<compile_context>
chip_gen: v7x
topology: tpu7x:2x2x1
jax: 0.10.0
libtpu: 0.0.40
codegen_flags: <defaults>
</compile_context>

<pallas_src>
import jax
import jax.numpy as jnp
from jax.experimental import pallas as pl
from jax.experimental.pallas import tpu as pltpu

# (fan_in, fan_out) of the four nn.Linear layers.
_LAYER_DIMS = [(100, 256), (256, 512), (512, 1024), (1024, 64 * 64 * 3)]
_K1_PAD = 128      # layer-1 contraction dim padded 100 -> 128 (zero rows/cols)
_TN_LAST = 3072    # layer-4 output-column tile width (12288 / 3072 = 4 tiles)


def _generator_kernel(z_ref, w1_ref, b1_ref, w2_ref, b2_ref,
                      w3_ref, b3_ref, w4_ref, s4_ref, b4_ref, o_ref):
    """Fused 4-layer MLP for one layer-4 output-column tile.

    Layers 1-3 weights are VMEM-resident (constant index_map => fetched once);
    recomputing them per tile costs ~1% of the HBM-bound wall-clock and keeps
    every grid step independent for the v7x 2-TensorCore split.
    """
    h = z_ref[...]                                               # (Bp,128) bf16

    # Layer 1: (Bp,128) @ (128,256) + b1, ReLU
    y = jnp.dot(h, w1_ref[...], preferred_element_type=jnp.float32) + b1_ref[...]
    h = jnp.maximum(y, 0.0).astype(jnp.bfloat16)

    # Layer 2: (Bp,256) @ (256,512) + b2, ReLU
    y = jnp.dot(h, w2_ref[...], preferred_element_type=jnp.float32) + b2_ref[...]
    h = jnp.maximum(y, 0.0).astype(jnp.bfloat16)

    # Layer 3: (Bp,512) @ (512,1024) + b3, ReLU
    y = jnp.dot(h, w3_ref[...], preferred_element_type=jnp.float32) + b3_ref[...]
    h = jnp.maximum(y, 0.0).astype(jnp.bfloat16)

    # Layer 4 (streamed contiguous int8 tile): dequant AFTER the dot via the
    # per-column scale on the f32 accumulator; int8->bf16 cast is exact.
    w4 = w4_ref[0].astype(jnp.bfloat16)                          # (1024, tn)
    y = jnp.dot(h, w4, preferred_element_type=jnp.float32)
    y = y * s4_ref[...] + b4_ref[...]
    o_ref[...] = jnp.tanh(y)


def _fused_generator(z_pad, params):
    """z_pad: (Bp, 128) bf16 -> (Bp, 12288) float32."""
    (w1, b1), (w2, b2), (w3, b3), (w4q, s4, b4) = params
    Bp = z_pad.shape[0]
    nt, K4, tn = w4q.shape                 # pre-tiled: (N//tn, 1024, tn) int8
    N = nt * tn
    assert tn % 128 == 0

    resident = lambda j: (0, 0)            # blocks that never change across grid
    col = lambda j: (0, j)                 # layer-4 bias/scale/output tiles

    return pl.pallas_call(
        _generator_kernel,
        out_shape=jax.ShapeDtypeStruct((Bp, N), jnp.float32),
        grid_spec=pltpu.PrefetchScalarGridSpec(
            num_scalar_prefetch=0,
            grid=(nt,),
            in_specs=[
                pl.BlockSpec((Bp, _K1_PAD), resident),       # z (resident)
                pl.BlockSpec(w1.shape, resident),            # (128, 256)  bf16
                pl.BlockSpec(b1.shape, resident),            # (1, 256)    f32
                pl.BlockSpec(w2.shape, resident),            # (256, 512)  bf16
                pl.BlockSpec(b2.shape, resident),            # (1, 512)    f32
                pl.BlockSpec(w3.shape, resident),            # (512, 1024) bf16
                pl.BlockSpec(b3.shape, resident),            # (1, 1024)   f32
                pl.BlockSpec((1, K4, tn), lambda j: (j, 0, 0)),  # contiguous int8 W4 tile
                pl.BlockSpec((1, tn), col),                  # per-column scales f32
                pl.BlockSpec((1, tn), col),                  # bias f32
            ],
            out_specs=pl.BlockSpec((Bp, tn), col),
        ),
        compiler_params=pltpu.CompilerParams(
            dimension_semantics=("parallel",),               # tiles independent (v7x 2-TC split)
            vmem_limit_bytes=48 * 1024 * 1024,               # headroom; < v7x 64 MiB physical
        ),
    )(z_pad, w1, b1, w2, b2, w3, b3, w4q, s4, b4)


# ---------------------------------------------------------------------------
# Parameters. Raw f32 params match nn.Linear init shapes; kernel params are the
# packed / quantized versions the pallas_call consumes.
# ---------------------------------------------------------------------------
def make_raw_params(key):
    raws = []
    for fan_in, fan_out in _LAYER_DIMS:
        key, wk, bk = jax.random.split(key, 3)
        bound = float(fan_in) ** -0.5
        w = jax.random.uniform(wk, (fan_in, fan_out), jnp.float32,
                               minval=-bound, maxval=bound)
        b = jax.random.uniform(bk, (1, fan_out), jnp.float32,
                               minval=-bound, maxval=bound)
        raws.append((w, b))
    return raws


def pack_generator_params(raws, tn=_TN_LAST):
    (w1, b1), (w2, b2), (w3, b3), (w4, b4) = raws

    # Layer 1: zero-pad contraction dim 100 -> 128; layers 1-3 bf16, f32 biases.
    w1p = jnp.pad(w1, ((0, _K1_PAD - w1.shape[0]), (0, 0))).astype(jnp.bfloat16)
    w2p = w2.astype(jnp.bfloat16)
    w3p = w3.astype(jnp.bfloat16)

    # Layer 4: symmetric per-output-column int8 quant + f32 scales, pre-tiled
    # as (N//tn, K4, tn) so each streamed block is one contiguous HBM run.
    K4, N = w4.shape
    assert N % tn == 0
    scale = jnp.maximum(jnp.max(jnp.abs(w4), axis=0, keepdims=True), 1e-12) / 127.0
    q = jnp.clip(jnp.round(w4 / scale), -127.0, 127.0).astype(jnp.int8)
    w4q = q.reshape(K4, N // tn, tn).transpose(1, 0, 2)          # (N//tn, K4, tn)

    return ((w1p, b1), (w2p, b2), (w3p, b3), (w4q, scale, b4))


def generator_forward(params, z):
    """z: (B, 100) float32  ->  (B, 3, 64, 64) float32 (NCHW)."""
    B, K = z.shape
    Bp = ((B + 15) // 16) * 16            # pad batch to bf16 sublane multiple
    z_pad = jnp.pad(z.astype(jnp.bfloat16), ((0, Bp - B), (0, _K1_PAD - K)))
    out = _fused_generator(z_pad, params)  # (Bp, 12288) f32
    return out[:B].reshape(-1, 3, 64, 64)


def reference_forward(raws, z):
    """Plain f32 JAX reference of the PyTorch module (for numerics check)."""
    h = z
    for i, (w, b) in enumerate(raws):
        h = h @ w + b
        h = jnp.maximum(h, 0.0) if i < 3 else jnp.tanh(h)
    return h.reshape(-1, 3, 64, 64)


if __name__ == "__main__":
    key = jax.random.PRNGKey(0)
    pkey, zkey = jax.random.split(key)

    raws = make_raw_params(pkey)
    params = pack_generator_params(raws)

    batch = 2
    z = jax.random.normal(zkey, (batch, 100), dtype=jnp.float32)

    out = jax.jit(generator_forward)(params, z)
    out = jax.block_until_ready(out)

    assert out.shape == (batch, 3, 64, 64), out.shape
    assert out.dtype == jnp.float32, out.dtype
    # Tanh output must lie in [-1, 1].
    assert bool(jnp.all(jnp.abs(out) <= 1.0 + 1e-6))

    # Numerics check vs. f32 reference (bf16 activations + int8 W4 quant):
    ref = reference_forward(raws, z)
    max_err = float(jnp.max(jnp.abs(out - ref)))
    assert max_err < 5e-2, f"max abs error vs f32 reference: {max_err}"

    print("KERNEL_OK")
</pallas_src>

<mosaic_0001>
module attributes {stable_mosaic.version = 11 : i64} {
  func.func @_generator_kernel(%arg0: i32, %arg1: memref<16x128xbf16, #tpu.memory_space<vmem>>, %arg2: memref<128x256xbf16, #tpu.memory_space<vmem>>, %arg3: memref<1x256xf32, #tpu.memory_space<vmem>>, %arg4: memref<256x512xbf16, #tpu.memory_space<vmem>>, %arg5: memref<1x512xf32, #tpu.memory_space<vmem>>, %arg6: memref<512x1024xbf16, #tpu.memory_space<vmem>>, %arg7: memref<1x1024xf32, #tpu.memory_space<vmem>>, %arg8: memref<1x1024x3072xi8, #tpu.memory_space<vmem>>, %arg9: memref<1x3072xf32, #tpu.memory_space<vmem>>, %arg10: memref<1x3072xf32, #tpu.memory_space<vmem>>, %arg11: memref<16x3072xf32, #tpu.memory_space<vmem>>) attributes {dimension_semantics = [#tpu.dimension_semantics<parallel>], iteration_bounds = array<i64: 4>, scalar_prefetch = 0 : i64, scratch_operands = 0 : i64, tpu.core_type = #tpu.core_type<tc>, window_params = [{pipeline_mode = #tpu.pipeline_mode<synchronous>, transform_indices = @transform_0, window_bounds = array<i64: 16, 128>}, {pipeline_mode = #tpu.pipeline_mode<synchronous>, transform_indices = @transform_1, window_bounds = array<i64: 128, 256>}, {pipeline_mode = #tpu.pipeline_mode<synchronous>, transform_indices = @transform_2, window_bounds = array<i64: 1, 256>}, {pipeline_mode = #tpu.pipeline_mode<synchronous>, transform_indices = @transform_3, window_bounds = array<i64: 256, 512>}, {pipeline_mode = #tpu.pipeline_mode<synchronous>, transform_indices = @transform_4, window_bounds = array<i64: 1, 512>}, {pipeline_mode = #tpu.pipeline_mode<synchronous>, transform_indices = @transform_5, window_bounds = array<i64: 512, 1024>}, {pipeline_mode = #tpu.pipeline_mode<synchronous>, transform_indices = @transform_6, window_bounds = array<i64: 1, 1024>}, {transform_indices = @transform_7, window_bounds = array<i64: 1, 1024, 3072>}, {transform_indices = @transform_8, window_bounds = array<i64: 1, 3072>}, {transform_indices = @transform_9, window_bounds = array<i64: 1, 3072>}, {transform_indices = @transform_10, window_bounds = array<i64: 16, 3072>}]} {
    %c0 = arith.constant 0 : index
    %c0_0 = arith.constant 0 : index
    %0 = vector.load %arg1[%c0, %c0_0] : memref<16x128xbf16, #tpu.memory_space<vmem>>, vector<16x128xbf16>
    %c0_1 = arith.constant 0 : index
    %c0_2 = arith.constant 0 : index
    %1 = vector.load %arg2[%c0_1, %c0_2] : memref<128x256xbf16, #tpu.memory_space<vmem>>, vector<128x256xbf16>
    %cst = arith.constant dense<0.000000e+00> : vector<16x256xf32>
    %2 = tpu.matmul %0, %1, %cst {dimension_numbers = #tpu.dot_dimension_numbers<[1], [0], [0], [1], [0, 0, 1, 1], [], []>} : vector<16x128xbf16>, vector<128x256xbf16>, vector<16x256xf32> -> vector<16x256xf32>
    %c0_3 = arith.constant 0 : index
    %c0_4 = arith.constant 0 : index
    %3 = vector.load %arg3[%c0_3, %c0_4] : memref<1x256xf32, #tpu.memory_space<vmem>>, vector<1x256xf32>
    %4 = vector.broadcast %3 : vector<1x256xf32> to vector<16x256xf32>
    %5 = arith.addf %2, %4 : vector<16x256xf32>
    %cst_5 = arith.constant 0.000000e+00 : f32
    %6 = vector.broadcast %cst_5 : f32 to vector<16x256xf32>
    %7 = arith.maximumf %5, %6 : vector<16x256xf32>
    %8 = arith.truncf %7 : vector<16x256xf32> to vector<16x256xbf16>
    %c0_6 = arith.constant 0 : index
    %c0_7 = arith.constant 0 : index
    %9 = vector.load %arg4[%c0_6, %c0_7] : memref<256x512xbf16, #tpu.memory_space<vmem>>, vector<256x512xbf16>
    %cst_8 = arith.constant dense<0.000000e+00> : vector<16x512xf32>
    %10 = tpu.matmul %8, %9, %cst_8 {dimension_numbers = #tpu.dot_dimension_numbers<[1], [0], [0], [1], [0, 0, 1, 1], [], []>} : vector<16x256xbf16>, vector<256x512xbf16>, vector<16x512xf32> -> vector<16x512xf32>
    %c0_9 = arith.constant 0 : index
    %c0_10 = arith.constant 0 : index
    %11 = vector.load %arg5[%c0_9, %c0_10] : memref<1x512xf32, #tpu.memory_space<vmem>>, vector<1x512xf32>
    %12 = vector.broadcast %11 : vector<1x512xf32> to vector<16x512xf32>
    %13 = arith.addf %10, %12 : vector<16x512xf32>
    %cst_11 = arith.constant 0.000000e+00 : f32
    %14 = vector.broadcast %cst_11 : f32 to vector<16x512xf32>
    %15 = arith.maximumf %13, %14 : vector<16x512xf32>
    %16 = arith.truncf %15 : vector<16x512xf32> to vector<16x512xbf16>
    %c0_12 = arith.constant 0 : index
    %c0_13 = arith.constant 0 : index
    %17 = vector.load %arg6[%c0_12, %c0_13] : memref<512x1024xbf16, #tpu.memory_space<vmem>>, vector<512x1024xbf16>
    %cst_14 = arith.constant dense<0.000000e+00> : vector<16x1024xf32>
    %18 = tpu.matmul %16, %17, %cst_14 {dimension_numbers = #tpu.dot_dimension_numbers<[1], [0], [0], [1], [0, 0, 1, 1], [], []>} : vector<16x512xbf16>, vector<512x1024xbf16>, vector<16x1024xf32> -> vector<16x1024xf32>
    %c0_15 = arith.constant 0 : index
    %c0_16 = arith.constant 0 : index
    %19 = vector.load %arg7[%c0_15, %c0_16] : memref<1x1024xf32, #tpu.memory_space<vmem>>, vector<1x1024xf32>
    %20 = vector.broadcast %19 : vector<1x1024xf32> to vector<16x1024xf32>
    %21 = arith.addf %18, %20 : vector<16x1024xf32>
    %cst_17 = arith.constant 0.000000e+00 : f32
    %22 = vector.broadcast %cst_17 : f32 to vector<16x1024xf32>
    %23 = arith.maximumf %21, %22 : vector<16x1024xf32>
    %24 = arith.truncf %23 : vector<16x1024xf32> to vector<16x1024xbf16>
    %c0_18 = arith.constant 0 : index
    %c0_19 = arith.constant 0 : index
    %c0_20 = arith.constant 0 : index
    %25 = vector.load %arg8[%c0_18, %c0_19, %c0_20] : memref<1x1024x3072xi8, #tpu.memory_space<vmem>>, vector<1x1024x3072xi8>
    %26 = vector.shape_cast %25 : vector<1x1024x3072xi8> to vector<1024x3072xi8>
    %27 = arith.sitofp %26 : vector<1024x3072xi8> to vector<1024x3072xbf16>
    %cst_21 = arith.constant dense<0.000000e+00> : vector<16x3072xf32>
    %28 = tpu.matmul %24, %27, %cst_21 {dimension_numbers = #tpu.dot_dimension_numbers<[1], [0], [0], [1], [0, 0, 1, 1], [], []>} : vector<16x1024xbf16>, vector<1024x3072xbf16>, vector<16x3072xf32> -> vector<16x3072xf32>
    %c0_22 = arith.constant 0 : index
    %c0_23 = arith.constant 0 : index
    %29 = vector.load %arg9[%c0_22, %c0_23] : memref<1x3072xf32, #tpu.memory_space<vmem>>, vector<1x3072xf32>
    %30 = vector.broadcast %29 : vector<1x3072xf32> to vector<16x3072xf32>
    %31 = arith.mulf %28, %30 : vector<16x3072xf32>
    %c0_24 = arith.constant 0 : index
    %c0_25 = arith.constant 0 : index
    %32 = vector.load %arg10[%c0_24, %c0_25] : memref<1x3072xf32, #tpu.memory_space<vmem>>, vector<1x3072xf32>
    %33 = vector.broadcast %32 : vector<1x3072xf32> to vector<16x3072xf32>
    %34 = arith.addf %31, %33 : vector<16x3072xf32>
    %35 = math.tanh %34 : vector<16x3072xf32>
    %c0_26 = arith.constant 0 : index
    %c0_27 = arith.constant 0 : index
    %36 = vector.load %arg11[%c0_26, %c0_27] : memref<16x3072xf32, #tpu.memory_space<vmem>>, vector<16x3072xf32>
    tpu.vector_store %arg11[%c0_26, %c0_27], %35 {strides = array<i32>} : memref<16x3072xf32, #tpu.memory_space<vmem>>, vector<16x3072xf32>,
    return
  }
  func.func @transform_0(%arg0: i32) -> (i32, i32) {
    %c0_i32 = arith.constant 0 : i32
    %c0_i32_0 = arith.constant 0 : i32
    %c0_i32_1 = arith.constant 0 : i32
    return %c0_i32, %c0_i32_0 : i32, i32
  }
  func.func @transform_1(%arg0: i32) -> (i32, i32) {
    %c0_i32 = arith.constant 0 : i32
    %c0_i32_0 = arith.constant 0 : i32
    %c0_i32_1 = arith.constant 0 : i32
    return %c0_i32, %c0_i32_0 : i32, i32
  }
  func.func @transform_2(%arg0: i32) -> (i32, i32) {
    %c0_i32 = arith.constant 0 : i32
    %c0_i32_0 = arith.constant 0 : i32
    %c0_i32_1 = arith.constant 0 : i32
    return %c0_i32, %c0_i32_0 : i32, i32
  }
  func.func @transform_3(%arg0: i32) -> (i32, i32) {
    %c0_i32 = arith.constant 0 : i32
    %c0_i32_0 = arith.constant 0 : i32
    %c0_i32_1 = arith.constant 0 : i32
    return %c0_i32, %c0_i32_0 : i32, i32
  }
  func.func @transform_4(%arg0: i32) -> (i32, i32) {
    %c0_i32 = arith.constant 0 : i32
    %c0_i32_0 = arith.constant 0 : i32
    %c0_i32_1 = arith.constant 0 : i32
    return %c0_i32, %c0_i32_0 : i32, i32
  }
  func.func @transform_5(%arg0: i32) -> (i32, i32) {
    %c0_i32 = arith.constant 0 : i32
    %c0_i32_0 = arith.constant 0 : i32
    %c0_i32_1 = arith.constant 0 : i32
    return %c0_i32, %c0_i32_0 : i32, i32
  }
  func.func @transform_6(%arg0: i32) -> (i32, i32) {
    %c0_i32 = arith.constant 0 : i32
    %c0_i32_0 = arith.constant 0 : i32
    %c0_i32_1 = arith.constant 0 : i32
    return %c0_i32, %c0_i32_0 : i32, i32
  }
  func.func @transform_7(%arg0: i32) -> (i32, i32, i32) {
    %c0_i32 = arith.constant 0 : i32
    %c0_i32_0 = arith.constant 0 : i32
    %c0_i32_1 = arith.constant 0 : i32
    return %arg0, %c0_i32, %c0_i32_0 : i32, i32, i32
  }
  func.func @transform_8(%arg0: i32) -> (i32, i32) {
    %c0_i32 = arith.constant 0 : i32
    %c0_i32_0 = arith.constant 0 : i32
    return %c0_i32, %arg0 : i32, i32
  }
  func.func @transform_9(%arg0: i32) -> (i32, i32) {
    %c0_i32 = arith.constant 0 : i32
    %c0_i32_0 = arith.constant 0 : i32
    return %c0_i32, %arg0 : i32, i32
  }
  func.func @transform_10(%arg0: i32) -> (i32, i32) {
    %c0_i32 = arith.constant 0 : i32
    %c0_i32_0 = arith.constant 0 : i32
    return %c0_i32, %arg0 : i32, i32
  }
}

</mosaic_0001>

<bundles_post_ra>
// kernel: generator_forward.1
= control target key start
LH: loop header
LB: loop body
LE: loop exit
PB: predicated region body
PF: predicated region fallthrough
CT: control target
= control target key end

     0   :  { %s11082_s0 = inlined_call_operand.vmem [shape: bf16[16,128], index: 0, kind: input, shape index: {}]   ;;  %s11083_s1 = inlined_call_operand.hbm [shape: bf16[128,256], index: 1, kind: input, shape index: {}]   ;;  %s11084_s2 = inlined_call_operand.hbm [shape: f32[1,256], index: 2, kind: input, shape index: {}]   ;;  %s11085_s3 = inlined_call_operand.hbm [shape: bf16[256,512], index: 3, kind: input, shape index: {}]   ;;  %s11086_s4 = inlined_call_operand.hbm [shape: f32[1,512], index: 4, kind: input, shape index: {}]   ;;  %s11087_s5 = inlined_call_operand.hbm [shape: bf16[512,1024], index: 5, kind: input, shape index: {}]   ;;  %s11088_s6 = inlined_call_operand.hbm [shape: f32[1,1024], index: 6, kind: input, shape index: {}]   ;;  %s11089_s7 = inlined_call_operand.hbm [shape: s8[4,1024,3072], index: 7, kind: input, shape index: {}]   ;;  %s11090_s8 = inlined_call_operand.hbm [shape: f32[1,12288], index: 8, kind: input, shape index: {}]   ;;  %s11091_s9 = inlined_call_operand.hbm [shape: f32[1,12288], index: 9, kind: input, shape index: {}]   ;;  %s11092_s10 = inlined_call_operand.vmem [shape: f32[16,12288], index: 10, kind: output, shape index: {}]  }
   0x1   :  { %11114 = sst [smem:[#allocation26_spill]] %s11082_s0 }
   0x2   :  { %11115 = sst [smem:[#allocation27_spill]] %s11083_s1 }
   0x3   :  { %11116 = sst [smem:[#allocation28_spill]] %s11084_s2 }
   0x4   :  { %11117 = sst [smem:[#allocation29_spill]] %s11085_s3 }
   0x5   :  { %11118 = sst [smem:[#allocation30_spill]] %s11086_s4 }
   0x6   :  { %11119 = sst [smem:[#allocation31_spill]] %s11089_s7 }
   0x7   :  { %11120 = sst [smem:[#allocation32_spill]] %s11090_s8 }
   0x8   :  { %11121 = sst [smem:[#allocation33_spill]] %s11092_s10 }
   0x9   :  { %15 = vsyncpa [#allocation3], 0 }
   0xa   :  { %16 = vsyncpa [#allocation5], 0 }
   0xb   :  { %17 = vsyncpa [#allocation8], 0 }
   0xc   :  { %18 = vsyncpa [#allocation11], 0  ;;  %s9502_s13 = smov 0   ;;  %s9504_s14 = smov 0  }
   0xd   :  { %s9506_s15 = smov 0   ;;  %s9508_s16 = smov 0  }
   0xe LB: > { %11122 = sst [smem:[#allocation21_spill]] %s9423_s15  ;;  %s9429_s17 = smov [#allocation2]   ;;  %s9427_s16 = sphi %s9508_s16, %s11165_s16   ;;  %s9423_s15 = sphi %s9506_s15, %s11167_s15   ;;  %s9419_s14 = sphi %s9504_s14, %s11169_s14   ;;  %s9415_s13 = sphi %s9502_s13, %s11168_s13  }
   0xf   : > { %s295_s18 = sshll.u32 %s9429_s17, 4  ;;  %s9523_s19 = sadd.s32 4294967295, %s9427_s16   ;;  %s296_s18 = int_to_ptr.vmem [resolvable:$true] %s295_s18 }
  0x10   : > { %p8235_p0 = scmp.ge.s32.totalorder %s9427_s16, 1  ;;  %p11093_p1 = scmp.eq.s32.totalorder %s9523_s19, 0 }
  0x11   : > { %p280_p2 = scmp.lt.s32.totalorder %s9427_s16, 5  ;;  %s9541_s22 = sadd.s32 1, %s9427_s16  }
  0x12   : > { %11125 = sst [smem:[#allocation22_spill]] %s9541_s22 }
  0x13   : > { %p9528_p3 = pnand %p8235_p0, %p280_p2  ;;  %s11126_s1 = sld [smem:[#allocation27_spill]] }
  0x15   : > { %s11123_s20 = scalar_select %p9528_p3, 1, 0 }
  0x16   : > { %p8809_p4 = pneg %p9528_p3 }
  0x18   : > { %p9536_p5 = pnand %p8809_p4, %p11093_p1 }
  0x19   : > { %s9119_s25 = scalar_lea.hbm %s11126_s1, 2048 }
  0x1a   : > { %s11124_s21 = scalar_select %p9536_p5, 1, 0 }
  0x1b   : > { %p9120_p6 = scmp.ne.s32.totalorder %s11126_s1, %s9119_s25  ;;  %p9551_p7 = pneg %p9536_p5 }
  0x1c   : > { %p9126_p10 = scmp.lt.u32.totalorder %s9119_s25, %s11126_s1 }
  0x1d   : > { %s11127_s28 = scalar_select %p9551_p7, 1, 0 }
  0x1e   : > { %p9122_p8 = pnand %p9551_p7, %p9120_p6 }
  0x20   : > { %p9123_p9 = pneg %p9122_p8 }
  0x22   : > { %p9128_p11 = pnand %p9126_p10, %p9123_p9 }
  0x24   : > { %9131 = shalt.err (!%p9128_p11)
}
  0x25   : > { %s9132_s11 = scalar_lea.vmem %s296_s18, 2048  ;;  %p9140_p2 = scmp.lt.s32.totalorder %s296_s18, %s296_s18 }
  0x26   : > { %p9133_p12 = scmp.ne.s32.totalorder %s296_s18, %s9132_s11  ;;  %p9141_p4 = scmp.lt.s32.totalorder %s9132_s11, %s9132_s11 }
  0x28   : > { %p9135_p13 = pnand %p9133_p12, %p9551_p7  ;;  %p9142_p1 = por %p9141_p4, %p9140_p2 }
  0x2a   : > { %p9136_p0 = pneg %p9135_p13 }
  0x2c   : > { %p9143_p3 = pnand %p9142_p1, %p9136_p0 }
  0x2e   : > { %9146 = shalt.err (!%p9143_p3)
}
  0x2f   : > { %s9430_s12 = smov 128   ;;  %s9431_s17 = smov 8  }
  0x30   : > { %8812 = dma.hbm_to_vmem [thread:$0]  (!%p9536_p5), %s11126_s1, 2048, %s296_s18, [#allocation3], %s9430_s12, %s9430_s12, %s9431_s17  }
  0x31   : > { %s175_s25 = ssub.s32 %s9427_s16, %s9541_s22  ;;  %s178_s26 = sadd.s32 1, %s9423_s15 }
  0x32   : > { %p176_p1 = scmp.eq.s32.totalorder %s175_s25, 0  ;;  %p185_p3 = scmp.ne.s32.totalorder %s9423_s15, %s9419_s14 }
  0x33   : > { %p186_p6 = scmp.eq.s32.totalorder %s9427_s16, 0  ;;  %p191_p8 = scmp.ne.s32.totalorder %s9419_s14, %s9415_s13 }
  0x34   : > { %s9576_s27 = scalar_select %p176_p1, %s9423_s15, %s178_s26  }
  0x35   : > { %p187_p9 = por %p186_p6, %p185_p3  ;;  %p11129_p10 = scmp.eq.s32.totalorder %s9523_s19, 0 }
  0x36   : > { %11128 = sst [smem:[#allocation23_spill]] %s9576_s27  ;;  %p267_p12 = scmp.eq.s32.totalorder %s9523_s19, 3 }
  0x37   : > { %p9580_p11 = por %p11129_p10, %p191_p8  ;;  %p8844_p13 = scmp.lt.s32.totalorder %s9427_s16, 4 }
  0x38   : > { %s368_s30 = sand.u32 1, %s9427_s16   ;;  %s11095_s11 = sand.u32 1, %s9423_s15  }
  0x39   : > { %s11130_s29 = scalar_select %p9580_p11, 1, 0 }
  0x3a   : > { %p9588_p0 = por %p267_p12, %p185_p3  ;;  %s8772_s12 = smul.u32 6144, %s11095_s11 }
  0x3b   : > { %11131 = sst [smem:[#allocation24_spill]] %s11130_s29  ;;  %p9594_p2 = pnand %p8844_p13, %p187_p9 }
  0x3c   : > { %s11132_s18 = scalar_select %p9588_p0, 1, 0 }
  0x3d   : > { %s11134_s13 = scalar_select %p9594_p2, 1, 0 }
  0x3e   : > { %11133 = sst [smem:[#allocation25_spill]] %s11132_s18  ;;  %s8773_s17 = smul.u32 98304, %s9427_s16 }
  0x3f   : > { %s11135_s7 = sld [smem:[#allocation31_spill]]  ;;  %s372_s26 = scalar_lea.vmem [#allocation12], %s8772_s12 }
  0x40   : > { %s379_s1 = sshll.u32 %s372_s26, 4  ;;  %s9606_s11 = scalar_lea.sflag [#allocation3], %s368_s30  ;;  %s9604_s1 = int_to_ptr.vmem [resolvable:$true] %s379_s1 }
  0x41   : > { %p9612_p1 = pneg %p9594_p2 }
  0x43   : > { %s11136_s22 = scalar_select %p9612_p1, 1, 0 }
  0x45   : > { %s9602_s25 = scalar_lea.hbm %s11135_s7, %s8773_s17  ;;  %s9152_s12 = scalar_lea.hbm %s11135_s7, 393216 }
  0x46   : > { %s9147_s27 = scalar_lea.hbm %s9602_s25, 98304  ;;  %p9153_p8 = scmp.lt.u32.totalorder %s9602_s25, %s11135_s7 }
  0x47   : > { %p9148_p4 = scmp.ne.s32.totalorder %s9602_s25, %s9147_s27  ;;  %p9154_p9 = scmp.lt.u32.totalorder %s9152_s12, %s9147_s27 }
  0x48   : > { %p9156_p12 = scmp.lt.u32.totalorder %s9147_s27, %s9602_s25 }
  0x49   : > { %p9150_p3 = pnand %p9612_p1, %p9148_p4  ;;  %p9155_p10 = por %p9154_p9, %p9153_p8 }
  0x4b   : > { %p9151_p6 = pneg %p9150_p3  ;;  %p9157_p13 = por %p9156_p12, %p9155_p10 }
  0x4d   : > { %p9158_p0 = pnand %p9157_p13, %p9151_p6 }
  0x4f   : > { %9161 = shalt.err (!%p9158_p0)
}
  0x50   : > { %s9162_s30 = scalar_lea.vmem %s9604_s1, 98304  ;;  %s9432_s17 = smov [#allocation12]  }
  0x51   : > { %p9163_p4 = scmp.ne.s32.totalorder %s9604_s1, %s9162_s30  ;;  %s9167_s23 = sshll.u32 %s9432_s17, 4  ;;  %s9168_s23 = int_to_ptr.vmem [resolvable:$false] %s9167_s23 }
  0x52   : > { %s9169_s24 = scalar_lea.vmem %s9168_s23, 196608  ;;  %p9170_p5 = scmp.lt.s32.totalorder %s9604_s1, %s9168_s23 }
  0x53   : > { %p9165_p3 = pnand %p9163_p4, %p9612_p1  ;;  %p9171_p7 = scmp.lt.s32.totalorder %s9169_s24, %s9162_s30 }
  0x55   : > { %p9166_p11 = pneg %p9165_p3  ;;  %p9172_p8 = por %p9171_p7, %p9170_p5 }
  0x57   : > { %p9173_p9 = pnand %p9172_p8, %p9166_p11 }
  0x59   : > { %9176 = shalt.err (!%p9173_p9)
}
  0x5a   : > { %s9433_s27 = smov 3072   ;;  %s9434_s12 = smov 192  }
  0x5b   : > { %8831 = dma.hbm_to_vmem [thread:$0]  (!%p9594_p2), %s9602_s25, 98304, %s9604_s1, %s9606_s11, %s9433_s27, %s9433_s27, %s9434_s12  }
  0x5c   : > { %s9435_s26 = smov [#allocation4]   ;;  %s9436_s10 = smov [#allocation7]  }
  0x5d   : > { %s309_s7 = sshll.u32 %s9435_s26, 4  ;;  %s333_s17 = sshll.u32 %s9436_s10, 4  ;;  %s310_s7 = int_to_ptr.vmem [resolvable:$true] %s309_s7  ;;  %s9636_s17 = int_to_ptr.vmem [resolvable:$true] %s333_s17 }
  0x5e   : > { %s11137_s2 = sld [smem:[#allocation28_spill]]  ;;  %p11138_p7 = scmp.ne.s32.totalorder %s11127_s28, 0 }
  0x64   : > { %s9177_s24 = scalar_lea.hbm %s11137_s2, 32 }
  0x65   : > { %p9178_p5 = scmp.ne.s32.totalorder %s11137_s2, %s9177_s24  ;;  %p9184_p6 = scmp.lt.u32.totalorder %s9177_s24, %s11137_s2 }
  0x67   : > { %p9180_p11 = pnand %p9178_p5, %p11138_p7 }
  0x69   : > { %p9181_p0 = pneg %p9180_p11 }
  0x6b   : > { %p9186_p10 = pnand %p9184_p6, %p9181_p0 }
  0x6d   : > { %9189 = shalt.err (!%p9186_p10)
}
  0x6e   : > { %s9190_s10 = scalar_lea.vmem %s310_s7, 32  ;;  %p9198_p3 = scmp.lt.s32.totalorder %s310_s7, %s310_s7 }
  0x6f   : > { %p9191_p12 = scmp.ne.s32.totalorder %s310_s7, %s9190_s10  ;;  %p9199_p8 = scmp.lt.s32.totalorder %s9190_s10, %s9190_s10 }
  0x71   : > { %p9193_p13 = pnand %p9191_p12, %p11138_p7  ;;  %p9200_p9 = por %p9199_p8, %p9198_p3 }
  0x73   : > { %p9194_p4 = pneg %p9193_p13 }
  0x75   : > { %p9201_p2 = pnand %p9200_p9, %p9194_p4 }
  0x77   : > { %9204 = shalt.err (!%p9201_p2)
}
  0x78   : > { %p11139_p5 = scmp.ne.s32.totalorder %s11124_s21, 0  ;;  %s11140_s4 = sld [smem:[#allocation30_spill]] }
  0x7a   : > { %8815 = dma.hbm_to_vmem [thread:$0]  (!%p11139_p5), %s11137_s2, 32, %s310_s7, [#allocation5]  }
  0x7e   : > { %s9205_s27 = scalar_lea.hbm %s11140_s4, 64 }
  0x7f   : > { %p9206_p11 = scmp.ne.s32.totalorder %s11140_s4, %s9205_s27  ;;  %p9212_p2 = scmp.lt.u32.totalorder %s9205_s27, %s11140_s4 }
  0x81   : > { %p9208_p0 = pnand %p9206_p11, %p11138_p7 }
  0x83   : > { %p9209_p6 = pneg %p9208_p0 }
  0x85   : > { %p9214_p10 = pnand %p9212_p2, %p9209_p6 }
  0x87   : > { %9217 = shalt.err (!%p9214_p10)
}
  0x88   : > { %s9218_s7 = scalar_lea.vmem %s9636_s17, 64  ;;  %p9226_p3 = scmp.lt.s32.totalorder %s9636_s17, %s9636_s17 }
  0x89   : > { %p9219_p12 = scmp.ne.s32.totalorder %s9636_s17, %s9218_s7  ;;  %p9227_p8 = scmp.lt.s32.totalorder %s9218_s7, %s9218_s7 }
  0x8b   : > { %p9221_p13 = pnand %p9219_p12, %p11138_p7  ;;  %p9228_p9 = por %p9227_p8, %p9226_p3 }
  0x8d   : > { %p9222_p4 = pneg %p9221_p13 }
  0x8f   : > { %p9229_p11 = pnand %p9228_p9, %p9222_p4 }
  0x91   : > { %9232 = shalt.err (!%p9229_p11)
}
  0x92   : > { %8821 = dma.hbm_to_vmem [thread:$0]  (!%p11139_p5), %s11140_s4, 64, %s9636_s17, [#allocation8]  }
  0x93   : > { %s11141_s10 = sand.u32 1, %s9423_s15   ;;  %s11110_s18 = smul.u32 384, %s9427_s16 }
  0x94   : > { %s9681_s0 = smul.u32 24, %s11141_s10  ;;  %s9437_s29 = smov [#allocation6]  }
  0x95   : > { %s319_s25 = sshll.u32 %s9437_s29, 4  ;;  %s11142_s8 = sld [smem:[#allocation32_spill]]  ;;  %s9684_s25 = int_to_ptr.vmem [resolvable:$true] %s319_s25 }
  0x96   : > { %s393_s17 = scalar_lea.vmem [#allocation13], %s9681_s0 }
  0x97   : > { %s401_s30 = sshll.u32 %s393_s17, 4  ;;  %s402_s30 = int_to_ptr.vmem [resolvable:$true] %s401_s30 }
  0x9b   : > { %s9691_s26 = scalar_lea.hbm %s11142_s8, %s11110_s18  ;;  %s9238_s1 = scalar_lea.hbm %s11142_s8, 1536 }
  0x9c   : > { %s9233_s23 = scalar_lea.hbm %s9691_s26, 384  ;;  %p9239_p10 = scmp.lt.u32.totalorder %s9691_s26, %s11142_s8 }
  0x9d   : > { %p9234_p0 = scmp.ne.s32.totalorder %s9691_s26, %s9233_s23  ;;  %p9240_p12 = scmp.lt.u32.totalorder %s9238_s1, %s9233_s23 }
  0x9e   : > { %p9242_p4 = scmp.lt.u32.totalorder %s9233_s23, %s9691_s26 }
  0x9f   : > { %p9236_p6 = pnand %p9234_p0, %p9612_p1  ;;  %p9241_p13 = por %p9240_p12, %p9239_p10 }
  0xa1   : > { %p9237_p2 = pneg %p9236_p6  ;;  %p9243_p3 = por %p9242_p4, %p9241_p13 }
  0xa3   : > { %p9244_p8 = pnand %p9243_p3, %p9237_p2 }
  0xa5   : > { %9247 = shalt.err (!%p9244_p8)
}
  0xa6   : > { %s9248_s27 = scalar_lea.vmem %s402_s30, 384  ;;  %s9438_s12 = smov [#allocation13]  }
  0xa7   : > { %p9249_p9 = scmp.ne.s32.totalorder %s402_s30, %s9248_s27  ;;  %s9253_s17 = sshll.u32 %s9438_s12, 4  ;;  %s9254_s17 = int_to_ptr.vmem [resolvable:$false] %s9253_s17 }
  0xa8   : > { %s9255_s7 = scalar_lea.vmem %s9254_s17, 768  ;;  %p9256_p6 = scmp.lt.s32.totalorder %s402_s30, %s9254_s17 }
  0xa9   : > { %p9251_p11 = pnand %p9249_p9, %p9612_p1  ;;  %p9257_p5 = scmp.lt.s32.totalorder %s9255_s7, %s9248_s27 }
  0xab   : > { %p9252_p0 = pneg %p9251_p11  ;;  %p9258_p7 = por %p9257_p5, %p9256_p6 }
  0xad   : > { %p9259_p10 = pnand %p9258_p7, %p9252_p0 }
  0xaf   : > { %9262 = shalt.err (!%p9259_p10)
}
  0xb0   : > { %p11143_p12 = scmp.ne.s32.totalorder %s11134_s13, 0  ;;  %s11144_s3 = sld [smem:[#allocation29_spill]] }
  0xb1   : > { %p11145_p13 = scmp.ne.s32.totalorder %s11127_s28, 0 }
  0xb2   : > { %8834 = dma.hbm_to_vmem [thread:$0]  (!%p11143_p12), %s9691_s26, 384, %s402_s30, %s9606_s11  }
  0xb6   : > { %s9263_s1 = scalar_lea.hbm %s11144_s3, 8192 }
  0xb7   : > { %p9264_p2 = scmp.ne.s32.totalorder %s11144_s3, %s9263_s1  ;;  %p9270_p7 = scmp.lt.u32.totalorder %s9263_s1, %s11144_s3 }
  0xb9   : > { %p9266_p4 = pnand %p9264_p2, %p11145_p13 }
  0xbb   : > { %p9267_p3 = pneg %p9266_p4 }
  0xbd   : > { %p9272_p5 = pnand %p9270_p7, %p9267_p3 }
  0xbf   : > { %9275 = shalt.err (!%p9272_p5)
}
  0xc0   : > { %s9276_s26 = scalar_lea.vmem %s9684_s25, 8192  ;;  %p9284_p0 = scmp.lt.s32.totalorder %s9684_s25, %s9684_s25 }
  0xc1   : > { %p9277_p8 = scmp.ne.s32.totalorder %s9684_s25, %s9276_s26  ;;  %p9285_p6 = scmp.lt.s32.totalorder %s9276_s26, %s9276_s26 }
  0xc3   : > { %p9279_p9 = pnand %p9277_p8, %p11145_p13  ;;  %p9286_p10 = por %p9285_p6, %p9284_p0 }
  0xc5   : > { %p9280_p11 = pneg %p9279_p9 }
  0xc7   : > { %p9287_p2 = pnand %p9286_p10, %p9280_p11 }
  0xc9   : > { %9290 = shalt.err (!%p9287_p2)
}
  0xca   : > { %s9439_s30 = smov 256   ;;  %s9440_s17 = smov 16  }
  0xcb   : > { %p11146_p4 = scmp.ne.s32.totalorder %s11124_s21, 0  ;;  %s9441_s24 = smov [#allocation9]  }
  0xcc   : > { %s343_s1 = sshll.u32 %s9441_s24, 4  ;;  %s9291_s27 = scalar_lea.hbm %s11087_s5, 32768  ;;  %s344_s1 = int_to_ptr.vmem [resolvable:$true] %s343_s1 }
  0xcd   : > { %8818 = dma.hbm_to_vmem [thread:$0]  (!%p11146_p4), %s11144_s3, 8192, %s9684_s25, [#allocation5], %s9439_s30, %s9439_s30, %s9440_s17  }
  0xce   : > { %p9292_p3 = scmp.ne.s32.totalorder %s11087_s5, %s9291_s27  ;;  %p9298_p8 = scmp.lt.u32.totalorder %s9291_s27, %s11087_s5 }
  0xd0   : > { %p9294_p7 = pnand %p9292_p3, %p11145_p13 }
  0xd2   : > { %p9295_p5 = pneg %p9294_p7 }
  0xd4   : > { %p9300_p9 = pnand %p9298_p8, %p9295_p5 }
  0xd6   : > { %9303 = shalt.err (!%p9300_p9)
}
  0xd7   : > { %s9304_s25 = scalar_lea.vmem %s344_s1, 32768  ;;  %p9312_p10 = scmp.lt.s32.totalorder %s344_s1, %s344_s1 }
  0xd8   : > { %p9305_p11 = scmp.ne.s32.totalorder %s344_s1, %s9304_s25  ;;  %p9313_p2 = scmp.lt.s32.totalorder %s9304_s25, %s9304_s25 }
  0xda   : > { %p9307_p0 = pnand %p9305_p11, %p11145_p13  ;;  %p9314_p12 = por %p9313_p2, %p9312_p10 }
  0xdc   : > { %p9308_p6 = pneg %p9307_p0 }
  0xde   : > { %p9315_p1 = pnand %p9314_p12, %p9308_p6 }
  0xe0   : > { %9318 = shalt.err (!%p9315_p1)
}
  0xe1   : > { %s9442_s30 = smov 512   ;;  %s9443_s2 = smov 32  }
  0xe2   : > { %8824 = dma.hbm_to_vmem [thread:$0]  (!%p11146_p4), %s11087_s5, 32768, %s344_s1, [#allocation8], %s9442_s30, %s9442_s30, %s9443_s2  }
  0xe3   : > { %s9444_s7 = smov [#allocation10]   ;;  %s11147_s24 = smul.u32 384, %s9427_s16 }
  0xe4   : > { %s357_s23 = sshll.u32 %s9444_s7, 4  ;;  %s412_s12 = scalar_lea.vmem [#allocation14], %s9681_s0  ;;  %s358_s23 = int_to_ptr.vmem [resolvable:$true] %s357_s23 }
  0xe5   : > { %s9758_s27 = scalar_lea.hbm %s11091_s9, %s11147_s24  ;;  %s420_s26 = sshll.u32 %s412_s12, 4  ;;  %s421_s26 = int_to_ptr.vmem [resolvable:$true] %s420_s26 }
  0xe6   : > { %s9319_s4 = scalar_lea.hbm %s11088_s6, 128 }
  0xe7   : > { %p9320_p1 = scmp.ne.s32.totalorder %s11088_s6, %s9319_s4  ;;  %p9326_p7 = scmp.lt.u32.totalorder %s9319_s4, %s11088_s6 }
  0xe9   : > { %p9322_p12 = pnand %p9320_p1, %p11145_p13 }
  0xeb   : > { %p9323_p3 = pneg %p9322_p12 }
  0xed   : > { %p9328_p5 = pnand %p9326_p7, %p9323_p3 }
  0xef   : > { %9331 = shalt.err (!%p9328_p5)
}
  0xf0   : > { %s9332_s30 = scalar_lea.vmem %s358_s23, 128  ;;  %p9340_p0 = scmp.lt.s32.totalorder %s358_s23, %s358_s23 }
  0xf1   : > { %p9333_p8 = scmp.ne.s32.totalorder %s358_s23, %s9332_s30  ;;  %p9341_p6 = scmp.lt.s32.totalorder %s9332_s30, %s9332_s30 }
  0xf3   : > { %p9335_p9 = pnand %p9333_p8, %p11145_p13  ;;  %p9342_p10 = por %p9341_p6, %p9340_p0 }
  0xf5   : > { %p9336_p11 = pneg %p9335_p9 }
  0xf7   : > { %p9343_p2 = pnand %p9342_p10, %p9336_p11 }
  0xf9   : > { %9346 = shalt.err (!%p9343_p2)
}
  0xfa   : > { %8827 = dma.hbm_to_vmem [thread:$0]  (!%p11146_p4), %s11088_s6, 128, %s358_s23, [#allocation11]  }
  0xfb   : > { %s9347_s4 = scalar_lea.hbm %s9758_s27, 384  ;;  %p11148_p1 = scmp.ne.s32.totalorder %s11136_s22, 0 }
  0xfc   : > { %p9348_p13 = scmp.ne.s32.totalorder %s9758_s27, %s9347_s4  ;;  %s9352_s0 = scalar_lea.hbm %s11091_s9, 1536 }
  0xfd   : > { %p9353_p7 = scmp.lt.u32.totalorder %s9758_s27, %s11091_s9  ;;  %p9354_p5 = scmp.lt.u32.totalorder %s9352_s0, %s9347_s4 }
  0xfe   : > { %p9350_p12 = pnand %p9348_p13, %p11148_p1  ;;  %p9356_p9 = scmp.lt.u32.totalorder %s9347_s4, %s9758_s27 }
  0xff   : > { %p9355_p8 = por %p9354_p5, %p9353_p7 }
 0x100   : > { %p9351_p3 = pneg %p9350_p12 }
 0x101   : > { %p9357_p11 = por %p9356_p9, %p9355_p8 }
 0x103   : > { %p9358_p0 = pnand %p9357_p11, %p9351_p3 }
 0x105   : > { %9361 = shalt.err (!%p9358_p0)
}
 0x106   : > { %s9362_s18 = scalar_lea.vmem %s421_s26, 384  ;;  %s9445_s17 = smov [#allocation14]  }
 0x107   : > { %p9363_p4 = scmp.ne.s32.totalorder %s421_s26, %s9362_s18  ;;  %s9367_s7 = sshll.u32 %s9445_s17, 4  ;;  %s9368_s7 = int_to_ptr.vmem [resolvable:$false] %s9367_s7 }
 0x108   : > { %s9369_s23 = scalar_lea.vmem %s9368_s7, 768  ;;  %p9370_p2 = scmp.lt.s32.totalorder %s421_s26, %s9368_s7 }
 0x109   : > { %p9365_p6 = pnand %p9363_p4, %p11148_p1  ;;  %p9371_p13 = scmp.lt.s32.totalorder %s9369_s23, %s9362_s18 }
 0x10b   : > { %p9366_p10 = pneg %p9365_p6  ;;  %p9372_p12 = por %p9371_p13, %p9370_p2 }
 0x10d   : > { %p9373_p5 = pnand %p9372_p12, %p9366_p10 }
 0x10f   : > { %9376 = shalt.err (!%p9373_p5)
}
 0x110   : > { %p11149_p7 = scmp.ne.s32.totalorder %s11134_s13, 0  ;;  %p11150_p3 = scmp.ne.s32.totalorder %s11123_s20, 0 }
 0x111   : > { %p11151_p1 = scmp.eq.s32.totalorder (!%p11150_p3), %s9523_s19, 0 }
 0x112   : > { %8837 = dma.hbm_to_vmem [thread:$0]  (!%p11149_p7), %s9758_s27, 384, %s421_s26, %s9606_s11  }
 0x113   : > { %429 = sbr.rel (%p11150_p3) target bundleno = 2779 (0xadb), region = 60 }
 0x11a   : > { %9394 = dma.done.wait (%p11151_p1), [#allocation3], 2048   ;;  %p11152_p8 = pmov %p11151_p1 }
 0x11b   : > { %p11153_p9 = pmov %p11151_p1 }
 0x11c   : > { %9396 = vsyncadd (%p11152_p8), [#allocation3], 4294965248 }
 0x11d   : > { %9398 = dma.done.wait (%p11153_p9), [#allocation5], 8224   ;;  %p11154_p11 = pmov %p11151_p1 }
 0x11e   : > { %p11155_p0 = pmov %p11151_p1 }
 0x11f   : > { %9400 = vsyncadd (%p11154_p11), [#allocation5], 4294959072 }
 0x120   : > { %9402 = dma.done.wait (%p11155_p0), [#allocation8], 32832   ;;  %p11156_p4 = pmov %p11155_p0 }
 0x121   : > { %p11157_p6 = pmov %p11155_p0 }
 0x122   : > { %9404 = vsyncadd (%p11156_p4), [#allocation8], 4294934464 }
 0x123   : > { %9406 = dma.done.wait (%p11157_p6), [#allocation11], 128   ;;  %p11158_p10 = pmov %p11155_p0 }
 0x124   : > { %s11159_s20 = sld [smem:[#allocation24_spill]]  ;;  %s455_s22 = sand.u32 1, %s9523_s19  }
 0x125   : > { %9408 = vsyncadd (%p11158_p10), [#allocation11], 4294967168  ;;  %s9817_s11 = sand.u32 1, %s9419_s14   ;;  %s456_s24 = scalar_lea.sflag [#allocation3], %s455_s22 }
 0x126   : > { %s8776_s13 = smul.u32 6144, %s9817_s11 }
 0x128   : > { %s9820_s10 = scalar_lea.vmem [#allocation12], %s8776_s13 }
 0x12a   : > { %p11160_p2 = scmp.ne.s32.totalorder %s11159_s20, 0 }
 0x12c   : > { %9410 = dma.done.wait (%p11160_p2), %s456_s24, 99072  }
 0x12d   : > { %9412 = vsyncadd (%p11160_p2), %s456_s24, 4294868224  ;;  %v9446_v0 = vmov 0   ;;  %v8898_v1 = vld [vmem:[#allocation2 + $0x4] ss:$8 sps:$4 sm:$0xff]   ;;  %v8900_v2 = vld [vmem:[#allocation2] ss:$8 sps:$4 sm:$0xff]  }
 0x12e   : > { %675 = vmatprep.mubr.bf16.mxu0 %v9446_v0  ;;  %643 = vmatprep.subr.bf16.mxu0 %v8898_v1  ;;  %v8901_v3 = vld [vmem:[#allocation2 + $0x14] ss:$8 sps:$4 sm:$0xff]   ;;  %v8903_v4 = vld [vmem:[#allocation2 + $0x10] ss:$8 sps:$4 sm:$0xff]   ;;  %v8904_v5 = vld [vmem:[#allocation2 + $0x24] ss:$8 sps:$4 sm:$0xff]  }
 0x12f   : > { %644 = vmatpush1.bf16.msra.mxu0 %v8900_v2  ;;  %v8906_v6 = vld [vmem:[#allocation2 + $0x20] ss:$8 sps:$4 sm:$0xff]   ;;  %v8907_v7 = vld [vmem:[#allocation2 + $0x34] ss:$8 sps:$4 sm:$0xff]   ;;  %v8909_v8 = vld [vmem:[#allocation2 + $0x30] ss:$8 sps:$4 sm:$0xff]  }
 0x130   : > { %645 = vmatprep.subr.bf16.mxu0 %v8901_v3  ;;  %v8910_v9 = vld [vmem:[#allocation2 + $0x44] ss:$8 sps:$4 sm:$0xff]   ;;  %v8912_v11 = vld [vmem:[#allocation2 + $0x40] ss:$8 sps:$4 sm:$0xff]   ;;  %v8913_v14 = vld [vmem:[#allocation2 + $0x54] ss:$8 sps:$4 sm:$0xff]  }
 0x131   : > { %v8923_v10 = vld [vmem:[#allocation6 + $0x4] ss:$16 sps:$4 sm:$0xff]   ;;  %v8928_v12 = vld [vmem:[#allocation6] ss:$16 sps:$4 sm:$0xff]   ;;  %v8927_v26 = vld [vmem:[#allocation6 + $0xc] ss:$16 sps:$4 sm:$0xff]  }
 0x132   : > { %1098 = vmatprep.subr.bf16.mxu1 %v8923_v10  ;;  %v8929_v13 = vld [vmem:[#allocation6 + $0x24] ss:$16 sps:$4 sm:$0xff]   ;;  %v8934_v15 = vld [vmem:[#allocation6 + $0x20] ss:$16 sps:$4 sm:$0xff]   ;;  %s11161_s12 = sld [smem:[#allocation26_spill]]  ;;  %s8777_s26 = smul.u32 24, %s9817_s11 }
 0x133   : > { %646 = vmatpush1.bf16.msra.mxu0 %v8903_v4  ;;  %1099 = vmatpush1.bf16.msra.mxu1 %v8928_v12  ;;  %v8935_v16 = vld [vmem:[#allocation6 + $0x44] ss:$16 sps:$4 sm:$0xff]   ;;  %v8940_v19 = vld [vmem:[#allocation6 + $0x40] ss:$16 sps:$4 sm:$0xff]   ;;  %v8925_v30 = vld [vmem:[#allocation6 + $0x8] ss:$16 sps:$4 sm:$0xff]  }
 0x134   : > { %647 = vmatprep.subr.bf16.mxu0 %v8904_v5  ;;  %1100 = vmatprep.subr.bf16.mxu1 %v8929_v13  ;;  %v8915_v17 = vld [vmem:[#allocation2 + $0x50] ss:$8 sps:$4 sm:$0xff]   ;;  %v8916_v18 = vld [vmem:[#allocation2 + $0x64] ss:$8 sps:$4 sm:$0xff]   ;;  %v8918_v21 = vld [vmem:[#allocation2 + $0x60] ss:$8 sps:$4 sm:$0xff]  }
 0x135   : > { %v8941_v20 = vld [vmem:[#allocation6 + $0x64] ss:$16 sps:$4 sm:$0xff]   ;;  %v8946_v23 = vld [vmem:[#allocation6 + $0x60] ss:$16 sps:$4 sm:$0xff]   ;;  %v8933_v31 = vld [vmem:[#allocation6 + $0x2c] ss:$16 sps:$4 sm:$0xff]  }
 0x136   : > { %v8919_v22 = vld [vmem:[#allocation2 + $0x74] ss:$8 sps:$4 sm:$0xff]   ;;  %v8921_v25 = vld [vmem:[#allocation2 + $0x70] ss:$8 sps:$4 sm:$0xff]   ;;  %s10194_s25 = scalar_lea.vmem [#allocation13], %s8777_s26  ;;  %s10197_s16 = scalar_lea.vmem [#allocation14], %s8777_s26 }
 0x137   : > { %648 = vmatpush1.bf16.msra.mxu0 %v8906_v6  ;;  %1101 = vmatpush1.bf16.msra.mxu1 %v8934_v15  ;;  %v8947_v24 = vld [vmem:[#allocation6 + $0x84] ss:$16 sps:$4 sm:$0xff]   ;;  %v8952_v27 = vld [vmem:[#allocation6 + $0x80] ss:$16 sps:$4 sm:$0xff]   ;;  %v8931_v34 = vld [vmem:[#allocation6 + $0x28] ss:$16 sps:$4 sm:$0xff]  }
 0x138   : > { %649 = vmatprep.subr.bf16.mxu0 %v8907_v7  ;;  %1102 = vmatprep.subr.bf16.mxu1 %v8935_v16  ;;  %v8953_v28 = vld [vmem:[#allocation6 + $0xa4] ss:$16 sps:$4 sm:$0xff]   ;;  %v8958_v32 = vld [vmem:[#allocation6 + $0xa0] ss:$16 sps:$4 sm:$0xff]   ;;  %v8939_v35 = vld [vmem:[#allocation6 + $0x4c] ss:$16 sps:$4 sm:$0xff]  }
 0x139   : > { %v8922_v29 = vld [vmem:[%s11161_s12] sm:$0xff]   ;;  %v8937_v38 = vld [vmem:[#allocation6 + $0x48] ss:$16 sps:$4 sm:$0xff]   ;;  %s8778_s1 = smul.u32 384, %s9817_s11  ;;  %s11162_s3 = sld [smem:[#allocation25_spill]] }
 0x13a   : > { %v8959_v33 = vld [vmem:[#allocation6 + $0xc4] ss:$16 sps:$4 sm:$0xff]   ;;  %v8964_v36 = vld [vmem:[#allocation6 + $0xc0] ss:$16 sps:$4 sm:$0xff]   ;;  %v8945_v39 = vld [vmem:[#allocation6 + $0x6c] ss:$16 sps:$4 sm:$0xff]  }
 0x13b   : > { %650 = vmatpush1.bf16.msra.mxu0 %v8909_v8  ;;  %1103 = vmatpush1.bf16.msra.mxu1 %v8940_v19  ;;  %v8965_v37 = vld [vmem:[#allocation6 + $0xe4] ss:$16 sps:$4 sm:$0xff]   ;;  %v8970_v40 = vld [vmem:[#allocation6 + $0xe0] ss:$16 sps:$4 sm:$0xff]   ;;  %v8943_v42 = vld [vmem:[#allocation6 + $0x68] ss:$16 sps:$4 sm:$0xff]  }
 0x13c   : > { %651 = vmatprep.subr.bf16.mxu0 %v8910_v9  ;;  %1104 = vmatprep.subr.bf16.mxu1 %v8941_v20  ;;  %v8971_v41 = vld [vmem:[#allocation6 + $0x104] ss:$16 sps:$4 sm:$0xff]   ;;  %v8951_v43 = vld [vmem:[#allocation6 + $0x8c] ss:$16 sps:$4 sm:$0xff]   ;;  %v8976_v44 = vld [vmem:[#allocation6 + $0x100] ss:$16 sps:$4 sm:$0xff]  }
 0x13d   : > { %v8977_v45 = vld [vmem:[#allocation6 + $0x124] ss:$16 sps:$4 sm:$0xff]   ;;  %v8949_v46 = vld [vmem:[#allocation6 + $0x88] ss:$16 sps:$4 sm:$0xff]   ;;  %v8957_v47 = vld [vmem:[#allocation6 + $0xac] ss:$16 sps:$4 sm:$0xff]  }
 0x13e   : > { %v8982_v48 = vld [vmem:[#allocation6 + $0x120] ss:$16 sps:$4 sm:$0xff]   ;;  %v8983_v49 = vld [vmem:[#allocation6 + $0x144] ss:$16 sps:$4 sm:$0xff]   ;;  %v8955_v50 = vld [vmem:[#allocation6 + $0xa8] ss:$16 sps:$4 sm:$0xff]  }
 0x13f   : > { %652 = vmatpush1.bf16.msra.mxu0 %v8912_v11  ;;  %1105 = vmatpush1.bf16.msra.mxu1 %v8946_v23  ;;  %v8963_v51 = vld [vmem:[#allocation6 + $0xcc] ss:$16 sps:$4 sm:$0xff]   ;;  %v8988_v52 = vld [vmem:[#allocation6 + $0x140] ss:$16 sps:$4 sm:$0xff]   ;;  %v8989_v53 = vld [vmem:[#allocation6 + $0x164] ss:$16 sps:$4 sm:$0xff]  }
 0x140   : > { %653 = vmatprep.subr.bf16.mxu0 %v8913_v14  ;;  %1106 = vmatprep.subr.bf16.mxu1 %v8947_v24  ;;  %v8961_v54 = vld [vmem:[#allocation6 + $0xc8] ss:$16 sps:$4 sm:$0xff]   ;;  %v8969_v55 = vld [vmem:[#allocation6 + $0xec] ss:$16 sps:$4 sm:$0xff]   ;;  %v8994_v56 = vld [vmem:[#allocation6 + $0x160] ss:$16 sps:$4 sm:$0xff]  }
 0x141   : > { %v8995_v57 = vld [vmem:[#allocation6 + $0x184] ss:$16 sps:$4 sm:$0xff]   ;;  %v8967_v58 = vld [vmem:[#allocation6 + $0xe8] ss:$16 sps:$4 sm:$0xff]   ;;  %v8975_v59 = vld [vmem:[#allocation6 + $0x10c] ss:$16 sps:$4 sm:$0xff]  }
 0x142   : > { %v9000_v60 = vld [vmem:[#allocation6 + $0x180] ss:$16 sps:$4 sm:$0xff]   ;;  %v9001_v61 = vld [vmem:[#allocation6 + $0x1a4] ss:$16 sps:$4 sm:$0xff]   ;;  %v8973_v62 = vld [vmem:[#allocation6 + $0x108] ss:$16 sps:$4 sm:$0xff]  }
 0x143   : > { %654 = vmatpush1.bf16.msra.mxu0 %v8915_v17  ;;  %1107 = vmatpush1.bf16.msra.mxu1 %v8952_v27  ;;  %v8981_v63 = vld [vmem:[#allocation6 + $0x12c] ss:$16 sps:$4 sm:$0xff]   ;;  %v8979_v0 = vld [vmem:[#allocation6 + $0x128] ss:$16 sps:$4 sm:$0xff]   ;;  %v9006_v9 = vld [vmem:[#allocation6 + $0x1a0] ss:$16 sps:$4 sm:$0xff]  }
 0x144   : > { %655 = vmatprep.subr.bf16.mxu0 %v8916_v18  ;;  %1108 = vmatprep.subr.bf16.mxu1 %v8953_v28  ;;  %v8987_v1 = vld [vmem:[#allocation6 + $0x14c] ss:$16 sps:$4 sm:$0xff]   ;;  %v8985_v2 = vld [vmem:[#allocation6 + $0x148] ss:$16 sps:$4 sm:$0xff]   ;;  %v9007_v10 = vld [vmem:[#allocation6 + $0x1c4] ss:$16 sps:$4 sm:$0xff]  }
 0x145   : > { %v8993_v3 = vld [vmem:[#allocation6 + $0x16c] ss:$16 sps:$4 sm:$0xff]   ;;  %v8991_v4 = vld [vmem:[#allocation6 + $0x168] ss:$16 sps:$4 sm:$0xff]   ;;  %v9012_v13 = vld [vmem:[#allocation6 + $0x1c0] ss:$16 sps:$4 sm:$0xff]  }
 0x146   : > { %v8999_v5 = vld [vmem:[#allocation6 + $0x18c] ss:$16 sps:$4 sm:$0xff]   ;;  %v8997_v6 = vld [vmem:[#allocation6 + $0x188] ss:$16 sps:$4 sm:$0xff]   ;;  %v9013_v14 = vld [vmem:[#allocation6 + $0x1e4] ss:$16 sps:$4 sm:$0xff]  }
 0x147   : > { %656 = vmatpush1.bf16.msra.mxu0 %v8918_v21  ;;  %1109 = vmatpush1.bf16.msra.mxu1 %v8958_v32  ;;  %v9005_v7 = vld [vmem:[#allocation6 + $0x1ac] ss:$16 sps:$4 sm:$0xff]   ;;  %v9003_v8 = vld [vmem:[#allocation6 + $0x1a8] ss:$16 sps:$4 sm:$0xff]   ;;  %v9018_v17 = vld [vmem:[#allocation6 + $0x1e0] ss:$16 sps:$4 sm:$0xff]  }
 0x148   : > { %657 = vmatprep.subr.bf16.mxu0 %v8919_v22  ;;  %1110 = vmatprep.subr.bf16.mxu1 %v8959_v33  ;;  %v9011_v11 = vld [vmem:[#allocation6 + $0x1cc] ss:$16 sps:$4 sm:$0xff]   ;;  %v9009_v12 = vld [vmem:[#allocation6 + $0x1c8] ss:$16 sps:$4 sm:$0xff]   ;;  %s10228_s30 = scalar_lea.vmem [#allocation15], %s8778_s1  ;;  %p11163_p13 = scmp.ne.s32.totalorder %s11162_s3, 0 }
 0x149   : > { %v9017_v15 = vld [vmem:[#allocation6 + $0x1ec] ss:$16 sps:$4 sm:$0xff]   ;;  %v9015_v16 = vld [vmem:[#allocation6 + $0x1e8] ss:$16 sps:$4 sm:$0xff]   ;;  %s8595_s8 = smul.u32 (%p11163_p13), 192, %s9523_s19  ;;  %s11164_s28 = sld [smem:[#allocation33_spill]] (%p11163_p13) }
 0x14a   : > { %v1196_v18 = vld [vmem:[#allocation9] sm:$0xff]  ;;  %v1197_v20 = vld [vmem:[#allocation9 + $0x8] sm:$0xff] }
 0x14b   : > { %658 = vmatpush1.bf16.msra.mxu0 %v8921_v25  ;;  %1111 = vmatpush1.bf16.msra.mxu1 %v8964_v36  ;;  %v1200_v19 = vld [vmem:[#allocation9 + $0x20] sm:$0xff]  ;;  %v1201_v23 = vld [vmem:[#allocation9 + $0x28] sm:$0xff] }
 0x14c   : > { %1141 = vmatprep.subr.bf16.mxu0 %v8927_v26  ;;  %1112 = vmatprep.subr.bf16.mxu1 %v8965_v37  ;;  %v8334_v21 = vcombine.low %v1196_v18, %v1200_v19  ;;  %v8335_v22 = vcombine.high %v1196_v18, %v1200_v19  ;;  %v8336_v24 = vcombine.low %v1197_v20, %v1201_v23  ;;  %v547_v26 = vlaneseq }
 0x14d   : > { %v8337_v25 = vcombine.high %v1197_v20, %v1201_v23  ;;  %v1245_v23 = vld [vmem:[#allocation9 + $0x188] sm:$0xff] }
 0x14e   : > { %676 = vmatmul.mubr.bf16.vlgmr.msra.gmra.mrb[0].mxu0 %v8922_v29  ;;  %v9829_v27 = vshrl.u32 %v547_v26, 7  ;;  %v545_v29 = vld [vmem:[#allocation4] sm:$0x3] }
 0x14f   : > { %1142 = vmatpush1.bf16.msra.mxu0 %v8925_v30  ;;  %1113 = vmatpush1.bf16.msra.mxu1 %v8970_v40  ;;  %s10977_s0 = scalar_lea.vmem (%p11163_p13), %s11164_s28, %s8595_s8 }
 0x150   : > { %1143 = vmatprep.subr.bf16.mxu0 %v8933_v31  ;;  %1114 = vmatprep.subr.bf16.mxu1 %v8971_v41  ;;  %v9832_v28 = vsub.s32 0, %v9829_v27  ;;  %v9835_v30 = vsub.s32 1, %v9829_v27 }
 0x152   : > { %v550_v31 = vrot.slane %v545_v29, %v9832_v28  ;;  %v554_v32 = vrot.slane %v545_v29, %v9835_v30 }
 0x153   : > { %1144 = vmatpush1.bf16.msra.mxu0 %v8931_v34  ;;  %1115 = vmatpush1.bf16.msra.mxu1 %v8976_v44 }
 0x154   : > { %1145 = vmatprep.subr.bf16.mxu0 %v8939_v35  ;;  %1116 = vmatprep.subr.bf16.mxu1 %v8977_v45 }
 0x157   : > { %1146 = vmatpush1.bf16.msra.mxu0 %v8937_v38  ;;  %1117 = vmatpush1.bf16.msra.mxu1 %v8982_v48  ;;  %v1209_v48 = vld [vmem:[#allocation9 + $0x68] sm:$0xff] }
 0x158   : > { %1147 = vmatprep.subr.bf16.mxu0 %v8945_v39  ;;  %1118 = vmatprep.subr.bf16.mxu1 %v8983_v49 }
 0x15b   : > { %1148 = vmatpush1.bf16.msra.mxu0 %v8943_v42  ;;  %1119 = vmatpush1.bf16.msra.mxu1 %v8988_v52 }
 0x15c   : > { %1149 = vmatprep.subr.bf16.mxu0 %v8951_v43  ;;  %1120 = vmatprep.subr.bf16.mxu1 %v8989_v53  ;;  %v1204_v43 = vld [vmem:[#allocation9 + $0x40] sm:$0xff] }
 0x15d   : > { %v1212_v53 = vld [vmem:[#allocation9 + $0x80] sm:$0xff] }
 0x15f   : > { %1150 = vmatpush1.bf16.msra.mxu0 %v8949_v46  ;;  %1121 = vmatpush1.bf16.msra.mxu1 %v8994_v56  ;;  %v1208_v46 = vld [vmem:[#allocation9 + $0x60] sm:$0xff]  ;;  %v1217_v56 = vld [vmem:[#allocation9 + $0xa8] sm:$0xff] }
 0x160   : > { %1151 = vmatprep.subr.bf16.mxu0 %v8957_v47  ;;  %1122 = vmatprep.subr.bf16.mxu1 %v8995_v57  ;;  %v1205_v47 = vld [vmem:[#allocation9 + $0x48] sm:$0xff]  ;;  %v8342_v57 = vcombine.low %v1204_v43, %v1208_v46 }
 0x161   : > { %v8345_v52 = vcombine.high %v1205_v47, %v1209_v48 }
 0x163   : > { %1152 = vmatpush1.bf16.msra.mxu0 %v8955_v50  ;;  %1123 = vmatpush1.bf16.msra.mxu1 %v9000_v60 }
 0x164   : > { %1153 = vmatprep.subr.bf16.mxu0 %v8963_v51  ;;  %1124 = vmatprep.subr.bf16.mxu1 %v9001_v61  ;;  %v8343_v51 = vcombine.high %v1204_v43, %v1208_v46  ;;  %v1220_v61 = vld [vmem:[#allocation9 + $0xc0] sm:$0xff]  ;;  %v1265_v43 = vld [vmem:[#allocation9 + $0x228] sm:$0xff] }
 0x167   : > { %1154 = vmatpush1.bf16.msra.mxu0 %v8961_v54  ;;  %1125 = vmatpush1.bf16.msra.mxu1 %v9006_v9  ;;  %v1216_v54 = vld [vmem:[#allocation9 + $0xa0] sm:$0xff] }
 0x168   : > { %1155 = vmatprep.subr.bf16.mxu0 %v8969_v55  ;;  %1126 = vmatprep.subr.bf16.mxu1 %v9007_v10  ;;  %v1213_v55 = vld [vmem:[#allocation9 + $0x88] sm:$0xff] }
 0x169   : > { %v8353_v60 = vcombine.high %v1213_v55, %v1217_v56 }
 0x16b   : > { %1156 = vmatpush1.bf16.msra.mxu0 %v8967_v58  ;;  %1127 = vmatpush1.bf16.msra.mxu1 %v9012_v13  ;;  %v8344_v58 = vcombine.low %v1205_v47, %v1209_v48  ;;  %v1236_v13 = vld [vmem:[#allocation9 + $0x140] sm:$0xff] }
 0x16c   : > { %1157 = vmatprep.subr.bf16.mxu0 %v8975_v59  ;;  %1128 = vmatprep.subr.bf16.mxu1 %v9013_v14  ;;  %v8351_v59 = vcombine.high %v1212_v53, %v1216_v54  ;;  %v1240_v14 = vld [vmem:[#allocation9 + $0x160] sm:$0xff] }
 0x16d   : > { %v8375_v19 = vcombine.high %v1236_v13, %v1240_v14  ;;  %v1268_v48 = vld [vmem:[#allocation9 + $0x240] sm:$0xff] }
 0x16f   : > { %1158 = vmatpush1.bf16.msra.mxu0 %v8973_v62  ;;  %1129 = vmatpush1.bf16.msra.mxu1 %v9018_v17  ;;  %v1224_v62 = vld [vmem:[#allocation9 + $0xe0] sm:$0xff] }
 0x170   : > { %1159 = vmatprep.subr.bf16.mxu0 %v8981_v63  ;;  %2774 = vmatprep.subr.bf16.mxu1 %v8335_v22  ;;  %v1221_v63 = vld [vmem:[#allocation9 + $0xc8] sm:$0xff]  ;;  %v8358_v9 = vcombine.low %v1220_v61, %v1224_v62  ;;  %v1248_v22 = vld [vmem:[#allocation9 + $0x1a0] sm:$0xff] }
 0x173   : > { %1160 = vmatpush1.bf16.msra.mxu0 %v8979_v0  ;;  %v1225_v0 = vld [vmem:[#allocation9 + $0xe8] sm:$0xff] }
 0x174   : > { %1161 = vmatprep.subr.bf16.mxu0 %v8987_v1  ;;  %v8350_v1 = vcombine.low %v1212_v53, %v1216_v54  ;;  %v8360_v10 = vcombine.low %v1221_v63, %v1225_v0 }
 0x177   : > { %1162 = vmatpush1.bf16.msra.mxu0 %v8985_v2  ;;  %v8352_v2 = vcombine.low %v1213_v55, %v1217_v56  ;;  %v1276_v56 = vld [vmem:[#allocation9 + $0x280] sm:$0xff] }
 0x178   : > { %1163 = vmatprep.subr.bf16.mxu0 %v8993_v3  ;;  %v8359_v3 = vcombine.high %v1220_v61, %v1224_v62 }
 0x17b   : > { %1164 = vmatpush1.bf16.msra.mxu0 %v8991_v4  ;;  %v8361_v4 = vcombine.high %v1221_v63, %v1225_v0  ;;  %v1284_v0 = vld [vmem:[#allocation9 + $0x2c0] sm:$0xff] }
 0x17c   : > { %1165 = vmatprep.subr.bf16.mxu0 %v8999_v5  ;;  %v1228_v5 = vld [vmem:[#allocation9 + $0x100] sm:$0xff] }
 0x17f   : > { %1166 = vmatpush1.bf16.msra.mxu0 %v8997_v6  ;;  %v1232_v6 = vld [vmem:[#allocation9 + $0x120] sm:$0xff] }
 0x180   : > { %1167 = vmatprep.subr.bf16.mxu0 %v9005_v7  ;;  %v1229_v7 = vld [vmem:[#allocation9 + $0x108] sm:$0xff]  ;;  %v8366_v17 = vcombine.low %v1228_v5, %v1232_v6 }
 0x183   : > { %1168 = vmatpush1.bf16.msra.mxu0 %v9003_v8  ;;  %v1233_v8 = vld [vmem:[#allocation9 + $0x128] sm:$0xff] }
 0x184   : > { %1169 = vmatprep.subr.bf16.mxu0 %v9011_v11  ;;  %v8367_v11 = vcombine.high %v1228_v5, %v1232_v6  ;;  %v8368_v18 = vcombine.low %v1229_v7, %v1233_v8 }
 0x187   : > { %1170 = vmatpush1.bf16.msra.mxu0 %v9009_v12  ;;  %v8369_v12 = vcombine.high %v1229_v7, %v1233_v8  ;;  %v1292_v8 = vld [vmem:[#allocation9 + $0x300] sm:$0xff] }
 0x188   : > { %1171 = vmatprep.subr.bf16.mxu0 %v9017_v15  ;;  %v1237_v15 = vld [vmem:[#allocation9 + $0x148] sm:$0xff] }
 0x18b   : > { %1172 = vmatpush1.bf16.msra.mxu0 %v9015_v16  ;;  %v1241_v16 = vld [vmem:[#allocation9 + $0x168] sm:$0xff] }
 0x18c   : > { %2860 = vmatprep.subr.bf16.mxu0 %v8337_v25  ;;  %v8377_v20 = vcombine.high %v1237_v15, %v1241_v16  ;;  %v8374_v25 = vcombine.low %v1236_v13, %v1240_v14  ;;  %v8376_v26 = vcombine.low %v1237_v15, %v1241_v16  ;;  %v1300_v16 = vld [vmem:[#allocation9 + $0x340] sm:$0xff] }
 0x221   : > { %v677_v33 = vpop.f32.mrb[0].mxu0 }
 0x222   : > { %v678_v34 = vadd.f32 %v677_v33, %v550_v31  ;;  %v679_v35 = vpop.f32.mrb[1].mxu0  ;;  %v1256_v33 = vld [vmem:[#allocation9 + $0x1e0] sm:$0xff] }
 0x223   : > { %v680_v36 = vadd.f32 %v679_v35, %v554_v32  ;;  %v681_v37 = vpop.f32.mrb[2].mxu0  ;;  %v1257_v35 = vld [vmem:[#allocation9 + $0x1e8] sm:$0xff] }
 0x224   : > { %v682_v38 = vadd.f32 %v681_v37, %v550_v31  ;;  %v683_v39 = vpop.f32.mrb[3].mxu0  ;;  %v686_v41 = vmax.f32 %v678_v34, 0.0  ;;  %v1253_v34 = vld [vmem:[#allocation9 + $0x1c8] sm:$0xff] }
 0x225   : > { %v684_v40 = vadd.f32 %v683_v39, %v554_v32  ;;  %v687_v44 = vmax.f32 %v680_v36, 0.0  ;;  %v1252_v32 = vld [vmem:[#allocation9 + $0x1c0] sm:$0xff]  ;;  %v8393_v39 = vcombine.high %v1253_v34, %v1257_v35 }
 0x226   : > { %v688_v42 = vmax.f32 %v682_v38, 0.0  ;;  %v8391_v38 = vcombine.high %v1252_v32, %v1256_v33 }
 0x227   : > { %v689_v45 = vmax.f32 %v684_v40, 0.0  ;;  %v1260_v40 = vld [vmem:[#allocation9 + $0x200] sm:$0xff] }
 0x228   : > { %v690_v49 = vpack.c.bf16 %v688_v42, %v686_v41  ;;  %v1264_v41 = vld [vmem:[#allocation9 + $0x220] sm:$0xff]  ;;  %v1261_v42 = vld [vmem:[#allocation9 + $0x208] sm:$0xff] }
 0x229   : > { %v691_v50 = vpack.c.bf16 %v689_v45, %v687_v44  ;;  %v8390_v44 = vcombine.low %v1252_v32, %v1256_v33  ;;  %v8392_v45 = vcombine.low %v1253_v34, %v1257_v35  ;;  %v8399_v46 = vcombine.high %v1260_v40, %v1264_v41  ;;  %v1313_v33 = vld [vmem:[#allocation9 + $0x3a8] sm:$0xff] }
 0x22a   : > { %v8401_v47 = vcombine.high %v1261_v42, %v1265_v43  ;;  %v8400_v53 = vcombine.low %v1261_v42, %v1265_v43 }
 0x22b   : > { %1130 = vmatprep.mubr.bf16.mxu1 %v691_v50  ;;  %1173 = vmatprep.mubr.bf16.mxu0 %v691_v50  ;;  %v1269_v50 = vld [vmem:[#allocation9 + $0x248] sm:$0xff] }
 0x22c   : > { %1131 = vmatmul.mubr.bf16.vlgmr.msra.gmra.mrb[0].mxu1 %v690_v49  ;;  %1174 = vmatmul.mubr.bf16.vlgmr.msra.gmra.mrb[4].mxu0 %v690_v49  ;;  %v1272_v49 = vld [vmem:[#allocation9 + $0x260] sm:$0xff] }
 0x22d   : > { %2775 = vmatpush1.bf16.msra.mxu1 %v8334_v21  ;;  %2861 = vmatpush1.bf16.msra.mxu0 %v8336_v24  ;;  %v1244_v21 = vld [vmem:[#allocation9 + $0x180] sm:$0xff]  ;;  %v1249_v24 = vld [vmem:[#allocation9 + $0x1a8] sm:$0xff]  ;;  %v8407_v54 = vcombine.high %v1268_v48, %v1272_v49 }
 0x22e   : > { %2776 = vmatprep.subr.bf16.mxu1 %v8343_v51  ;;  %2862 = vmatprep.subr.bf16.mxu0 %v8345_v52  ;;  %v8383_v29 = vcombine.high %v1244_v21, %v1248_v22  ;;  %v8385_v31 = vcombine.high %v1245_v23, %v1249_v24  ;;  %v8382_v36 = vcombine.low %v1244_v21, %v1248_v22  ;;  %v1273_v51 = vld [vmem:[#allocation9 + $0x268] sm:$0xff] }
 0x22f   : > { %v8384_v37 = vcombine.low %v1245_v23, %v1249_v24  ;;  %v8398_v52 = vcombine.low %v1260_v40, %v1264_v41  ;;  %v8409_v55 = vcombine.high %v1269_v50, %v1273_v51  ;;  %v8408_v61 = vcombine.low %v1269_v50, %v1273_v51  ;;  %v1321_v41 = vld [vmem:[#allocation9 + $0x3e8] sm:$0xff] }
 0x231   : > { %2777 = vmatpush1.bf16.msra.mxu1 %v8342_v57  ;;  %2863 = vmatpush1.bf16.msra.mxu0 %v8344_v58  ;;  %v1280_v57 = vld [vmem:[#allocation9 + $0x2a0] sm:$0xff]  ;;  %v1277_v58 = vld [vmem:[#allocation9 + $0x288] sm:$0xff] }
 0x232   : > { %2778 = vmatprep.subr.bf16.mxu1 %v8351_v59  ;;  %2864 = vmatprep.subr.bf16.mxu0 %v8353_v60  ;;  %v1281_v59 = vld [vmem:[#allocation9 + $0x2a8] sm:$0xff]  ;;  %v8406_v60 = vcombine.low %v1268_v48, %v1272_v49  ;;  %v8415_v62 = vcombine.high %v1276_v56, %v1280_v57 }
 0x233   : > { %v8417_v63 = vcombine.high %v1277_v58, %v1281_v59  ;;  %v8416_v5 = vcombine.low %v1277_v58, %v1281_v59  ;;  %v1329_v49 = vld [vmem:[#allocation9 + $0x428] sm:$0xff] }
 0x235   : > { %2779 = vmatpush1.bf16.msra.mxu1 %v8350_v1  ;;  %2865 = vmatpush1.bf16.msra.mxu0 %v8352_v2  ;;  %v1288_v1 = vld [vmem:[#allocation9 + $0x2e0] sm:$0xff]  ;;  %v1285_v2 = vld [vmem:[#allocation9 + $0x2c8] sm:$0xff] }
 0x236   : > { %2780 = vmatprep.subr.bf16.mxu1 %v8359_v3  ;;  %2866 = vmatprep.subr.bf16.mxu0 %v8361_v4  ;;  %v1289_v3 = vld [vmem:[#allocation9 + $0x2e8] sm:$0xff]  ;;  %v8414_v4 = vcombine.low %v1276_v56, %v1280_v57  ;;  %v8423_v6 = vcombine.high %v1284_v0, %v1288_v1 }
 0x237   : > { %v8425_v7 = vcombine.high %v1285_v2, %v1289_v3  ;;  %v8424_v13 = vcombine.low %v1285_v2, %v1289_v3 }
 0x239   : > { %2781 = vmatpush1.bf16.msra.mxu1 %v8358_v9  ;;  %2867 = vmatpush1.bf16.msra.mxu0 %v8360_v10  ;;  %v1296_v9 = vld [vmem:[#allocation9 + $0x320] sm:$0xff]  ;;  %v1293_v10 = vld [vmem:[#allocation9 + $0x308] sm:$0xff] }
 0x23a   : > { %2782 = vmatprep.subr.bf16.mxu1 %v8367_v11  ;;  %2868 = vmatprep.subr.bf16.mxu0 %v8369_v12  ;;  %v1297_v11 = vld [vmem:[#allocation9 + $0x328] sm:$0xff]  ;;  %v8422_v12 = vcombine.low %v1284_v0, %v1288_v1  ;;  %v8431_v14 = vcombine.high %v1292_v8, %v1296_v9 }
 0x23b   : > { %v8433_v15 = vcombine.high %v1293_v10, %v1297_v11  ;;  %v8432_v21 = vcombine.low %v1293_v10, %v1297_v11 }
 0x23d   : > { %2783 = vmatpush1.bf16.msra.mxu1 %v8366_v17  ;;  %2869 = vmatpush1.bf16.msra.mxu0 %v8368_v18  ;;  %v1304_v17 = vld [vmem:[#allocation9 + $0x360] sm:$0xff]  ;;  %v1301_v18 = vld [vmem:[#allocation9 + $0x348] sm:$0xff] }
 0x23e   : > { %2784 = vmatprep.subr.bf16.mxu1 %v8375_v19  ;;  %2870 = vmatprep.subr.bf16.mxu0 %v8377_v20  ;;  %v1305_v19 = vld [vmem:[#allocation9 + $0x368] sm:$0xff]  ;;  %v8430_v20 = vcombine.low %v1292_v8, %v1296_v9  ;;  %v8439_v22 = vcombine.high %v1300_v16, %v1304_v17  ;;  %v8438_v24 = vcombine.low %v1300_v16, %v1304_v17 }
 0x23f   : > { %v8441_v23 = vcombine.high %v1301_v18, %v1305_v19 }
 0x241   : > { %2785 = vmatpush1.bf16.msra.mxu1 %v8374_v25  ;;  %2871 = vmatpush1.bf16.msra.mxu0 %v8376_v26  ;;  %v8440_v25 = vcombine.low %v1301_v18, %v1305_v19  ;;  %v1308_v26 = vld [vmem:[#allocation9 + $0x380] sm:$0xff] }
 0x242   : > { %2786 = vmatprep.subr.bf16.mxu1 %v8383_v29  ;;  %2872 = vmatprep.subr.bf16.mxu0 %v8385_v31  ;;  %v1312_v29 = vld [vmem:[#allocation9 + $0x3a0] sm:$0xff]  ;;  %v1309_v31 = vld [vmem:[#allocation9 + $0x388] sm:$0xff] }
 0x243   : > { %v8447_v32 = vcombine.high %v1308_v26, %v1312_v29  ;;  %v8446_v34 = vcombine.low %v1308_v26, %v1312_v29  ;;  %v8448_v35 = vcombine.low %v1309_v31, %v1313_v33 }
 0x245   : > { %2787 = vmatpush1.bf16.msra.mxu1 %v8382_v36  ;;  %2873 = vmatpush1.bf16.msra.mxu0 %v8384_v37  ;;  %v8449_v36 = vcombine.high %v1309_v31, %v1313_v33  ;;  %v1316_v37 = vld [vmem:[#allocation9 + $0x3c0] sm:$0xff] }
 0x246   : > { %2788 = vmatprep.subr.bf16.mxu1 %v8391_v38  ;;  %2874 = vmatprep.subr.bf16.mxu0 %v8393_v39  ;;  %v1320_v38 = vld [vmem:[#allocation9 + $0x3e0] sm:$0xff]  ;;  %v1317_v39 = vld [vmem:[#allocation9 + $0x3c8] sm:$0xff] }
 0x247   : > { %v8455_v40 = vcombine.high %v1316_v37, %v1320_v38  ;;  %v8454_v42 = vcombine.low %v1316_v37, %v1320_v38  ;;  %v8456_v43 = vcombine.low %v1317_v39, %v1321_v41  ;;  %v1340_v31 = vld [vmem:[#allocation9 + $0x480] sm:$0xff] }
 0x249   : > { %2789 = vmatpush1.bf16.msra.mxu1 %v8390_v44  ;;  %2875 = vmatpush1.bf16.msra.mxu0 %v8392_v45  ;;  %v8457_v44 = vcombine.high %v1317_v39, %v1321_v41  ;;  %v1324_v45 = vld [vmem:[#allocation9 + $0x400] sm:$0xff] }
 0x24a   : > { %2790 = vmatprep.subr.bf16.mxu1 %v8399_v46  ;;  %2876 = vmatprep.subr.bf16.mxu0 %v8401_v47  ;;  %v1328_v46 = vld [vmem:[#allocation9 + $0x420] sm:$0xff]  ;;  %v1325_v47 = vld [vmem:[#allocation9 + $0x408] sm:$0xff] }
 0x24b   : > { %v8463_v48 = vcombine.high %v1324_v45, %v1328_v46  ;;  %v8462_v50 = vcombine.low %v1324_v45, %v1328_v46  ;;  %v8464_v51 = vcombine.low %v1325_v47, %v1329_v49  ;;  %v1348_v41 = vld [vmem:[#allocation9 + $0x4c0] sm:$0xff] }
 0x24d   : > { %2791 = vmatpush1.bf16.msra.mxu1 %v8398_v52  ;;  %2877 = vmatpush1.bf16.msra.mxu0 %v8400_v53  ;;  %v8465_v52 = vcombine.high %v1325_v47, %v1329_v49  ;;  %v9840_v53 = vsub.s32 2, %v9829_v27  ;;  %v1356_v49 = vld [vmem:[#allocation9 + $0x500] sm:$0xff] }
 0x24e   : > { %2792 = vmatprep.subr.bf16.mxu1 %v8407_v54  ;;  %2878 = vmatprep.subr.bf16.mxu0 %v8409_v55  ;;  %v756_v54 = vld [vmem:[#allocation7] sm:$0xf]  ;;  %v9843_v55 = vsub.s32 3, %v9829_v27 }
 0x24f   : > { %v761_v56 = vrot.slane %v756_v54, %v9832_v28  ;;  %v769_v57 = vrot.slane %v756_v54, %v9840_v53  ;;  %v765_v58 = vrot.slane %v756_v54, %v9835_v30 }
 0x250   : > { %v773_v59 = vrot.slane %v756_v54, %v9843_v55 }
 0x251   : > { %2793 = vmatpush1.bf16.msra.mxu1 %v8406_v60  ;;  %2879 = vmatpush1.bf16.msra.mxu0 %v8408_v61 }
 0x252   : > { %2794 = vmatprep.subr.bf16.mxu1 %v8415_v62  ;;  %2880 = vmatprep.subr.bf16.mxu0 %v8417_v63 }
 0x255   : > { %2795 = vmatpush1.bf16.msra.mxu1 %v8414_v4  ;;  %2881 = vmatpush1.bf16.msra.mxu0 %v8416_v5 }
 0x256   : > { %2796 = vmatprep.subr.bf16.mxu1 %v8423_v6  ;;  %2882 = vmatprep.subr.bf16.mxu0 %v8425_v7 }
 0x259   : > { %2797 = vmatpush1.bf16.msra.mxu1 %v8422_v12  ;;  %2883 = vmatpush1.bf16.msra.mxu0 %v8424_v13 }
 0x25a   : > { %2798 = vmatprep.subr.bf16.mxu1 %v8431_v14  ;;  %2884 = vmatprep.subr.bf16.mxu0 %v8433_v15 }
 0x25d   : > { %2799 = vmatpush1.bf16.msra.mxu1 %v8430_v20  ;;  %2885 = vmatpush1.bf16.msra.mxu0 %v8432_v21  ;;  %v1332_v20 = vld [vmem:[#allocation9 + $0x440] sm:$0xff] }
 0x25e   : > { %2800 = vmatprep.subr.bf16.mxu1 %v8439_v22  ;;  %2886 = vmatprep.subr.bf16.mxu0 %v8441_v23  ;;  %v1336_v23 = vld [vmem:[#allocation9 + $0x460] sm:$0xff] }
 0x25f   : > { %v8470_v37 = vcombine.low %v1332_v20, %v1336_v23 }
 0x261   : > { %2801 = vmatpush1.bf16.msra.mxu1 %v8438_v24  ;;  %2887 = vmatpush1.bf16.msra.mxu0 %v8440_v25  ;;  %v1333_v24 = vld [vmem:[#allocation9 + $0x448] sm:$0xff] }
 0x262   : > { %2802 = vmatprep.subr.bf16.mxu1 %v8447_v32  ;;  %2888 = vmatprep.subr.bf16.mxu0 %v8449_v36  ;;  %v1337_v25 = vld [vmem:[#allocation9 + $0x468] sm:$0xff]  ;;  %v8471_v32 = vcombine.high %v1332_v20, %v1336_v23  ;;  %v1392_v20 = vld [vmem:[#allocation9 + $0x620] sm:$0xff] }
 0x263   : > { %v8473_v33 = vcombine.high %v1333_v24, %v1337_v25  ;;  %v1345_v36 = vld [vmem:[#allocation9 + $0x4a8] sm:$0xff]  ;;  %v8472_v38 = vcombine.low %v1333_v24, %v1337_v25 }
 0x264   : > { %v1389_v23 = vld [vmem:[#allocation9 + $0x608] sm:$0xff] }
 0x265   : > { %2803 = vmatpush1.bf16.msra.mxu1 %v8446_v34  ;;  %2889 = vmatpush1.bf16.msra.mxu0 %v8448_v35  ;;  %v1344_v34 = vld [vmem:[#allocation9 + $0x4a0] sm:$0xff]  ;;  %v1341_v35 = vld [vmem:[#allocation9 + $0x488] sm:$0xff] }
 0x266   : > { %2804 = vmatprep.subr.bf16.mxu1 %v8455_v40  ;;  %2890 = vmatprep.subr.bf16.mxu0 %v8457_v44  ;;  %v8479_v39 = vcombine.high %v1340_v31, %v1344_v34  ;;  %v8481_v40 = vcombine.high %v1341_v35, %v1345_v36  ;;  %v1353_v44 = vld [vmem:[#allocation9 + $0x4e8] sm:$0xff]  ;;  %v8478_v45 = vcombine.low %v1340_v31, %v1344_v34  ;;  %v1396_v34 = vld [vmem:[#allocation9 + $0x640] sm:$0xff] }
 0x267   : > { %v8480_v46 = vcombine.low %v1341_v35, %v1345_v36  ;;  %v1393_v24 = vld [vmem:[#allocation9 + $0x628] sm:$0xff]  ;;  %v1400_v35 = vld [vmem:[#allocation9 + $0x660] sm:$0xff] }
 0x268   : > { %v1397_v36 = vld [vmem:[#allocation9 + $0x648] sm:$0xff] }
 0x269   : > { %2805 = vmatpush1.bf16.msra.mxu1 %v8454_v42  ;;  %2891 = vmatpush1.bf16.msra.mxu0 %v8456_v43  ;;  %v1352_v42 = vld [vmem:[#allocation9 + $0x4e0] sm:$0xff]  ;;  %v1349_v43 = vld [vmem:[#allocation9 + $0x4c8] sm:$0xff] }
 0x26a   : > { %2817 = vmatprep.subr.bf16.mxu1 %v8463_v48  ;;  %2903 = vmatprep.subr.bf16.mxu0 %v8465_v52  ;;  %v8487_v47 = vcombine.high %v1348_v41, %v1352_v42  ;;  %v8489_v48 = vcombine.high %v1349_v43, %v1353_v44  ;;  %v1361_v52 = vld [vmem:[#allocation9 + $0x528] sm:$0xff]  ;;  %v8486_v54 = vcombine.low %v1348_v41, %v1352_v42  ;;  %v1404_v42 = vld [vmem:[#allocation9 + $0x680] sm:$0xff] }
 0x2ff   : > { %v1132_v60 = vpop.f32.mrb[0].mxu1  ;;  %v1175_v61 = vpop.f32.mrb[4].mxu0 }
 0x300   : > { %v1133_v62 = vadd.f32 %v1132_v60, %v761_v56  ;;  %v1176_v63 = vadd.f32 %v1175_v61, %v769_v57  ;;  %v1134_v0 = vpop.f32.mrb[1].mxu1  ;;  %v1177_v1 = vpop.f32.mrb[5].mxu0  ;;  %v1368_v60 = vld [vmem:[#allocation9 + $0x560] sm:$0xff]  ;;  %v1365_v61 = vld [vmem:[#allocation9 + $0x548] sm:$0xff] }
 0x301   : > { %v1135_v2 = vadd.f32 %v1134_v0, %v765_v58  ;;  %v1178_v3 = vadd.f32 %v1177_v1, %v773_v59  ;;  %v1136_v4 = vpop.f32.mrb[2].mxu1  ;;  %v1179_v5 = vpop.f32.mrb[6].mxu0 }
 0x302   : > { %v1137_v6 = vadd.f32 %v1136_v4, %v761_v56  ;;  %v1180_v7 = vadd.f32 %v1179_v5, %v769_v57  ;;  %v1138_v8 = vpop.f32.mrb[3].mxu1  ;;  %v1181_v9 = vpop.f32.mrb[7].mxu0  ;;  %v1184_v12 = vmax.f32 %v1133_v62, 0.0  ;;  %v1186_v13 = vmax.f32 %v1176_v63, 0.0  ;;  %v1369_v62 = vld [vmem:[#allocation9 + $0x568] sm:$0xff]  ;;  %v1376_v4 = vld [vmem:[#allocation9 + $0x5a0] sm:$0xff] }
 0x303   : > { %v1139_v10 = vadd.f32 %v1138_v8, %v765_v58  ;;  %v1182_v11 = vadd.f32 %v1181_v9, %v773_v59  ;;  %v1185_v16 = vmax.f32 %v1135_v2, 0.0  ;;  %v1187_v17 = vmax.f32 %v1178_v3, 0.0  ;;  %v1364_v59 = vld [vmem:[#allocation9 + $0x540] sm:$0xff]  ;;  %v1373_v5 = vld [vmem:[#allocation9 + $0x588] sm:$0xff] }
 0x304   : > { %v1188_v14 = vmax.f32 %v1137_v6, 0.0  ;;  %v1190_v15 = vmax.f32 %v1180_v7, 0.0  ;;  %v8488_v56 = vcombine.low %v1349_v43, %v1353_v44  ;;  %v8503_v1 = vcombine.high %v1364_v59, %v1368_v60  ;;  %v1372_v3 = vld [vmem:[#allocation9 + $0x580] sm:$0xff]  ;;  %v1377_v6 = vld [vmem:[#allocation9 + $0x5a8] sm:$0xff] }
 0x305   : > { %v1189_v18 = vmax.f32 %v1139_v10, 0.0  ;;  %v1191_v19 = vmax.f32 %v1182_v11, 0.0  ;;  %v8505_v2 = vcombine.high %v1365_v61, %v1369_v62  ;;  %v8502_v7 = vcombine.low %v1364_v59, %v1368_v60  ;;  %v1380_v11 = vld [vmem:[#allocation9 + $0x5c0] sm:$0xff]  ;;  %v1405_v44 = vld [vmem:[#allocation9 + $0x688] sm:$0xff] }
 0x306   : > { %v9849_v21 = vpack.c.bf16 %v1188_v14, %v1184_v12  ;;  %v9851_v22 = vpack.c.bf16 %v1190_v15, %v1186_v13  ;;  %v8504_v8 = vcombine.low %v1365_v61, %v1369_v62  ;;  %v8511_v9 = vcombine.high %v1372_v3, %v1376_v4  ;;  %v1384_v12 = vld [vmem:[#allocation9 + $0x5e0] sm:$0xff]  ;;  %v1381_v13 = vld [vmem:[#allocation9 + $0x5c8] sm:$0xff] }
 0x307   : > { %v9853_v26 = vpack.c.bf16 %v1189_v18, %v1185_v16  ;;  %v9855_v29 = vpack.c.bf16 %v1191_v19, %v1187_v17  ;;  %v8513_v10 = vcombine.high %v1373_v5, %v1377_v6  ;;  %v1385_v14 = vld [vmem:[#allocation9 + $0x5e8] sm:$0xff]  ;;  %v8510_v15 = vcombine.low %v1372_v3, %v1376_v4  ;;  %v1388_v19 = vld [vmem:[#allocation9 + $0x600] sm:$0xff] }
 0x308   : > { %v8512_v16 = vcombine.low %v1373_v5, %v1377_v6  ;;  %v8519_v17 = vcombine.high %v1380_v11, %v1384_v12  ;;  %v8521_v18 = vcombine.high %v1381_v13, %v1385_v14  ;;  %v8518_v25 = vcombine.low %v1380_v11, %v1384_v12  ;;  %v1408_v43 = vld [vmem:[#allocation9 + $0x6a0] sm:$0xff]  ;;  %v1421_v62 = vld [vmem:[#allocation9 + $0x708] sm:$0xff] }
 0x309   : > { %2806 = vmatprep.mubr.bf16.mxu1 %v9853_v26  ;;  %2892 = vmatprep.mubr.bf16.mxu0 %v9853_v26  ;;  %v8520_v31 = vcombine.low %v1381_v13, %v1385_v14  ;;  %v1420_v60 = vld [vmem:[#allocation9 + $0x700] sm:$0xff]  ;;  %v1429_v6 = vld [vmem:[#allocation9 + $0x748] sm:$0xff] }
 0x30a   : > { %2807 = vmatmul.mubr.bf16.vlgmr.msra.gmra.mrb[4].mxu1 %v9849_v21  ;;  %2893 = vmatmul.mubr.bf16.vlgmr.msra.gmra.mrb[8].mxu0 %v9849_v21  ;;  %v1424_v61 = vld [vmem:[#allocation9 + $0x720] sm:$0xff]  ;;  %v1437_v14 = vld [vmem:[#allocation9 + $0x788] sm:$0xff] }
 0x30b   : > { %2818 = vmatpush1.bf16.msra.mxu1 %v8462_v50  ;;  %2904 = vmatpush1.bf16.msra.mxu0 %v8464_v51  ;;  %v1360_v50 = vld [vmem:[#allocation9 + $0x520] sm:$0xff]  ;;  %v1357_v51 = vld [vmem:[#allocation9 + $0x508] sm:$0xff] }
 0x30c   : > { %2849 = vmatprep.mubr.bf16.mxu1 %v9855_v29  ;;  %2935 = vmatprep.mubr.bf16.mxu0 %v9855_v29  ;;  %v8495_v57 = vcombine.high %v1356_v49, %v1360_v50  ;;  %v8497_v58 = vcombine.high %v1357_v51, %v1361_v52  ;;  %v8494_v63 = vcombine.low %v1356_v49, %v1360_v50  ;;  %v1412_v50 = vld [vmem:[#allocation9 + $0x6c0] sm:$0xff] }
 0x30d   : > { %2819 = vmatprep.subr.bf16.mxu1 %v8471_v32  ;;  %2905 = vmatprep.subr.bf16.mxu0 %v8473_v33  ;;  %v8496_v0 = vcombine.low %v1357_v51, %v1361_v52  ;;  %v8527_v32 = vcombine.high %v1388_v19, %v1392_v20  ;;  %v8529_v33 = vcombine.high %v1389_v23, %v1393_v24  ;;  %v1416_v51 = vld [vmem:[#allocation9 + $0x6e0] sm:$0xff]  ;;  %v1413_v52 = vld [vmem:[#allocation9 + $0x6c8] sm:$0xff] }
 0x30e   : > { %v1428_v4 = vld [vmem:[#allocation9 + $0x740] sm:$0xff] }
 0x30f   : > { %2820 = vmatpush1.bf16.msra.mxu1 %v8470_v37  ;;  %2906 = vmatpush1.bf16.msra.mxu0 %v8472_v38  ;;  %v1401_v37 = vld [vmem:[#allocation9 + $0x668] sm:$0xff]  ;;  %v8526_v38 = vcombine.low %v1388_v19, %v1392_v20  ;;  %v1432_v5 = vld [vmem:[#allocation9 + $0x760] sm:$0xff] }
 0x310   : > { %2821 = vmatprep.subr.bf16.mxu1 %v8479_v39  ;;  %2907 = vmatprep.subr.bf16.mxu0 %v8481_v40  ;;  %v8528_v39 = vcombine.low %v1389_v23, %v1393_v24  ;;  %v8535_v40 = vcombine.high %v1396_v34, %v1400_v35  ;;  %v8537_v41 = vcombine.high %v1397_v36, %v1401_v37  ;;  %v1436_v12 = vld [vmem:[#allocation9 + $0x780] sm:$0xff]  ;;  %v1445_v24 = vld [vmem:[#allocation9 + $0x7c8] sm:$0xff] }
 0x311   : > { %v1440_v13 = vld [vmem:[#allocation9 + $0x7a0] sm:$0xff] }
 0x312   : > { %v1444_v20 = vld [vmem:[#allocation9 + $0x7c0] sm:$0xff] }
 0x313   : > { %2822 = vmatpush1.bf16.msra.mxu1 %v8478_v45  ;;  %2908 = vmatpush1.bf16.msra.mxu0 %v8480_v46  ;;  %v1409_v45 = vld [vmem:[#allocation9 + $0x6a8] sm:$0xff]  ;;  %v8534_v46 = vcombine.low %v1396_v34, %v1400_v35  ;;  %v1448_v23 = vld [vmem:[#allocation9 + $0x7e0] sm:$0xff]  ;;  %v1198_v35 = vld [vmem:[#allocation9 + $0x10] sm:$0xff] }
 0x314   : > { %2823 = vmatprep.subr.bf16.mxu1 %v8487_v47  ;;  %2909 = vmatprep.subr.bf16.mxu0 %v8489_v48  ;;  %v8536_v47 = vcombine.low %v1397_v36, %v1401_v37  ;;  %v8543_v48 = vcombine.high %v1404_v42, %v1408_v43  ;;  %v8545_v49 = vcombine.high %v1405_v44, %v1409_v45  ;;  %v1202_v36 = vld [vmem:[#allocation9 + $0x30] sm:$0xff]  ;;  %v1199_v37 = vld [vmem:[#allocation9 + $0x18] sm:$0xff] }
 0x317   : > { %2824 = vmatpush1.bf16.msra.mxu1 %v8486_v54  ;;  %2910 = vmatpush1.bf16.msra.mxu0 %v8488_v56  ;;  %v1417_v54 = vld [vmem:[#allocation9 + $0x6e8] sm:$0xff]  ;;  %v8542_v56 = vcombine.low %v1404_v42, %v1408_v43  ;;  %v1206_v43 = vld [vmem:[#allocation9 + $0x50] sm:$0xff] }
 0x318   : > { %2825 = vmatprep.subr.bf16.mxu1 %v8495_v57  ;;  %2911 = vmatprep.subr.bf16.mxu0 %v8497_v58  ;;  %v8544_v57 = vcombine.low %v1405_v44, %v1409_v45  ;;  %v8551_v58 = vcombine.high %v1412_v50, %v1416_v51  ;;  %v8553_v59 = vcombine.high %v1413_v52, %v1417_v54  ;;  %v1210_v44 = vld [vmem:[#allocation9 + $0x70] sm:$0xff]  ;;  %v1207_v45 = vld [vmem:[#allocation9 + $0x58] sm:$0xff] }
 0x31b   : > { %2826 = vmatpush1.bf16.msra.mxu1 %v8494_v63  ;;  %2912 = vmatpush1.bf16.msra.mxu0 %v8496_v0  ;;  %v1425_v63 = vld [vmem:[#allocation9 + $0x728] sm:$0xff]  ;;  %v8550_v0 = vcombine.low %v1412_v50, %v1416_v51  ;;  %v1214_v51 = vld [vmem:[#allocation9 + $0x90] sm:$0xff] }
 0x31c   : > { %2827 = vmatprep.subr.bf16.mxu1 %v8503_v1  ;;  %2913 = vmatprep.subr.bf16.mxu0 %v8505_v2  ;;  %v8552_v1 = vcombine.low %v1413_v52, %v1417_v54  ;;  %v8559_v2 = vcombine.high %v1420_v60, %v1424_v61  ;;  %v8561_v3 = vcombine.high %v1421_v62, %v1425_v63  ;;  %v1218_v52 = vld [vmem:[#allocation9 + $0xb0] sm:$0xff]  ;;  %v1215_v54 = vld [vmem:[#allocation9 + $0x98] sm:$0xff] }
 0x31f   : > { %2828 = vmatpush1.bf16.msra.mxu1 %v8502_v7  ;;  %2914 = vmatpush1.bf16.msra.mxu0 %v8504_v8  ;;  %v1433_v7 = vld [vmem:[#allocation9 + $0x768] sm:$0xff]  ;;  %v8558_v8 = vcombine.low %v1420_v60, %v1424_v61  ;;  %v1222_v61 = vld [vmem:[#allocation9 + $0xd0] sm:$0xff] }
 0x320   : > { %2829 = vmatprep.subr.bf16.mxu1 %v8511_v9  ;;  %2915 = vmatprep.subr.bf16.mxu0 %v8513_v10  ;;  %v8560_v9 = vcombine.low %v1421_v62, %v1425_v63  ;;  %v8567_v10 = vcombine.high %v1428_v4, %v1432_v5  ;;  %v8569_v11 = vcombine.high %v1429_v6, %v1433_v7  ;;  %v1226_v62 = vld [vmem:[#allocation9 + $0xf0] sm:$0xff]  ;;  %v1223_v63 = vld [vmem:[#allocation9 + $0xd8] sm:$0xff] }
 0x323   : > { %2830 = vmatpush1.bf16.msra.mxu1 %v8510_v15  ;;  %2916 = vmatpush1.bf16.msra.mxu0 %v8512_v16  ;;  %v1441_v15 = vld [vmem:[#allocation9 + $0x7a8] sm:$0xff]  ;;  %v8566_v16 = vcombine.low %v1428_v4, %v1432_v5  ;;  %v1230_v5 = vld [vmem:[#allocation9 + $0x110] sm:$0xff] }
 0x324   : > { %2831 = vmatprep.subr.bf16.mxu1 %v8519_v17  ;;  %2917 = vmatprep.subr.bf16.mxu0 %v8521_v18  ;;  %v8568_v17 = vcombine.low %v1429_v6, %v1433_v7  ;;  %v8575_v18 = vcombine.high %v1436_v12, %v1440_v13  ;;  %v8577_v19 = vcombine.high %v1437_v14, %v1441_v15  ;;  %v1234_v6 = vld [vmem:[#allocation9 + $0x130] sm:$0xff]  ;;  %v1235_v7 = vld [vmem:[#allocation9 + $0x138] sm:$0xff] }
 0x327   : > { %2832 = vmatpush1.bf16.msra.mxu1 %v8518_v25  ;;  %2918 = vmatpush1.bf16.msra.mxu0 %v8520_v31  ;;  %v1449_v25 = vld [vmem:[#allocation9 + $0x7e8] sm:$0xff]  ;;  %v8574_v31 = vcombine.low %v1436_v12, %v1440_v13  ;;  %v1238_v12 = vld [vmem:[#allocation9 + $0x150] sm:$0xff] }
 0x328   : > { %2833 = vmatprep.subr.bf16.mxu1 %v8527_v32  ;;  %2919 = vmatprep.subr.bf16.mxu0 %v8529_v33  ;;  %v8576_v32 = vcombine.low %v1437_v14, %v1441_v15  ;;  %v8583_v33 = vcombine.high %v1444_v20, %v1448_v23  ;;  %v8585_v34 = vcombine.high %v1445_v24, %v1449_v25  ;;  %v1242_v13 = vld [vmem:[#allocation9 + $0x170] sm:$0xff]  ;;  %v1239_v14 = vld [vmem:[#allocation9 + $0x158] sm:$0xff] }
 0x329   : > { %v1243_v15 = vld [vmem:[#allocation9 + $0x178] sm:$0xff] }
 0x32b   : > { %2834 = vmatpush1.bf16.msra.mxu1 %v8526_v38  ;;  %2920 = vmatpush1.bf16.msra.mxu0 %v8528_v39  ;;  %v1203_v38 = vld [vmem:[#allocation9 + $0x38] sm:$0xff]  ;;  %v8582_v39 = vcombine.low %v1444_v20, %v1448_v23  ;;  %v1246_v20 = vld [vmem:[#allocation9 + $0x190] sm:$0xff] }
 0x32c   : > { %2835 = vmatprep.subr.bf16.mxu1 %v8535_v40  ;;  %2921 = vmatprep.subr.bf16.mxu0 %v8537_v41  ;;  %v8584_v40 = vcombine.low %v1445_v24, %v1449_v25  ;;  %v8339_v41 = vcombine.high %v1198_v35, %v1202_v36  ;;  %v8341_v42 = vcombine.high %v1199_v37, %v1203_v38  ;;  %v1250_v23 = vld [vmem:[#allocation9 + $0x1b0] sm:$0xff]  ;;  %v1247_v24 = vld [vmem:[#allocation9 + $0x198] sm:$0xff] }
 0x32d   : > { %v1251_v25 = vld [vmem:[#allocation9 + $0x1b8] sm:$0xff] }
 0x32f   : > { %2836 = vmatpush1.bf16.msra.mxu1 %v8534_v46  ;;  %2922 = vmatpush1.bf16.msra.mxu0 %v8536_v47  ;;  %v1211_v46 = vld [vmem:[#allocation9 + $0x78] sm:$0xff]  ;;  %v8338_v47 = vcombine.low %v1198_v35, %v1202_v36  ;;  %v1254_v35 = vld [vmem:[#allocation9 + $0x1d0] sm:$0xff] }
 0x330   : > { %2837 = vmatprep.subr.bf16.mxu1 %v8543_v48  ;;  %2923 = vmatprep.subr.bf16.mxu0 %v8545_v49  ;;  %v8340_v48 = vcombine.low %v1199_v37, %v1203_v38  ;;  %v8347_v49 = vcombine.high %v1206_v43, %v1210_v44  ;;  %v8349_v50 = vcombine.high %v1207_v45, %v1211_v46  ;;  %v1258_v36 = vld [vmem:[#allocation9 + $0x1f0] sm:$0xff]  ;;  %v1255_v37 = vld [vmem:[#allocation9 + $0x1d8] sm:$0xff] }
 0x331   : > { %v1259_v38 = vld [vmem:[#allocation9 + $0x1f8] sm:$0xff] }
 0x333   : > { %2838 = vmatpush1.bf16.msra.mxu1 %v8542_v56  ;;  %2924 = vmatpush1.bf16.msra.mxu0 %v8544_v57  ;;  %v1219_v56 = vld [vmem:[#allocation9 + $0xb8] sm:$0xff]  ;;  %v8346_v57 = vcombine.low %v1206_v43, %v1210_v44  ;;  %v1262_v43 = vld [vmem:[#allocation9 + $0x210] sm:$0xff] }
 0x334   : > { %2839 = vmatprep.subr.bf16.mxu1 %v8551_v58  ;;  %2925 = vmatprep.subr.bf16.mxu0 %v8553_v59  ;;  %v8348_v58 = vcombine.low %v1207_v45, %v1211_v46  ;;  %v8355_v59 = vcombine.high %v1214_v51, %v1218_v52  ;;  %v8357_v60 = vcombine.high %v1215_v54, %v1219_v56  ;;  %v1266_v44 = vld [vmem:[#allocation9 + $0x230] sm:$0xff]  ;;  %v1263_v45 = vld [vmem:[#allocation9 + $0x218] sm:$0xff] }
 0x335   : > { %v1267_v46 = vld [vmem:[#allocation9 + $0x238] sm:$0xff] }
 0x337   : > { %2840 = vmatpush1.bf16.msra.mxu1 %v8550_v0  ;;  %2926 = vmatpush1.bf16.msra.mxu0 %v8552_v1  ;;  %v1227_v0 = vld [vmem:[#allocation9 + $0xf8] sm:$0xff]  ;;  %v8354_v1 = vcombine.low %v1214_v51, %v1218_v52  ;;  %v1270_v51 = vld [vmem:[#allocation9 + $0x250] sm:$0xff] }
 0x338   : > { %2841 = vmatprep.subr.bf16.mxu1 %v8559_v2  ;;  %2927 = vmatprep.subr.bf16.mxu0 %v8561_v3  ;;  %v8356_v2 = vcombine.low %v1215_v54, %v1219_v56  ;;  %v8363_v3 = vcombine.high %v1222_v61, %v1226_v62  ;;  %v8365_v4 = vcombine.high %v1223_v63, %v1227_v0  ;;  %v1274_v52 = vld [vmem:[#allocation9 + $0x270] sm:$0xff]  ;;  %v1271_v54 = vld [vmem:[#allocation9 + $0x258] sm:$0xff] }
 0x339   : > { %v1275_v56 = vld [vmem:[#allocation9 + $0x278] sm:$0xff] }
 0x33b   : > { %2842 = vmatpush1.bf16.msra.mxu1 %v8558_v8  ;;  %2928 = vmatpush1.bf16.msra.mxu0 %v8560_v9  ;;  %v8362_v8 = vcombine.low %v1222_v61, %v1226_v62  ;;  %v8364_v9 = vcombine.low %v1223_v63, %v1227_v0  ;;  %v1278_v61 = vld [vmem:[#allocation9 + $0x290] sm:$0xff]  ;;  %v1279_v63 = vld [vmem:[#allocation9 + $0x298] sm:$0xff] }
 0x33c   : > { %2843 = vmatprep.subr.bf16.mxu1 %v8567_v10  ;;  %2929 = vmatprep.subr.bf16.mxu0 %v8569_v11  ;;  %v8371_v10 = vcombine.high %v1230_v5, %v1234_v6  ;;  %v1282_v62 = vld [vmem:[#allocation9 + $0x2b0] sm:$0xff]  ;;  %v1283_v0 = vld [vmem:[#allocation9 + $0x2b8] sm:$0xff] }
 0x33f   : > { %2844 = vmatpush1.bf16.msra.mxu1 %v8566_v16  ;;  %2930 = vmatpush1.bf16.msra.mxu0 %v8568_v17  ;;  %v8370_v16 = vcombine.low %v1230_v5, %v1234_v6  ;;  %v1286_v5 = vld [vmem:[#allocation9 + $0x2d0] sm:$0xff] }
 0x340   : > { %2845 = vmatprep.subr.bf16.mxu1 %v8575_v18  ;;  %2931 = vmatprep.subr.bf16.mxu0 %v8577_v19  ;;  %v8379_v18 = vcombine.high %v1238_v12, %v1242_v13  ;;  %v8381_v19 = vcombine.high %v1239_v14, %v1243_v15  ;;  %v1290_v6 = vld [vmem:[#allocation9 + $0x2f0] sm:$0xff] }
 0x343   : > { %2846 = vmatpush1.bf16.msra.mxu1 %v8574_v31  ;;  %2932 = vmatpush1.bf16.msra.mxu0 %v8576_v32  ;;  %v8378_v31 = vcombine.low %v1238_v12, %v1242_v13  ;;  %v8380_v32 = vcombine.low %v1239_v14, %v1243_v15  ;;  %v1294_v12 = vld [vmem:[#allocation9 + $0x310] sm:$0xff]  ;;  %v1295_v14 = vld [vmem:[#allocation9 + $0x318] sm:$0xff] }
 0x344   : > { %2847 = vmatprep.subr.bf16.mxu1 %v8583_v33  ;;  %2933 = vmatprep.subr.bf16.mxu0 %v8585_v34  ;;  %v8387_v33 = vcombine.high %v1246_v20, %v1250_v23  ;;  %v8389_v34 = vcombine.high %v1247_v24, %v1251_v25  ;;  %v1298_v13 = vld [vmem:[#allocation9 + $0x330] sm:$0xff]  ;;  %v1299_v15 = vld [vmem:[#allocation9 + $0x338] sm:$0xff] }
 0x347   : > { %2848 = vmatpush1.bf16.msra.mxu1 %v8582_v39  ;;  %2934 = vmatpush1.bf16.msra.mxu0 %v8584_v40  ;;  %v8386_v39 = vcombine.low %v1246_v20, %v1250_v23  ;;  %v8388_v40 = vcombine.low %v1247_v24, %v1251_v25  ;;  %v1302_v20 = vld [vmem:[#allocation9 + $0x350] sm:$0xff]  ;;  %v1303_v24 = vld [vmem:[#allocation9 + $0x358] sm:$0xff] }
 0x348   : > { %2946 = vmatprep.subr.bf16.mxu1 %v8339_v41  ;;  %3032 = vmatprep.subr.bf16.mxu0 %v8341_v42  ;;  %v8395_v41 = vcombine.high %v1254_v35, %v1258_v36  ;;  %v8397_v42 = vcombine.high %v1255_v37, %v1259_v38  ;;  %v1306_v23 = vld [vmem:[#allocation9 + $0x370] sm:$0xff]  ;;  %v1307_v25 = vld [vmem:[#allocation9 + $0x378] sm:$0xff] }
 0x34a   : > { %2850 = vmatmul.mubr.bf16.vlgmr.msra.gmra.mrb[4].mxu1 %v9851_v22  ;;  %2936 = vmatmul.mubr.bf16.vlgmr.msra.gmra.mrb[8].mxu0 %v9851_v22 }
 0x34b   : > { %2947 = vmatpush1.bf16.msra.mxu1 %v8338_v47  ;;  %2978 = vmatprep.mubr.bf16.mxu1 %v9853_v26  ;;  %v8394_v47 = vcombine.low %v1254_v35, %v1258_v36  ;;  %v1310_v35 = vld [vmem:[#allocation9 + $0x390] sm:$0xff] }
 0x34c   : > { %3033 = vmatpush1.bf16.msra.mxu0 %v8340_v48  ;;  %3064 = vmatprep.mubr.bf16.mxu0 %v9853_v26  ;;  %v1231_v26 = vld [vmem:[#allocation9 + $0x118] sm:$0xff]  ;;  %v8396_v48 = vcombine.low %v1255_v37, %v1259_v38  ;;  %v1314_v36 = vld [vmem:[#allocation9 + $0x3b0] sm:$0xff] }
 0x34d   : > { %2948 = vmatprep.subr.bf16.mxu1 %v8347_v49  ;;  %3034 = vmatprep.subr.bf16.mxu0 %v8349_v50  ;;  %v8373_v11 = vcombine.high %v1231_v26, %v1235_v7  ;;  %v8372_v17 = vcombine.low %v1231_v26, %v1235_v7  ;;  %v8403_v49 = vcombine.high %v1262_v43, %v1266_v44  ;;  %v1287_v26 = vld [vmem:[#allocation9 + $0x2d8] sm:$0xff] }
 0x34e   : > { %v8405_v50 = vcombine.high %v1263_v45, %v1267_v46  ;;  %v1291_v7 = vld [vmem:[#allocation9 + $0x2f8] sm:$0xff] }
 0x34f   : > { %2949 = vmatpush1.bf16.msra.mxu1 %v8346_v57  ;;  %v8402_v57 = vcombine.low %v1262_v43, %v1266_v44  ;;  %v1311_v37 = vld [vmem:[#allocation9 + $0x398] sm:$0xff]  ;;  %v1318_v43 = vld [vmem:[#allocation9 + $0x3d0] sm:$0xff] }
 0x350   : > { %3035 = vmatpush1.bf16.msra.mxu0 %v8348_v58  ;;  %2950 = vmatprep.subr.bf16.mxu1 %v8355_v59  ;;  %v8404_v58 = vcombine.low %v1263_v45, %v1267_v46  ;;  %v8411_v59 = vcombine.high %v1270_v51, %v1274_v52  ;;  %v1315_v38 = vld [vmem:[#allocation9 + $0x3b8] sm:$0xff]  ;;  %v1322_v44 = vld [vmem:[#allocation9 + $0x3f0] sm:$0xff] }
 0x351   : > { %3036 = vmatprep.subr.bf16.mxu0 %v8357_v60  ;;  %v8413_v60 = vcombine.high %v1271_v54, %v1275_v56  ;;  %v1319_v45 = vld [vmem:[#allocation9 + $0x3d8] sm:$0xff] }
 0x352   : > { %v1323_v46 = vld [vmem:[#allocation9 + $0x3f8] sm:$0xff] }
 0x353   : > { %2951 = vmatpush1.bf16.msra.mxu1 %v8354_v1  ;;  %v8410_v1 = vcombine.low %v1270_v51, %v1274_v52  ;;  %v1326_v51 = vld [vmem:[#allocation9 + $0x410] sm:$0xff] }
 0x354   : > { %3037 = vmatpush1.bf16.msra.mxu0 %v8356_v2  ;;  %2952 = vmatprep.subr.bf16.mxu1 %v8363_v3  ;;  %v8412_v2 = vcombine.low %v1271_v54, %v1275_v56  ;;  %v8419_v3 = vcombine.high %v1278_v61, %v1282_v62  ;;  %v1330_v52 = vld [vmem:[#allocation9 + $0x430] sm:$0xff]  ;;  %v1327_v54 = vld [vmem:[#allocation9 + $0x418] sm:$0xff] }
 0x355   : > { %3038 = vmatprep.subr.bf16.mxu0 %v8365_v4  ;;  %v8421_v4 = vcombine.high %v1279_v63, %v1283_v0  ;;  %v1331_v56 = vld [vmem:[#allocation9 + $0x438] sm:$0xff] }
 0x357   : > { %2953 = vmatpush1.bf16.msra.mxu1 %v8362_v8  ;;  %v8418_v8 = vcombine.low %v1278_v61, %v1282_v62  ;;  %v1334_v61 = vld [vmem:[#allocation9 + $0x450] sm:$0xff] }
 0x358   : > { %3039 = vmatpush1.bf16.msra.mxu0 %v8364_v9  ;;  %2954 = vmatprep.subr.bf16.mxu1 %v8371_v10  ;;  %v8420_v9 = vcombine.low %v1279_v63, %v1283_v0  ;;  %v8427_v10 = vcombine.high %v1286_v5, %v1290_v6  ;;  %v1338_v62 = vld [vmem:[#allocation9 + $0x470] sm:$0xff]  ;;  %v8466_v63 = vcombine.low %v1326_v51, %v1330_v52  ;;  %v1335_v0 = vld [vmem:[#allocation9 + $0x458] sm:$0xff] }
 0x359   : > { %3040 = vmatprep.subr.bf16.mxu0 %v8373_v11  ;;  %v8429_v11 = vcombine.high %v1287_v26, %v1291_v7 }
 0x35b   : > { %2955 = vmatpush1.bf16.msra.mxu1 %v8370_v16  ;;  %v8426_v16 = vcombine.low %v1286_v5, %v1290_v6  ;;  %v1346_v5 = vld [vmem:[#allocation9 + $0x4b0] sm:$0xff] }
 0x35c   : > { %3041 = vmatpush1.bf16.msra.mxu0 %v8372_v17  ;;  %2956 = vmatprep.subr.bf16.mxu1 %v8379_v18  ;;  %v8428_v17 = vcombine.low %v1287_v26, %v1291_v7  ;;  %v8435_v18 = vcombine.high %v1294_v12, %v1298_v13  ;;  %v1343_v26 = vld [vmem:[#allocation9 + $0x498] sm:$0xff] }
 0x35d   : > { %3042 = vmatprep.subr.bf16.mxu0 %v8381_v19  ;;  %v8437_v19 = vcombine.high %v1295_v14, %v1299_v15  ;;  %v1347_v7 = vld [vmem:[#allocation9 + $0x4b8] sm:$0xff] }
 0x35f   : > { %2957 = vmatpush1.bf16.msra.mxu1 %v8378_v31  ;;  %v8434_v31 = vcombine.low %v1294_v12, %v1298_v13  ;;  %v1350_v12 = vld [vmem:[#allocation9 + $0x4d0] sm:$0xff] }
 0x360   : > { %3043 = vmatpush1.bf16.msra.mxu0 %v8380_v32  ;;  %2958 = vmatprep.subr.bf16.mxu1 %v8387_v33  ;;  %v8436_v32 = vcombine.low %v1295_v14, %v1299_v15  ;;  %v8443_v33 = vcombine.high %v1302_v20, %v1306_v23  ;;  %v1354_v13 = vld [vmem:[#allocation9 + $0x4f0] sm:$0xff]  ;;  %v1351_v14 = vld [vmem:[#allocation9 + $0x4d8] sm:$0xff] }
 0x361   : > { %3044 = vmatprep.subr.bf16.mxu0 %v8389_v34  ;;  %v8445_v34 = vcombine.high %v1303_v24, %v1307_v25  ;;  %v1355_v15 = vld [vmem:[#allocation9 + $0x4f8] sm:$0xff] }
 0x363   : > { %2959 = vmatpush1.bf16.msra.mxu1 %v8386_v39  ;;  %v8442_v39 = vcombine.low %v1302_v20, %v1306_v23  ;;  %v1362_v20 = vld [vmem:[#allocation9 + $0x530] sm:$0xff]  ;;  %v1359_v23 = vld [vmem:[#allocation9 + $0x518] sm:$0xff] }
 0x364   : > { %3045 = vmatpush1.bf16.msra.mxu0 %v8388_v40  ;;  %2960 = vmatprep.subr.bf16.mxu1 %v8395_v41  ;;  %v8444_v40 = vcombine.low %v1303_v24, %v1307_v25  ;;  %v8451_v41 = vcombine.high %v1310_v35, %v1314_v36  ;;  %v1363_v24 = vld [vmem:[#allocation9 + $0x538] sm:$0xff]  ;;  %v8492_v25 = vcombine.low %v1351_v14, %v1355_v15 }
 0x365   : > { %3046 = vmatprep.subr.bf16.mxu0 %v8397_v42  ;;  %v8453_v42 = vcombine.high %v1311_v37, %v1315_v38 }
 0x367   : > { %2961 = vmatpush1.bf16.msra.mxu1 %v8394_v47  ;;  %v8450_v47 = vcombine.low %v1310_v35, %v1314_v36  ;;  %v1367_v35 = vld [vmem:[#allocation9 + $0x558] sm:$0xff] }
 0x368   : > { %3047 = vmatpush1.bf16.msra.mxu0 %v8396_v48  ;;  %2962 = vmatprep.subr.bf16.mxu1 %v8403_v49  ;;  %v8452_v48 = vcombine.low %v1311_v37, %v1315_v38  ;;  %v8459_v49 = vcombine.high %v1318_v43, %v1322_v44  ;;  %v1371_v36 = vld [vmem:[#allocation9 + $0x578] sm:$0xff]  ;;  %v8500_v38 = vcombine.low %v1359_v23, %v1363_v24 }
 0x369   : > { %3048 = vmatprep.subr.bf16.mxu0 %v8405_v50  ;;  %v8461_v50 = vcombine.high %v1319_v45, %v1323_v46 }
 0x36b   : > { %2963 = vmatpush1.bf16.msra.mxu1 %v8402_v57  ;;  %v8458_v57 = vcombine.low %v1318_v43, %v1322_v44  ;;  %v1375_v43 = vld [vmem:[#allocation9 + $0x598] sm:$0xff] }
 0x36c   : > { %3049 = vmatpush1.bf16.msra.mxu0 %v8404_v58  ;;  %2964 = vmatprep.subr.bf16.mxu1 %v8411_v59  ;;  %v8460_v58 = vcombine.low %v1319_v45, %v1323_v46  ;;  %v8467_v59 = vcombine.high %v1326_v51, %v1330_v52  ;;  %v1379_v44 = vld [vmem:[#allocation9 + $0x5b8] sm:$0xff]  ;;  %v8508_v46 = vcombine.low %v1367_v35, %v1371_v36 }
 0x36d   : > { %3050 = vmatprep.subr.bf16.mxu0 %v8413_v60  ;;  %v8469_v60 = vcombine.high %v1327_v54, %v1331_v56  ;;  %v1383_v51 = vld [vmem:[#allocation9 + $0x5d8] sm:$0xff] }
 0x36e   : > { %v1387_v52 = vld [vmem:[#allocation9 + $0x5f8] sm:$0xff] }
 0x36f   : > { %2965 = vmatpush1.bf16.msra.mxu1 %v8410_v1  ;;  %v1339_v1 = vld [vmem:[#allocation9 + $0x478] sm:$0xff] }
 0x370   : > { %3051 = vmatpush1.bf16.msra.mxu0 %v8412_v2  ;;  %2966 = vmatprep.subr.bf16.mxu1 %v8419_v3  ;;  %v8468_v2 = vcombine.low %v1327_v54, %v1331_v56  ;;  %v8475_v3 = vcombine.high %v1334_v61, %v1338_v62  ;;  %v8477_v6 = vcombine.high %v1335_v0, %v1339_v1 }
 0x371   : > { %3052 = vmatprep.subr.bf16.mxu0 %v8421_v4  ;;  %v1342_v4 = vld [vmem:[#allocation9 + $0x490] sm:$0xff]  ;;  %v8516_v56 = vcombine.low %v1375_v43, %v1379_v44 }
 0x373   : > { %2967 = vmatpush1.bf16.msra.mxu1 %v8418_v8  ;;  %v8474_v8 = vcombine.low %v1334_v61, %v1338_v62  ;;  %v1391_v61 = vld [vmem:[#allocation9 + $0x618] sm:$0xff] }
 0x374   : > { %3053 = vmatpush1.bf16.msra.mxu0 %v8420_v9  ;;  %2968 = vmatprep.subr.bf16.mxu1 %v8427_v10  ;;  %v8476_v9 = vcombine.low %v1335_v0, %v1339_v1  ;;  %v8483_v10 = vcombine.high %v1342_v4, %v1346_v5  ;;  %v1395_v62 = vld [vmem:[#allocation9 + $0x638] sm:$0xff]  ;;  %v8524_v0 = vcombine.low %v1383_v51, %v1387_v52 }
 0x375   : > { %3054 = vmatprep.subr.bf16.mxu0 %v8429_v11  ;;  %v8485_v11 = vcombine.high %v1343_v26, %v1347_v7 }
 0x377   : > { %2969 = vmatpush1.bf16.msra.mxu1 %v8426_v16  ;;  %v8482_v16 = vcombine.low %v1342_v4, %v1346_v5  ;;  %v1402_v4 = vld [vmem:[#allocation9 + $0x670] sm:$0xff]  ;;  %v1399_v5 = vld [vmem:[#allocation9 + $0x658] sm:$0xff] }
 0x378   : > { %3055 = vmatpush1.bf16.msra.mxu0 %v8428_v17  ;;  %2970 = vmatprep.subr.bf16.mxu1 %v8435_v18  ;;  %v8491_v17 = vcombine.high %v1350_v12, %v1354_v13  ;;  %v8493_v18 = vcombine.high %v1351_v14, %v1355_v15 }
 0x379   : > { %3056 = vmatprep.subr.bf16.mxu0 %v8437_v19  ;;  %v1358_v19 = vld [vmem:[#allocation9 + $0x510] sm:$0xff] }
 0x37a   : > { %v8498_v37 = vcombine.low %v1358_v19, %v1362_v20 }
 0x37b   : > { %2971 = vmatpush1.bf16.msra.mxu1 %v8434_v31  ;;  %v8499_v31 = vcombine.high %v1358_v19, %v1362_v20  ;;  %v1415_v19 = vld [vmem:[#allocation9 + $0x6d8] sm:$0xff] }
 0x37c   : > { %3057 = vmatpush1.bf16.msra.mxu0 %v8436_v32  ;;  %2972 = vmatprep.subr.bf16.mxu1 %v8443_v33  ;;  %v8501_v32 = vcombine.high %v1359_v23, %v1363_v24  ;;  %v1366_v33 = vld [vmem:[#allocation9 + $0x550] sm:$0xff]  ;;  %v1419_v20 = vld [vmem:[#allocation9 + $0x6f8] sm:$0xff] }
 0x37d   : > { %3058 = vmatprep.subr.bf16.mxu0 %v8445_v34  ;;  %v1370_v34 = vld [vmem:[#allocation9 + $0x570] sm:$0xff] }
 0x37e   : > { %v8506_v45 = vcombine.low %v1366_v33, %v1370_v34 }
 0x37f   : > { %2973 = vmatpush1.bf16.msra.mxu1 %v8442_v39  ;;  %v8507_v39 = vcombine.high %v1366_v33, %v1370_v34  ;;  %v1423_v33 = vld [vmem:[#allocation9 + $0x718] sm:$0xff] }
 0x380   : > { %3059 = vmatpush1.bf16.msra.mxu0 %v8444_v40  ;;  %2974 = vmatprep.subr.bf16.mxu1 %v8451_v41  ;;  %v8509_v40 = vcombine.high %v1367_v35, %v1371_v36  ;;  %v1374_v41 = vld [vmem:[#allocation9 + $0x590] sm:$0xff]  ;;  %v1427_v34 = vld [vmem:[#allocation9 + $0x738] sm:$0xff]  ;;  %v8556_v36 = vcombine.low %v1415_v19, %v1419_v20 }
 0x381   : > { %3060 = vmatprep.subr.bf16.mxu0 %v8453_v42  ;;  %v1378_v42 = vld [vmem:[#allocation9 + $0x5b0] sm:$0xff] }
 0x382   : > { %v8514_v54 = vcombine.low %v1374_v41, %v1378_v42 }
 0x383   : > { %2975 = vmatpush1.bf16.msra.mxu1 %v8450_v47  ;;  %v8515_v47 = vcombine.high %v1374_v41, %v1378_v42  ;;  %v1431_v41 = vld [vmem:[#allocation9 + $0x758] sm:$0xff] }
 0x384   : > { %3061 = vmatpush1.bf16.msra.mxu0 %v8452_v48  ;;  %2976 = vmatprep.subr.bf16.mxu1 %v8459_v49  ;;  %v8517_v48 = vcombine.high %v1375_v43, %v1379_v44  ;;  %v1382_v49 = vld [vmem:[#allocation9 + $0x5d0] sm:$0xff]  ;;  %v1435_v42 = vld [vmem:[#allocation9 + $0x778] sm:$0xff]  ;;  %v8564_v44 = vcombine.low %v1423_v33, %v1427_v34 }
 0x385   : > { %3062 = vmatprep.subr.bf16.mxu0 %v8461_v50  ;;  %v1386_v50 = vld [vmem:[#allocation9 + $0x5f0] sm:$0xff] }
 0x387   : > { %2977 = vmatpush1.bf16.msra.mxu1 %v8458_v57  ;;  %v8523_v57 = vcombine.high %v1382_v49, %v1386_v50 }
 0x388   : > { %3063 = vmatpush1.bf16.msra.mxu0 %v8460_v58  ;;  %2989 = vmatprep.subr.bf16.mxu1 %v8467_v59  ;;  %v8525_v58 = vcombine.high %v1383_v51, %v1387_v52  ;;  %v1390_v59 = vld [vmem:[#allocation9 + $0x610] sm:$0xff]  ;;  %v8572_v52 = vcombine.low %v1431_v41, %v1435_v42 }
 0x389   : > { %3075 = vmatprep.subr.bf16.mxu0 %v8469_v60  ;;  %v1394_v60 = vld [vmem:[#allocation9 + $0x630] sm:$0xff] }
 0x38a   : > { %2979 = vmatmul.mubr.bf16.vlgmr.msra.gmra.mrb[8].mxu1 %v9849_v21  ;;  %v8531_v1 = vcombine.high %v1390_v59, %v1394_v60 }
 0x38b   : > { %3065 = vmatmul.mubr.bf16.vlgmr.msra.gmra.mrb[12].mxu0 %v9849_v21  ;;  %2990 = vmatpush1.bf16.msra.mxu1 %v8466_v63  ;;  %v8484_v21 = vcombine.low %v1343_v26, %v1347_v7  ;;  %v8522_v63 = vcombine.low %v1382_v49, %v1386_v50  ;;  %v8530_v26 = vcombine.low %v1390_v59, %v1394_v60  ;;  %v1439_v49 = vld [vmem:[#allocation9 + $0x798] sm:$0xff] }
 0x38c   : > { %3021 = vmatprep.mubr.bf16.mxu1 %v9855_v29  ;;  %3076 = vmatpush1.bf16.msra.mxu0 %v8468_v2  ;;  %v8533_v2 = vcombine.high %v1391_v61, %v1395_v62  ;;  %v8532_v7 = vcombine.low %v1391_v61, %v1395_v62  ;;  %v1443_v50 = vld [vmem:[#allocation9 + $0x7b8] sm:$0xff] }
 0x38d   : > { %3107 = vmatprep.mubr.bf16.mxu0 %v9855_v29  ;;  %2991 = vmatprep.subr.bf16.mxu1 %v8475_v3  ;;  %v8490_v29 = vcombine.low %v1350_v12, %v1354_v13  ;;  %v1398_v3 = vld [vmem:[#allocation9 + $0x650] sm:$0xff]  ;;  %v1407_v12 = vld [vmem:[#allocation9 + $0x698] sm:$0xff]  ;;  %v8580_v62 = vcombine.low %v1439_v49, %v1443_v50 }
 0x38e   : > { %3077 = vmatprep.subr.bf16.mxu0 %v8477_v6  ;;  %v1403_v6 = vld [vmem:[#allocation9 + $0x678] sm:$0xff]  ;;  %v8538_v14 = vcombine.low %v1398_v3, %v1402_v4 }
 0x38f   : > { %2992 = vmatpush1.bf16.msra.mxu1 %v8474_v8  ;;  %v8539_v8 = vcombine.high %v1398_v3, %v1402_v4  ;;  %v1411_v13 = vld [vmem:[#allocation9 + $0x6b8] sm:$0xff]  ;;  %v8540_v15 = vcombine.low %v1399_v5, %v1403_v6 }
 0x390   : > { %3078 = vmatpush1.bf16.msra.mxu0 %v8476_v9  ;;  %2993 = vmatprep.subr.bf16.mxu1 %v8483_v10  ;;  %v8541_v9 = vcombine.high %v1399_v5, %v1403_v6  ;;  %v1406_v10 = vld [vmem:[#allocation9 + $0x690] sm:$0xff]  ;;  %v8548_v24 = vcombine.low %v1407_v12, %v1411_v13  ;;  %v1447_v59 = vld [vmem:[#allocation9 + $0x7d8] sm:$0xff]  ;;  %v3142_v6 = vld [vmem:[%s9820_s10] sm:$0xff] }
 0x391   : > { %3079 = vmatprep.subr.bf16.mxu0 %v8485_v11  ;;  %v1410_v11 = vld [vmem:[#allocation9 + $0x6b0] sm:$0xff]  ;;  %v1451_v60 = vld [vmem:[#allocation9 + $0x7f8] sm:$0xff] }
 0x392   : > { %v8546_v23 = vcombine.low %v1406_v10, %v1410_v11  ;;  %v8588_v4 = vcombine.low %v1447_v59, %v1451_v60 }
 0x393   : > { %2994 = vmatpush1.bf16.msra.mxu1 %v8482_v16  ;;  %v8547_v16 = vcombine.high %v1406_v10, %v1410_v11 }
 0x394   : > { %3080 = vmatpush1.bf16.msra.mxu0 %v8484_v21  ;;  %2995 = vmatprep.subr.bf16.mxu1 %v8491_v17  ;;  %v8549_v21 = vcombine.high %v1407_v12, %v1411_v13  ;;  %v1414_v17 = vld [vmem:[#allocation9 + $0x6d0] sm:$0xff]  ;;  %v3169_v13 = vld [vmem:[%s9820_s10 + $0xd8] sm:$0xff] }
 0x395   : > { %3081 = vmatprep.subr.bf16.mxu0 %v8493_v18  ;;  %v1418_v18 = vld [vmem:[#allocation9 + $0x6f0] sm:$0xff] }
 0x396   : > { %v8554_v35 = vcombine.low %v1414_v17, %v1418_v18  ;;  %v3167_v12 = vld [vmem:[%s9820_s10 + $0xc8] sm:$0xff] }
 0x397   : > { %2996 = vmatpush1.bf16.msra.mxu1 %v8490_v29  ;;  %v8555_v29 = vcombine.high %v1414_v17, %v1418_v18  ;;  %v3961_v17 = vunpack.c.l.s8.bf16 %v3169_v13  ;;  %v3168_v18 = vld [vmem:[%s9820_s10 + $0xd0] sm:$0xff] }
 0x398   : > { %3082 = vmatpush1.bf16.msra.mxu0 %v8492_v25  ;;  %2997 = vmatprep.subr.bf16.mxu1 %v8499_v31  ;;  %v8557_v25 = vcombine.high %v1415_v19, %v1419_v20  ;;  %v1422_v31 = vld [vmem:[#allocation9 + $0x710] sm:$0xff]  ;;  %v3960_v20 = vunpack.c.l.s8.bf16 %v3168_v18 }
 0x399   : > { %3083 = vmatprep.subr.bf16.mxu0 %v8501_v32  ;;  %v1426_v32 = vld [vmem:[#allocation9 + $0x730] sm:$0xff] }
 0x39a   : > { %v8562_v43 = vcombine.low %v1422_v31, %v1426_v32 }
 0x39b   : > { %2998 = vmatpush1.bf16.msra.mxu1 %v8498_v37  ;;  %v8563_v37 = vcombine.high %v1422_v31, %v1426_v32  ;;  %v3984_v31 = vunpack.c.h.s8.bf16 %v3168_v18 }
 0x39c   : > { %3084 = vmatpush1.bf16.msra.mxu0 %v8500_v38  ;;  %2999 = vmatprep.subr.bf16.mxu1 %v8507_v39  ;;  %v8565_v38 = vcombine.high %v1423_v33, %v1427_v34  ;;  %v1430_v39 = vld [vmem:[#allocation9 + $0x750] sm:$0xff]  ;;  %v3190_v33 = vld [vmem:[%s9820_s10 + $0x180] sm:$0xff] }
 0x39d   : > { %3085 = vmatprep.subr.bf16.mxu0 %v8509_v40  ;;  %v1434_v40 = vld [vmem:[#allocation9 + $0x770] sm:$0xff] }
 0x39e   : > { %v8570_v51 = vcombine.low %v1430_v39, %v1434_v40 }
 0x39f   : > { %3000 = vmatpush1.bf16.msra.mxu1 %v8506_v45  ;;  %v8571_v45 = vcombine.high %v1430_v39, %v1434_v40  ;;  %v3215_v40 = vld [vmem:[%s9820_s10 + $0x248] sm:$0xff] }
 0x3a0   : > { %3086 = vmatpush1.bf16.msra.mxu0 %v8508_v46  ;;  %3001 = vmatprep.subr.bf16.mxu1 %v8515_v47  ;;  %v8573_v46 = vcombine.high %v1431_v41, %v1435_v42  ;;  %v1438_v47 = vld [vmem:[#allocation9 + $0x790] sm:$0xff]  ;;  %v3217_v41 = vld [vmem:[%s9820_s10 + $0x258] sm:$0xff]  ;;  %v4030_v42 = vunpack.c.h.s8.bf16 %v3190_v33 }
 0x3a1   : > { %3087 = vmatprep.subr.bf16.mxu0 %v8517_v48  ;;  %v1442_v48 = vld [vmem:[#allocation9 + $0x7b0] sm:$0xff] }
 0x3a2   : > { %v8578_v61 = vcombine.low %v1438_v47, %v1442_v48 }
 0x3a3   : > { %3002 = vmatpush1.bf16.msra.mxu1 %v8514_v54  ;;  %v8579_v54 = vcombine.high %v1438_v47, %v1442_v48  ;;  %v3216_v47 = vld [vmem:[%s9820_s10 + $0x250] sm:$0xff] }
 0x3a4   : > { %3088 = vmatpush1.bf16.msra.mxu0 %v8516_v56  ;;  %3003 = vmatprep.subr.bf16.mxu1 %v8523_v57  ;;  %v8581_v56 = vcombine.high %v1439_v49, %v1443_v50  ;;  %v1446_v57 = vld [vmem:[#allocation9 + $0x7d0] sm:$0xff]  ;;  %v4056_v49 = vunpack.c.l.s8.bf16 %v3216_v47  ;;  %v4079_v50 = vunpack.c.h.s8.bf16 %v3215_v40 }
 0x3a5   : > { %3089 = vmatprep.subr.bf16.mxu0 %v8525_v58  ;;  %v1450_v58 = vld [vmem:[#allocation9 + $0x7f0] sm:$0xff] }
 0x3a6   : > { %v8586_v3 = vcombine.low %v1446_v57, %v1450_v58 }
 0x3a7   : > { %3004 = vmatpush1.bf16.msra.mxu1 %v8522_v63  ;;  %v8587_v63 = vcombine.high %v1446_v57, %v1450_v58  ;;  %v4080_v57 = vunpack.c.h.s8.bf16 %v3216_v47  ;;  %v9913_v47 = vld [vmem:[#allocation10] sm:$0xff] }
 0x3a8   : > { %3090 = vmatpush1.bf16.msra.mxu0 %v8524_v0  ;;  %3005 = vmatprep.subr.bf16.mxu1 %v8531_v1  ;;  %v8589_v0 = vcombine.high %v1447_v59, %v1451_v60  ;;  %v3143_v1 = vld [vmem:[%s9820_s10 + $0x8] sm:$0xff]  ;;  %v3238_v59 = vld [vmem:[%s9820_s10 + $0x300] sm:$0xff] }
 0x3a9   : > { %3091 = vmatprep.subr.bf16.mxu0 %v8533_v2  ;;  %v3145_v2 = vld [vmem:[%s9820_s10 + $0x18] sm:$0xff]  ;;  %v3911_v5 = vunpack.c.l.s8.bf16 %v3143_v1  ;;  %v3935_v10 = vunpack.c.h.s8.bf16 %v3143_v1 }
 0x3aa   : > { %v3937_v11 = vunpack.c.h.s8.bf16 %v3145_v2 }
 0x3ab   : > { %3006 = vmatpush1.bf16.msra.mxu1 %v8530_v26  ;;  %v3913_v26 = vunpack.c.l.s8.bf16 %v3145_v2  ;;  %v3263_v2 = vld [vmem:[%s9820_s10 + $0x3c8] sm:$0xff] }
 0x3ac   : > { %3092 = vmatpush1.bf16.msra.mxu0 %v8532_v7  ;;  %3007 = vmatprep.subr.bf16.mxu1 %v8539_v8  ;;  %v3144_v7 = vld [vmem:[%s9820_s10 + $0x10] sm:$0xff]  ;;  %v3910_v8 = vunpack.c.l.s8.bf16 %v3142_v6 }
 0x3ad   : > { %3093 = vmatprep.subr.bf16.mxu0 %v8541_v9  ;;  %v3912_v9 = vunpack.c.l.s8.bf16 %v3144_v7 }
 0x3af   : > { %3008 = vmatpush1.bf16.msra.mxu1 %v8538_v14  ;;  %v3934_v14 = vunpack.c.h.s8.bf16 %v3142_v6  ;;  %v4151_v6 = vunpack.c.l.s8.bf16 %v3263_v2 }
 0x3b0   : > { %3094 = vmatpush1.bf16.msra.mxu0 %v8540_v15  ;;  %3009 = vmatprep.subr.bf16.mxu1 %v8547_v16  ;;  %v3936_v15 = vunpack.c.h.s8.bf16 %v3144_v7  ;;  %v3959_v16 = vunpack.c.l.s8.bf16 %v3167_v12 }
 0x3b1   : > { %3095 = vmatprep.subr.bf16.mxu0 %v8549_v21  ;;  %v3166_v21 = vld [vmem:[%s9820_s10 + $0xc0] sm:$0xff] }
 0x3b2   : > { %v3958_v19 = vunpack.c.l.s8.bf16 %v3166_v21 }
 0x3b3   : > { %3010 = vmatpush1.bf16.msra.mxu1 %v8546_v23  ;;  %v3985_v23 = vunpack.c.h.s8.bf16 %v3169_v13  ;;  %v3287_v13 = vld [vmem:[%s9820_s10 + $0x488] sm:$0xff] }
 0x3b4   : > { %3096 = vmatpush1.bf16.msra.mxu0 %v8548_v24  ;;  %3011 = vmatprep.subr.bf16.mxu1 %v8555_v29  ;;  %v3191_v24 = vld [vmem:[%s9820_s10 + $0x188] sm:$0xff]  ;;  %v3193_v29 = vld [vmem:[%s9820_s10 + $0x198] sm:$0xff] }
 0x3b5   : > { %3097 = vmatprep.subr.bf16.mxu0 %v8557_v25  ;;  %v3982_v25 = vunpack.c.h.s8.bf16 %v3166_v21  ;;  %v4007_v32 = vunpack.c.l.s8.bf16 %v3191_v24  ;;  %v4009_v34 = vunpack.c.l.s8.bf16 %v3193_v29  ;;  %v4033_v39 = vunpack.c.h.s8.bf16 %v3193_v29  ;;  %v3311_v29 = vld [vmem:[%s9820_s10 + $0x548] sm:$0xff] }
 0x3b6   : > { %v4199_v21 = vunpack.c.l.s8.bf16 %v3287_v13 }
 0x3b7   : > { %3012 = vmatpush1.bf16.msra.mxu1 %v8554_v35  ;;  %v3192_v35 = vld [vmem:[%s9820_s10 + $0x190] sm:$0xff] }
 0x3b8   : > { %3098 = vmatpush1.bf16.msra.mxu0 %v8556_v36  ;;  %3013 = vmatprep.subr.bf16.mxu1 %v8563_v37  ;;  %v4006_v36 = vunpack.c.l.s8.bf16 %v3190_v33  ;;  %v4008_v37 = vunpack.c.l.s8.bf16 %v3192_v35  ;;  %v4247_v33 = vunpack.c.l.s8.bf16 %v3311_v29 }
 0x3b9   : > { %3099 = vmatprep.subr.bf16.mxu0 %v8565_v38  ;;  %v4031_v38 = vunpack.c.h.s8.bf16 %v3191_v24 }
 0x3bb   : > { %3014 = vmatpush1.bf16.msra.mxu1 %v8562_v43  ;;  %v4032_v43 = vunpack.c.h.s8.bf16 %v3192_v35 }
 0x3bc   : > { %3100 = vmatpush1.bf16.msra.mxu0 %v8564_v44  ;;  %3015 = vmatprep.subr.bf16.mxu1 %v8571_v45  ;;  %v4055_v44 = vunpack.c.l.s8.bf16 %v3215_v40  ;;  %v3214_v45 = vld [vmem:[%s9820_s10 + $0x240] sm:$0xff] }
 0x3bd   : > { %3101 = vmatprep.subr.bf16.mxu0 %v8573_v46  ;;  %v4057_v46 = vunpack.c.l.s8.bf16 %v3217_v41  ;;  %v4054_v48 = vunpack.c.l.s8.bf16 %v3214_v45 }
 0x3bf   : > { %3016 = vmatpush1.bf16.msra.mxu1 %v8570_v51  ;;  %v4081_v51 = vunpack.c.h.s8.bf16 %v3217_v41  ;;  %v9906_v41 = vld [vmem:[%s9820_s10 + $0x608] sm:$0xff] }
 0x3c0   : > { %3102 = vmatpush1.bf16.msra.mxu0 %v8572_v52  ;;  %3017 = vmatprep.subr.bf16.mxu1 %v8579_v54  ;;  %v3239_v52 = vld [vmem:[%s9820_s10 + $0x308] sm:$0xff]  ;;  %v3241_v54 = vld [vmem:[%s9820_s10 + $0x318] sm:$0xff] }
 0x3c1   : > { %3103 = vmatprep.subr.bf16.mxu0 %v8581_v56  ;;  %v4078_v56 = vunpack.c.h.s8.bf16 %v3214_v45  ;;  %v4103_v58 = vunpack.c.l.s8.bf16 %v3239_v52  ;;  %v4105_v60 = vunpack.c.l.s8.bf16 %v3241_v54  ;;  %v4129_v1 = vunpack.c.h.s8.bf16 %v3241_v54 }
 0x3c2   : > { %v4295_v45 = vunpack.c.l.s8.bf16 %v9906_v41 }
 0x3c3   : > { %3018 = vmatpush1.bf16.msra.mxu1 %v8578_v61  ;;  %v3240_v61 = vld [vmem:[%s9820_s10 + $0x310] sm:$0xff] }
 0x3c4   : > { %3104 = vmatpush1.bf16.msra.mxu0 %v8580_v62  ;;  %3019 = vmatprep.subr.bf16.mxu1 %v8587_v63  ;;  %v4102_v62 = vunpack.c.l.s8.bf16 %v3238_v59  ;;  %v4104_v63 = vunpack.c.l.s8.bf16 %v3240_v61 }
 0x3c5   : > { %3105 = vmatprep.subr.bf16.mxu0 %v8589_v0  ;;  %v4127_v0 = vunpack.c.h.s8.bf16 %v3239_v52 }
 0x3c7   : > { %3020 = vmatpush1.bf16.msra.mxu1 %v8586_v3  ;;  %v3265_v3 = vld [vmem:[%s9820_s10 + $0x3d8] sm:$0xff] }
 0x3c8   : > { %3106 = vmatpush1.bf16.msra.mxu0 %v8588_v4  ;;  %5446 = vmatprep.subr.bf16.mxu1 %v3911_v5  ;;  %v4126_v4 = vunpack.c.h.s8.bf16 %v3238_v59  ;;  %v4128_v5 = vunpack.c.h.s8.bf16 %v3240_v61  ;;  %v4153_v7 = vunpack.c.l.s8.bf16 %v3265_v3 }
 0x3c9   : > { %5618 = vmatprep.subr.bf16.mxu0 %v3913_v26  ;;  %v3262_v26 = vld [vmem:[%s9820_s10 + $0x3c0] sm:$0xff] }
 0x3ca   : > { %3022 = vmatmul.mubr.bf16.vlgmr.msra.gmra.mrb[8].mxu1 %v9851_v22 }
 0x3cb   : > { %3108 = vmatmul.mubr.bf16.vlgmr.msra.gmra.mrb[12].mxu0 %v9851_v22  ;;  %5447 = vmatpush1.bf16.msra.mxu1 %v3910_v8  ;;  %v3983_v22 = vunpack.c.h.s8.bf16 %v3167_v12  ;;  %v3264_v8 = vld [vmem:[%s9820_s10 + $0x3d0] sm:$0xff]  ;;  %v4177_v12 = vunpack.c.h.s8.bf16 %v3265_v3 }
 0x3cc   : > { %5619 = vmatpush1.bf16.msra.mxu0 %v3912_v9  ;;  %5448 = vmatprep.subr.bf16.mxu1 %v3935_v10  ;;  %v4150_v9 = vunpack.c.l.s8.bf16 %v3262_v26  ;;  %v4152_v10 = vunpack.c.l.s8.bf16 %v3264_v8 }
 0x3cd   : > { %5620 = vmatprep.subr.bf16.mxu0 %v3937_v11  ;;  %v4175_v11 = vunpack.c.h.s8.bf16 %v3263_v2 }
 0x3cf   : > { %5449 = vmatpush1.bf16.msra.mxu1 %v3934_v14  ;;  %v3289_v14 = vld [vmem:[%s9820_s10 + $0x498] sm:$0xff] }
 0x3d0   : > { %5621 = vmatpush1.bf16.msra.mxu0 %v3936_v15  ;;  %5450 = vmatprep.subr.bf16.mxu1 %v3959_v16  ;;  %v4174_v15 = vunpack.c.h.s8.bf16 %v3262_v26  ;;  %v4176_v16 = vunpack.c.h.s8.bf16 %v3264_v8  ;;  %v4201_v18 = vunpack.c.l.s8.bf16 %v3289_v14  ;;  %v4225_v24 = vunpack.c.h.s8.bf16 %v3289_v14 }
 0x3d1   : > { %5622 = vmatprep.subr.bf16.mxu0 %v3961_v17  ;;  %v3286_v17 = vld [vmem:[%s9820_s10 + $0x480] sm:$0xff] }
 0x3d3   : > { %5451 = vmatpush1.bf16.msra.mxu1 %v3958_v19  ;;  %v3288_v19 = vld [vmem:[%s9820_s10 + $0x490] sm:$0xff] }
 0x3d4   : > { %5623 = vmatpush1.bf16.msra.mxu0 %v3960_v20  ;;  %5452 = vmatprep.subr.bf16.mxu1 %v3983_v22  ;;  %v4198_v20 = vunpack.c.l.s8.bf16 %v3286_v17  ;;  %v4200_v22 = vunpack.c.l.s8.bf16 %v3288_v19 }
 0x3d5   : > { %5624 = vmatprep.subr.bf16.mxu0 %v3985_v23  ;;  %v4223_v23 = vunpack.c.h.s8.bf16 %v3287_v13 }
 0x3d7   : > { %5453 = vmatpush1.bf16.msra.mxu1 %v3982_v25  ;;  %v3313_v25 = vld [vmem:[%s9820_s10 + $0x558] sm:$0xff] }
 0x3d8   : > { %5625 = vmatpush1.bf16.msra.mxu0 %v3984_v31  ;;  %5454 = vmatprep.subr.bf16.mxu1 %v4007_v32  ;;  %v4222_v31 = vunpack.c.h.s8.bf16 %v3286_v17  ;;  %v4224_v32 = vunpack.c.h.s8.bf16 %v3288_v19  ;;  %v4249_v35 = vunpack.c.l.s8.bf16 %v3313_v25  ;;  %v4273_v40 = vunpack.c.h.s8.bf16 %v3313_v25 }
 0x3d9   : > { %5626 = vmatprep.subr.bf16.mxu0 %v4009_v34  ;;  %v3310_v34 = vld [vmem:[%s9820_s10 + $0x540] sm:$0xff] }
 0x3db   : > { %5455 = vmatpush1.bf16.msra.mxu1 %v4006_v36  ;;  %v3312_v36 = vld [vmem:[%s9820_s10 + $0x550] sm:$0xff] }
 0x3dc   : > { %5627 = vmatpush1.bf16.msra.mxu0 %v4008_v37  ;;  %5456 = vmatprep.subr.bf16.mxu1 %v4031_v38  ;;  %v4246_v37 = vunpack.c.l.s8.bf16 %v3310_v34  ;;  %v4248_v38 = vunpack.c.l.s8.bf16 %v3312_v36 }
 0x3dd   : > { %5628 = vmatprep.subr.bf16.mxu0 %v4033_v39  ;;  %v4271_v39 = vunpack.c.h.s8.bf16 %v3311_v29 }
 0x3df   : > { %5457 = vmatpush1.bf16.msra.mxu1 %v4030_v42  ;;  %v9909_v42 = vld [vmem:[%s9820_s10 + $0x618] sm:$0xff] }
 0x3e0   : > { %5629 = vmatpush1.bf16.msra.mxu0 %v4032_v43  ;;  %5458 = vmatprep.subr.bf16.mxu1 %v4055_v44  ;;  %v4270_v43 = vunpack.c.h.s8.bf16 %v3310_v34  ;;  %v4272_v44 = vunpack.c.h.s8.bf16 %v3312_v36  ;;  %v3360_v34 = vld [vmem:[%s9820_s10 + $0x6d0] sm:$0xff] }
 0x3e1   : > { %5630 = vmatprep.subr.bf16.mxu0 %v4057_v46  ;;  %v4297_v46 = vunpack.c.l.s8.bf16 %v9909_v42  ;;  %v4344_v36 = vunpack.c.l.s8.bf16 %v3360_v34 }
 0x3e3   : > { %5459 = vmatpush1.bf16.msra.mxu1 %v4054_v48  ;;  %v1457_v48 = vrot.slane %v9913_v47, %v9832_v28 }
 0x3e4   : > { %5631 = vmatpush1.bf16.msra.mxu0 %v4056_v49  ;;  %5460 = vmatprep.subr.bf16.mxu1 %v4079_v50  ;;  %v1465_v49 = vrot.slane %v9913_v47, %v9840_v53  ;;  %v1461_v50 = vrot.slane %v9913_v47, %v9835_v30 }
 0x3e5   : > { %5632 = vmatprep.subr.bf16.mxu0 %v4081_v51  ;;  %v1469_v51 = vrot.slane %v9913_v47, %v9843_v55 }
 0x3e7   : > { %5461 = vmatpush1.bf16.msra.mxu1 %v4078_v56 }
 0x3e8   : > { %5633 = vmatpush1.bf16.msra.mxu0 %v4080_v57  ;;  %5462 = vmatprep.subr.bf16.mxu1 %v4103_v58 }
 0x3e9   : > { %5634 = vmatprep.subr.bf16.mxu0 %v4105_v60 }
 0x3eb   : > { %5463 = vmatpush1.bf16.msra.mxu1 %v4102_v62 }
 0x3ec   : > { %5635 = vmatpush1.bf16.msra.mxu0 %v4104_v63  ;;  %5464 = vmatprep.subr.bf16.mxu1 %v4127_v0 }
 0x3ed   : > { %5636 = vmatprep.subr.bf16.mxu0 %v4129_v1 }
 0x3ef   : > { %5465 = vmatpush1.bf16.msra.mxu1 %v4126_v4 }
 0x3f0   : > { %5637 = vmatpush1.bf16.msra.mxu0 %v4128_v5  ;;  %5466 = vmatprep.subr.bf16.mxu1 %v4151_v6 }
 0x3f1   : > { %5638 = vmatprep.subr.bf16.mxu0 %v4153_v7 }
 0x3f3   : > { %5467 = vmatpush1.bf16.msra.mxu1 %v4150_v9  ;;  %v3334_v9 = vld [vmem:[%s9820_s10 + $0x600] sm:$0xff] }
 0x3f4   : > { %5639 = vmatpush1.bf16.msra.mxu0 %v4152_v10  ;;  %5468 = vmatprep.subr.bf16.mxu1 %v4175_v11  ;;  %v3336_v10 = vld [vmem:[%s9820_s10 + $0x610] sm:$0xff]  ;;  %v4318_v29 = vunpack.c.h.s8.bf16 %v3334_v9 }
 0x3f5   : > { %5640 = vmatprep.subr.bf16.mxu0 %v4177_v12  ;;  %v4296_v19 = vunpack.c.l.s8.bf16 %v3336_v10  ;;  %v4320_v25 = vunpack.c.h.s8.bf16 %v3336_v10 }
 0x3f7   : > { %5469 = vmatpush1.bf16.msra.mxu1 %v4174_v15 }
 0x3f8   : > { %5641 = vmatpush1.bf16.msra.mxu0 %v4176_v16  ;;  %5470 = vmatprep.subr.bf16.mxu1 %v4199_v21 }
 0x3f9   : > { %5642 = vmatprep.subr.bf16.mxu0 %v4201_v18  ;;  %v4294_v18 = vunpack.c.l.s8.bf16 %v3334_v9 }
 0x3fb   : > { %5471 = vmatpush1.bf16.msra.mxu1 %v4198_v20  ;;  %v4319_v20 = vunpack.c.h.s8.bf16 %v9906_v41 }
 0x3fc   : > { %5643 = vmatpush1.bf16.msra.mxu0 %v4200_v22  ;;  %5472 = vmatprep.subr.bf16.mxu1 %v4223_v23  ;;  %v4321_v22 = vunpack.c.h.s8.bf16 %v9909_v42  ;;  %v3359_v23 = vld [vmem:[%s9820_s10 + $0x6c8] sm:$0xff]  ;;  %v4368_v42 = vunpack.c.h.s8.bf16 %v3360_v34  ;;  %v3481_v34 = vld [vmem:[%s9820_s10 + $0xa98] sm:$0xff] }
 0x3fd   : > { %5644 = vmatprep.subr.bf16.mxu0 %v4225_v24  ;;  %v3361_v24 = vld [vmem:[%s9820_s10 + $0x6d8] sm:$0xff] }
 0x3ff   : > { %5473 = vmatpush1.bf16.msra.mxu1 %v4222_v31  ;;  %v4343_v31 = vunpack.c.l.s8.bf16 %v3359_v23 }
 0x400   : > { %5645 = vmatpush1.bf16.msra.mxu0 %v4224_v32  ;;  %5474 = vmatprep.subr.bf16.mxu1 %v4247_v33  ;;  %v4345_v32 = vunpack.c.l.s8.bf16 %v3361_v24  ;;  %v3358_v33 = vld [vmem:[%s9820_s10 + $0x6c0] sm:$0xff] }
 0x401   : > { %5646 = vmatprep.subr.bf16.mxu0 %v4249_v35  ;;  %v4342_v35 = vunpack.c.l.s8.bf16 %v3358_v33  ;;  %v4366_v41 = vunpack.c.h.s8.bf16 %v3358_v33  ;;  %v3479_v33 = vld [vmem:[%s9820_s10 + $0xa88] sm:$0xff] }
 0x403   : > { %5475 = vmatpush1.bf16.msra.mxu1 %v4246_v37  ;;  %v4367_v37 = vunpack.c.h.s8.bf16 %v3359_v23  ;;  %v3454_v23 = vld [vmem:[%s9820_s10 + $0x9c0] sm:$0xff] }
 0x404   : > { %5647 = vmatpush1.bf16.msra.mxu0 %v4248_v38  ;;  %5476 = vmatprep.subr.bf16.mxu1 %v4271_v39  ;;  %v4369_v38 = vunpack.c.h.s8.bf16 %v3361_v24  ;;  %v3383_v39 = vld [vmem:[%s9820_s10 + $0x788] sm:$0xff]  ;;  %v3456_v24 = vld [vmem:[%s9820_s10 + $0x9d0] sm:$0xff] }
 0x405   : > { %5648 = vmatprep.subr.bf16.mxu0 %v4273_v40  ;;  %v3385_v40 = vld [vmem:[%s9820_s10 + $0x798] sm:$0xff] }
 0x407   : > { %5477 = vmatpush1.bf16.msra.mxu1 %v4270_v43  ;;  %v4391_v43 = vunpack.c.l.s8.bf16 %v3383_v39 }
 0x408   : > { %5649 = vmatpush1.bf16.msra.mxu0 %v4272_v44  ;;  %5489 = vmatprep.subr.bf16.mxu1 %v4295_v45  ;;  %v4393_v44 = vunpack.c.l.s8.bf16 %v3385_v40  ;;  %v3382_v45 = vld [vmem:[%s9820_s10 + $0x780] sm:$0xff] }
 0x409   : > { %5661 = vmatprep.subr.bf16.mxu0 %v4297_v46  ;;  %v3384_v46 = vld [vmem:[%s9820_s10 + $0x790] sm:$0xff] }
 0x41d   : > { %v2851_v52 = vpop.f32.mrb[4].mxu1  ;;  %v2937_v54 = vpop.f32.mrb[8].mxu0 }
 0x41e   : > { %v8596_v56 = vadd.f32 %v2851_v52, %v1457_v48  ;;  %v8600_v57 = vadd.f32 %v2937_v54, %v1465_v49  ;;  %v2853_v58 = vpop.f32.mrb[5].mxu1  ;;  %v2939_v59 = vpop.f32.mrb[9].mxu0  ;;  %v3407_v52 = vld [vmem:[%s9820_s10 + $0x848] sm:$0xff]  ;;  %v3409_v54 = vld [vmem:[%s9820_s10 + $0x858] sm:$0xff] }
 0x41f   : > { %v8597_v60 = vadd.f32 %v2853_v58, %v1461_v50  ;;  %v8601_v61 = vadd.f32 %v2939_v59, %v1469_v51  ;;  %v2855_v62 = vpop.f32.mrb[6].mxu1  ;;  %v2941_v63 = vpop.f32.mrb[10].mxu0  ;;  %v4439_v58 = vunpack.c.l.s8.bf16 %v3407_v52  ;;  %v4441_v59 = vunpack.c.l.s8.bf16 %v3409_v54 }
 0x420   : > { %v8598_v0 = vadd.f32 %v2855_v62, %v1457_v48  ;;  %v8602_v1 = vadd.f32 %v2941_v63, %v1465_v49  ;;  %v2857_v2 = vpop.f32.mrb[7].mxu1  ;;  %v2943_v3 = vpop.f32.mrb[11].mxu0  ;;  %v3118_v6 = vmax.f32 %v8596_v56, 0.0  ;;  %v3120_v26 = vmax.f32 %v8600_v57, 0.0 }
 0x421   : > { %v8599_v4 = vadd.f32 %v2857_v2, %v1461_v50  ;;  %v8603_v5 = vadd.f32 %v2943_v3, %v1469_v51  ;;  %v3119_v11 = vmax.f32 %v8597_v60, 0.0  ;;  %v3121_v12 = vmax.f32 %v8601_v61, 0.0  ;;  %v3406_v60 = vld [vmem:[%s9820_s10 + $0x840] sm:$0xff]  ;;  %v3408_v61 = vld [vmem:[%s9820_s10 + $0x850] sm:$0xff]  ;;  %v3431_v2 = vld [vmem:[%s9820_s10 + $0x908] sm:$0xff] }
 0x422   : > { %v3126_v7 = vmax.f32 %v8598_v0, 0.0  ;;  %v3128_v8 = vmax.f32 %v8602_v1, 0.0  ;;  %v4390_v48 = vunpack.c.l.s8.bf16 %v3382_v45  ;;  %v4392_v49 = vunpack.c.l.s8.bf16 %v3384_v46  ;;  %v3433_v3 = vld [vmem:[%s9820_s10 + $0x918] sm:$0xff] }
 0x423   : > { %v3127_v13 = vmax.f32 %v8599_v4, 0.0  ;;  %v3129_v14 = vmax.f32 %v8603_v5, 0.0  ;;  %v4415_v50 = vunpack.c.h.s8.bf16 %v3383_v39  ;;  %v4417_v51 = vunpack.c.h.s8.bf16 %v3385_v40  ;;  %v3478_v39 = vld [vmem:[%s9820_s10 + $0xa80] sm:$0xff]  ;;  %v3480_v40 = vld [vmem:[%s9820_s10 + $0xa90] sm:$0xff] }
 0x424   : > { %v9925_v15 = vpack.c.bf16 %v3126_v7, %v3118_v6  ;;  %v9927_v16 = vpack.c.bf16 %v3128_v8, %v3120_v26  ;;  %v4414_v56 = vunpack.c.h.s8.bf16 %v3382_v45  ;;  %v4416_v57 = vunpack.c.h.s8.bf16 %v3384_v46  ;;  %v3430_v7 = vld [vmem:[%s9820_s10 + $0x900] sm:$0xff]  ;;  %v3432_v8 = vld [vmem:[%s9820_s10 + $0x910] sm:$0xff]  ;;  %v3503_v45 = vld [vmem:[%s9820_s10 + $0xb48] sm:$0xff] }
 0x425   : > { %v9929_v21 = vpack.c.bf16 %v3127_v13, %v3119_v11  ;;  %v9931_v17 = vpack.c.bf16 %v3129_v14, %v3121_v12  ;;  %v4438_v62 = vunpack.c.l.s8.bf16 %v3406_v60  ;;  %v4440_v63 = vunpack.c.l.s8.bf16 %v3408_v61  ;;  %v3455_v13 = vld [vmem:[%s9820_s10 + $0x9c8] sm:$0xff]  ;;  %v3457_v14 = vld [vmem:[%s9820_s10 + $0x9d8] sm:$0xff] }
 0x426   : > { %v4463_v0 = vunpack.c.h.s8.bf16 %v3407_v52  ;;  %v4465_v1 = vunpack.c.h.s8.bf16 %v3409_v54  ;;  %v4462_v4 = vunpack.c.h.s8.bf16 %v3406_v60  ;;  %v4464_v5 = vunpack.c.h.s8.bf16 %v3408_v61  ;;  %v3505_v46 = vld [vmem:[%s9820_s10 + $0xb58] sm:$0xff]  ;;  %v3502_v52 = vld [vmem:[%s9820_s10 + $0xb40] sm:$0xff]  ;;  %v3504_v54 = vld [vmem:[%s9820_s10 + $0xb50] sm:$0xff] }
 0x427   : > { %5478 = vmatprep.mubr.bf16.mxu1 %v9929_v21  ;;  %5650 = vmatprep.mubr.bf16.mxu0 %v9929_v21  ;;  %v4487_v6 = vunpack.c.l.s8.bf16 %v3431_v2  ;;  %v4489_v26 = vunpack.c.l.s8.bf16 %v3433_v3  ;;  %v4486_v9 = vunpack.c.l.s8.bf16 %v3430_v7  ;;  %v4488_v10 = vunpack.c.l.s8.bf16 %v3432_v8  ;;  %v3527_v60 = vld [vmem:[%s9820_s10 + $0xc08] sm:$0xff]  ;;  %v3529_v61 = vld [vmem:[%s9820_s10 + $0xc18] sm:$0xff] }
 0x428   : > { %5479 = vmatmul.mubr.bf16.vlgmr.msra.gmra.mrb[12].mxu1 %v9925_v15  ;;  %5651 = vmatmul.mubr.bf16.vlgmr.msra.gmra.mrb[16].mxu0 %v9925_v15  ;;  %v4511_v11 = vunpack.c.h.s8.bf16 %v3431_v2  ;;  %v4513_v12 = vunpack.c.h.s8.bf16 %v3433_v3  ;;  %v3526_v2 = vld [vmem:[%s9820_s10 + $0xc00] sm:$0xff]  ;;  %v3528_v3 = vld [vmem:[%s9820_s10 + $0xc10] sm:$0xff] }
 0x429   : > { %5490 = vmatpush1.bf16.msra.mxu1 %v4294_v18  ;;  %5662 = vmatpush1.bf16.msra.mxu0 %v4296_v19  ;;  %v4510_v18 = vunpack.c.h.s8.bf16 %v3430_v7  ;;  %v4512_v19 = vunpack.c.h.s8.bf16 %v3432_v8  ;;  %v3551_v7 = vld [vmem:[%s9820_s10 + $0xcc8] sm:$0xff]  ;;  %v3553_v8 = vld [vmem:[%s9820_s10 + $0xcd8] sm:$0xff] }
 0x42a   : > { %5521 = vmatprep.mubr.bf16.mxu1 %v9931_v17  ;;  %5693 = vmatprep.mubr.bf16.mxu0 %v9931_v17 }
 0x42b   : > { %5491 = vmatprep.subr.bf16.mxu1 %v4319_v20  ;;  %5663 = vmatprep.subr.bf16.mxu0 %v4321_v22  ;;  %v4535_v20 = vunpack.c.l.s8.bf16 %v3455_v13  ;;  %v4537_v22 = vunpack.c.l.s8.bf16 %v3457_v14 }
 0x42d   : > { %5492 = vmatpush1.bf16.msra.mxu1 %v4318_v29  ;;  %5664 = vmatpush1.bf16.msra.mxu0 %v4320_v25  ;;  %v4534_v29 = vunpack.c.l.s8.bf16 %v3454_v23  ;;  %v4536_v25 = vunpack.c.l.s8.bf16 %v3456_v24 }
 0x42e   : > { %5493 = vmatprep.subr.bf16.mxu1 %v4343_v31  ;;  %5665 = vmatprep.subr.bf16.mxu0 %v4345_v32  ;;  %v4559_v31 = vunpack.c.h.s8.bf16 %v3455_v13  ;;  %v4561_v32 = vunpack.c.h.s8.bf16 %v3457_v14  ;;  %v3550_v13 = vld [vmem:[%s9820_s10 + $0xcc0] sm:$0xff]  ;;  %v3552_v14 = vld [vmem:[%s9820_s10 + $0xcd0] sm:$0xff] }
 0x431   : > { %5494 = vmatpush1.bf16.msra.mxu1 %v4342_v35  ;;  %5666 = vmatpush1.bf16.msra.mxu0 %v4344_v36  ;;  %v4558_v35 = vunpack.c.h.s8.bf16 %v3454_v23  ;;  %v4560_v36 = vunpack.c.h.s8.bf16 %v3456_v24  ;;  %v3575_v23 = vld [vmem:[%s9820_s10 + $0xd88] sm:$0xff]  ;;  %v3577_v24 = vld [vmem:[%s9820_s10 + $0xd98] sm:$0xff] }
 0x432   : > { %5495 = vmatprep.subr.bf16.mxu1 %v4367_v37  ;;  %5667 = vmatprep.subr.bf16.mxu0 %v4369_v38  ;;  %v4583_v37 = vunpack.c.l.s8.bf16 %v3479_v33  ;;  %v4585_v38 = vunpack.c.l.s8.bf16 %v3481_v34 }
 0x435   : > { %5496 = vmatpush1.bf16.msra.mxu1 %v4366_v41  ;;  %5668 = vmatpush1.bf16.msra.mxu0 %v4368_v42  ;;  %v4582_v41 = vunpack.c.l.s8.bf16 %v3478_v39  ;;  %v4584_v42 = vunpack.c.l.s8.bf16 %v3480_v40 }
 0x436   : > { %5497 = vmatprep.subr.bf16.mxu1 %v4391_v43  ;;  %5669 = vmatprep.subr.bf16.mxu0 %v4393_v44  ;;  %v4607_v43 = vunpack.c.h.s8.bf16 %v3479_v33  ;;  %v4609_v44 = vunpack.c.h.s8.bf16 %v3481_v34  ;;  %v3574_v33 = vld [vmem:[%s9820_s10 + $0xd80] sm:$0xff]  ;;  %v3576_v34 = vld [vmem:[%s9820_s10 + $0xd90] sm:$0xff] }
 0x439   : > { %5498 = vmatpush1.bf16.msra.mxu1 %v4390_v48  ;;  %5670 = vmatpush1.bf16.msra.mxu0 %v4392_v49  ;;  %v4606_v48 = vunpack.c.h.s8.bf16 %v3478_v39  ;;  %v4608_v49 = vunpack.c.h.s8.bf16 %v3480_v40  ;;  %v3599_v39 = vld [vmem:[%s9820_s10 + $0xe48] sm:$0xff]  ;;  %v3601_v40 = vld [vmem:[%s9820_s10 + $0xe58] sm:$0xff] }
 0x43a   : > { %5499 = vmatprep.subr.bf16.mxu1 %v4415_v50  ;;  %5671 = vmatprep.subr.bf16.mxu0 %v4417_v51  ;;  %v4631_v50 = vunpack.c.l.s8.bf16 %v3503_v45  ;;  %v4633_v51 = vunpack.c.l.s8.bf16 %v3505_v46 }
 0x43d   : > { %5500 = vmatpush1.bf16.msra.mxu1 %v4414_v56  ;;  %5672 = vmatpush1.bf16.msra.mxu0 %v4416_v57  ;;  %v4630_v56 = vunpack.c.l.s8.bf16 %v3502_v52  ;;  %v4632_v57 = vunpack.c.l.s8.bf16 %v3504_v54 }
 0x43e   : > { %5501 = vmatprep.subr.bf16.mxu1 %v4439_v58  ;;  %5673 = vmatprep.subr.bf16.mxu0 %v4441_v59  ;;  %v4655_v58 = vunpack.c.h.s8.bf16 %v3503_v45  ;;  %v4657_v59 = vunpack.c.h.s8.bf16 %v3505_v46  ;;  %v3598_v45 = vld [vmem:[%s9820_s10 + $0xe40] sm:$0xff]  ;;  %v3600_v46 = vld [vmem:[%s9820_s10 + $0xe50] sm:$0xff] }
 0x441   : > { %5502 = vmatpush1.bf16.msra.mxu1 %v4438_v62  ;;  %5674 = vmatpush1.bf16.msra.mxu0 %v4440_v63  ;;  %v4654_v62 = vunpack.c.h.s8.bf16 %v3502_v52  ;;  %v4656_v63 = vunpack.c.h.s8.bf16 %v3504_v54  ;;  %v3623_v52 = vld [vmem:[%s9820_s10 + $0xf08] sm:$0xff]  ;;  %v3625_v54 = vld [vmem:[%s9820_s10 + $0xf18] sm:$0xff] }
 0x442   : > { %5503 = vmatprep.subr.bf16.mxu1 %v4463_v0  ;;  %5675 = vmatprep.subr.bf16.mxu0 %v4465_v1  ;;  %v4679_v0 = vunpack.c.l.s8.bf16 %v3527_v60  ;;  %v4681_v1 = vunpack.c.l.s8.bf16 %v3529_v61 }
 0x445   : > { %5504 = vmatpush1.bf16.msra.mxu1 %v4462_v4  ;;  %5676 = vmatpush1.bf16.msra.mxu0 %v4464_v5  ;;  %v4678_v4 = vunpack.c.l.s8.bf16 %v3526_v2  ;;  %v4680_v5 = vunpack.c.l.s8.bf16 %v3528_v3 }
 0x446   : > { %5505 = vmatprep.subr.bf16.mxu1 %v4487_v6  ;;  %5677 = vmatprep.subr.bf16.mxu0 %v4489_v26  ;;  %v4703_v6 = vunpack.c.h.s8.bf16 %v3527_v60  ;;  %v4705_v26 = vunpack.c.h.s8.bf16 %v3529_v61  ;;  %v3622_v60 = vld [vmem:[%s9820_s10 + $0xf00] sm:$0xff]  ;;  %v3624_v61 = vld [vmem:[%s9820_s10 + $0xf10] sm:$0xff] }
 0x449   : > { %5506 = vmatpush1.bf16.msra.mxu1 %v4486_v9  ;;  %5678 = vmatpush1.bf16.msra.mxu0 %v4488_v10  ;;  %v4702_v9 = vunpack.c.h.s8.bf16 %v3526_v2  ;;  %v4704_v10 = vunpack.c.h.s8.bf16 %v3528_v3  ;;  %v3647_v2 = vld [vmem:[%s9820_s10 + $0xfc8] sm:$0xff]  ;;  %v3649_v3 = vld [vmem:[%s9820_s10 + $0xfd8] sm:$0xff] }
 0x44a   : > { %5507 = vmatprep.subr.bf16.mxu1 %v4511_v11  ;;  %5679 = vmatprep.subr.bf16.mxu0 %v4513_v12  ;;  %v4727_v11 = vunpack.c.l.s8.bf16 %v3551_v7  ;;  %v4729_v12 = vunpack.c.l.s8.bf16 %v3553_v8 }
 0x44d   : > { %5508 = vmatpush1.bf16.msra.mxu1 %v4510_v18  ;;  %5680 = vmatpush1.bf16.msra.mxu0 %v4512_v19  ;;  %v4726_v18 = vunpack.c.l.s8.bf16 %v3550_v13  ;;  %v4728_v19 = vunpack.c.l.s8.bf16 %v3552_v14 }
 0x44e   : > { %5509 = vmatprep.subr.bf16.mxu1 %v4535_v20  ;;  %5681 = vmatprep.subr.bf16.mxu0 %v4537_v22  ;;  %v4751_v20 = vunpack.c.h.s8.bf16 %v3551_v7  ;;  %v4753_v22 = vunpack.c.h.s8.bf16 %v3553_v8  ;;  %v3646_v7 = vld [vmem:[%s9820_s10 + $0xfc0] sm:$0xff]  ;;  %v3648_v8 = vld [vmem:[%s9820_s10 + $0xfd0] sm:$0xff] }
 0x451   : > { %5510 = vmatpush1.bf16.msra.mxu1 %v4534_v29  ;;  %5682 = vmatpush1.bf16.msra.mxu0 %v4536_v25  ;;  %v4750_v29 = vunpack.c.h.s8.bf16 %v3550_v13  ;;  %v4752_v25 = vunpack.c.h.s8.bf16 %v3552_v14  ;;  %v3671_v13 = vld [vmem:[%s9820_s10 + $0x1088] sm:$0xff]  ;;  %v3673_v14 = vld [vmem:[%s9820_s10 + $0x1098] sm:$0xff] }
 0x452   : > { %5511 = vmatprep.subr.bf16.mxu1 %v4559_v31  ;;  %5683 = vmatprep.subr.bf16.mxu0 %v4561_v32  ;;  %v4775_v31 = vunpack.c.l.s8.bf16 %v3575_v23  ;;  %v4777_v32 = vunpack.c.l.s8.bf16 %v3577_v24 }
 0x455   : > { %5512 = vmatpush1.bf16.msra.mxu1 %v4558_v35  ;;  %5684 = vmatpush1.bf16.msra.mxu0 %v4560_v36  ;;  %v4774_v35 = vunpack.c.l.s8.bf16 %v3574_v33  ;;  %v4776_v36 = vunpack.c.l.s8.bf16 %v3576_v34 }
 0x456   : > { %5513 = vmatprep.subr.bf16.mxu1 %v4583_v37  ;;  %5685 = vmatprep.subr.bf16.mxu0 %v4585_v38  ;;  %v4799_v37 = vunpack.c.h.s8.bf16 %v3575_v23  ;;  %v4801_v38 = vunpack.c.h.s8.bf16 %v3577_v24  ;;  %v3670_v23 = vld [vmem:[%s9820_s10 + $0x1080] sm:$0xff]  ;;  %v3672_v24 = vld [vmem:[%s9820_s10 + $0x1090] sm:$0xff] }
 0x459   : > { %5514 = vmatpush1.bf16.msra.mxu1 %v4582_v41  ;;  %5686 = vmatpush1.bf16.msra.mxu0 %v4584_v42  ;;  %v4798_v41 = vunpack.c.h.s8.bf16 %v3574_v33  ;;  %v4800_v42 = vunpack.c.h.s8.bf16 %v3576_v34  ;;  %v10000_v33 = vsub.s32 4, %v9829_v27  ;;  %v10003_v34 = vsub.s32 6, %v9829_v27 }
 0x45a   : > { %5515 = vmatprep.subr.bf16.mxu1 %v4607_v43  ;;  %5687 = vmatprep.subr.bf16.mxu0 %v4609_v44  ;;  %v4823_v43 = vunpack.c.l.s8.bf16 %v3599_v39  ;;  %v4825_v44 = vunpack.c.l.s8.bf16 %v3601_v40 }
 0x45d   : > { %5516 = vmatpush1.bf16.msra.mxu1 %v4606_v48  ;;  %5688 = vmatpush1.bf16.msra.mxu0 %v4608_v49  ;;  %v4822_v48 = vunpack.c.l.s8.bf16 %v3598_v45  ;;  %v4824_v49 = vunpack.c.l.s8.bf16 %v3600_v46 }
 0x45e   : > { %5517 = vmatprep.subr.bf16.mxu1 %v4631_v50  ;;  %5689 = vmatprep.subr.bf16.mxu0 %v4633_v51  ;;  %v4847_v50 = vunpack.c.h.s8.bf16 %v3599_v39  ;;  %v4849_v51 = vunpack.c.h.s8.bf16 %v3601_v40  ;;  %v4990_v39 = vunpack.c.h.s8.bf16 %v3670_v23  ;;  %v4992_v40 = vunpack.c.h.s8.bf16 %v3672_v24 }
 0x461   : > { %5518 = vmatpush1.bf16.msra.mxu1 %v4630_v56  ;;  %5690 = vmatpush1.bf16.msra.mxu0 %v4632_v57  ;;  %v4846_v56 = vunpack.c.h.s8.bf16 %v3598_v45  ;;  %v4848_v57 = vunpack.c.h.s8.bf16 %v3600_v46  ;;  %v3696_v45 = vld [vmem:[%s9820_s10 + $0x1150] sm:$0xff]  ;;  %v1481_v46 = vrot.slane %v9913_v47, %v10003_v34 }
 0x462   : > { %5519 = vmatprep.subr.bf16.mxu1 %v4655_v58  ;;  %5691 = vmatprep.subr.bf16.mxu0 %v4657_v59  ;;  %v4871_v58 = vunpack.c.l.s8.bf16 %v3623_v52  ;;  %v4873_v59 = vunpack.c.l.s8.bf16 %v3625_v54 }
 0x465   : > { %5520 = vmatpush1.bf16.msra.mxu1 %v4654_v62  ;;  %5692 = vmatpush1.bf16.msra.mxu0 %v4656_v63  ;;  %v4870_v62 = vunpack.c.l.s8.bf16 %v3622_v60  ;;  %v4872_v63 = vunpack.c.l.s8.bf16 %v3624_v61 }
 0x466   : > { %5532 = vmatprep.subr.bf16.mxu1 %v4679_v0  ;;  %5704 = vmatprep.subr.bf16.mxu0 %v4681_v1  ;;  %v4895_v0 = vunpack.c.h.s8.bf16 %v3623_v52  ;;  %v4897_v1 = vunpack.c.h.s8.bf16 %v3625_v54 }
 0x468   : > { %5522 = vmatmul.mubr.bf16.vlgmr.msra.gmra.mrb[12].mxu1 %v9927_v16  ;;  %5694 = vmatmul.mubr.bf16.vlgmr.msra.gmra.mrb[16].mxu0 %v9927_v16 }
 0x469   : > { %5533 = vmatpush1.bf16.msra.mxu1 %v4678_v4  ;;  %5705 = vmatpush1.bf16.msra.mxu0 %v4680_v5  ;;  %v4894_v4 = vunpack.c.h.s8.bf16 %v3622_v60  ;;  %v4896_v5 = vunpack.c.h.s8.bf16 %v3624_v61 }
 0x46a   : > { %5534 = vmatprep.subr.bf16.mxu1 %v4703_v6  ;;  %5706 = vmatprep.subr.bf16.mxu0 %v4705_v26  ;;  %v4919_v6 = vunpack.c.l.s8.bf16 %v3647_v2  ;;  %v4921_v26 = vunpack.c.l.s8.bf16 %v3649_v3 }
 0x46d   : > { %5535 = vmatpush1.bf16.msra.mxu1 %v4702_v9  ;;  %5707 = vmatpush1.bf16.msra.mxu0 %v4704_v10  ;;  %v4918_v9 = vunpack.c.l.s8.bf16 %v3646_v7  ;;  %v4920_v10 = vunpack.c.l.s8.bf16 %v3648_v8 }
 0x46e   : > { %5536 = vmatprep.subr.bf16.mxu1 %v4727_v11  ;;  %5708 = vmatprep.subr.bf16.mxu0 %v4729_v12  ;;  %v4943_v11 = vunpack.c.h.s8.bf16 %v3647_v2  ;;  %v4945_v12 = vunpack.c.h.s8.bf16 %v3649_v3 }
 0x471   : > { %5537 = vmatpush1.bf16.msra.mxu1 %v4726_v18  ;;  %5709 = vmatpush1.bf16.msra.mxu0 %v4728_v19  ;;  %v4942_v18 = vunpack.c.h.s8.bf16 %v3646_v7  ;;  %v4944_v19 = vunpack.c.h.s8.bf16 %v3648_v8  ;;  %v5040_v7 = vunpack.c.h.s8.bf16 %v3696_v45 }
 0x472   : > { %5538 = vmatprep.subr.bf16.mxu1 %v4751_v20  ;;  %5710 = vmatprep.subr.bf16.mxu0 %v4753_v22  ;;  %v4967_v20 = vunpack.c.l.s8.bf16 %v3671_v13  ;;  %v4969_v22 = vunpack.c.l.s8.bf16 %v3673_v14 }
 0x475   : > { %5539 = vmatpush1.bf16.msra.mxu1 %v4750_v29  ;;  %5711 = vmatpush1.bf16.msra.mxu0 %v4752_v25  ;;  %v4966_v29 = vunpack.c.l.s8.bf16 %v3670_v23  ;;  %v4968_v25 = vunpack.c.l.s8.bf16 %v3672_v24 }
 0x476   : > { %5540 = vmatprep.subr.bf16.mxu1 %v4775_v31  ;;  %5712 = vmatprep.subr.bf16.mxu0 %v4777_v32  ;;  %v4991_v31 = vunpack.c.h.s8.bf16 %v3671_v13  ;;  %v4993_v32 = vunpack.c.h.s8.bf16 %v3673_v14  ;;  %v3718_v13 = vld [vmem:[%s9820_s10 + $0x1200] sm:$0xff]  ;;  %v3720_v14 = vld [vmem:[%s9820_s10 + $0x1210] sm:$0xff] }
 0x479   : > { %5541 = vmatpush1.bf16.msra.mxu1 %v4774_v35  ;;  %5713 = vmatpush1.bf16.msra.mxu0 %v4776_v36  ;;  %v10006_v35 = vsub.s32 5, %v9829_v27  ;;  %v3695_v36 = vld [vmem:[%s9820_s10 + $0x1148] sm:$0xff] }
 0x47a   : > { %5542 = vmatprep.subr.bf16.mxu1 %v4799_v37  ;;  %5714 = vmatprep.subr.bf16.mxu0 %v4801_v38  ;;  %v3697_v37 = vld [vmem:[%s9820_s10 + $0x1158] sm:$0xff]  ;;  %v10011_v38 = vsub.s32 7, %v9829_v27 }
 0x47b   : > { %v1477_v27 = vrot.slane %v9913_v47, %v10006_v35 }
 0x47d   : > { %5543 = vmatpush1.bf16.msra.mxu1 %v4798_v41  ;;  %5715 = vmatpush1.bf16.msra.mxu0 %v4800_v42  ;;  %v1473_v41 = vrot.slane %v9913_v47, %v10000_v33  ;;  %v5015_v42 = vunpack.c.l.s8.bf16 %v3695_v36 }
 0x47e   : > { %5544 = vmatprep.subr.bf16.mxu1 %v4823_v43  ;;  %5716 = vmatprep.subr.bf16.mxu0 %v4825_v44  ;;  %v5017_v43 = vunpack.c.l.s8.bf16 %v3697_v37  ;;  %v3694_v44 = vld [vmem:[%s9820_s10 + $0x1140] sm:$0xff] }
 0x481   : > { %5545 = vmatpush1.bf16.msra.mxu1 %v4822_v48  ;;  %5717 = vmatpush1.bf16.msra.mxu0 %v4824_v49  ;;  %v1485_v48 = vrot.slane %v9913_v47, %v10011_v38 }
 0x482   : > { %5546 = vmatprep.subr.bf16.mxu1 %v4847_v50  ;;  %5718 = vmatprep.subr.bf16.mxu0 %v4849_v51  ;;  %v5014_v50 = vunpack.c.l.s8.bf16 %v3694_v44  ;;  %v5016_v51 = vunpack.c.l.s8.bf16 %v3696_v45 }
 0x485   : > { %5547 = vmatpush1.bf16.msra.mxu1 %v4846_v56  ;;  %5719 = vmatpush1.bf16.msra.mxu0 %v4848_v57  ;;  %v5039_v57 = vunpack.c.h.s8.bf16 %v3695_v36  ;;  %v5064_v36 = vunpack.c.l.s8.bf16 %v3720_v14 }
 0x486   : > { %5548 = vmatprep.subr.bf16.mxu1 %v4871_v58  ;;  %5720 = vmatprep.subr.bf16.mxu0 %v4873_v59  ;;  %v5041_v58 = vunpack.c.h.s8.bf16 %v3697_v37  ;;  %v3719_v59 = vld [vmem:[%s9820_s10 + $0x1208] sm:$0xff] }
 0x487   : > { %v5063_v8 = vunpack.c.l.s8.bf16 %v3719_v59 }
 0x489   : > { %5549 = vmatpush1.bf16.msra.mxu1 %v4870_v62  ;;  %5721 = vmatpush1.bf16.msra.mxu0 %v4872_v63 }
 0x48a   : > { %5550 = vmatprep.subr.bf16.mxu1 %v4895_v0  ;;  %5722 = vmatprep.subr.bf16.mxu0 %v4897_v1  ;;  %v3721_v0 = vld [vmem:[%s9820_s10 + $0x1218] sm:$0xff] }
 0x48d   : > { %5551 = vmatpush1.bf16.msra.mxu1 %v4894_v4  ;;  %5723 = vmatpush1.bf16.msra.mxu0 %v4896_v5  ;;  %v5038_v4 = vunpack.c.h.s8.bf16 %v3694_v44  ;;  %v5088_v44 = vunpack.c.h.s8.bf16 %v3720_v14  ;;  %v3817_v14 = vld [vmem:[%s9820_s10 + $0x1518] sm:$0xff] }
 0x48e   : > { %5552 = vmatprep.subr.bf16.mxu1 %v4919_v6  ;;  %5724 = vmatprep.subr.bf16.mxu0 %v4921_v26 }
 0x491   : > { %5553 = vmatpush1.bf16.msra.mxu1 %v4918_v9  ;;  %5725 = vmatpush1.bf16.msra.mxu0 %v4920_v10 }
 0x492   : > { %5554 = vmatprep.subr.bf16.mxu1 %v4943_v11  ;;  %5726 = vmatprep.subr.bf16.mxu0 %v4945_v12  ;;  %v5065_v12 = vunpack.c.l.s8.bf16 %v3721_v0 }
 0x495   : > { %5555 = vmatpush1.bf16.msra.mxu1 %v4942_v18  ;;  %5727 = vmatpush1.bf16.msra.mxu0 %v4944_v19 }
 0x496   : > { %5556 = vmatprep.subr.bf16.mxu1 %v4967_v20  ;;  %5728 = vmatprep.subr.bf16.mxu0 %v4969_v22 }
 0x499   : > { %5557 = vmatpush1.bf16.msra.mxu1 %v4966_v29  ;;  %5729 = vmatpush1.bf16.msra.mxu0 %v4968_v25 }
 0x49a   : > { %5558 = vmatprep.subr.bf16.mxu1 %v4991_v31  ;;  %5730 = vmatprep.subr.bf16.mxu0 %v4993_v32  ;;  %v5062_v32 = vunpack.c.l.s8.bf16 %v3718_v13 }
 0x49d   : > { %5559 = vmatpush1.bf16.msra.mxu1 %v4990_v39  ;;  %5731 = vmatpush1.bf16.msra.mxu0 %v4992_v40  ;;  %v3023_v49 = vpop.f32.mrb[8].mxu1  ;;  %v5087_v39 = vunpack.c.h.s8.bf16 %v3719_v59  ;;  %v5089_v40 = vunpack.c.h.s8.bf16 %v3721_v0 }
 0x49e   : > { %v8604_v52 = vadd.f32 %v3023_v49, %v1473_v41  ;;  %v3109_v54 = vpop.f32.mrb[12].mxu0  ;;  %v3025_v56 = vpop.f32.mrb[9].mxu1  ;;  %5560 = vmatprep.subr.bf16.mxu1 %v5015_v42  ;;  %5732 = vmatprep.subr.bf16.mxu0 %v5017_v43  ;;  %v3745_v42 = vld [vmem:[%s9820_s10 + $0x12d8] sm:$0xff]  ;;  %v5086_v43 = vunpack.c.h.s8.bf16 %v3718_v13  ;;  %v3815_v13 = vld [vmem:[%s9820_s10 + $0x1508] sm:$0xff] }
 0x49f   : > { %v8608_v60 = vadd.f32 %v3109_v54, %v1481_v46  ;;  %v8605_v61 = vadd.f32 %v3025_v56, %v1477_v27  ;;  %v3111_v62 = vpop.f32.mrb[13].mxu0  ;;  %v3027_v63 = vpop.f32.mrb[10].mxu1  ;;  %v3767_v54 = vld [vmem:[%s9820_s10 + $0x1388] sm:$0xff]  ;;  %v3769_v56 = vld [vmem:[%s9820_s10 + $0x1398] sm:$0xff] }
 0x4a0   : > { %v8609_v47 = vadd.f32 %v3111_v62, %v1485_v48  ;;  %v8606_v1 = vadd.f32 %v3027_v63, %v1473_v41  ;;  %v3113_v2 = vpop.f32.mrb[14].mxu0  ;;  %v3029_v3 = vpop.f32.mrb[11].mxu1  ;;  %v3122_v9 = vmax.f32 %v8604_v52, 0.0  ;;  %v3743_v41 = vld [vmem:[%s9820_s10 + $0x12c8] sm:$0xff]  ;;  %v5137_v52 = vunpack.c.h.s8.bf16 %v3745_v42  ;;  %v3768_v62 = vld [vmem:[%s9820_s10 + $0x1390] sm:$0xff] }
 0x4a1   : > { %v8610_v5 = vadd.f32 %v3113_v2, %v1481_v46  ;;  %v8607_v6 = vadd.f32 %v3029_v3, %v1477_v27  ;;  %v3115_v26 = vpop.f32.mrb[15].mxu0  ;;  %5561 = vmatpush1.bf16.msra.mxu1 %v5014_v50  ;;  %5733 = vmatpush1.bf16.msra.mxu0 %v5016_v51  ;;  %v3124_v18 = vmax.f32 %v8608_v60, 0.0  ;;  %v3123_v19 = vmax.f32 %v8605_v61, 0.0  ;;  %v3742_v27 = vld [vmem:[%s9820_s10 + $0x12c0] sm:$0xff]  ;;  %v3791_v2 = vld [vmem:[%s9820_s10 + $0x1448] sm:$0xff]  ;;  %v3793_v3 = vld [vmem:[%s9820_s10 + $0x1458] sm:$0xff] }
 0x4a2   : > { %v3130_v10 = vmax.f32 %v8606_v1, 0.0  ;;  %v8611_v11 = vadd.f32 %v3115_v26, %v1485_v48  ;;  %5562 = vmatprep.subr.bf16.mxu1 %v5039_v57  ;;  %5734 = vmatprep.subr.bf16.mxu0 %v5041_v58  ;;  %v3125_v23 = vmax.f32 %v8609_v47, 0.0  ;;  %v5111_v45 = vunpack.c.l.s8.bf16 %v3743_v41  ;;  %v3744_v48 = vld [vmem:[%s9820_s10 + $0x12d0] sm:$0xff]  ;;  %v3766_v61 = vld [vmem:[%s9820_s10 + $0x1380] sm:$0xff] }
 0x4a3   : > { %v3132_v20 = vmax.f32 %v8610_v5, 0.0  ;;  %v3131_v22 = vmax.f32 %v8607_v6, 0.0  ;;  %v5113_v46 = vunpack.c.l.s8.bf16 %v3745_v42  ;;  %v5110_v49 = vunpack.c.l.s8.bf16 %v3742_v27  ;;  %v3841_v42 = vld [vmem:[%s9820_s10 + $0x15d8] sm:$0xff] }
 0x4a4   : > { %v10027_v24 = vpack.c.bf16 %v3130_v10, %v3122_v9  ;;  %v3133_v29 = vmax.f32 %v8611_v11, 0.0  ;;  %v5112_v50 = vunpack.c.l.s8.bf16 %v3744_v48  ;;  %v5135_v51 = vunpack.c.h.s8.bf16 %v3743_v41  ;;  %v3839_v41 = vld [vmem:[%s9820_s10 + $0x15c8] sm:$0xff] }
 0x4a5   : > { %v10029_v25 = vpack.c.bf16 %v3132_v20, %v3124_v18  ;;  %v10031_v31 = vpack.c.bf16 %v3131_v22, %v3123_v19  ;;  %5563 = vmatpush1.bf16.msra.mxu1 %v5038_v4  ;;  %5735 = vmatpush1.bf16.msra.mxu0 %v5040_v7  ;;  %v5134_v57 = vunpack.c.h.s8.bf16 %v3742_v27  ;;  %v5136_v58 = vunpack.c.h.s8.bf16 %v3744_v48  ;;  %v3790_v7 = vld [vmem:[%s9820_s10 + $0x1440] sm:$0xff]  ;;  %v3840_v48 = vld [vmem:[%s9820_s10 + $0x15d0] sm:$0xff] }
 0x4a6   : > { %v10033_v37 = vpack.c.bf16 %v3133_v29, %v3125_v23  ;;  %5575 = vmatprep.subr.bf16.mxu1 %v5063_v8  ;;  %5747 = vmatprep.subr.bf16.mxu0 %v5065_v12  ;;  %v5159_v59 = vunpack.c.l.s8.bf16 %v3767_v54  ;;  %v5161_v60 = vunpack.c.l.s8.bf16 %v3769_v56  ;;  %v5158_v63 = vunpack.c.l.s8.bf16 %v3766_v61  ;;  %v3792_v8 = vld [vmem:[%s9820_s10 + $0x1450] sm:$0xff]  ;;  %v3814_v23 = vld [vmem:[%s9820_s10 + $0x1500] sm:$0xff] }
 0x4a7   : > { %5564 = vmatprep.mubr.bf16.mxu1 %v10031_v31  ;;  %5736 = vmatprep.mubr.bf16.mxu0 %v10031_v31  ;;  %v5160_v0 = vunpack.c.l.s8.bf16 %v3768_v62  ;;  %v5183_v47 = vunpack.c.h.s8.bf16 %v3767_v54  ;;  %v5185_v1 = vunpack.c.h.s8.bf16 %v3769_v56  ;;  %v5182_v4 = vunpack.c.h.s8.bf16 %v3766_v61  ;;  %v3816_v29 = vld [vmem:[%s9820_s10 + $0x1510] sm:$0xff]  ;;  %v3838_v27 = vld [vmem:[%s9820_s10 + $0x15c0] sm:$0xff]  ;;  %v3863_v54 = vld [vmem:[%s9820_s10 + $0x1688] sm:$0xff] }
 0x4a8   : > { %5565 = vmatmul.mubr.bf16.vlgmr.msra.gmra.mrb[12].mxu1 %v10027_v24  ;;  %5737 = vmatmul.mubr.bf16.vlgmr.msra.gmra.mrb[16].mxu0 %v10027_v24  ;;  %v5184_v5 = vunpack.c.h.s8.bf16 %v3768_v62  ;;  %v5207_v6 = vunpack.c.l.s8.bf16 %v3791_v2  ;;  %v5209_v26 = vunpack.c.l.s8.bf16 %v3793_v3  ;;  %v5206_v9 = vunpack.c.l.s8.bf16 %v3790_v7  ;;  %v3865_v56 = vld [vmem:[%s9820_s10 + $0x1698] sm:$0xff]  ;;  %v3862_v61 = vld [vmem:[%s9820_s10 + $0x1680] sm:$0xff]  ;;  %v3864_v62 = vld [vmem:[%s9820_s10 + $0x1690] sm:$0xff] }
 0x4a9   : > { %5576 = vmatpush1.bf16.msra.mxu1 %v5062_v32  ;;  %5748 = vmatpush1.bf16.msra.mxu0 %v5064_v36  ;;  %v5208_v10 = vunpack.c.l.s8.bf16 %v3792_v8  ;;  %v5231_v11 = vunpack.c.h.s8.bf16 %v3791_v2  ;;  %v5233_v12 = vunpack.c.h.s8.bf16 %v3793_v3  ;;  %v5230_v18 = vunpack.c.h.s8.bf16 %v3790_v7  ;;  %v3887_v2 = vld [vmem:[%s9820_s10 + $0x1748] sm:$0xff]  ;;  %v3889_v3 = vld [vmem:[%s9820_s10 + $0x1758] sm:$0xff]  ;;  %v3886_v7 = vld [vmem:[%s9820_s10 + $0x1740] sm:$0xff] }
 0x4aa   : > { %5607 = vmatprep.mubr.bf16.mxu1 %v10033_v37  ;;  %5779 = vmatprep.mubr.bf16.mxu0 %v10033_v37  ;;  %v5232_v19 = vunpack.c.h.s8.bf16 %v3792_v8  ;;  %v5255_v20 = vunpack.c.l.s8.bf16 %v3815_v13  ;;  %v5257_v22 = vunpack.c.l.s8.bf16 %v3817_v14  ;;  %v5254_v32 = vunpack.c.l.s8.bf16 %v3814_v23  ;;  %v3888_v8 = vld [vmem:[%s9820_s10 + $0x1750] sm:$0xff] }
 0x4ab   : > { %5577 = vmatprep.subr.bf16.mxu1 %v5087_v39  ;;  %5749 = vmatprep.subr.bf16.mxu0 %v5089_v40  ;;  %v5256_v36 = vunpack.c.l.s8.bf16 %v3816_v29  ;;  %v5279_v39 = vunpack.c.h.s8.bf16 %v3815_v13  ;;  %v5281_v40 = vunpack.c.h.s8.bf16 %v3817_v14  ;;  %v3147_v13 = vld [vmem:[%s9820_s10 + $0x28] sm:$0xff]  ;;  %v3149_v14 = vld [vmem:[%s9820_s10 + $0x38] sm:$0xff] }
 0x4ad   : > { %5578 = vmatpush1.bf16.msra.mxu1 %v5086_v43  ;;  %5750 = vmatpush1.bf16.msra.mxu0 %v5088_v44  ;;  %v5278_v43 = vunpack.c.h.s8.bf16 %v3814_v23  ;;  %v5280_v44 = vunpack.c.h.s8.bf16 %v3816_v29  ;;  %v3146_v23 = vld [vmem:[%s9820_s10 + $0x20] sm:$0xff]  ;;  %v3148_v29 = vld [vmem:[%s9820_s10 + $0x30] sm:$0xff] }
 0x4ae   : > { %5579 = vmatprep.subr.bf16.mxu1 %v5111_v45  ;;  %5751 = vmatprep.subr.bf16.mxu0 %v5113_v46  ;;  %v5303_v45 = vunpack.c.l.s8.bf16 %v3839_v41  ;;  %v5305_v46 = vunpack.c.l.s8.bf16 %v3841_v42 }
 0x4b1   : > { %5580 = vmatpush1.bf16.msra.mxu1 %v5110_v49  ;;  %5752 = vmatpush1.bf16.msra.mxu0 %v5112_v50  ;;  %v5302_v49 = vunpack.c.l.s8.bf16 %v3838_v27  ;;  %v5304_v50 = vunpack.c.l.s8.bf16 %v3840_v48 }
 0x4b2   : > { %5581 = vmatprep.subr.bf16.mxu1 %v5135_v51  ;;  %5753 = vmatprep.subr.bf16.mxu0 %v5137_v52  ;;  %v5327_v51 = vunpack.c.h.s8.bf16 %v3839_v41  ;;  %v5329_v52 = vunpack.c.h.s8.bf16 %v3841_v42  ;;  %v3171_v41 = vld [vmem:[%s9820_s10 + $0xe8] sm:$0xff]  ;;  %v3173_v42 = vld [vmem:[%s9820_s10 + $0xf8] sm:$0xff] }
 0x4b5   : > { %5582 = vmatpush1.bf16.msra.mxu1 %v5134_v57  ;;  %5754 = vmatpush1.bf16.msra.mxu0 %v5136_v58  ;;  %v5326_v57 = vunpack.c.h.s8.bf16 %v3838_v27  ;;  %v5328_v58 = vunpack.c.h.s8.bf16 %v3840_v48  ;;  %v3965_v27 = vunpack.c.l.s8.bf16 %v3173_v42  ;;  %v3172_v48 = vld [vmem:[%s9820_s10 + $0xf0] sm:$0xff] }
 0x4b6   : > { %5583 = vmatprep.subr.bf16.mxu1 %v5159_v59  ;;  %5755 = vmatprep.subr.bf16.mxu0 %v5161_v60  ;;  %v5351_v59 = vunpack.c.l.s8.bf16 %v3863_v54  ;;  %v5353_v60 = vunpack.c.l.s8.bf16 %v3865_v56 }
 0x4b9   : > { %5584 = vmatpush1.bf16.msra.mxu1 %v5158_v63  ;;  %5756 = vmatpush1.bf16.msra.mxu0 %v5160_v0  ;;  %v5350_v63 = vunpack.c.l.s8.bf16 %v3862_v61  ;;  %v5352_v0 = vunpack.c.l.s8.bf16 %v3864_v62 }
 0x4ba   : > { %5585 = vmatprep.subr.bf16.mxu1 %v5183_v47  ;;  %5757 = vmatprep.subr.bf16.mxu0 %v5185_v1  ;;  %v5375_v47 = vunpack.c.h.s8.bf16 %v3863_v54  ;;  %v5377_v1 = vunpack.c.h.s8.bf16 %v3865_v56  ;;  %v3195_v54 = vld [vmem:[%s9820_s10 + $0x1a8] sm:$0xff]  ;;  %v3197_v56 = vld [vmem:[%s9820_s10 + $0x1b8] sm:$0xff] }
 0x4bd   : > { %5586 = vmatpush1.bf16.msra.mxu1 %v5182_v4  ;;  %5758 = vmatpush1.bf16.msra.mxu0 %v5184_v5  ;;  %v5374_v4 = vunpack.c.h.s8.bf16 %v3862_v61  ;;  %v5376_v5 = vunpack.c.h.s8.bf16 %v3864_v62  ;;  %v4013_v61 = vunpack.c.l.s8.bf16 %v3197_v56  ;;  %v3196_v62 = vld [vmem:[%s9820_s10 + $0x1b0] sm:$0xff] }
 0x4be   : > { %5587 = vmatprep.subr.bf16.mxu1 %v5207_v6  ;;  %5759 = vmatprep.subr.bf16.mxu0 %v5209_v26  ;;  %v5399_v6 = vunpack.c.l.s8.bf16 %v3887_v2  ;;  %v5401_v26 = vunpack.c.l.s8.bf16 %v3889_v3 }
 0x4c1   : > { %5588 = vmatpush1.bf16.msra.mxu1 %v5206_v9  ;;  %5760 = vmatpush1.bf16.msra.mxu0 %v5208_v10  ;;  %v5398_v9 = vunpack.c.l.s8.bf16 %v3886_v7  ;;  %v5400_v10 = vunpack.c.l.s8.bf16 %v3888_v8 }
 0x4c2   : > { %5589 = vmatprep.subr.bf16.mxu1 %v5231_v11  ;;  %5761 = vmatprep.subr.bf16.mxu0 %v5233_v12  ;;  %v5423_v11 = vunpack.c.h.s8.bf16 %v3887_v2  ;;  %v5425_v12 = vunpack.c.h.s8.bf16 %v3889_v3  ;;  %v3219_v2 = vld [vmem:[%s9820_s10 + $0x268] sm:$0xff]  ;;  %v3221_v3 = vld [vmem:[%s9820_s10 + $0x278] sm:$0xff] }
 0x4c5   : > { %5590 = vmatpush1.bf16.msra.mxu1 %v5230_v18  ;;  %5762 = vmatpush1.bf16.msra.mxu0 %v5232_v19  ;;  %v5422_v18 = vunpack.c.h.s8.bf16 %v3886_v7  ;;  %v5424_v19 = vunpack.c.h.s8.bf16 %v3888_v8  ;;  %v4061_v7 = vunpack.c.l.s8.bf16 %v3221_v3  ;;  %v3220_v8 = vld [vmem:[%s9820_s10 + $0x270] sm:$0xff] }
 0x4c6   : > { %5591 = vmatprep.subr.bf16.mxu1 %v5255_v20  ;;  %5763 = vmatprep.subr.bf16.mxu0 %v5257_v22  ;;  %v3915_v20 = vunpack.c.l.s8.bf16 %v3147_v13  ;;  %v3917_v22 = vunpack.c.l.s8.bf16 %v3149_v14 }
 0x4c9   : > { %5592 = vmatpush1.bf16.msra.mxu1 %v5254_v32  ;;  %5764 = vmatpush1.bf16.msra.mxu0 %v5256_v36  ;;  %v3914_v32 = vunpack.c.l.s8.bf16 %v3146_v23  ;;  %v3916_v36 = vunpack.c.l.s8.bf16 %v3148_v29 }
 0x4ca   : > { %5593 = vmatprep.subr.bf16.mxu1 %v5279_v39  ;;  %5765 = vmatprep.subr.bf16.mxu0 %v5281_v40  ;;  %v3939_v39 = vunpack.c.h.s8.bf16 %v3147_v13  ;;  %v3941_v40 = vunpack.c.h.s8.bf16 %v3149_v14  ;;  %v3243_v13 = vld [vmem:[%s9820_s10 + $0x328] sm:$0xff]  ;;  %v3245_v14 = vld [vmem:[%s9820_s10 + $0x338] sm:$0xff] }
 0x4cd   : > { %5594 = vmatpush1.bf16.msra.mxu1 %v5278_v43  ;;  %5766 = vmatpush1.bf16.msra.mxu0 %v5280_v44  ;;  %v3938_v43 = vunpack.c.h.s8.bf16 %v3146_v23  ;;  %v3940_v44 = vunpack.c.h.s8.bf16 %v3148_v29  ;;  %v4109_v23 = vunpack.c.l.s8.bf16 %v3245_v14  ;;  %v3244_v29 = vld [vmem:[%s9820_s10 + $0x330] sm:$0xff] }
 0x4ce   : > { %5595 = vmatprep.subr.bf16.mxu1 %v5303_v45  ;;  %5767 = vmatprep.subr.bf16.mxu0 %v5305_v46  ;;  %v3963_v45 = vunpack.c.l.s8.bf16 %v3171_v41  ;;  %v3170_v46 = vld [vmem:[%s9820_s10 + $0xe0] sm:$0xff] }
 0x4d1   : > { %5596 = vmatpush1.bf16.msra.mxu1 %v5302_v49  ;;  %5768 = vmatpush1.bf16.msra.mxu0 %v5304_v50  ;;  %v3962_v49 = vunpack.c.l.s8.bf16 %v3170_v46  ;;  %v3964_v50 = vunpack.c.l.s8.bf16 %v3172_v48 }
 0x4d2   : > { %5597 = vmatprep.subr.bf16.mxu1 %v5327_v51  ;;  %5769 = vmatprep.subr.bf16.mxu0 %v5329_v52  ;;  %v3987_v51 = vunpack.c.h.s8.bf16 %v3171_v41  ;;  %v3989_v52 = vunpack.c.h.s8.bf16 %v3173_v42  ;;  %v3267_v41 = vld [vmem:[%s9820_s10 + $0x3e8] sm:$0xff]  ;;  %v3269_v42 = vld [vmem:[%s9820_s10 + $0x3f8] sm:$0xff] }
 0x4d5   : > { %5598 = vmatpush1.bf16.msra.mxu1 %v5326_v57  ;;  %5770 = vmatpush1.bf16.msra.mxu0 %v5328_v58  ;;  %v3986_v57 = vunpack.c.h.s8.bf16 %v3170_v46  ;;  %v3988_v58 = vunpack.c.h.s8.bf16 %v3172_v48  ;;  %v3266_v46 = vld [vmem:[%s9820_s10 + $0x3e0] sm:$0xff]  ;;  %v3268_v48 = vld [vmem:[%s9820_s10 + $0x3f0] sm:$0xff] }
 0x4d6   : > { %5599 = vmatprep.subr.bf16.mxu1 %v5351_v59  ;;  %5771 = vmatprep.subr.bf16.mxu0 %v5353_v60  ;;  %v4011_v59 = vunpack.c.l.s8.bf16 %v3195_v54  ;;  %v3194_v60 = vld [vmem:[%s9820_s10 + $0x1a0] sm:$0xff] }
 0x4d9   : > { %5600 = vmatpush1.bf16.msra.mxu1 %v5350_v63  ;;  %5772 = vmatpush1.bf16.msra.mxu0 %v5352_v0  ;;  %v4010_v63 = vunpack.c.l.s8.bf16 %v3194_v60  ;;  %v4012_v0 = vunpack.c.l.s8.bf16 %v3196_v62 }
 0x4da   : > { %5601 = vmatprep.subr.bf16.mxu1 %v5375_v47  ;;  %5773 = vmatprep.subr.bf16.mxu0 %v5377_v1  ;;  %v4035_v47 = vunpack.c.h.s8.bf16 %v3195_v54  ;;  %v4037_v1 = vunpack.c.h.s8.bf16 %v3197_v56  ;;  %v3291_v54 = vld [vmem:[%s9820_s10 + $0x4a8] sm:$0xff]  ;;  %v3293_v56 = vld [vmem:[%s9820_s10 + $0x4b8] sm:$0xff] }
 0x4dd   : > { %5602 = vmatpush1.bf16.msra.mxu1 %v5374_v4  ;;  %5774 = vmatpush1.bf16.msra.mxu0 %v5376_v5  ;;  %v4034_v4 = vunpack.c.h.s8.bf16 %v3194_v60  ;;  %v4036_v5 = vunpack.c.h.s8.bf16 %v3196_v62  ;;  %v3290_v60 = vld [vmem:[%s9820_s10 + $0x4a0] sm:$0xff]  ;;  %v3292_v62 = vld [vmem:[%s9820_s10 + $0x4b0] sm:$0xff] }
 0x4de   : > { %5603 = vmatprep.subr.bf16.mxu1 %v5399_v6  ;;  %5775 = vmatprep.subr.bf16.mxu0 %v5401_v26  ;;  %v4059_v6 = vunpack.c.l.s8.bf16 %v3219_v2  ;;  %v3218_v26 = vld [vmem:[%s9820_s10 + $0x260] sm:$0xff] }
 0x4e1   : > { %5604 = vmatpush1.bf16.msra.mxu1 %v5398_v9  ;;  %5776 = vmatpush1.bf16.msra.mxu0 %v5400_v10  ;;  %v4058_v9 = vunpack.c.l.s8.bf16 %v3218_v26  ;;  %v4060_v10 = vunpack.c.l.s8.bf16 %v3220_v8 }
 0x4e2   : > { %5605 = vmatprep.subr.bf16.mxu1 %v5423_v11  ;;  %5777 = vmatprep.subr.bf16.mxu0 %v5425_v12  ;;  %v4083_v11 = vunpack.c.h.s8.bf16 %v3219_v2  ;;  %v4085_v12 = vunpack.c.h.s8.bf16 %v3221_v3  ;;  %v3315_v2 = vld [vmem:[%s9820_s10 + $0x568] sm:$0xff]  ;;  %v3317_v3 = vld [vmem:[%s9820_s10 + $0x578] sm:$0xff] }
 0x4e5   : > { %5606 = vmatpush1.bf16.msra.mxu1 %v5422_v18  ;;  %5778 = vmatpush1.bf16.msra.mxu0 %v5424_v19  ;;  %v4082_v18 = vunpack.c.h.s8.bf16 %v3218_v26  ;;  %v4084_v19 = vunpack.c.h.s8.bf16 %v3220_v8  ;;  %v3314_v26 = vld [vmem:[%s9820_s10 + $0x560] sm:$0xff]  ;;  %v3316_v8 = vld [vmem:[%s9820_s10 + $0x570] sm:$0xff] }
 0x4e6   : > { %5790 = vmatprep.subr.bf16.mxu1 %v3915_v20  ;;  %5962 = vmatprep.subr.bf16.mxu0 %v3917_v22  ;;  %v4107_v20 = vunpack.c.l.s8.bf16 %v3243_v13  ;;  %v3242_v22 = vld [vmem:[%s9820_s10 + $0x320] sm:$0xff] }
 0x4e8   : > { %5608 = vmatmul.mubr.bf16.vlgmr.msra.gmra.mrb[12].mxu1 %v10029_v25  ;;  %5780 = vmatmul.mubr.bf16.vlgmr.msra.gmra.mrb[16].mxu0 %v10029_v25 }
 0x4e9   : > { %5791 = vmatpush1.bf16.msra.mxu1 %v3914_v32  ;;  %5822 = vmatprep.mubr.bf16.mxu1 %v9929_v21  ;;  %v4106_v32 = vunpack.c.l.s8.bf16 %v3242_v22 }
 0x4ea   : > { %5963 = vmatpush1.bf16.msra.mxu0 %v3916_v36  ;;  %5994 = vmatprep.mubr.bf16.mxu0 %v9929_v21  ;;  %v4108_v36 = vunpack.c.l.s8.bf16 %v3244_v29 }
 0x4eb   : > { %5792 = vmatprep.subr.bf16.mxu1 %v3939_v39  ;;  %5964 = vmatprep.subr.bf16.mxu0 %v3941_v40  ;;  %v4131_v39 = vunpack.c.h.s8.bf16 %v3243_v13  ;;  %v4133_v40 = vunpack.c.h.s8.bf16 %v3245_v14  ;;  %v3339_v13 = vld [vmem:[%s9820_s10 + $0x628] sm:$0xff]  ;;  %v3341_v14 = vld [vmem:[%s9820_s10 + $0x638] sm:$0xff] }
 0x4ed   : > { %5793 = vmatpush1.bf16.msra.mxu1 %v3938_v43  ;;  %v4130_v43 = vunpack.c.h.s8.bf16 %v3242_v22  ;;  %v3338_v22 = vld [vmem:[%s9820_s10 + $0x620] sm:$0xff] }
 0x4ee   : > { %5965 = vmatpush1.bf16.msra.mxu0 %v3940_v44  ;;  %5794 = vmatprep.subr.bf16.mxu1 %v3963_v45  ;;  %v4132_v44 = vunpack.c.h.s8.bf16 %v3244_v29  ;;  %v4155_v45 = vunpack.c.l.s8.bf16 %v3267_v41  ;;  %v3340_v29 = vld [vmem:[%s9820_s10 + $0x630] sm:$0xff] }
 0x4ef   : > { %5966 = vmatprep.subr.bf16.mxu0 %v3965_v27  ;;  %v4157_v27 = vunpack.c.l.s8.bf16 %v3269_v42 }
 0x4f1   : > { %5795 = vmatpush1.bf16.msra.mxu1 %v3962_v49  ;;  %v4154_v49 = vunpack.c.l.s8.bf16 %v3266_v46 }
 0x4f2   : > { %5967 = vmatpush1.bf16.msra.mxu0 %v3964_v50  ;;  %5796 = vmatprep.subr.bf16.mxu1 %v3987_v51  ;;  %v4156_v50 = vunpack.c.l.s8.bf16 %v3268_v48  ;;  %v4179_v51 = vunpack.c.h.s8.bf16 %v3267_v41  ;;  %v4325_v41 = vunpack.c.h.s8.bf16 %v3341_v14 }
 0x4f3   : > { %5968 = vmatprep.subr.bf16.mxu0 %v3989_v52  ;;  %v4181_v52 = vunpack.c.h.s8.bf16 %v3269_v42  ;;  %v3365_v42 = vld [vmem:[%s9820_s10 + $0x6f8] sm:$0xff] }
 0x4f5   : > { %5797 = vmatpush1.bf16.msra.mxu1 %v3986_v57  ;;  %v4178_v57 = vunpack.c.h.s8.bf16 %v3266_v46  ;;  %v3362_v46 = vld [vmem:[%s9820_s10 + $0x6e0] sm:$0xff] }
 0x4f6   : > { %5969 = vmatpush1.bf16.msra.mxu0 %v3988_v58  ;;  %5798 = vmatprep.subr.bf16.mxu1 %v4011_v59  ;;  %v4180_v58 = vunpack.c.h.s8.bf16 %v3268_v48  ;;  %v4203_v59 = vunpack.c.l.s8.bf16 %v3291_v54  ;;  %v3364_v48 = vld [vmem:[%s9820_s10 + $0x6f0] sm:$0xff] }
 0x4f7   : > { %5970 = vmatprep.subr.bf16.mxu0 %v4013_v61  ;;  %v4205_v61 = vunpack.c.l.s8.bf16 %v3293_v56 }
 0x4f9   : > { %5799 = vmatpush1.bf16.msra.mxu1 %v4010_v63  ;;  %v4202_v63 = vunpack.c.l.s8.bf16 %v3290_v60 }
 0x4fa   : > { %5971 = vmatpush1.bf16.msra.mxu0 %v4012_v0  ;;  %5800 = vmatprep.subr.bf16.mxu1 %v4035_v47  ;;  %v4204_v0 = vunpack.c.l.s8.bf16 %v3292_v62  ;;  %v4227_v47 = vunpack.c.h.s8.bf16 %v3291_v54  ;;  %v3387_v54 = vld [vmem:[%s9820_s10 + $0x7a8] sm:$0xff] }
 0x4fb   : > { %5972 = vmatprep.subr.bf16.mxu0 %v4037_v1  ;;  %v4229_v1 = vunpack.c.h.s8.bf16 %v3293_v56  ;;  %v3389_v56 = vld [vmem:[%s9820_s10 + $0x7b8] sm:$0xff] }
 0x4fd   : > { %5801 = vmatpush1.bf16.msra.mxu1 %v4034_v4  ;;  %v4226_v4 = vunpack.c.h.s8.bf16 %v3290_v60  ;;  %v3386_v60 = vld [vmem:[%s9820_s10 + $0x7a0] sm:$0xff] }
 0x4fe   : > { %5973 = vmatpush1.bf16.msra.mxu0 %v4036_v5  ;;  %5802 = vmatprep.subr.bf16.mxu1 %v4059_v6  ;;  %v4228_v5 = vunpack.c.h.s8.bf16 %v3292_v62  ;;  %v4251_v6 = vunpack.c.l.s8.bf16 %v3315_v2  ;;  %v3388_v62 = vld [vmem:[%s9820_s10 + $0x7b0] sm:$0xff] }
 0x4ff   : > { %5974 = vmatprep.subr.bf16.mxu0 %v4061_v7  ;;  %v4253_v7 = vunpack.c.l.s8.bf16 %v3317_v3 }
 0x501   : > { %5803 = vmatpush1.bf16.msra.mxu1 %v4058_v9  ;;  %v4250_v9 = vunpack.c.l.s8.bf16 %v3314_v26 }
 0x502   : > { %5975 = vmatpush1.bf16.msra.mxu0 %v4060_v10  ;;  %5804 = vmatprep.subr.bf16.mxu1 %v4083_v11  ;;  %v4252_v10 = vunpack.c.l.s8.bf16 %v3316_v8  ;;  %v4275_v11 = vunpack.c.h.s8.bf16 %v3315_v2  ;;  %v3411_v2 = vld [vmem:[%s9820_s10 + $0x868] sm:$0xff] }
 0x503   : > { %5976 = vmatprep.subr.bf16.mxu0 %v4085_v12  ;;  %v4277_v12 = vunpack.c.h.s8.bf16 %v3317_v3  ;;  %v3413_v3 = vld [vmem:[%s9820_s10 + $0x878] sm:$0xff] }
 0x505   : > { %5805 = vmatpush1.bf16.msra.mxu1 %v4082_v18  ;;  %v4274_v18 = vunpack.c.h.s8.bf16 %v3314_v26  ;;  %v3410_v26 = vld [vmem:[%s9820_s10 + $0x860] sm:$0xff] }
 0x506   : > { %5977 = vmatpush1.bf16.msra.mxu0 %v4084_v19  ;;  %5806 = vmatprep.subr.bf16.mxu1 %v4107_v20  ;;  %v4276_v19 = vunpack.c.h.s8.bf16 %v3316_v8  ;;  %v4299_v20 = vunpack.c.l.s8.bf16 %v3339_v13  ;;  %v3412_v8 = vld [vmem:[%s9820_s10 + $0x870] sm:$0xff] }
 0x507   : > { %5978 = vmatprep.subr.bf16.mxu0 %v4109_v23  ;;  %v4301_v23 = vunpack.c.l.s8.bf16 %v3341_v14  ;;  %v3437_v14 = vld [vmem:[%s9820_s10 + $0x938] sm:$0xff] }
 0x509   : > { %5807 = vmatpush1.bf16.msra.mxu1 %v4106_v32  ;;  %v4298_v32 = vunpack.c.l.s8.bf16 %v3338_v22 }
 0x50a   : > { %5979 = vmatpush1.bf16.msra.mxu0 %v4108_v36  ;;  %5808 = vmatprep.subr.bf16.mxu1 %v4131_v39  ;;  %v4300_v36 = vunpack.c.l.s8.bf16 %v3340_v29  ;;  %v4323_v39 = vunpack.c.h.s8.bf16 %v3339_v13  ;;  %v3435_v13 = vld [vmem:[%s9820_s10 + $0x928] sm:$0xff] }
 0x50b   : > { %5980 = vmatprep.subr.bf16.mxu0 %v4133_v40  ;;  %v3363_v40 = vld [vmem:[%s9820_s10 + $0x6e8] sm:$0xff] }
 0x50d   : > { %5809 = vmatpush1.bf16.msra.mxu1 %v4130_v43  ;;  %v4322_v43 = vunpack.c.h.s8.bf16 %v3338_v22  ;;  %v3434_v22 = vld [vmem:[%s9820_s10 + $0x920] sm:$0xff] }
 0x50e   : > { %5981 = vmatpush1.bf16.msra.mxu0 %v4132_v44  ;;  %5810 = vmatprep.subr.bf16.mxu1 %v4155_v45  ;;  %v4324_v44 = vunpack.c.h.s8.bf16 %v3340_v29  ;;  %v4347_v45 = vunpack.c.l.s8.bf16 %v3363_v40  ;;  %v3436_v29 = vld [vmem:[%s9820_s10 + $0x930] sm:$0xff] }
 0x50f   : > { %5982 = vmatprep.subr.bf16.mxu0 %v4157_v27  ;;  %v4349_v27 = vunpack.c.l.s8.bf16 %v3365_v42 }
 0x511   : > { %5811 = vmatpush1.bf16.msra.mxu1 %v4154_v49  ;;  %v4346_v49 = vunpack.c.l.s8.bf16 %v3362_v46 }
 0x512   : > { %5983 = vmatpush1.bf16.msra.mxu0 %v4156_v50  ;;  %5812 = vmatprep.subr.bf16.mxu1 %v4179_v51  ;;  %v4348_v50 = vunpack.c.l.s8.bf16 %v3364_v48  ;;  %v4371_v51 = vunpack.c.h.s8.bf16 %v3363_v40  ;;  %v4517_v40 = vunpack.c.h.s8.bf16 %v3437_v14 }
 0x513   : > { %5984 = vmatprep.subr.bf16.mxu0 %v4181_v52  ;;  %v4373_v52 = vunpack.c.h.s8.bf16 %v3365_v42  ;;  %v3461_v42 = vld [vmem:[%s9820_s10 + $0x9f8] sm:$0xff] }
 0x515   : > { %5813 = vmatpush1.bf16.msra.mxu1 %v4178_v57  ;;  %v4370_v57 = vunpack.c.h.s8.bf16 %v3362_v46  ;;  %v3458_v46 = vld [vmem:[%s9820_s10 + $0x9e0] sm:$0xff] }
 0x516   : > { %5985 = vmatpush1.bf16.msra.mxu0 %v4180_v58  ;;  %5814 = vmatprep.subr.bf16.mxu1 %v4203_v59  ;;  %v4372_v58 = vunpack.c.h.s8.bf16 %v3364_v48  ;;  %v4395_v59 = vunpack.c.l.s8.bf16 %v3387_v54  ;;  %v3460_v48 = vld [vmem:[%s9820_s10 + $0x9f0] sm:$0xff] }
 0x517   : > { %5986 = vmatprep.subr.bf16.mxu0 %v4205_v61  ;;  %v4397_v61 = vunpack.c.l.s8.bf16 %v3389_v56 }
 0x519   : > { %5815 = vmatpush1.bf16.msra.mxu1 %v4202_v63  ;;  %v4394_v63 = vunpack.c.l.s8.bf16 %v3386_v60 }
 0x51a   : > { %5987 = vmatpush1.bf16.msra.mxu0 %v4204_v0  ;;  %5816 = vmatprep.subr.bf16.mxu1 %v4227_v47  ;;  %v4396_v0 = vunpack.c.l.s8.bf16 %v3388_v62  ;;  %v4419_v47 = vunpack.c.h.s8.bf16 %v3387_v54  ;;  %v3483_v54 = vld [vmem:[%s9820_s10 + $0xaa8] sm:$0xff] }
 0x51b   : > { %5988 = vmatprep.subr.bf16.mxu0 %v4229_v1  ;;  %v4421_v1 = vunpack.c.h.s8.bf16 %v3389_v56  ;;  %v3485_v56 = vld [vmem:[%s9820_s10 + $0xab8] sm:$0xff] }
 0x51d   : > { %5817 = vmatpush1.bf16.msra.mxu1 %v4226_v4  ;;  %v4418_v4 = vunpack.c.h.s8.bf16 %v3386_v60  ;;  %v3482_v60 = vld [vmem:[%s9820_s10 + $0xaa0] sm:$0xff] }
 0x51e   : > { %5989 = vmatpush1.bf16.msra.mxu0 %v4228_v5  ;;  %5818 = vmatprep.subr.bf16.mxu1 %v4251_v6  ;;  %v4420_v5 = vunpack.c.h.s8.bf16 %v3388_v62  ;;  %v4443_v6 = vunpack.c.l.s8.bf16 %v3411_v2  ;;  %v3484_v62 = vld [vmem:[%s9820_s10 + $0xab0] sm:$0xff] }
 0x51f   : > { %5990 = vmatprep.subr.bf16.mxu0 %v4253_v7  ;;  %v4445_v7 = vunpack.c.l.s8.bf16 %v3413_v3 }
 0x521   : > { %5819 = vmatpush1.bf16.msra.mxu1 %v4250_v9  ;;  %v4442_v9 = vunpack.c.l.s8.bf16 %v3410_v26 }
 0x522   : > { %5991 = vmatpush1.bf16.msra.mxu0 %v4252_v10  ;;  %5820 = vmatprep.subr.bf16.mxu1 %v4275_v11  ;;  %v4444_v10 = vunpack.c.l.s8.bf16 %v3412_v8  ;;  %v4467_v11 = vunpack.c.h.s8.bf16 %v3411_v2  ;;  %v3507_v2 = vld [vmem:[%s9820_s10 + $0xb68] sm:$0xff] }
 0x523   : > { %5992 = vmatprep.subr.bf16.mxu0 %v4277_v12  ;;  %v4469_v12 = vunpack.c.h.s8.bf16 %v3413_v3  ;;  %v3509_v3 = vld [vmem:[%s9820_s10 + $0xb78] sm:$0xff] }
 0x525   : > { %5821 = vmatpush1.bf16.msra.mxu1 %v4274_v18  ;;  %v4466_v18 = vunpack.c.h.s8.bf16 %v3410_v26  ;;  %v3506_v26 = vld [vmem:[%s9820_s10 + $0xb60] sm:$0xff] }
 0x526   : > { %5993 = vmatpush1.bf16.msra.mxu0 %v4276_v19  ;;  %5833 = vmatprep.subr.bf16.mxu1 %v4299_v20  ;;  %v4468_v19 = vunpack.c.h.s8.bf16 %v3412_v8  ;;  %v4491_v20 = vunpack.c.l.s8.bf16 %v3435_v13  ;;  %v3508_v8 = vld [vmem:[%s9820_s10 + $0xb70] sm:$0xff] }
 0x527   : > { %6005 = vmatprep.subr.bf16.mxu0 %v4301_v23  ;;  %v4493_v23 = vunpack.c.l.s8.bf16 %v3437_v14  ;;  %v3533_v14 = vld [vmem:[%s9820_s10 + $0xc38] sm:$0xff] }
 0x528   : > { %5823 = vmatmul.mubr.bf16.vlgmr.msra.gmra.mrb[16].mxu1 %v9925_v15 }
 0x529   : > { %5995 = vmatmul.mubr.bf16.vlgmr.msra.gmra.mrb[20].mxu0 %v9925_v15  ;;  %5834 = vmatpush1.bf16.msra.mxu1 %v4298_v32  ;;  %v4490_v32 = vunpack.c.l.s8.bf16 %v3434_v22 }
 0x52a   : > { %5865 = vmatprep.mubr.bf16.mxu1 %v9931_v17  ;;  %6006 = vmatpush1.bf16.msra.mxu0 %v4300_v36  ;;  %v4492_v36 = vunpack.c.l.s8.bf16 %v3436_v29 }
 0x52b   : > { %6037 = vmatprep.mubr.bf16.mxu0 %v9931_v17  ;;  %5835 = vmatprep.subr.bf16.mxu1 %v4323_v39  ;;  %v4515_v39 = vunpack.c.h.s8.bf16 %v3435_v13  ;;  %v3531_v13 = vld [vmem:[%s9820_s10 + $0xc28] sm:$0xff] }
 0x52c   : > { %6007 = vmatprep.subr.bf16.mxu0 %v4325_v41  ;;  %v3459_v41 = vld [vmem:[%s9820_s10 + $0x9e8] sm:$0xff] }
 0x52d   : > { %5836 = vmatpush1.bf16.msra.mxu1 %v4322_v43  ;;  %v4514_v43 = vunpack.c.h.s8.bf16 %v3434_v22  ;;  %v3530_v22 = vld [vmem:[%s9820_s10 + $0xc20] sm:$0xff] }
 0x52e   : > { %6008 = vmatpush1.bf16.msra.mxu0 %v4324_v44  ;;  %5837 = vmatprep.subr.bf16.mxu1 %v4347_v45  ;;  %v4516_v44 = vunpack.c.h.s8.bf16 %v3436_v29  ;;  %v4539_v45 = vunpack.c.l.s8.bf16 %v3459_v41  ;;  %v3532_v29 = vld [vmem:[%s9820_s10 + $0xc30] sm:$0xff] }
 0x52f   : > { %6009 = vmatprep.subr.bf16.mxu0 %v4349_v27  ;;  %v4541_v27 = vunpack.c.l.s8.bf16 %v3461_v42 }
 0x531   : > { %5838 = vmatpush1.bf16.msra.mxu1 %v4346_v49  ;;  %v4538_v49 = vunpack.c.l.s8.bf16 %v3458_v46 }
 0x532   : > { %6010 = vmatpush1.bf16.msra.mxu0 %v4348_v50  ;;  %5839 = vmatprep.subr.bf16.mxu1 %v4371_v51  ;;  %v4540_v50 = vunpack.c.l.s8.bf16 %v3460_v48  ;;  %v4563_v51 = vunpack.c.h.s8.bf16 %v3459_v41  ;;  %v4709_v41 = vunpack.c.h.s8.bf16 %v3533_v14 }
 0x533   : > { %6011 = vmatprep.subr.bf16.mxu0 %v4373_v52  ;;  %v4565_v52 = vunpack.c.h.s8.bf16 %v3461_v42  ;;  %v3557_v42 = vld [vmem:[%s9820_s10 + $0xcf8] sm:$0xff] }
 0x535   : > { %5840 = vmatpush1.bf16.msra.mxu1 %v4370_v57  ;;  %v4562_v57 = vunpack.c.h.s8.bf16 %v3458_v46  ;;  %v3554_v46 = vld [vmem:[%s9820_s10 + $0xce0] sm:$0xff] }
 0x536   : > { %6012 = vmatpush1.bf16.msra.mxu0 %v4372_v58  ;;  %5841 = vmatprep.subr.bf16.mxu1 %v4395_v59  ;;  %v4564_v58 = vunpack.c.h.s8.bf16 %v3460_v48  ;;  %v4587_v59 = vunpack.c.l.s8.bf16 %v3483_v54  ;;  %v3556_v48 = vld [vmem:[%s9820_s10 + $0xcf0] sm:$0xff] }
 0x537   : > { %6013 = vmatprep.subr.bf16.mxu0 %v4397_v61  ;;  %v4589_v61 = vunpack.c.l.s8.bf16 %v3485_v56 }
 0x539   : > { %5842 = vmatpush1.bf16.msra.mxu1 %v4394_v63  ;;  %v4586_v63 = vunpack.c.l.s8.bf16 %v3482_v60 }
 0x53a   : > { %6014 = vmatpush1.bf16.msra.mxu0 %v4396_v0  ;;  %5843 = vmatprep.subr.bf16.mxu1 %v4419_v47  ;;  %v4588_v0 = vunpack.c.l.s8.bf16 %v3484_v62  ;;  %v4611_v47 = vunpack.c.h.s8.bf16 %v3483_v54  ;;  %v3579_v54 = vld [vmem:[%s9820_s10 + $0xda8] sm:$0xff] }
 0x53b   : > { %6015 = vmatprep.subr.bf16.mxu0 %v4421_v1  ;;  %v4613_v1 = vunpack.c.h.s8.bf16 %v3485_v56  ;;  %v3581_v56 = vld [vmem:[%s9820_s10 + $0xdb8] sm:$0xff] }
 0x53d   : > { %5844 = vmatpush1.bf16.msra.mxu1 %v4418_v4  ;;  %v4610_v4 = vunpack.c.h.s8.bf16 %v3482_v60  ;;  %v3578_v60 = vld [vmem:[%s9820_s10 + $0xda0] sm:$0xff] }
 0x53e   : > { %6016 = vmatpush1.bf16.msra.mxu0 %v4420_v5  ;;  %5845 = vmatprep.subr.bf16.mxu1 %v4443_v6  ;;  %v4612_v5 = vunpack.c.h.s8.bf16 %v3484_v62  ;;  %v4635_v6 = vunpack.c.l.s8.bf16 %v3507_v2  ;;  %v3580_v62 = vld [vmem:[%s9820_s10 + $0xdb0] sm:$0xff] }
 0x53f   : > { %6017 = vmatprep.subr.bf16.mxu0 %v4445_v7  ;;  %v4637_v7 = vunpack.c.l.s8.bf16 %v3509_v3 }
 0x541   : > { %5846 = vmatpush1.bf16.msra.mxu1 %v4442_v9  ;;  %v4634_v9 = vunpack.c.l.s8.bf16 %v3506_v26 }
 0x542   : > { %6018 = vmatpush1.bf16.msra.mxu0 %v4444_v10  ;;  %5847 = vmatprep.subr.bf16.mxu1 %v4467_v11  ;;  %v4636_v10 = vunpack.c.l.s8.bf16 %v3508_v8  ;;  %v4659_v11 = vunpack.c.h.s8.bf16 %v3507_v2  ;;  %v3603_v2 = vld [vmem:[%s9820_s10 + $0xe68] sm:$0xff] }
 0x543   : > { %6019 = vmatprep.subr.bf16.mxu0 %v4469_v12  ;;  %v4661_v12 = vunpack.c.h.s8.bf16 %v3509_v3  ;;  %v3605_v3 = vld [vmem:[%s9820_s10 + $0xe78] sm:$0xff] }
 0x545   : > { %5848 = vmatpush1.bf16.msra.mxu1 %v4466_v18  ;;  %v4658_v18 = vunpack.c.h.s8.bf16 %v3506_v26  ;;  %v3602_v26 = vld [vmem:[%s9820_s10 + $0xe60] sm:$0xff] }
 0x546   : > { %6020 = vmatpush1.bf16.msra.mxu0 %v4468_v19  ;;  %5849 = vmatprep.subr.bf16.mxu1 %v4491_v20  ;;  %v4660_v19 = vunpack.c.h.s8.bf16 %v3508_v8  ;;  %v4683_v20 = vunpack.c.l.s8.bf16 %v3531_v13  ;;  %v3604_v8 = vld [vmem:[%s9820_s10 + $0xe70] sm:$0xff] }
 0x547   : > { %6021 = vmatprep.subr.bf16.mxu0 %v4493_v23  ;;  %v4685_v23 = vunpack.c.l.s8.bf16 %v3533_v14  ;;  %v3629_v14 = vld [vmem:[%s9820_s10 + $0xf38] sm:$0xff] }
 0x549   : > { %5850 = vmatpush1.bf16.msra.mxu1 %v4490_v32  ;;  %v4682_v32 = vunpack.c.l.s8.bf16 %v3530_v22 }
 0x54a   : > { %6022 = vmatpush1.bf16.msra.mxu0 %v4492_v36  ;;  %5851 = vmatprep.subr.bf16.mxu1 %v4515_v39  ;;  %v4684_v36 = vunpack.c.l.s8.bf16 %v3532_v29  ;;  %v4707_v39 = vunpack.c.h.s8.bf16 %v3531_v13  ;;  %v3627_v13 = vld [vmem:[%s9820_s10 + $0xf28] sm:$0xff] }
 0x54b   : > { %6023 = vmatprep.subr.bf16.mxu0 %v4517_v40  ;;  %v3555_v40 = vld [vmem:[%s9820_s10 + $0xce8] sm:$0xff] }
 0x54d   : > { %5852 = vmatpush1.bf16.msra.mxu1 %v4514_v43  ;;  %v4706_v43 = vunpack.c.h.s8.bf16 %v3530_v22  ;;  %v3626_v22 = vld [vmem:[%s9820_s10 + $0xf20] sm:$0xff] }
 0x54e   : > { %6024 = vmatpush1.bf16.msra.mxu0 %v4516_v44  ;;  %5853 = vmatprep.subr.bf16.mxu1 %v4539_v45  ;;  %v4708_v44 = vunpack.c.h.s8.bf16 %v3532_v29  ;;  %v4731_v45 = vunpack.c.l.s8.bf16 %v3555_v40  ;;  %v3628_v29 = vld [vmem:[%s9820_s10 + $0xf30] sm:$0xff] }
 0x54f   : > { %6025 = vmatprep.subr.bf16.mxu0 %v4541_v27  ;;  %v4733_v27 = vunpack.c.l.s8.bf16 %v3557_v42 }
 0x551   : > { %5854 = vmatpush1.bf16.msra.mxu1 %v4538_v49  ;;  %v4730_v49 = vunpack.c.l.s8.bf16 %v3554_v46 }
 0x552   : > { %6026 = vmatpush1.bf16.msra.mxu0 %v4540_v50  ;;  %5855 = vmatprep.subr.bf16.mxu1 %v4563_v51  ;;  %v4732_v50 = vunpack.c.l.s8.bf16 %v3556_v48  ;;  %v4755_v51 = vunpack.c.h.s8.bf16 %v3555_v40  ;;  %v4901_v40 = vunpack.c.h.s8.bf16 %v3629_v14 }
 0x553   : > { %6027 = vmatprep.subr.bf16.mxu0 %v4565_v52  ;;  %v4757_v52 = vunpack.c.h.s8.bf16 %v3557_v42  ;;  %v3653_v42 = vld [vmem:[%s9820_s10 + $0xff8] sm:$0xff] }
 0x555   : > { %5856 = vmatpush1.bf16.msra.mxu1 %v4562_v57  ;;  %v4754_v57 = vunpack.c.h.s8.bf16 %v3554_v46  ;;  %v3650_v46 = vld [vmem:[%s9820_s10 + $0xfe0] sm:$0xff] }
 0x556   : > { %6028 = vmatpush1.bf16.msra.mxu0 %v4564_v58  ;;  %5857 = vmatprep.subr.bf16.mxu1 %v4587_v59  ;;  %v4756_v58 = vunpack.c.h.s8.bf16 %v3556_v48  ;;  %v4779_v59 = vunpack.c.l.s8.bf16 %v3579_v54  ;;  %v3652_v48 = vld [vmem:[%s9820_s10 + $0xff0] sm:$0xff] }
 0x557   : > { %6029 = vmatprep.subr.bf16.mxu0 %v4589_v61  ;;  %v4781_v61 = vunpack.c.l.s8.bf16 %v3581_v56 }
 0x559   : > { %5858 = vmatpush1.bf16.msra.mxu1 %v4586_v63  ;;  %v4778_v63 = vunpack.c.l.s8.bf16 %v3578_v60 }
 0x55a   : > { %6030 = vmatpush1.bf16.msra.mxu0 %v4588_v0  ;;  %5859 = vmatprep.subr.bf16.mxu1 %v4611_v47  ;;  %v4780_v0 = vunpack.c.l.s8.bf16 %v3580_v62  ;;  %v4803_v47 = vunpack.c.h.s8.bf16 %v3579_v54  ;;  %v3675_v54 = vld [vmem:[%s9820_s10 + $0x10a8] sm:$0xff] }
 0x55b   : > { %6031 = vmatprep.subr.bf16.mxu0 %v4613_v1  ;;  %v4805_v1 = vunpack.c.h.s8.bf16 %v3581_v56  ;;  %v3677_v56 = vld [vmem:[%s9820_s10 + $0x10b8] sm:$0xff] }
 0x55d   : > { %5860 = vmatpush1.bf16.msra.mxu1 %v4610_v4  ;;  %v4802_v4 = vunpack.c.h.s8.bf16 %v3578_v60  ;;  %v3674_v60 = vld [vmem:[%s9820_s10 + $0x10a0] sm:$0xff] }
 0x55e   : > { %6032 = vmatpush1.bf16.msra.mxu0 %v4612_v5  ;;  %5861 = vmatprep.subr.bf16.mxu1 %v4635_v6  ;;  %v4804_v5 = vunpack.c.h.s8.bf16 %v3580_v62  ;;  %v4827_v6 = vunpack.c.l.s8.bf16 %v3603_v2  ;;  %v3676_v62 = vld [vmem:[%s9820_s10 + $0x10b0] sm:$0xff] }
 0x55f   : > { %6033 = vmatprep.subr.bf16.mxu0 %v4637_v7  ;;  %v4829_v7 = vunpack.c.l.s8.bf16 %v3605_v3 }
 0x561   : > { %5862 = vmatpush1.bf16.msra.mxu1 %v4634_v9  ;;  %v4826_v9 = vunpack.c.l.s8.bf16 %v3602_v26 }
 0x562   : > { %6034 = vmatpush1.bf16.msra.mxu0 %v4636_v10  ;;  %5863 = vmatprep.subr.bf16.mxu1 %v4659_v11  ;;  %v4828_v10 = vunpack.c.l.s8.bf16 %v3604_v8  ;;  %v4851_v11 = vunpack.c.h.s8.bf16 %v3603_v2  ;;  %v3699_v2 = vld [vmem:[%s9820_s10 + $0x1168] sm:$0xff] }
 0x563   : > { %6035 = vmatprep.subr.bf16.mxu0 %v4661_v12  ;;  %v4853_v12 = vunpack.c.h.s8.bf16 %v3605_v3  ;;  %v3701_v3 = vld [vmem:[%s9820_s10 + $0x1178] sm:$0xff] }
 0x565   : > { %5864 = vmatpush1.bf16.msra.mxu1 %v4658_v18  ;;  %v4850_v18 = vunpack.c.h.s8.bf16 %v3602_v26  ;;  %v3698_v26 = vld [vmem:[%s9820_s10 + $0x1160] sm:$0xff] }
 0x566   : > { %6036 = vmatpush1.bf16.msra.mxu0 %v4660_v19  ;;  %5876 = vmatprep.subr.bf16.mxu1 %v4683_v20  ;;  %v4852_v19 = vunpack.c.h.s8.bf16 %v3604_v8  ;;  %v4875_v20 = vunpack.c.l.s8.bf16 %v3627_v13  ;;  %v3700_v8 = vld [vmem:[%s9820_s10 + $0x1170] sm:$0xff] }
 0x567   : > { %6048 = vmatprep.subr.bf16.mxu0 %v4685_v23  ;;  %v4877_v23 = vunpack.c.l.s8.bf16 %v3629_v14  ;;  %v3725_v14 = vld [vmem:[%s9820_s10 + $0x1238] sm:$0xff] }
 0x568   : > { %5866 = vmatmul.mubr.bf16.vlgmr.msra.gmra.mrb[16].mxu1 %v9927_v16 }
 0x569   : > { %6038 = vmatmul.mubr.bf16.vlgmr.msra.gmra.mrb[20].mxu0 %v9927_v16  ;;  %5877 = vmatpush1.bf16.msra.mxu1 %v4682_v32  ;;  %v4874_v32 = vunpack.c.l.s8.bf16 %v3626_v22 }
 0x56a   : > { %5908 = vmatprep.mubr.bf16.mxu1 %v10031_v31  ;;  %6049 = vmatpush1.bf16.msra.mxu0 %v4684_v36  ;;  %v4876_v36 = vunpack.c.l.s8.bf16 %v3628_v29 }
 0x56b   : > { %6080 = vmatprep.mubr.bf16.mxu0 %v10031_v31  ;;  %5878 = vmatprep.subr.bf16.mxu1 %v4707_v39  ;;  %v4899_v39 = vunpack.c.h.s8.bf16 %v3627_v13  ;;  %v3723_v13 = vld [vmem:[%s9820_s10 + $0x1228] sm:$0xff] }
 0x56c   : > { %6050 = vmatprep.subr.bf16.mxu0 %v4709_v41  ;;  %v3651_v41 = vld [vmem:[%s9820_s10 + $0xfe8] sm:$0xff] }
 0x56d   : > { %5879 = vmatpush1.bf16.msra.mxu1 %v4706_v43  ;;  %v4898_v43 = vunpack.c.h.s8.bf16 %v3626_v22  ;;  %v3722_v22 = vld [vmem:[%s9820_s10 + $0x1220] sm:$0xff] }
 0x56e   : > { %6051 = vmatpush1.bf16.msra.mxu0 %v4708_v44  ;;  %5880 = vmatprep.subr.bf16.mxu1 %v4731_v45  ;;  %v4900_v44 = vunpack.c.h.s8.bf16 %v3628_v29  ;;  %v4923_v45 = vunpack.c.l.s8.bf16 %v3651_v41  ;;  %v3724_v29 = vld [vmem:[%s9820_s10 + $0x1230] sm:$0xff] }
 0x56f   : > { %6052 = vmatprep.subr.bf16.mxu0 %v4733_v27  ;;  %v4925_v27 = vunpack.c.l.s8.bf16 %v3653_v42 }
 0x571   : > { %5881 = vmatpush1.bf16.msra.mxu1 %v4730_v49  ;;  %v4922_v49 = vunpack.c.l.s8.bf16 %v3650_v46 }
 0x572   : > { %6053 = vmatpush1.bf16.msra.mxu0 %v4732_v50  ;;  %5882 = vmatprep.subr.bf16.mxu1 %v4755_v51  ;;  %v4924_v50 = vunpack.c.l.s8.bf16 %v3652_v48  ;;  %v4947_v51 = vunpack.c.h.s8.bf16 %v3651_v41  ;;  %v5093_v41 = vunpack.c.h.s8.bf16 %v3725_v14 }
 0x573   : > { %6054 = vmatprep.subr.bf16.mxu0 %v4757_v52  ;;  %v4949_v52 = vunpack.c.h.s8.bf16 %v3653_v42  ;;  %v3749_v42 = vld [vmem:[%s9820_s10 + $0x12f8] sm:$0xff] }
 0x575   : > { %5883 = vmatpush1.bf16.msra.mxu1 %v4754_v57  ;;  %v4946_v57 = vunpack.c.h.s8.bf16 %v3650_v46  ;;  %v3746_v46 = vld [vmem:[%s9820_s10 + $0x12e0] sm:$0xff] }
 0x576   : > { %6055 = vmatpush1.bf16.msra.mxu0 %v4756_v58  ;;  %5884 = vmatprep.subr.bf16.mxu1 %v4779_v59  ;;  %v4948_v58 = vunpack.c.h.s8.bf16 %v3652_v48  ;;  %v4971_v59 = vunpack.c.l.s8.bf16 %v3675_v54  ;;  %v3748_v48 = vld [vmem:[%s9820_s10 + $0x12f0] sm:$0xff] }
 0x577   : > { %6056 = vmatprep.subr.bf16.mxu0 %v4781_v61  ;;  %v4973_v61 = vunpack.c.l.s8.bf16 %v3677_v56 }
 0x579   : > { %5885 = vmatpush1.bf16.msra.mxu1 %v4778_v63  ;;  %v4970_v63 = vunpack.c.l.s8.bf16 %v3674_v60 }
 0x57a   : > { %6057 = vmatpush1.bf16.msra.mxu0 %v4780_v0  ;;  %5886 = vmatprep.subr.bf16.mxu1 %v4803_v47  ;;  %v4972_v0 = vunpack.c.l.s8.bf16 %v3676_v62  ;;  %v4995_v47 = vunpack.c.h.s8.bf16 %v3675_v54  ;;  %v3771_v54 = vld [vmem:[%s9820_s10 + $0x13a8] sm:$0xff] }
 0x57b   : > { %6058 = vmatprep.subr.bf16.mxu0 %v4805_v1  ;;  %v4997_v1 = vunpack.c.h.s8.bf16 %v3677_v56  ;;  %v3773_v56 = vld [vmem:[%s9820_s10 + $0x13b8] sm:$0xff] }
 0x57d   : > { %5887 = vmatpush1.bf16.msra.mxu1 %v4802_v4  ;;  %v4994_v4 = vunpack.c.h.s8.bf16 %v3674_v60  ;;  %v3770_v60 = vld [vmem:[%s9820_s10 + $0x13a0] sm:$0xff] }
 0x57e   : > { %6059 = vmatpush1.bf16.msra.mxu0 %v4804_v5  ;;  %5888 = vmatprep.subr.bf16.mxu1 %v4827_v6  ;;  %v4996_v5 = vunpack.c.h.s8.bf16 %v3676_v62  ;;  %v5019_v6 = vunpack.c.l.s8.bf16 %v3699_v2  ;;  %v3772_v62 = vld [vmem:[%s9820_s10 + $0x13b0] sm:$0xff] }
 0x57f   : > { %6060 = vmatprep.subr.bf16.mxu0 %v4829_v7  ;;  %v5021_v7 = vunpack.c.l.s8.bf16 %v3701_v3 }
 0x581   : > { %5889 = vmatpush1.bf16.msra.mxu1 %v4826_v9  ;;  %v5018_v9 = vunpack.c.l.s8.bf16 %v3698_v26 }
 0x582   : > { %6061 = vmatpush1.bf16.msra.mxu0 %v4828_v10  ;;  %5890 = vmatprep.subr.bf16.mxu1 %v4851_v11  ;;  %v5020_v10 = vunpack.c.l.s8.bf16 %v3700_v8  ;;  %v5043_v11 = vunpack.c.h.s8.bf16 %v3699_v2  ;;  %v7684_v2 = vld [vmem:[%s10197_s16] sm:$0xff] }
 0x583   : > { %6062 = vmatprep.subr.bf16.mxu0 %v4853_v12  ;;  %v5045_v12 = vunpack.c.h.s8.bf16 %v3701_v3  ;;  %v5189_v3 = vunpack.c.h.s8.bf16 %v3773_v56 }
 0x585   : > { %5891 = vmatpush1.bf16.msra.mxu1 %v4850_v18  ;;  %v5042_v18 = vunpack.c.h.s8.bf16 %v3698_v26  ;;  %v3797_v26 = vld [vmem:[%s9820_s10 + $0x1478] sm:$0xff] }
 0x586   : > { %6063 = vmatpush1.bf16.msra.mxu0 %v4852_v19  ;;  %5892 = vmatprep.subr.bf16.mxu1 %v4875_v20  ;;  %v5044_v19 = vunpack.c.h.s8.bf16 %v3700_v8  ;;  %v5067_v20 = vunpack.c.l.s8.bf16 %v3723_v13 }
 0x587   : > { %6064 = vmatprep.subr.bf16.mxu0 %v4877_v23  ;;  %v5069_v23 = vunpack.c.l.s8.bf16 %v3725_v14  ;;  %v5188_v14 = vunpack.c.h.s8.bf16 %v3772_v62 }
 0x589   : > { %5893 = vmatpush1.bf16.msra.mxu1 %v4874_v32  ;;  %v5066_v32 = vunpack.c.l.s8.bf16 %v3722_v22 }
 0x58a   : > { %6065 = vmatpush1.bf16.msra.mxu0 %v4876_v36  ;;  %5894 = vmatprep.subr.bf16.mxu1 %v4899_v39  ;;  %v5068_v36 = vunpack.c.l.s8.bf16 %v3724_v29  ;;  %v5091_v39 = vunpack.c.h.s8.bf16 %v3723_v13  ;;  %v7701_v13 = vrot.slane %v7684_v2, %v9840_v53 }
 0x58b   : > { %6066 = vmatprep.subr.bf16.mxu0 %v4901_v40  ;;  %v3747_v40 = vld [vmem:[%s9820_s10 + $0x12e8] sm:$0xff] }
 0x58d   : > { %5895 = vmatpush1.bf16.msra.mxu1 %v4898_v43  ;;  %v5090_v43 = vunpack.c.h.s8.bf16 %v3722_v22  ;;  %v7705_v22 = vrot.slane %v7684_v2, %v9843_v55 }
 0x58e   : > { %6067 = vmatpush1.bf16.msra.mxu0 %v4900_v44  ;;  %5896 = vmatprep.subr.bf16.mxu1 %v4923_v45  ;;  %v5092_v44 = vunpack.c.h.s8.bf16 %v3724_v29  ;;  %v5115_v45 = vunpack.c.l.s8.bf16 %v3747_v40  ;;  %v5213_v29 = vunpack.c.l.s8.bf16 %v3797_v26 }
 0x58f   : > { %6068 = vmatprep.subr.bf16.mxu0 %v4925_v27  ;;  %v5117_v27 = vunpack.c.l.s8.bf16 %v3749_v42 }
 0x591   : > { %5897 = vmatpush1.bf16.msra.mxu1 %v4922_v49  ;;  %v5114_v49 = vunpack.c.l.s8.bf16 %v3746_v46 }
 0x592   : > { %6069 = vmatpush1.bf16.msra.mxu0 %v4924_v50  ;;  %5898 = vmatprep.subr.bf16.mxu1 %v4947_v51  ;;  %v5116_v50 = vunpack.c.l.s8.bf16 %v3748_v48  ;;  %v5139_v51 = vunpack.c.h.s8.bf16 %v3747_v40 }
 0x593   : > { %6070 = vmatprep.subr.bf16.mxu0 %v4949_v52  ;;  %v5141_v52 = vunpack.c.h.s8.bf16 %v3749_v42 }
 0x595   : > { %5899 = vmatpush1.bf16.msra.mxu1 %v4946_v57  ;;  %v5138_v57 = vunpack.c.h.s8.bf16 %v3746_v46 }
 0x596   : > { %6071 = vmatpush1.bf16.msra.mxu0 %v4948_v58  ;;  %5900 = vmatprep.subr.bf16.mxu1 %v4971_v59  ;;  %v5140_v58 = vunpack.c.h.s8.bf16 %v3748_v48  ;;  %v5163_v59 = vunpack.c.l.s8.bf16 %v3771_v54  ;;  %v5237_v48 = vunpack.c.h.s8.bf16 %v3797_v26  ;;  %v3820_v26 = vld [vmem:[%s9820_s10 + $0x1530] sm:$0xff] }
 0x597   : > { %6072 = vmatprep.subr.bf16.mxu0 %v4973_v61  ;;  %v5165_v61 = vunpack.c.l.s8.bf16 %v3773_v56 }
 0x599   : > { %5901 = vmatpush1.bf16.msra.mxu1 %v4970_v63  ;;  %v5162_v63 = vunpack.c.l.s8.bf16 %v3770_v60 }
 0x59a   : > { %6073 = vmatpush1.bf16.msra.mxu0 %v4972_v0  ;;  %5902 = vmatprep.subr.bf16.mxu1 %v4995_v47  ;;  %v7510_v0 = vld [vmem:[%s10194_s25] sm:$0xff]  ;;  %v5164_v47 = vunpack.c.l.s8.bf16 %v3772_v62 }
 0x59b   : > { %6074 = vmatprep.subr.bf16.mxu0 %v4997_v1  ;;  %v5187_v1 = vunpack.c.h.s8.bf16 %v3771_v54  ;;  %v7531_v8 = vrot.slane %v7510_v0, %v9843_v55 }
 0x59d   : > { %5903 = vmatpush1.bf16.msra.mxu1 %v4994_v4  ;;  %v7519_v4 = vrot.slane %v7510_v0, %v9832_v28 }
 0x59e   : > { %6075 = vmatpush1.bf16.msra.mxu0 %v4996_v5  ;;  %5904 = vmatprep.subr.bf16.mxu1 %v5019_v6  ;;  %v7527_v5 = vrot.slane %v7510_v0, %v9840_v53  ;;  %v3795_v6 = vld [vmem:[%s9820_s10 + $0x1468] sm:$0xff] }
 0x59f   : > { %6076 = vmatprep.subr.bf16.mxu0 %v5021_v7  ;;  %v7523_v7 = vrot.slane %v7510_v0, %v9835_v30 }
 0x5a1   : > { %5905 = vmatpush1.bf16.msra.mxu1 %v5018_v9  ;;  %v5186_v9 = vunpack.c.h.s8.bf16 %v3770_v60 }
 0x5a2   : > { %6077 = vmatpush1.bf16.msra.mxu0 %v5020_v10  ;;  %5906 = vmatprep.subr.bf16.mxu1 %v5043_v11  ;;  %v10207_v10 = vld [vmem:[%s9820_s10 + $0x1460] sm:$0xff]  ;;  %v10210_v11 = vld [vmem:[%s9820_s10 + $0x1470] sm:$0xff] }
 0x5a3   : > { %6078 = vmatprep.subr.bf16.mxu0 %v5045_v12  ;;  %v7693_v12 = vrot.slane %v7684_v2, %v9832_v28  ;;  %v5212_v42 = vunpack.c.l.s8.bf16 %v10210_v11 }
 0x5a5   : > { %5907 = vmatpush1.bf16.msra.mxu1 %v5042_v18 }
 0x5a6   : > { %6079 = vmatpush1.bf16.msra.mxu0 %v5044_v19  ;;  %5919 = vmatprep.subr.bf16.mxu1 %v5067_v20  ;;  %v7697_v20 = vrot.slane %v7684_v2, %v9835_v30  ;;  %v5236_v2 = vunpack.c.h.s8.bf16 %v10210_v11  ;;  %v3843_v11 = vld [vmem:[%s9820_s10 + $0x15e8] sm:$0xff] }
 0x5a7   : > { %6091 = vmatprep.subr.bf16.mxu0 %v5069_v23  ;;  %v5211_v23 = vunpack.c.l.s8.bf16 %v3795_v6 }
 0x5a8   : > { %5909 = vmatmul.mubr.bf16.vlgmr.msra.gmra.mrb[16].mxu1 %v10027_v24 }
 0x5a9   : > { %6081 = vmatmul.mubr.bf16.vlgmr.msra.gmra.mrb[20].mxu0 %v10027_v24  ;;  %5920 = vmatpush1.bf16.msra.mxu1 %v5066_v32 }
 0x5aa   : > { %5951 = vmatprep.mubr.bf16.mxu1 %v10033_v37  ;;  %6092 = vmatpush1.bf16.msra.mxu0 %v5068_v36 }
 0x5ab   : > { %6123 = vmatprep.mubr.bf16.mxu0 %v10033_v37  ;;  %5921 = vmatprep.subr.bf16.mxu1 %v5091_v39 }
 0x5ac   : > { %6093 = vmatprep.subr.bf16.mxu0 %v5093_v41  ;;  %v5210_v41 = vunpack.c.l.s8.bf16 %v10207_v10 }
 0x5ad   : > { %5922 = vmatpush1.bf16.msra.mxu1 %v5090_v43 }
 0x5ae   : > { %6094 = vmatpush1.bf16.msra.mxu0 %v5092_v44  ;;  %5923 = vmatprep.subr.bf16.mxu1 %v5115_v45 }
 0x5af   : > { %6095 = vmatprep.subr.bf16.mxu0 %v5117_v27  ;;  %v5235_v27 = vunpack.c.h.s8.bf16 %v3795_v6 }
 0x5b1   : > { %5924 = vmatpush1.bf16.msra.mxu1 %v5114_v49 }
 0x5b2   : > { %6096 = vmatpush1.bf16.msra.mxu0 %v5116_v50  ;;  %5925 = vmatprep.subr.bf16.mxu1 %v5139_v51 }
 0x5b3   : > { %6097 = vmatprep.subr.bf16.mxu0 %v5141_v52 }
 0x5b5   : > { %5926 = vmatpush1.bf16.msra.mxu1 %v5138_v57 }
 0x5b6   : > { %6098 = vmatpush1.bf16.msra.mxu0 %v5140_v58  ;;  %5927 = vmatprep.subr.bf16.mxu1 %v5163_v59 }
 0x5b7   : > { %6099 = vmatprep.subr.bf16.mxu0 %v5165_v61  ;;  %v3819_v61 = vld [vmem:[%s9820_s10 + $0x1528] sm:$0xff] }
 0x5b9   : > { %5928 = vmatpush1.bf16.msra.mxu1 %v5162_v63  ;;  %v3821_v63 = vld [vmem:[%s9820_s10 + $0x1538] sm:$0xff] }
 0x5ba   : > { %6100 = vmatpush1.bf16.msra.mxu0 %v5164_v47  ;;  %5929 = vmatprep.subr.bf16.mxu1 %v5187_v1  ;;  %v5234_v47 = vunpack.c.h.s8.bf16 %v10207_v10  ;;  %v5261_v6 = vunpack.c.l.s8.bf16 %v3821_v63  ;;  %v5285_v10 = vunpack.c.h.s8.bf16 %v3821_v63 }
 0x5bb   : > { %v5609_v18 = vpop.f32.mrb[12].mxu1  ;;  %v5781_v19 = vpop.f32.mrb[16].mxu0  ;;  %6101 = vmatprep.subr.bf16.mxu0 %v5189_v3  ;;  %v5259_v3 = vunpack.c.l.s8.bf16 %v3819_v61 }
 0x5bc   : > { %v7636_v32 = vmul.f32 %v7519_v4, %v5609_v18  ;;  %v7638_v36 = vmul.f32 %v7527_v5, %v5781_v19  ;;  %v5611_v39 = vpop.f32.mrb[13].mxu1  ;;  %v5783_v40 = vpop.f32.mrb[17].mxu0  ;;  %v5284_v18 = vunpack.c.h.s8.bf16 %v3820_v26  ;;  %v5307_v19 = vunpack.c.l.s8.bf16 %v3843_v11 }
 0x5bd   : > { %v7637_v43 = vmul.f32 %v7523_v7, %v5611_v39  ;;  %v7639_v44 = vmul.f32 %v7531_v8, %v5783_v40  ;;  %v5613_v45 = vpop.f32.mrb[14].mxu1  ;;  %v5785_v46 = vpop.f32.mrb[18].mxu0  ;;  %5930 = vmatpush1.bf16.msra.mxu1 %v5186_v9  ;;  %v5283_v9 = vunpack.c.h.s8.bf16 %v3819_v61  ;;  %v3891_v61 = vld [vmem:[%s9820_s10 + $0x1768] sm:$0xff] }
 0x5be   : > { %v7810_v49 = vadd.f32 %v7693_v12, %v7636_v32  ;;  %v7812_v50 = vadd.f32 %v7701_v13, %v7638_v36  ;;  %v7660_v51 = vmul.f32 %v7519_v4, %v5613_v45  ;;  %v7662_v52 = vmul.f32 %v7527_v5, %v5785_v46  ;;  %6102 = vmatpush1.bf16.msra.mxu0 %v5188_v14  ;;  %v5615_v54 = vpop.f32.mrb[15].mxu1  ;;  %v5787_v56 = vpop.f32.mrb[19].mxu0  ;;  %v3818_v4 = vld [vmem:[%s9820_s10 + $0x1520] sm:$0xff]  ;;  %v3867_v45 = vld [vmem:[%s9820_s10 + $0x16a8] sm:$0xff] }
 0x5bf   : > { %v7811_v57 = vadd.f32 %v7697_v20, %v7637_v43  ;;  %v7813_v58 = vadd.f32 %v7705_v22, %v7639_v44  ;;  %v7661_v59 = vmul.f32 %v7523_v7, %v5615_v54  ;;  %v7663_v60 = vmul.f32 %v7531_v8, %v5787_v56  ;;  %5931 = vmatprep.subr.bf16.mxu1 %v5211_v23  ;;  %v3868_v56 = vld [vmem:[%s9820_s10 + $0x16b0] sm:$0xff] }
 0x5c0   : > { %9019 = vtanh.f32 %v7810_v49  ;;  %v7834_v62 = vadd.f32 %v7693_v12, %v7660_v51  ;;  %6103 = vmatprep.subr.bf16.mxu0 %v5213_v29  ;;  %v7836_v0 = vadd.f32 %v7701_v13, %v7662_v52  ;;  %v5258_v7 = vunpack.c.l.s8.bf16 %v3818_v4  ;;  %v3845_v12 = vld [vmem:[%s9820_s10 + $0x15f8] sm:$0xff]  ;;  %v3844_v29 = vld [vmem:[%s9820_s10 + $0x15f0] sm:$0xff]  ;;  %v3866_v52 = vld [vmem:[%s9820_s10 + $0x16a0] sm:$0xff] }
 0x5c1   : > { %9021 = vtanh.f32 %v7812_v50  ;;  %5932 = vmatpush1.bf16.msra.mxu1 %v5210_v41  ;;  %v7835_v1 = vadd.f32 %v7697_v20, %v7661_v59  ;;  %v7837_v5 = vadd.f32 %v7705_v22, %v7663_v60  ;;  %v5260_v8 = vunpack.c.l.s8.bf16 %v3820_v26  ;;  %v3842_v20 = vld [vmem:[%s9820_s10 + $0x15e0] sm:$0xff] }
 0x5c2   : > { %9023 = vtanh.f32 %v7811_v57  ;;  %6104 = vmatpush1.bf16.msra.mxu0 %v5212_v42  ;;  %5933 = vmatprep.subr.bf16.mxu1 %v5235_v27  ;;  %v5282_v13 = vunpack.c.h.s8.bf16 %v3818_v4  ;;  %v5309_v23 = vunpack.c.l.s8.bf16 %v3845_v12  ;;  %v5306_v39 = vunpack.c.l.s8.bf16 %v3842_v20  ;;  %v3869_v27 = vld [vmem:[%s9820_s10 + $0x16b8] sm:$0xff] }
 0x5c3   : > { %9025 = vtanh.f32 %v7813_v58  ;;  %6105 = vmatprep.subr.bf16.mxu0 %v5237_v48  ;;  %v5308_v41 = vunpack.c.l.s8.bf16 %v3844_v29  ;;  %v5331_v42 = vunpack.c.h.s8.bf16 %v3843_v11  ;;  %v5333_v44 = vunpack.c.h.s8.bf16 %v3845_v12  ;;  %v3150_v12 = vld [vmem:[%s9820_s10 + $0x40] sm:$0xff] }
 0x5c4   : > { %9027 = vtanh.f32 %v7834_v62  ;;  %v5330_v49 = vunpack.c.h.s8.bf16 %v3842_v20  ;;  %v5332_v50 = vunpack.c.h.s8.bf16 %v3844_v29  ;;  %v5355_v51 = vunpack.c.l.s8.bf16 %v3867_v45  ;;  %v3893_v62 = vld [vmem:[%s9820_s10 + $0x1778] sm:$0xff] }
 0x5c5   : > { %9029 = vtanh.f32 %v7836_v0  ;;  %5934 = vmatpush1.bf16.msra.mxu1 %v5234_v47  ;;  %v5357_v54 = vunpack.c.l.s8.bf16 %v3869_v27  ;;  %v5354_v57 = vunpack.c.l.s8.bf16 %v3866_v52  ;;  %v5356_v58 = vunpack.c.l.s8.bf16 %v3868_v56  ;;  %v3177_v29 = vld [vmem:[%s9820_s10 + $0x118] sm:$0xff] }
 0x5c6   : > { %9031 = vtanh.f32 %v7835_v1  ;;  %6106 = vmatpush1.bf16.msra.mxu0 %v5236_v2  ;;  %5935 = vmatprep.subr.bf16.mxu1 %v5259_v3  ;;  %v5379_v59 = vunpack.c.h.s8.bf16 %v3867_v45  ;;  %v5381_v60 = vunpack.c.h.s8.bf16 %v3869_v27  ;;  %v5378_v63 = vunpack.c.h.s8.bf16 %v3866_v52  ;;  %v3890_v1 = vld [vmem:[%s9820_s10 + $0x1760] sm:$0xff]  ;;  %v3892_v3 = vld [vmem:[%s9820_s10 + $0x1770] sm:$0xff]  ;;  %v3199_v27 = vld [vmem:[%s9820_s10 + $0x1c8] sm:$0xff] }
 0x5c7   : > { %9033 = vtanh.f32 %v7837_v5  ;;  %6107 = vmatprep.subr.bf16.mxu0 %v5261_v6  ;;  %v5380_v0 = vunpack.c.h.s8.bf16 %v3868_v56  ;;  %v5403_v47 = vunpack.c.l.s8.bf16 %v3891_v61  ;;  %v5405_v2 = vunpack.c.l.s8.bf16 %v3893_v62  ;;  %v3198_v52 = vld [vmem:[%s9820_s10 + $0x1c0] sm:$0xff]  ;;  %v3200_v56 = vld [vmem:[%s9820_s10 + $0x1d0] sm:$0xff] }
 0x5c8   : > { %v5402_v4 = vunpack.c.l.s8.bf16 %v3890_v1  ;;  %v5404_v5 = vunpack.c.l.s8.bf16 %v3892_v3  ;;  %v5427_v6 = vunpack.c.h.s8.bf16 %v3891_v61  ;;  %v5429_v26 = vunpack.c.h.s8.bf16 %v3893_v62  ;;  %v3223_v61 = vld [vmem:[%s9820_s10 + $0x288] sm:$0xff]  ;;  %v3225_v62 = vld [vmem:[%s9820_s10 + $0x298] sm:$0xff] }
 0x5c9   : > { %5936 = vmatpush1.bf16.msra.mxu1 %v5258_v7  ;;  %v3151_v7 = vld [vmem:[%s9820_s10 + $0x48] sm:$0xff] }
 0x5ca   : > { %v9020_v14 = vpop.eup %9019  ;;  %6108 = vmatpush1.bf16.msra.mxu0 %v5260_v8  ;;  %5937 = vmatprep.subr.bf16.mxu1 %v5283_v9  ;;  %v3153_v8 = vld [vmem:[%s9820_s10 + $0x58] sm:$0xff]  ;;  %v5426_v9 = vunpack.c.h.s8.bf16 %v3890_v1  ;;  %v3919_v11 = vunpack.c.l.s8.bf16 %v3151_v7  ;;  %v3943_v20 = vunpack.c.h.s8.bf16 %v3151_v7  ;;  %v3222_v1 = vld [vmem:[%s9820_s10 + $0x280] sm:$0xff]  ;;  %v3247_v7 = vld [vmem:[%s9820_s10 + $0x348] sm:$0xff] }
 0x5cb   : > { %v9022_v22 = vpop.eup %9021  ;;  %7906 = vst [vmem:[%s10228_s30] sm:$0xff] %v9020_v14  ;;  %6109 = vmatprep.subr.bf16.mxu0 %v5285_v10  ;;  %v5428_v10 = vunpack.c.h.s8.bf16 %v3892_v3  ;;  %v3152_v14 = vld [vmem:[%s9820_s10 + $0x50] sm:$0xff] }
 0x5cc   : > { %v9024_v32 = vpop.eup %9023  ;;  %7908 = vst [vmem:[%s10228_s30 + $0x10] sm:$0xff] %v9022_v22  ;;  %v3175_v22 = vld [vmem:[%s9820_s10 + $0x108] sm:$0xff]  ;;  %v3224_v3 = vld [vmem:[%s9820_s10 + $0x290] sm:$0xff] }
 0x5cd   : > { %v9026_v36 = vpop.eup %9025  ;;  %7907 = vst [vmem:[%s10228_s30 + $0x8] sm:$0xff] %v9024_v32  ;;  %5938 = vmatpush1.bf16.msra.mxu1 %v5282_v13  ;;  %v3921_v13 = vunpack.c.l.s8.bf16 %v3153_v8  ;;  %v3942_v32 = vunpack.c.h.s8.bf16 %v3150_v12  ;;  %v3991_v45 = vunpack.c.h.s8.bf16 %v3175_v22 }
 0x5ce   : > { %v9028_v40 = vpop.eup %9027  ;;  %7909 = vst [vmem:[%s10228_s30 + $0x18] sm:$0xff] %v9026_v36  ;;  %6110 = vmatpush1.bf16.msra.mxu0 %v5284_v18  ;;  %5939 = vmatprep.subr.bf16.mxu1 %v5307_v19  ;;  %v3918_v18 = vunpack.c.l.s8.bf16 %v3150_v12  ;;  %v3920_v19 = vunpack.c.l.s8.bf16 %v3152_v14  ;;  %v3944_v36 = vunpack.c.h.s8.bf16 %v3152_v14  ;;  %v3246_v12 = vld [vmem:[%s9820_s10 + $0x340] sm:$0xff]  ;;  %v3248_v14 = vld [vmem:[%s9820_s10 + $0x350] sm:$0xff] }
 0x5cf   : > { %v9030_v43 = vpop.eup %9029  ;;  %7930 = vst [vmem:[%s10228_s30 + $0xc0] sm:$0xff] %v9028_v40  ;;  %6111 = vmatprep.subr.bf16.mxu0 %v5309_v23  ;;  %v3945_v23 = vunpack.c.h.s8.bf16 %v3153_v8  ;;  %v3174_v40 = vld [vmem:[%s9820_s10 + $0x100] sm:$0xff]  ;;  %v3249_v8 = vld [vmem:[%s9820_s10 + $0x358] sm:$0xff] }
 0x5d0   : > { %v9032_v46 = vpop.eup %9031  ;;  %7932 = vst [vmem:[%s10228_s30 + $0xd0] sm:$0xff] %v9030_v43  ;;  %v3966_v43 = vunpack.c.l.s8.bf16 %v3174_v40 }
 0x5d1   : > { %v9034_v48 = vpop.eup %9033  ;;  %7931 = vst [vmem:[%s10228_s30 + $0xc8] sm:$0xff] %v9032_v46  ;;  %5940 = vmatpush1.bf16.msra.mxu1 %v5306_v39  ;;  %v3967_v39 = vunpack.c.l.s8.bf16 %v3175_v22  ;;  %v3993_v46 = vunpack.c.h.s8.bf16 %v3177_v29  ;;  %v4137_v22 = vunpack.c.h.s8.bf16 %v3249_v8 }
 0x5d2   : > { %7933 = vst [vmem:[%s10228_s30 + $0xd8] sm:$0xff] %v9034_v48  ;;  %6112 = vmatpush1.bf16.msra.mxu0 %v5308_v41  ;;  %5941 = vmatprep.subr.bf16.mxu1 %v5331_v42  ;;  %v3969_v41 = vunpack.c.l.s8.bf16 %v3177_v29  ;;  %v3176_v42 = vld [vmem:[%s9820_s10 + $0x110] sm:$0xff]  ;;  %v3201_v48 = vld [vmem:[%s9820_s10 + $0x1d8] sm:$0xff] }
 0x5d3   : > { %6113 = vmatprep.subr.bf16.mxu0 %v5333_v44  ;;  %v3968_v44 = vunpack.c.l.s8.bf16 %v3176_v42  ;;  %v3273_v29 = vld [vmem:[%s9820_s10 + $0x418] sm:$0xff] }
 0x5d5   : > { %5942 = vmatpush1.bf16.msra.mxu1 %v5330_v49  ;;  %v3990_v49 = vunpack.c.h.s8.bf16 %v3174_v40  ;;  %v3270_v40 = vld [vmem:[%s9820_s10 + $0x400] sm:$0xff] }
 0x5d6   : > { %6114 = vmatpush1.bf16.msra.mxu0 %v5332_v50  ;;  %5943 = vmatprep.subr.bf16.mxu1 %v5355_v51  ;;  %v3992_v50 = vunpack.c.h.s8.bf16 %v3176_v42  ;;  %v4015_v51 = vunpack.c.l.s8.bf16 %v3199_v27  ;;  %v3272_v42 = vld [vmem:[%s9820_s10 + $0x410] sm:$0xff] }
 0x5d7   : > { %6115 = vmatprep.subr.bf16.mxu0 %v5357_v54  ;;  %v4017_v54 = vunpack.c.l.s8.bf16 %v3201_v48 }
 0x5d9   : > { %5944 = vmatpush1.bf16.msra.mxu1 %v5354_v57  ;;  %v4014_v57 = vunpack.c.l.s8.bf16 %v3198_v52 }
 0x5da   : > { %6116 = vmatpush1.bf16.msra.mxu0 %v5356_v58  ;;  %5945 = vmatprep.subr.bf16.mxu1 %v5379_v59  ;;  %v4016_v58 = vunpack.c.l.s8.bf16 %v3200_v56  ;;  %v4039_v59 = vunpack.c.h.s8.bf16 %v3199_v27  ;;  %v3295_v27 = vld [vmem:[%s9820_s10 + $0x4c8] sm:$0xff] }
 0x5db   : > { %6117 = vmatprep.subr.bf16.mxu0 %v5381_v60  ;;  %v4041_v60 = vunpack.c.h.s8.bf16 %v3201_v48  ;;  %v3297_v48 = vld [vmem:[%s9820_s10 + $0x4d8] sm:$0xff] }
 0x5dd   : > { %5946 = vmatpush1.bf16.msra.mxu1 %v5378_v63  ;;  %v4038_v63 = vunpack.c.h.s8.bf16 %v3198_v52  ;;  %v3294_v52 = vld [vmem:[%s9820_s10 + $0x4c0] sm:$0xff] }
 0x5de   : > { %6118 = vmatpush1.bf16.msra.mxu0 %v5380_v0  ;;  %5947 = vmatprep.subr.bf16.mxu1 %v5403_v47  ;;  %v4040_v0 = vunpack.c.h.s8.bf16 %v3200_v56  ;;  %v4063_v47 = vunpack.c.l.s8.bf16 %v3223_v61  ;;  %v3296_v56 = vld [vmem:[%s9820_s10 + $0x4d0] sm:$0xff] }
 0x5df   : > { %6119 = vmatprep.subr.bf16.mxu0 %v5405_v2  ;;  %v4065_v2 = vunpack.c.l.s8.bf16 %v3225_v62 }
 0x5e1   : > { %5948 = vmatpush1.bf16.msra.mxu1 %v5402_v4  ;;  %v4062_v4 = vunpack.c.l.s8.bf16 %v3222_v1 }
 0x5e2   : > { %6120 = vmatpush1.bf16.msra.mxu0 %v5404_v5  ;;  %5949 = vmatprep.subr.bf16.mxu1 %v5427_v6  ;;  %v4064_v5 = vunpack.c.l.s8.bf16 %v3224_v3  ;;  %v4087_v6 = vunpack.c.h.s8.bf16 %v3223_v61  ;;  %v3319_v61 = vld [vmem:[%s9820_s10 + $0x588] sm:$0xff] }
 0x5e3   : > { %6121 = vmatprep.subr.bf16.mxu0 %v5429_v26  ;;  %v4089_v26 = vunpack.c.h.s8.bf16 %v3225_v62  ;;  %v3321_v62 = vld [vmem:[%s9820_s10 + $0x598] sm:$0xff] }
 0x5e5   : > { %5950 = vmatpush1.bf16.msra.mxu1 %v5426_v9  ;;  %v4086_v9 = vunpack.c.h.s8.bf16 %v3222_v1  ;;  %v3318_v1 = vld [vmem:[%s9820_s10 + $0x580] sm:$0xff] }
 0x5e6   : > { %6122 = vmatpush1.bf16.msra.mxu0 %v5428_v10  ;;  %6134 = vmatprep.subr.bf16.mxu1 %v3919_v11  ;;  %v4088_v10 = vunpack.c.h.s8.bf16 %v3224_v3  ;;  %v4111_v11 = vunpack.c.l.s8.bf16 %v3247_v7  ;;  %v3320_v3 = vld [vmem:[%s9820_s10 + $0x590] sm:$0xff] }
 0x5e7   : > { %6306 = vmatprep.subr.bf16.mxu0 %v3921_v13  ;;  %v4113_v13 = vunpack.c.l.s8.bf16 %v3249_v8  ;;  %v3345_v8 = vld [vmem:[%s9820_s10 + $0x658] sm:$0xff] }
 0x5e8   : > { %5952 = vmatmul.mubr.bf16.vlgmr.msra.gmra.mrb[16].mxu1 %v10029_v25 }
 0x5e9   : > { %6124 = vmatmul.mubr.bf16.vlgmr.msra.gmra.mrb[20].mxu0 %v10029_v25  ;;  %6135 = vmatpush1.bf16.msra.mxu1 %v3918_v18  ;;  %v4110_v18 = vunpack.c.l.s8.bf16 %v3246_v12 }
 0x5ea   : > { %6166 = vmatprep.mubr.bf16.mxu1 %v9929_v21  ;;  %6307 = vmatpush1.bf16.msra.mxu0 %v3920_v19  ;;  %v4112_v19 = vunpack.c.l.s8.bf16 %v3248_v14 }
 0x5eb   : > { %6338 = vmatprep.mubr.bf16.mxu0 %v9929_v21  ;;  %6136 = vmatprep.subr.bf16.mxu1 %v3943_v20  ;;  %v4135_v20 = vunpack.c.h.s8.bf16 %v3247_v7  ;;  %v3343_v7 = vld [vmem:[%s9820_s10 + $0x648] sm:$0xff] }
 0x5ec   : > { %6308 = vmatprep.subr.bf16.mxu0 %v3945_v23  ;;  %v3271_v23 = vld [vmem:[%s9820_s10 + $0x408] sm:$0xff] }
 0x5ed   : > { %6137 = vmatpush1.bf16.msra.mxu1 %v3942_v32  ;;  %v4134_v32 = vunpack.c.h.s8.bf16 %v3246_v12  ;;  %v3342_v12 = vld [vmem:[%s9820_s10 + $0x640] sm:$0xff] }
 0x5ee   : > { %6309 = vmatpush1.bf16.msra.mxu0 %v3944_v36  ;;  %6138 = vmatprep.subr.bf16.mxu1 %v3967_v39  ;;  %v4136_v36 = vunpack.c.h.s8.bf16 %v3248_v14  ;;  %v4159_v39 = vunpack.c.l.s8.bf16 %v3271_v23  ;;  %v3344_v14 = vld [vmem:[%s9820_s10 + $0x650] sm:$0xff] }
 0x5ef   : > { %6310 = vmatprep.subr.bf16.mxu0 %v3969_v41  ;;  %v4161_v41 = vunpack.c.l.s8.bf16 %v3273_v29 }
 0x5f1   : > { %6139 = vmatpush1.bf16.msra.mxu1 %v3966_v43  ;;  %v4158_v43 = vunpack.c.l.s8.bf16 %v3270_v40 }
 0x5f2   : > { %6311 = vmatpush1.bf16.msra.mxu0 %v3968_v44  ;;  %6140 = vmatprep.subr.bf16.mxu1 %v3991_v45  ;;  %v4160_v44 = vunpack.c.l.s8.bf16 %v3272_v42  ;;  %v4183_v45 = vunpack.c.h.s8.bf16 %v3271_v23  ;;  %v4329_v23 = vunpack.c.h.s8.bf16 %v3345_v8 }
 0x5f3   : > { %6312 = vmatprep.subr.bf16.mxu0 %v3993_v46  ;;  %v4185_v46 = vunpack.c.h.s8.bf16 %v3273_v29  ;;  %v3369_v29 = vld [vmem:[%s9820_s10 + $0x718] sm:$0xff] }
 0x5f5   : > { %6141 = vmatpush1.bf16.msra.mxu1 %v3990_v49  ;;  %v4182_v49 = vunpack.c.h.s8.bf16 %v3270_v40  ;;  %v3366_v40 = vld [vmem:[%s9820_s10 + $0x700] sm:$0xff] }
 0x5f6   : > { %6313 = vmatpush1.bf16.msra.mxu0 %v3992_v50  ;;  %6142 = vmatprep.subr.bf16.mxu1 %v4015_v51  ;;  %v4184_v50 = vunpack.c.h.s8.bf16 %v3272_v42  ;;  %v4207_v51 = vunpack.c.l.s8.bf16 %v3295_v27  ;;  %v3368_v42 = vld [vmem:[%s9820_s10 + $0x710] sm:$0xff] }
 0x5f7   : > { %6314 = vmatprep.subr.bf16.mxu0 %v4017_v54  ;;  %v4209_v54 = vunpack.c.l.s8.bf16 %v3297_v48 }
 0x5f9   : > { %6143 = vmatpush1.bf16.msra.mxu1 %v4014_v57  ;;  %v4206_v57 = vunpack.c.l.s8.bf16 %v3294_v52 }
 0x5fa   : > { %6315 = vmatpush1.bf16.msra.mxu0 %v4016_v58  ;;  %6144 = vmatprep.subr.bf16.mxu1 %v4039_v59  ;;  %v4208_v58 = vunpack.c.l.s8.bf16 %v3296_v56  ;;  %v4231_v59 = vunpack.c.h.s8.bf16 %v3295_v27  ;;  %v3391_v27 = vld [vmem:[%s9820_s10 + $0x7c8] sm:$0xff] }
 0x5fb   : > { %6316 = vmatprep.subr.bf16.mxu0 %v4041_v60  ;;  %v4233_v60 = vunpack.c.h.s8.bf16 %v3297_v48  ;;  %v3393_v48 = vld [vmem:[%s9820_s10 + $0x7d8] sm:$0xff] }
 0x5fd   : > { %6145 = vmatpush1.bf16.msra.mxu1 %v4038_v63  ;;  %v4230_v63 = vunpack.c.h.s8.bf16 %v3294_v52  ;;  %v3390_v52 = vld [vmem:[%s9820_s10 + $0x7c0] sm:$0xff] }
 0x5fe   : > { %6317 = vmatpush1.bf16.msra.mxu0 %v4040_v0  ;;  %6146 = vmatprep.subr.bf16.mxu1 %v4063_v47  ;;  %v4232_v0 = vunpack.c.h.s8.bf16 %v3296_v56  ;;  %v4255_v47 = vunpack.c.l.s8.bf16 %v3319_v61  ;;  %v3392_v56 = vld [vmem:[%s9820_s10 + $0x7d0] sm:$0xff] }
 0x5ff   : > { %6318 = vmatprep.subr.bf16.mxu0 %v4065_v2  ;;  %v4257_v2 = vunpack.c.l.s8.bf16 %v3321_v62 }
 0x601   : > { %6147 = vmatpush1.bf16.msra.mxu1 %v4062_v4  ;;  %v4254_v4 = vunpack.c.l.s8.bf16 %v3318_v1 }
 0x602   : > { %6319 = vmatpush1.bf16.msra.mxu0 %v4064_v5  ;;  %6148 = vmatprep.subr.bf16.mxu1 %v4087_v6  ;;  %v4256_v5 = vunpack.c.l.s8.bf16 %v3320_v3  ;;  %v4279_v6 = vunpack.c.h.s8.bf16 %v3319_v61  ;;  %v3415_v61 = vld [vmem:[%s9820_s10 + $0x888] sm:$0xff] }
 0x603   : > { %6320 = vmatprep.subr.bf16.mxu0 %v4089_v26  ;;  %v4281_v26 = vunpack.c.h.s8.bf16 %v3321_v62  ;;  %v3417_v62 = vld [vmem:[%s9820_s10 + $0x898] sm:$0xff] }
 0x605   : > { %6149 = vmatpush1.bf16.msra.mxu1 %v4086_v9  ;;  %v4278_v9 = vunpack.c.h.s8.bf16 %v3318_v1  ;;  %v3414_v1 = vld [vmem:[%s9820_s10 + $0x880] sm:$0xff] }
 0x606   : > { %6321 = vmatpush1.bf16.msra.mxu0 %v4088_v10  ;;  %6150 = vmatprep.subr.bf16.mxu1 %v4111_v11  ;;  %v4280_v10 = vunpack.c.h.s8.bf16 %v3320_v3  ;;  %v4303_v11 = vunpack.c.l.s8.bf16 %v3343_v7  ;;  %v3416_v3 = vld [vmem:[%s9820_s10 + $0x890] sm:$0xff] }
 0x607   : > { %6322 = vmatprep.subr.bf16.mxu0 %v4113_v13  ;;  %v4305_v13 = vunpack.c.l.s8.bf16 %v3345_v8  ;;  %v3441_v8 = vld [vmem:[%s9820_s10 + $0x958] sm:$0xff] }
 0x609   : > { %6151 = vmatpush1.bf16.msra.mxu1 %v4110_v18  ;;  %v4302_v18 = vunpack.c.l.s8.bf16 %v3342_v12 }
 0x60a   : > { %6323 = vmatpush1.bf16.msra.mxu0 %v4112_v19  ;;  %6152 = vmatprep.subr.bf16.mxu1 %v4135_v20  ;;  %v4304_v19 = vunpack.c.l.s8.bf16 %v3344_v14  ;;  %v4327_v20 = vunpack.c.h.s8.bf16 %v3343_v7  ;;  %v3439_v7 = vld [vmem:[%s9820_s10 + $0x948] sm:$0xff] }
 0x60b   : > { %6324 = vmatprep.subr.bf16.mxu0 %v4137_v22  ;;  %v3367_v22 = vld [vmem:[%s9820_s10 + $0x708] sm:$0xff] }
 0x60d   : > { %6153 = vmatpush1.bf16.msra.mxu1 %v4134_v32  ;;  %v4326_v32 = vunpack.c.h.s8.bf16 %v3342_v12  ;;  %v3438_v12 = vld [vmem:[%s9820_s10 + $0x940] sm:$0xff] }
 0x60e   : > { %6325 = vmatpush1.bf16.msra.mxu0 %v4136_v36  ;;  %6154 = vmatprep.subr.bf16.mxu1 %v4159_v39  ;;  %v4328_v36 = vunpack.c.h.s8.bf16 %v3344_v14  ;;  %v4351_v39 = vunpack.c.l.s8.bf16 %v3367_v22  ;;  %v3440_v14 = vld [vmem:[%s9820_s10 + $0x950] sm:$0xff] }
 0x60f   : > { %6326 = vmatprep.subr.bf16.mxu0 %v4161_v41  ;;  %v4353_v41 = vunpack.c.l.s8.bf16 %v3369_v29 }
 0x611   : > { %6155 = vmatpush1.bf16.msra.mxu1 %v4158_v43  ;;  %v4350_v43 = vunpack.c.l.s8.bf16 %v3366_v40 }
 0x612   : > { %6327 = vmatpush1.bf16.msra.mxu0 %v4160_v44  ;;  %6156 = vmatprep.subr.bf16.mxu1 %v4183_v45  ;;  %v4352_v44 = vunpack.c.l.s8.bf16 %v3368_v42  ;;  %v4375_v45 = vunpack.c.h.s8.bf16 %v3367_v22  ;;  %v4521_v22 = vunpack.c.h.s8.bf16 %v3441_v8 }
 0x613   : > { %6328 = vmatprep.subr.bf16.mxu0 %v4185_v46  ;;  %v4377_v46 = vunpack.c.h.s8.bf16 %v3369_v29  ;;  %v3465_v29 = vld [vmem:[%s9820_s10 + $0xa18] sm:$0xff] }
 0x615   : > { %6157 = vmatpush1.bf16.msra.mxu1 %v4182_v49  ;;  %v4374_v49 = vunpack.c.h.s8.bf16 %v3366_v40  ;;  %v3462_v40 = vld [vmem:[%s9820_s10 + $0xa00] sm:$0xff] }
 0x616   : > { %6329 = vmatpush1.bf16.msra.mxu0 %v4184_v50  ;;  %6158 = vmatprep.subr.bf16.mxu1 %v4207_v51  ;;  %v4376_v50 = vunpack.c.h.s8.bf16 %v3368_v42  ;;  %v4399_v51 = vunpack.c.l.s8.bf16 %v3391_v27  ;;  %v3464_v42 = vld [vmem:[%s9820_s10 + $0xa10] sm:$0xff] }
 0x617   : > { %6330 = vmatprep.subr.bf16.mxu0 %v4209_v54  ;;  %v4401_v54 = vunpack.c.l.s8.bf16 %v3393_v48 }
 0x619   : > { %6159 = vmatpush1.bf16.msra.mxu1 %v4206_v57  ;;  %v4398_v57 = vunpack.c.l.s8.bf16 %v3390_v52 }
 0x61a   : > { %6331 = vmatpush1.bf16.msra.mxu0 %v4208_v58  ;;  %6160 = vmatprep.subr.bf16.mxu1 %v4231_v59  ;;  %v4400_v58 = vunpack.c.l.s8.bf16 %v3392_v56  ;;  %v4423_v59 = vunpack.c.h.s8.bf16 %v3391_v27  ;;  %v3487_v27 = vld [vmem:[%s9820_s10 + $0xac8] sm:$0xff] }
 0x61b   : > { %6332 = vmatprep.subr.bf16.mxu0 %v4233_v60  ;;  %v4425_v60 = vunpack.c.h.s8.bf16 %v3393_v48  ;;  %v3489_v48 = vld [vmem:[%s9820_s10 + $0xad8] sm:$0xff] }
 0x61d   : > { %6161 = vmatpush1.bf16.msra.mxu1 %v4230_v63  ;;  %v4422_v63 = vunpack.c.h.s8.bf16 %v3390_v52  ;;  %v3486_v52 = vld [vmem:[%s9820_s10 + $0xac0] sm:$0xff] }
 0x61e   : > { %6333 = vmatpush1.bf16.msra.mxu0 %v4232_v0  ;;  %6162 = vmatprep.subr.bf16.mxu1 %v4255_v47  ;;  %v4424_v0 = vunpack.c.h.s8.bf16 %v3392_v56  ;;  %v4447_v47 = vunpack.c.l.s8.bf16 %v3415_v61  ;;  %v3488_v56 = vld [vmem:[%s9820_s10 + $0xad0] sm:$0xff] }
 0x61f   : > { %6334 = vmatprep.subr.bf16.mxu0 %v4257_v2  ;;  %v4449_v2 = vunpack.c.l.s8.bf16 %v3417_v62 }
 0x621   : > { %6163 = vmatpush1.bf16.msra.mxu1 %v4254_v4  ;;  %v4446_v4 = vunpack.c.l.s8.bf16 %v3414_v1 }
 0x622   : > { %6335 = vmatpush1.bf16.msra.mxu0 %v4256_v5  ;;  %6164 = vmatprep.subr.bf16.mxu1 %v4279_v6  ;;  %v4448_v5 = vunpack.c.l.s8.bf16 %v3416_v3  ;;  %v4471_v6 = vunpack.c.h.s8.bf16 %v3415_v61  ;;  %v3511_v61 = vld [vmem:[%s9820_s10 + $0xb88] sm:$0xff] }
 0x623   : > { %6336 = vmatprep.subr.bf16.mxu0 %v4281_v26  ;;  %v4473_v26 = vunpack.c.h.s8.bf16 %v3417_v62  ;;  %v3513_v62 = vld [vmem:[%s9820_s10 + $0xb98] sm:$0xff] }
 0x625   : > { %6165 = vmatpush1.bf16.msra.mxu1 %v4278_v9  ;;  %v4470_v9 = vunpack.c.h.s8.bf16 %v3414_v1  ;;  %v3510_v1 = vld [vmem:[%s9820_s10 + $0xb80] sm:$0xff] }
 0x626   : > { %6337 = vmatpush1.bf16.msra.mxu0 %v4280_v10  ;;  %6177 = vmatprep.subr.bf16.mxu1 %v4303_v11  ;;  %v4472_v10 = vunpack.c.h.s8.bf16 %v3416_v3  ;;  %v4495_v11 = vunpack.c.l.s8.bf16 %v3439_v7  ;;  %v3512_v3 = vld [vmem:[%s9820_s10 + $0xb90] sm:$0xff] }
 0x627   : > { %6349 = vmatprep.subr.bf16.mxu0 %v4305_v13  ;;  %v4497_v13 = vunpack.c.l.s8.bf16 %v3441_v8  ;;  %v3537_v8 = vld [vmem:[%s9820_s10 + $0xc58] sm:$0xff] }
 0x628   : > { %6167 = vmatmul.mubr.bf16.vlgmr.msra.gmra.mrb[20].mxu1 %v9925_v15 }
 0x629   : > { %6339 = vmatmul.mubr.bf16.vlgmr.msra.gmra.mrb[24].mxu0 %v9925_v15  ;;  %6178 = vmatpush1.bf16.msra.mxu1 %v4302_v18  ;;  %v4494_v18 = vunpack.c.l.s8.bf16 %v3438_v12 }
 0x62a   : > { %6209 = vmatprep.mubr.bf16.mxu1 %v9931_v17  ;;  %6350 = vmatpush1.bf16.msra.mxu0 %v4304_v19  ;;  %v4496_v19 = vunpack.c.l.s8.bf16 %v3440_v14 }
 0x62b   : > { %6381 = vmatprep.mubr.bf16.mxu0 %v9931_v17  ;;  %6179 = vmatprep.subr.bf16.mxu1 %v4327_v20  ;;  %v4519_v20 = vunpack.c.h.s8.bf16 %v3439_v7  ;;  %v3535_v7 = vld [vmem:[%s9820_s10 + $0xc48] sm:$0xff] }
 0x62c   : > { %6351 = vmatprep.subr.bf16.mxu0 %v4329_v23  ;;  %v3463_v23 = vld [vmem:[%s9820_s10 + $0xa08] sm:$0xff] }
 0x62d   : > { %6180 = vmatpush1.bf16.msra.mxu1 %v4326_v32  ;;  %v4518_v32 = vunpack.c.h.s8.bf16 %v3438_v12  ;;  %v3534_v12 = vld [vmem:[%s9820_s10 + $0xc40] sm:$0xff] }
 0x62e   : > { %6352 = vmatpush1.bf16.msra.mxu0 %v4328_v36  ;;  %6181 = vmatprep.subr.bf16.mxu1 %v4351_v39  ;;  %v4520_v36 = vunpack.c.h.s8.bf16 %v3440_v14  ;;  %v4543_v39 = vunpack.c.l.s8.bf16 %v3463_v23  ;;  %v3536_v14 = vld [vmem:[%s9820_s10 + $0xc50] sm:$0xff] }
 0x62f   : > { %6353 = vmatprep.subr.bf16.mxu0 %v4353_v41  ;;  %v4545_v41 = vunpack.c.l.s8.bf16 %v3465_v29 }
 0x631   : > { %6182 = vmatpush1.bf16.msra.mxu1 %v4350_v43  ;;  %v4542_v43 = vunpack.c.l.s8.bf16 %v3462_v40 }
 0x632   : > { %6354 = vmatpush1.bf16.msra.mxu0 %v4352_v44  ;;  %6183 = vmatprep.subr.bf16.mxu1 %v4375_v45  ;;  %v4544_v44 = vunpack.c.l.s8.bf16 %v3464_v42  ;;  %v4567_v45 = vunpack.c.h.s8.bf16 %v3463_v23  ;;  %v4713_v23 = vunpack.c.h.s8.bf16 %v3537_v8 }
 0x633   : > { %6355 = vmatprep.subr.bf16.mxu0 %v4377_v46  ;;  %v4569_v46 = vunpack.c.h.s8.bf16 %v3465_v29  ;;  %v3561_v29 = vld [vmem:[%s9820_s10 + $0xd18] sm:$0xff] }
 0x635   : > { %6184 = vmatpush1.bf16.msra.mxu1 %v4374_v49  ;;  %v4566_v49 = vunpack.c.h.s8.bf16 %v3462_v40  ;;  %v3558_v40 = vld [vmem:[%s9820_s10 + $0xd00] sm:$0xff] }
 0x636   : > { %6356 = vmatpush1.bf16.msra.mxu0 %v4376_v50  ;;  %6185 = vmatprep.subr.bf16.mxu1 %v4399_v51  ;;  %v4568_v50 = vunpack.c.h.s8.bf16 %v3464_v42  ;;  %v4591_v51 = vunpack.c.l.s8.bf16 %v3487_v27  ;;  %v3560_v42 = vld [vmem:[%s9820_s10 + $0xd10] sm:$0xff] }
 0x637   : > { %6357 = vmatprep.subr.bf16.mxu0 %v4401_v54  ;;  %v4593_v54 = vunpack.c.l.s8.bf16 %v3489_v48 }
 0x639   : > { %6186 = vmatpush1.bf16.msra.mxu1 %v4398_v57  ;;  %v4590_v57 = vunpack.c.l.s8.bf16 %v3486_v52 }
 0x63a   : > { %6358 = vmatpush1.bf16.msra.mxu0 %v4400_v58  ;;  %6187 = vmatprep.subr.bf16.mxu1 %v4423_v59  ;;  %v4592_v58 = vunpack.c.l.s8.bf16 %v3488_v56  ;;  %v4615_v59 = vunpack.c.h.s8.bf16 %v3487_v27  ;;  %v3583_v27 = vld [vmem:[%s9820_s10 + $0xdc8] sm:$0xff] }
 0x63b   : > { %6359 = vmatprep.subr.bf16.mxu0 %v4425_v60  ;;  %v4617_v60 = vunpack.c.h.s8.bf16 %v3489_v48  ;;  %v3585_v48 = vld [vmem:[%s9820_s10 + $0xdd8] sm:$0xff] }
 0x63d   : > { %6188 = vmatpush1.bf16.msra.mxu1 %v4422_v63  ;;  %v4614_v63 = vunpack.c.h.s8.bf16 %v3486_v52  ;;  %v3582_v52 = vld [vmem:[%s9820_s10 + $0xdc0] sm:$0xff] }
 0x63e   : > { %6360 = vmatpush1.bf16.msra.mxu0 %v4424_v0  ;;  %6189 = vmatprep.subr.bf16.mxu1 %v4447_v47  ;;  %v4616_v0 = vunpack.c.h.s8.bf16 %v3488_v56  ;;  %v4639_v47 = vunpack.c.l.s8.bf16 %v3511_v61  ;;  %v3584_v56 = vld [vmem:[%s9820_s10 + $0xdd0] sm:$0xff] }
 0x63f   : > { %6361 = vmatprep.subr.bf16.mxu0 %v4449_v2  ;;  %v4641_v2 = vunpack.c.l.s8.bf16 %v3513_v62 }
 0x641   : > { %6190 = vmatpush1.bf16.msra.mxu1 %v4446_v4  ;;  %v4638_v4 = vunpack.c.l.s8.bf16 %v3510_v1 }
 0x642   : > { %6362 = vmatpush1.bf16.msra.mxu0 %v4448_v5  ;;  %6191 = vmatprep.subr.bf16.mxu1 %v4471_v6  ;;  %v4640_v5 = vunpack.c.l.s8.bf16 %v3512_v3  ;;  %v4663_v6 = vunpack.c.h.s8.bf16 %v3511_v61  ;;  %v3607_v61 = vld [vmem:[%s9820_s10 + $0xe88] sm:$0xff] }
 0x643   : > { %6363 = vmatprep.subr.bf16.mxu0 %v4473_v26  ;;  %v4665_v26 = vunpack.c.h.s8.bf16 %v3513_v62  ;;  %v3609_v62 = vld [vmem:[%s9820_s10 + $0xe98] sm:$0xff] }
 0x645   : > { %6192 = vmatpush1.bf16.msra.mxu1 %v4470_v9  ;;  %v4662_v9 = vunpack.c.h.s8.bf16 %v3510_v1  ;;  %v3606_v1 = vld [vmem:[%s9820_s10 + $0xe80] sm:$0xff] }
 0x646   : > { %6364 = vmatpush1.bf16.msra.mxu0 %v4472_v10  ;;  %6193 = vmatprep.subr.bf16.mxu1 %v4495_v11  ;;  %v4664_v10 = vunpack.c.h.s8.bf16 %v3512_v3  ;;  %v4687_v11 = vunpack.c.l.s8.bf16 %v3535_v7  ;;  %v3608_v3 = vld [vmem:[%s9820_s10 + $0xe90] sm:$0xff] }
 0x647   : > { %6365 = vmatprep.subr.bf16.mxu0 %v4497_v13  ;;  %v4689_v13 = vunpack.c.l.s8.bf16 %v3537_v8  ;;  %v3633_v8 = vld [vmem:[%s9820_s10 + $0xf58] sm:$0xff] }
 0x649   : > { %6194 = vmatpush1.bf16.msra.mxu1 %v4494_v18  ;;  %v4686_v18 = vunpack.c.l.s8.bf16 %v3534_v12 }
 0x64a   : > { %6366 = vmatpush1.bf16.msra.mxu0 %v4496_v19  ;;  %6195 = vmatprep.subr.bf16.mxu1 %v4519_v20  ;;  %v4688_v19 = vunpack.c.l.s8.bf16 %v3536_v14  ;;  %v4711_v20 = vunpack.c.h.s8.bf16 %v3535_v7  ;;  %v3631_v7 = vld [vmem:[%s9820_s10 + $0xf48] sm:$0xff] }
 0x64b   : > { %6367 = vmatprep.subr.bf16.mxu0 %v4521_v22  ;;  %v3559_v22 = vld [vmem:[%s9820_s10 + $0xd08] sm:$0xff] }
 0x64d   : > { %6196 = vmatpush1.bf16.msra.mxu1 %v4518_v32  ;;  %v4710_v32 = vunpack.c.h.s8.bf16 %v3534_v12  ;;  %v3630_v12 = vld [vmem:[%s9820_s10 + $0xf40] sm:$0xff] }
 0x64e   : > { %6368 = vmatpush1.bf16.msra.mxu0 %v4520_v36  ;;  %6197 = vmatprep.subr.bf16.mxu1 %v4543_v39  ;;  %v4712_v36 = vunpack.c.h.s8.bf16 %v3536_v14  ;;  %v4735_v39 = vunpack.c.l.s8.bf16 %v3559_v22  ;;  %v3632_v14 = vld [vmem:[%s9820_s10 + $0xf50] sm:$0xff] }
 0x64f   : > { %6369 = vmatprep.subr.bf16.mxu0 %v4545_v41  ;;  %v4737_v41 = vunpack.c.l.s8.bf16 %v3561_v29 }
 0x651   : > { %6198 = vmatpush1.bf16.msra.mxu1 %v4542_v43  ;;  %v4734_v43 = vunpack.c.l.s8.bf16 %v3558_v40 }
 0x652   : > { %6370 = vmatpush1.bf16.msra.mxu0 %v4544_v44  ;;  %6199 = vmatprep.subr.bf16.mxu1 %v4567_v45  ;;  %v4736_v44 = vunpack.c.l.s8.bf16 %v3560_v42  ;;  %v4759_v45 = vunpack.c.h.s8.bf16 %v3559_v22  ;;  %v4905_v22 = vunpack.c.h.s8.bf16 %v3633_v8 }
 0x653   : > { %6371 = vmatprep.subr.bf16.mxu0 %v4569_v46  ;;  %v4761_v46 = vunpack.c.h.s8.bf16 %v3561_v29  ;;  %v3657_v29 = vld [vmem:[%s9820_s10 + $0x1018] sm:$0xff] }
 0x655   : > { %6200 = vmatpush1.bf16.msra.mxu1 %v4566_v49  ;;  %v4758_v49 = vunpack.c.h.s8.bf16 %v3558_v40  ;;  %v3654_v40 = vld [vmem:[%s9820_s10 + $0x1000] sm:$0xff] }
 0x656   : > { %6372 = vmatpush1.bf16.msra.mxu0 %v4568_v50  ;;  %6201 = vmatprep.subr.bf16.mxu1 %v4591_v51  ;;  %v4760_v50 = vunpack.c.h.s8.bf16 %v3560_v42  ;;  %v4783_v51 = vunpack.c.l.s8.bf16 %v3583_v27  ;;  %v3656_v42 = vld [vmem:[%s9820_s10 + $0x1010] sm:$0xff] }
 0x657   : > { %6373 = vmatprep.subr.bf16.mxu0 %v4593_v54  ;;  %v4785_v54 = vunpack.c.l.s8.bf16 %v3585_v48 }
 0x659   : > { %6202 = vmatpush1.bf16.msra.mxu1 %v4590_v57  ;;  %v4782_v57 = vunpack.c.l.s8.bf16 %v3582_v52 }
 0x65a   : > { %6374 = vmatpush1.bf16.msra.mxu0 %v4592_v58  ;;  %6203 = vmatprep.subr.bf16.mxu1 %v4615_v59  ;;  %v4784_v58 = vunpack.c.l.s8.bf16 %v3584_v56  ;;  %v4807_v59 = vunpack.c.h.s8.bf16 %v3583_v27  ;;  %v3679_v27 = vld [vmem:[%s9820_s10 + $0x10c8] sm:$0xff] }
 0x65b   : > { %6375 = vmatprep.subr.bf16.mxu0 %v4617_v60  ;;  %v4809_v60 = vunpack.c.h.s8.bf16 %v3585_v48  ;;  %v3681_v48 = vld [vmem:[%s9820_s10 + $0x10d8] sm:$0xff] }
 0x65d   : > { %6204 = vmatpush1.bf16.msra.mxu1 %v4614_v63  ;;  %v4806_v63 = vunpack.c.h.s8.bf16 %v3582_v52  ;;  %v3678_v52 = vld [vmem:[%s9820_s10 + $0x10c0] sm:$0xff] }
 0x65e   : > { %6376 = vmatpush1.bf16.msra.mxu0 %v4616_v0  ;;  %6205 = vmatprep.subr.bf16.mxu1 %v4639_v47  ;;  %v4808_v0 = vunpack.c.h.s8.bf16 %v3584_v56  ;;  %v4831_v47 = vunpack.c.l.s8.bf16 %v3607_v61  ;;  %v3680_v56 = vld [vmem:[%s9820_s10 + $0x10d0] sm:$0xff] }
 0x65f   : > { %6377 = vmatprep.subr.bf16.mxu0 %v4641_v2  ;;  %v4833_v2 = vunpack.c.l.s8.bf16 %v3609_v62 }
 0x661   : > { %6206 = vmatpush1.bf16.msra.mxu1 %v4638_v4  ;;  %v4830_v4 = vunpack.c.l.s8.bf16 %v3606_v1 }
 0x662   : > { %6378 = vmatpush1.bf16.msra.mxu0 %v4640_v5  ;;  %6207 = vmatprep.subr.bf16.mxu1 %v4663_v6  ;;  %v4832_v5 = vunpack.c.l.s8.bf16 %v3608_v3  ;;  %v4855_v6 = vunpack.c.h.s8.bf16 %v3607_v61  ;;  %v3703_v61 = vld [vmem:[%s9820_s10 + $0x1188] sm:$0xff] }
 0x663   : > { %6379 = vmatprep.subr.bf16.mxu0 %v4665_v26  ;;  %v4857_v26 = vunpack.c.h.s8.bf16 %v3609_v62  ;;  %v3705_v62 = vld [vmem:[%s9820_s10 + $0x1198] sm:$0xff] }
 0x665   : > { %6208 = vmatpush1.bf16.msra.mxu1 %v4662_v9  ;;  %v4854_v9 = vunpack.c.h.s8.bf16 %v3606_v1  ;;  %v3702_v1 = vld [vmem:[%s9820_s10 + $0x1180] sm:$0xff] }
 0x666   : > { %6380 = vmatpush1.bf16.msra.mxu0 %v4664_v10  ;;  %6220 = vmatprep.subr.bf16.mxu1 %v4687_v11  ;;  %v4856_v10 = vunpack.c.h.s8.bf16 %v3608_v3  ;;  %v4879_v11 = vunpack.c.l.s8.bf16 %v3631_v7  ;;  %v3704_v3 = vld [vmem:[%s9820_s10 + $0x1190] sm:$0xff] }
 0x667   : > { %6392 = vmatprep.subr.bf16.mxu0 %v4689_v13  ;;  %v4881_v13 = vunpack.c.l.s8.bf16 %v3633_v8  ;;  %v3729_v8 = vld [vmem:[%s9820_s10 + $0x1258] sm:$0xff] }
 0x668   : > { %6210 = vmatmul.mubr.bf16.vlgmr.msra.gmra.mrb[20].mxu1 %v9927_v16 }
 0x669   : > { %6382 = vmatmul.mubr.bf16.vlgmr.msra.gmra.mrb[24].mxu0 %v9927_v16  ;;  %6221 = vmatpush1.bf16.msra.mxu1 %v4686_v18  ;;  %v4878_v18 = vunpack.c.l.s8.bf16 %v3630_v12 }
 0x66a   : > { %6252 = vmatprep.mubr.bf16.mxu1 %v10031_v31  ;;  %6393 = vmatpush1.bf16.msra.mxu0 %v4688_v19  ;;  %v4880_v19 = vunpack.c.l.s8.bf16 %v3632_v14 }
 0x66b   : > { %6424 = vmatprep.mubr.bf16.mxu0 %v10031_v31  ;;  %6222 = vmatprep.subr.bf16.mxu1 %v4711_v20  ;;  %v4903_v20 = vunpack.c.h.s8.bf16 %v3631_v7  ;;  %v3727_v7 = vld [vmem:[%s9820_s10 + $0x1248] sm:$0xff] }
 0x66c   : > { %6394 = vmatprep.subr.bf16.mxu0 %v4713_v23  ;;  %v3655_v23 = vld [vmem:[%s9820_s10 + $0x1008] sm:$0xff] }
 0x66d   : > { %6223 = vmatpush1.bf16.msra.mxu1 %v4710_v32  ;;  %v4902_v32 = vunpack.c.h.s8.bf16 %v3630_v12  ;;  %v3726_v12 = vld [vmem:[%s9820_s10 + $0x1240] sm:$0xff] }
 0x66e   : > { %6395 = vmatpush1.bf16.msra.mxu0 %v4712_v36  ;;  %6224 = vmatprep.subr.bf16.mxu1 %v4735_v39  ;;  %v4904_v36 = vunpack.c.h.s8.bf16 %v3632_v14  ;;  %v4927_v39 = vunpack.c.l.s8.bf16 %v3655_v23  ;;  %v3728_v14 = vld [vmem:[%s9820_s10 + $0x1250] sm:$0xff] }
 0x66f   : > { %6396 = vmatprep.subr.bf16.mxu0 %v4737_v41  ;;  %v4929_v41 = vunpack.c.l.s8.bf16 %v3657_v29 }
 0x671   : > { %6225 = vmatpush1.bf16.msra.mxu1 %v4734_v43  ;;  %v4926_v43 = vunpack.c.l.s8.bf16 %v3654_v40 }
 0x672   : > { %6397 = vmatpush1.bf16.msra.mxu0 %v4736_v44  ;;  %6226 = vmatprep.subr.bf16.mxu1 %v4759_v45  ;;  %v4928_v44 = vunpack.c.l.s8.bf16 %v3656_v42  ;;  %v4951_v45 = vunpack.c.h.s8.bf16 %v3655_v23  ;;  %v5097_v23 = vunpack.c.h.s8.bf16 %v3729_v8 }
 0x673   : > { %6398 = vmatprep.subr.bf16.mxu0 %v4761_v46  ;;  %v4953_v46 = vunpack.c.h.s8.bf16 %v3657_v29  ;;  %v3753_v29 = vld [vmem:[%s9820_s10 + $0x1318] sm:$0xff] }
 0x675   : > { %6227 = vmatpush1.bf16.msra.mxu1 %v4758_v49  ;;  %v4950_v49 = vunpack.c.h.s8.bf16 %v3654_v40  ;;  %v3750_v40 = vld [vmem:[%s9820_s10 + $0x1300] sm:$0xff] }
 0x676   : > { %6399 = vmatpush1.bf16.msra.mxu0 %v4760_v50  ;;  %6228 = vmatprep.subr.bf16.mxu1 %v4783_v51  ;;  %v4952_v50 = vunpack.c.h.s8.bf16 %v3656_v42  ;;  %v4975_v51 = vunpack.c.l.s8.bf16 %v3679_v27  ;;  %v3752_v42 = vld [vmem:[%s9820_s10 + $0x1310] sm:$0xff] }
 0x677   : > { %6400 = vmatprep.subr.bf16.mxu0 %v4785_v54  ;;  %v4977_v54 = vunpack.c.l.s8.bf16 %v3681_v48 }
 0x679   : > { %6229 = vmatpush1.bf16.msra.mxu1 %v4782_v57  ;;  %v4974_v57 = vunpack.c.l.s8.bf16 %v3678_v52 }
 0x67a   : > { %6401 = vmatpush1.bf16.msra.mxu0 %v4784_v58  ;;  %6230 = vmatprep.subr.bf16.mxu1 %v4807_v59  ;;  %v4976_v58 = vunpack.c.l.s8.bf16 %v3680_v56  ;;  %v4999_v59 = vunpack.c.h.s8.bf16 %v3679_v27  ;;  %v3775_v27 = vld [vmem:[%s9820_s10 + $0x13c8] sm:$0xff] }
 0x67b   : > { %6402 = vmatprep.subr.bf16.mxu0 %v4809_v60  ;;  %v5001_v60 = vunpack.c.h.s8.bf16 %v3681_v48  ;;  %v3777_v48 = vld [vmem:[%s9820_s10 + $0x13d8] sm:$0xff] }
 0x67d   : > { %6231 = vmatpush1.bf16.msra.mxu1 %v4806_v63  ;;  %v4998_v63 = vunpack.c.h.s8.bf16 %v3678_v52  ;;  %v3774_v52 = vld [vmem:[%s9820_s10 + $0x13c0] sm:$0xff] }
 0x67e   : > { %6403 = vmatpush1.bf16.msra.mxu0 %v4808_v0  ;;  %6232 = vmatprep.subr.bf16.mxu1 %v4831_v47  ;;  %v5000_v0 = vunpack.c.h.s8.bf16 %v3680_v56  ;;  %v5023_v47 = vunpack.c.l.s8.bf16 %v3703_v61  ;;  %v3776_v56 = vld [vmem:[%s9820_s10 + $0x13d0] sm:$0xff] }
 0x67f   : > { %6404 = vmatprep.subr.bf16.mxu0 %v4833_v2  ;;  %v5025_v2 = vunpack.c.l.s8.bf16 %v3705_v62 }
 0x681   : > { %6233 = vmatpush1.bf16.msra.mxu1 %v4830_v4  ;;  %v5022_v4 = vunpack.c.l.s8.bf16 %v3702_v1 }
 0x682   : > { %6405 = vmatpush1.bf16.msra.mxu0 %v4832_v5  ;;  %6234 = vmatprep.subr.bf16.mxu1 %v4855_v6  ;;  %v5024_v5 = vunpack.c.l.s8.bf16 %v3704_v3  ;;  %v5047_v6 = vunpack.c.h.s8.bf16 %v3703_v61  ;;  %v3799_v61 = vld [vmem:[%s9820_s10 + $0x1488] sm:$0xff] }
 0x683   : > { %6406 = vmatprep.subr.bf16.mxu0 %v4857_v26  ;;  %v5049_v26 = vunpack.c.h.s8.bf16 %v3705_v62  ;;  %v9115_v62 = vld [vmem:[%s10194_s25] sm:$0xff] }
 0x685   : > { %6235 = vmatpush1.bf16.msra.mxu1 %v4854_v9  ;;  %v5046_v9 = vunpack.c.h.s8.bf16 %v3702_v1  ;;  %v7539_v1 = vrot.slane %v9115_v62, %v10006_v35 }
 0x686   : > { %6407 = vmatpush1.bf16.msra.mxu0 %v4856_v10  ;;  %6236 = vmatprep.subr.bf16.mxu1 %v4879_v11  ;;  %v5048_v10 = vunpack.c.h.s8.bf16 %v3704_v3  ;;  %v5071_v11 = vunpack.c.l.s8.bf16 %v3727_v7  ;;  %v10380_v3 = vld [vmem:[%s9820_s10 + $0x1480] sm:$0xff] }
 0x687   : > { %6408 = vmatprep.subr.bf16.mxu0 %v4881_v13  ;;  %v5073_v13 = vunpack.c.l.s8.bf16 %v3729_v8  ;;  %v3800_v8 = vld [vmem:[%s9820_s10 + $0x1490] sm:$0xff] }
 0x689   : > { %6237 = vmatpush1.bf16.msra.mxu1 %v4878_v18  ;;  %v5070_v18 = vunpack.c.l.s8.bf16 %v3726_v12 }
 0x68a   : > { %6409 = vmatpush1.bf16.msra.mxu0 %v4880_v19  ;;  %6238 = vmatprep.subr.bf16.mxu1 %v4903_v20  ;;  %v5072_v19 = vunpack.c.l.s8.bf16 %v3728_v14  ;;  %v5095_v20 = vunpack.c.h.s8.bf16 %v3727_v7  ;;  %v5215_v7 = vunpack.c.l.s8.bf16 %v3799_v61 }
 0x68b   : > { %6410 = vmatprep.subr.bf16.mxu0 %v4905_v22  ;;  %v3751_v22 = vld [vmem:[%s9820_s10 + $0x1308] sm:$0xff] }
 0x68d   : > { %6239 = vmatpush1.bf16.msra.mxu1 %v4902_v32  ;;  %v5094_v32 = vunpack.c.h.s8.bf16 %v3726_v12 }
 0x68e   : > { %6411 = vmatpush1.bf16.msra.mxu0 %v4904_v36  ;;  %6240 = vmatprep.subr.bf16.mxu1 %v4927_v39  ;;  %v5096_v36 = vunpack.c.h.s8.bf16 %v3728_v14  ;;  %v5119_v39 = vunpack.c.l.s8.bf16 %v3751_v22 }
 0x68f   : > { %6412 = vmatprep.subr.bf16.mxu0 %v4929_v41  ;;  %v5121_v41 = vunpack.c.l.s8.bf16 %v3753_v29 }
 0x691   : > { %6241 = vmatpush1.bf16.msra.mxu1 %v4926_v43  ;;  %v5118_v43 = vunpack.c.l.s8.bf16 %v3750_v40 }
 0x692   : > { %6413 = vmatpush1.bf16.msra.mxu0 %v4928_v44  ;;  %6242 = vmatprep.subr.bf16.mxu1 %v4951_v45  ;;  %v5120_v44 = vunpack.c.l.s8.bf16 %v3752_v42  ;;  %v5143_v45 = vunpack.c.h.s8.bf16 %v3751_v22 }
 0x693   : > { %6414 = vmatprep.subr.bf16.mxu0 %v4953_v46  ;;  %v5145_v46 = vunpack.c.h.s8.bf16 %v3753_v29 }
 0x695   : > { %6243 = vmatpush1.bf16.msra.mxu1 %v4950_v49  ;;  %v5142_v49 = vunpack.c.h.s8.bf16 %v3750_v40 }
 0x696   : > { %6415 = vmatpush1.bf16.msra.mxu0 %v4952_v50  ;;  %6244 = vmatprep.subr.bf16.mxu1 %v4975_v51  ;;  %v5144_v50 = vunpack.c.h.s8.bf16 %v3752_v42  ;;  %v5167_v51 = vunpack.c.l.s8.bf16 %v3775_v27 }
 0x697   : > { %6416 = vmatprep.subr.bf16.mxu0 %v4977_v54  ;;  %v5169_v54 = vunpack.c.l.s8.bf16 %v3777_v48 }
 0x699   : > { %6245 = vmatpush1.bf16.msra.mxu1 %v4974_v57  ;;  %v5166_v57 = vunpack.c.l.s8.bf16 %v3774_v52 }
 0x69a   : > { %6417 = vmatpush1.bf16.msra.mxu0 %v4976_v58  ;;  %6246 = vmatprep.subr.bf16.mxu1 %v4999_v59  ;;  %v5168_v58 = vunpack.c.l.s8.bf16 %v3776_v56  ;;  %v5191_v59 = vunpack.c.h.s8.bf16 %v3775_v27 }
 0x69b   : > { %6418 = vmatprep.subr.bf16.mxu0 %v5001_v60  ;;  %v5193_v60 = vunpack.c.h.s8.bf16 %v3777_v48 }
 0x69d   : > { %6247 = vmatpush1.bf16.msra.mxu1 %v4998_v63  ;;  %v7535_v63 = vrot.slane %v9115_v62, %v10000_v33 }
 0x69e   : > { %6419 = vmatpush1.bf16.msra.mxu0 %v5000_v0  ;;  %6248 = vmatprep.subr.bf16.mxu1 %v5023_v47  ;;  %v10375_v0 = vld [vmem:[%s9820_s10 + $0x1498] sm:$0xff]  ;;  %v7543_v47 = vrot.slane %v9115_v62, %v10003_v34 }
 0x69f   : > { %6420 = vmatprep.subr.bf16.mxu0 %v5025_v2  ;;  %v5190_v2 = vunpack.c.h.s8.bf16 %v3774_v52  ;;  %v5217_v12 = vunpack.c.l.s8.bf16 %v10375_v0 }
 0x6a1   : > { %6249 = vmatpush1.bf16.msra.mxu1 %v5022_v4  ;;  %v9116_v4 = vld [vmem:[%s10197_s16] sm:$0xff] }
 0x6a2   : > { %6421 = vmatpush1.bf16.msra.mxu0 %v5024_v5  ;;  %6250 = vmatprep.subr.bf16.mxu1 %v5047_v6  ;;  %v7709_v5 = vrot.slane %v9116_v4, %v10000_v33  ;;  %v7547_v6 = vrot.slane %v9115_v62, %v10011_v38 }
 0x6a3   : > { %6422 = vmatprep.subr.bf16.mxu0 %v5049_v26  ;;  %v5192_v26 = vunpack.c.h.s8.bf16 %v3776_v56 }
 0x6a5   : > { %6251 = vmatpush1.bf16.msra.mxu1 %v5046_v9 }
 0x6a6   : > { %6423 = vmatpush1.bf16.msra.mxu0 %v5048_v10  ;;  %6263 = vmatprep.subr.bf16.mxu1 %v5071_v11  ;;  %v7717_v10 = vrot.slane %v9116_v4, %v10003_v34  ;;  %v7713_v11 = vrot.slane %v9116_v4, %v10006_v35 }
 0x6a7   : > { %6435 = vmatprep.subr.bf16.mxu0 %v5073_v13 }
 0x6a8   : > { %6253 = vmatmul.mubr.bf16.vlgmr.msra.gmra.mrb[20].mxu1 %v10027_v24 }
 0x6a9   : > { %6425 = vmatmul.mubr.bf16.vlgmr.msra.gmra.mrb[24].mxu0 %v10027_v24  ;;  %6264 = vmatpush1.bf16.msra.mxu1 %v5070_v18 }
 0x6aa   : > { %6295 = vmatprep.mubr.bf16.mxu1 %v10033_v37  ;;  %6436 = vmatpush1.bf16.msra.mxu0 %v5072_v19  ;;  %v7721_v19 = vrot.slane %v9116_v4, %v10011_v38 }
 0x6ab   : > { %6467 = vmatprep.mubr.bf16.mxu0 %v10033_v37  ;;  %6265 = vmatprep.subr.bf16.mxu1 %v5095_v20  ;;  %v5214_v20 = vunpack.c.l.s8.bf16 %v10380_v3 }
 0x6ac   : > { %6437 = vmatprep.subr.bf16.mxu0 %v5097_v23 }
 0x6ad   : > { %6266 = vmatpush1.bf16.msra.mxu1 %v5094_v32 }
 0x6ae   : > { %6438 = vmatpush1.bf16.msra.mxu0 %v5096_v36  ;;  %6267 = vmatprep.subr.bf16.mxu1 %v5119_v39  ;;  %v5216_v36 = vunpack.c.l.s8.bf16 %v3800_v8  ;;  %v5239_v39 = vunpack.c.h.s8.bf16 %v3799_v61  ;;  %v5240_v61 = vunpack.c.h.s8.bf16 %v3800_v8 }
 0x6af   : > { %6439 = vmatprep.subr.bf16.mxu0 %v5121_v41 }
 0x6b1   : > { %6268 = vmatpush1.bf16.msra.mxu1 %v5118_v43 }
 0x6b2   : > { %6440 = vmatpush1.bf16.msra.mxu0 %v5120_v44  ;;  %6269 = vmatprep.subr.bf16.mxu1 %v5143_v45  ;;  %v5241_v45 = vunpack.c.h.s8.bf16 %v10375_v0 }
 0x6b3   : > { %6441 = vmatprep.subr.bf16.mxu0 %v5145_v46 }
 0x6b5   : > { %6270 = vmatpush1.bf16.msra.mxu1 %v5142_v49 }
 0x6b6   : > { %6442 = vmatpush1.bf16.msra.mxu0 %v5144_v50  ;;  %6271 = vmatprep.subr.bf16.mxu1 %v5167_v51  ;;  %v3823_v51 = vld [vmem:[%s9820_s10 + $0x1548] sm:$0xff] }
 0x6b7   : > { %6443 = vmatprep.subr.bf16.mxu0 %v5169_v54  ;;  %v5263_v62 = vunpack.c.l.s8.bf16 %v3823_v51  ;;  %v5287_v4 = vunpack.c.h.s8.bf16 %v3823_v51 }
 0x6b9   : > { %6272 = vmatpush1.bf16.msra.mxu1 %v5166_v57  ;;  %v3825_v57 = vld [vmem:[%s9820_s10 + $0x1558] sm:$0xff] }
 0x6ba   : > { %6444 = vmatpush1.bf16.msra.mxu0 %v5168_v58  ;;  %6273 = vmatprep.subr.bf16.mxu1 %v5191_v59  ;;  %v5238_v59 = vunpack.c.h.s8.bf16 %v10380_v3 }
 0x6bb   : > { %v5953_v9 = vpop.f32.mrb[16].mxu1  ;;  %6445 = vmatprep.subr.bf16.mxu0 %v5193_v60 }
 0x6bc   : > { %v7640_v13 = vmul.f32 %v7535_v63, %v5953_v9  ;;  %v6125_v14 = vpop.f32.mrb[20].mxu0  ;;  %v5955_v18 = vpop.f32.mrb[17].mxu1 }
 0x6bd   : > { %v7642_v22 = vmul.f32 %v7543_v47, %v6125_v14  ;;  %v7641_v23 = vmul.f32 %v7539_v1, %v5955_v18  ;;  %v6127_v29 = vpop.f32.mrb[21].mxu0  ;;  %v5957_v32 = vpop.f32.mrb[18].mxu1  ;;  %6274 = vmatpush1.bf16.msra.mxu1 %v5190_v2  ;;  %v3848_v14 = vld [vmem:[%s9820_s10 + $0x1610] sm:$0xff] }
 0x6be   : > { %v7814_v40 = vadd.f32 %v7709_v5, %v7640_v13  ;;  %v7643_v41 = vmul.f32 %v7547_v6, %v6127_v29  ;;  %v7664_v42 = vmul.f32 %v7535_v63, %v5957_v32  ;;  %v6129_v43 = vpop.f32.mrb[22].mxu0  ;;  %6446 = vmatpush1.bf16.msra.mxu0 %v5192_v26  ;;  %v5959_v44 = vpop.f32.mrb[19].mxu1  ;;  %6275 = vmatprep.subr.bf16.mxu1 %v5215_v7  ;;  %v3822_v63 = vld [vmem:[%s9820_s10 + $0x1540] sm:$0xff]  ;;  %v3849_v26 = vld [vmem:[%s9820_s10 + $0x1618] sm:$0xff] }
 0x6bf   : > { %v7816_v46 = vadd.f32 %v7717_v10, %v7642_v22  ;;  %v7815_v27 = vadd.f32 %v7713_v11, %v7641_v23  ;;  %v7666_v48 = vmul.f32 %v7543_v47, %v6129_v43  ;;  %v7665_v49 = vmul.f32 %v7539_v1, %v5959_v44  ;;  %v6131_v50 = vpop.f32.mrb[23].mxu0  ;;  %6447 = vmatprep.subr.bf16.mxu0 %v5217_v12  ;;  %v3824_v1 = vld [vmem:[%s9820_s10 + $0x1550] sm:$0xff] }
 0x6c0   : > { %9035 = vtanh.f32 %v7814_v40  ;;  %v7817_v52 = vadd.f32 %v7721_v19, %v7643_v41  ;;  %v7838_v54 = vadd.f32 %v7709_v5, %v7664_v42  ;;  %v7667_v56 = vmul.f32 %v7547_v6, %v6131_v50  ;;  %v3847_v6 = vld [vmem:[%s9820_s10 + $0x1608] sm:$0xff]  ;;  %v3873_v41 = vld [vmem:[%s9820_s10 + $0x16d8] sm:$0xff] }
 0x6c1   : > { %9037 = vtanh.f32 %v7816_v46  ;;  %v7840_v58 = vadd.f32 %v7717_v10, %v7666_v48  ;;  %6276 = vmatpush1.bf16.msra.mxu1 %v5214_v20  ;;  %v7839_v60 = vadd.f32 %v7713_v11, %v7665_v49  ;;  %v5265_v47 = vunpack.c.l.s8.bf16 %v3825_v57  ;;  %v3846_v11 = vld [vmem:[%s9820_s10 + $0x1600] sm:$0xff]  ;;  %v3872_v48 = vld [vmem:[%s9820_s10 + $0x16d0] sm:$0xff] }
 0x6c2   : > { %9039 = vtanh.f32 %v7815_v27  ;;  %6448 = vmatpush1.bf16.msra.mxu0 %v5216_v36  ;;  %6277 = vmatprep.subr.bf16.mxu1 %v5239_v39  ;;  %v7841_v0 = vadd.f32 %v7721_v19, %v7667_v56  ;;  %v5262_v2 = vunpack.c.l.s8.bf16 %v3822_v63  ;;  %v5264_v3 = vunpack.c.l.s8.bf16 %v3824_v1  ;;  %v3871_v39 = vld [vmem:[%s9820_s10 + $0x16c8] sm:$0xff]  ;;  %v3870_v46 = vld [vmem:[%s9820_s10 + $0x16c0] sm:$0xff]  ;;  %v3897_v56 = vld [vmem:[%s9820_s10 + $0x1798] sm:$0xff] }
 0x6c3   : > { %9041 = vtanh.f32 %v7817_v52  ;;  %6449 = vmatprep.subr.bf16.mxu0 %v5241_v45  ;;  %v5289_v5 = vunpack.c.h.s8.bf16 %v3825_v57  ;;  %v5286_v7 = vunpack.c.h.s8.bf16 %v3822_v63  ;;  %v5288_v9 = vunpack.c.h.s8.bf16 %v3824_v1 }
 0x6c4   : > { %9043 = vtanh.f32 %v7838_v54  ;;  %v5311_v10 = vunpack.c.l.s8.bf16 %v3847_v6  ;;  %v5313_v13 = vunpack.c.l.s8.bf16 %v3849_v26  ;;  %v5310_v20 = vunpack.c.l.s8.bf16 %v3846_v11  ;;  %v3895_v54 = vld [vmem:[%s9820_s10 + $0x1788] sm:$0xff] }
 0x6c5   : > { %9045 = vtanh.f32 %v7840_v58  ;;  %6278 = vmatpush1.bf16.msra.mxu1 %v5238_v59  ;;  %v5312_v23 = vunpack.c.l.s8.bf16 %v3848_v14  ;;  %v5335_v29 = vunpack.c.h.s8.bf16 %v3847_v6  ;;  %v5337_v36 = vunpack.c.h.s8.bf16 %v3849_v26  ;;  %v3154_v26 = vld [vmem:[%s9820_s10 + $0x60] sm:$0xff] }
 0x6c6   : > { %9047 = vtanh.f32 %v7839_v60  ;;  %6450 = vmatpush1.bf16.msra.mxu0 %v5240_v61  ;;  %6279 = vmatprep.subr.bf16.mxu1 %v5263_v62  ;;  %v5334_v43 = vunpack.c.h.s8.bf16 %v3846_v11  ;;  %v5336_v44 = vunpack.c.h.s8.bf16 %v3848_v14  ;;  %v5359_v45 = vunpack.c.l.s8.bf16 %v3871_v39  ;;  %v3894_v60 = vld [vmem:[%s9820_s10 + $0x1780] sm:$0xff]  ;;  %v3896_v62 = vld [vmem:[%s9820_s10 + $0x1790] sm:$0xff]  ;;  %v3181_v14 = vld [vmem:[%s9820_s10 + $0x138] sm:$0xff] }
 0x6c7   : > { %9049 = vtanh.f32 %v7841_v0  ;;  %6451 = vmatprep.subr.bf16.mxu0 %v5265_v47  ;;  %v5361_v27 = vunpack.c.l.s8.bf16 %v3873_v41  ;;  %v5358_v49 = vunpack.c.l.s8.bf16 %v3870_v46  ;;  %v5360_v50 = vunpack.c.l.s8.bf16 %v3872_v48 }
 0x6c8   : > { %v5383_v51 = vunpack.c.h.s8.bf16 %v3871_v39  ;;  %v5385_v52 = vunpack.c.h.s8.bf16 %v3873_v41  ;;  %v5382_v57 = vunpack.c.h.s8.bf16 %v3870_v46  ;;  %v5384_v58 = vunpack.c.h.s8.bf16 %v3872_v48  ;;  %v3203_v41 = vld [vmem:[%s9820_s10 + $0x1e8] sm:$0xff]  ;;  %v3202_v46 = vld [vmem:[%s9820_s10 + $0x1e0] sm:$0xff]  ;;  %v3204_v48 = vld [vmem:[%s9820_s10 + $0x1f0] sm:$0xff] }
 0x6c9   : > { %6280 = vmatpush1.bf16.msra.mxu1 %v5262_v2  ;;  %v5407_v59 = vunpack.c.l.s8.bf16 %v3895_v54  ;;  %v5409_v61 = vunpack.c.l.s8.bf16 %v3897_v56  ;;  %v5406_v63 = vunpack.c.l.s8.bf16 %v3894_v60  ;;  %v5408_v0 = vunpack.c.l.s8.bf16 %v3896_v62  ;;  %v3155_v2 = vld [vmem:[%s9820_s10 + $0x68] sm:$0xff] }
 0x6ca   : > { %v9036_v8 = vpop.eup %9035  ;;  %6452 = vmatpush1.bf16.msra.mxu0 %v5264_v3  ;;  %6281 = vmatprep.subr.bf16.mxu1 %v5287_v4  ;;  %v5431_v47 = vunpack.c.h.s8.bf16 %v3895_v54  ;;  %v5433_v1 = vunpack.c.h.s8.bf16 %v3897_v56  ;;  %v3157_v3 = vld [vmem:[%s9820_s10 + $0x78] sm:$0xff]  ;;  %v5430_v4 = vunpack.c.h.s8.bf16 %v3894_v60  ;;  %v3923_v6 = vunpack.c.l.s8.bf16 %v3155_v2  ;;  %v3227_v54 = vld [vmem:[%s9820_s10 + $0x2a8] sm:$0xff]  ;;  %v3226_v60 = vld [vmem:[%s9820_s10 + $0x2a0] sm:$0xff] }
 0x6cb   : > { %v9038_v12 = vpop.eup %9037  ;;  %7910 = vst [vmem:[%s10228_s30 + $0x20] sm:$0xff] %v9036_v8  ;;  %6453 = vmatprep.subr.bf16.mxu0 %v5289_v5  ;;  %v5432_v5 = vunpack.c.h.s8.bf16 %v3896_v62  ;;  %v3156_v8 = vld [vmem:[%s9820_s10 + $0x70] sm:$0xff]  ;;  %v3947_v11 = vunpack.c.h.s8.bf16 %v3155_v2  ;;  %v3229_v56 = vld [vmem:[%s9820_s10 + $0x2b8] sm:$0xff]  ;;  %v3251_v2 = vld [vmem:[%s9820_s10 + $0x368] sm:$0xff] }
 0x6cc   : > { %v9040_v18 = vpop.eup %9039  ;;  %7912 = vst [vmem:[%s10228_s30 + $0x30] sm:$0xff] %v9038_v12  ;;  %v3179_v12 = vld [vmem:[%s9820_s10 + $0x128] sm:$0xff]  ;;  %v3228_v62 = vld [vmem:[%s9820_s10 + $0x2b0] sm:$0xff] }
 0x6cd   : > { %v9042_v19 = vpop.eup %9041  ;;  %7911 = vst [vmem:[%s10228_s30 + $0x28] sm:$0xff] %v9040_v18  ;;  %6282 = vmatpush1.bf16.msra.mxu1 %v5286_v7  ;;  %v3925_v7 = vunpack.c.l.s8.bf16 %v3157_v3  ;;  %v3946_v18 = vunpack.c.h.s8.bf16 %v3154_v26  ;;  %v3995_v39 = vunpack.c.h.s8.bf16 %v3179_v12 }
 0x6ce   : > { %v9044_v22 = vpop.eup %9043  ;;  %7913 = vst [vmem:[%s10228_s30 + $0x38] sm:$0xff] %v9042_v19  ;;  %6454 = vmatpush1.bf16.msra.mxu0 %v5288_v9  ;;  %6283 = vmatprep.subr.bf16.mxu1 %v5311_v10  ;;  %v3922_v9 = vunpack.c.l.s8.bf16 %v3154_v26  ;;  %v3924_v10 = vunpack.c.l.s8.bf16 %v3156_v8  ;;  %v3948_v19 = vunpack.c.h.s8.bf16 %v3156_v8  ;;  %v3250_v26 = vld [vmem:[%s9820_s10 + $0x360] sm:$0xff]  ;;  %v3252_v8 = vld [vmem:[%s9820_s10 + $0x370] sm:$0xff] }
 0x6cf   : > { %v9046_v32 = vpop.eup %9045  ;;  %7934 = vst [vmem:[%s10228_s30 + $0xe0] sm:$0xff] %v9044_v22  ;;  %6455 = vmatprep.subr.bf16.mxu0 %v5313_v13  ;;  %v3949_v13 = vunpack.c.h.s8.bf16 %v3157_v3  ;;  %v3178_v22 = vld [vmem:[%s9820_s10 + $0x120] sm:$0xff]  ;;  %v3253_v3 = vld [vmem:[%s9820_s10 + $0x378] sm:$0xff] }
 0x6d0   : > { %v9048_v40 = vpop.eup %9047  ;;  %7936 = vst [vmem:[%s10228_s30 + $0xf0] sm:$0xff] %v9046_v32  ;;  %v3970_v32 = vunpack.c.l.s8.bf16 %v3178_v22 }
 0x6d1   : > { %v9050_v42 = vpop.eup %9049  ;;  %7935 = vst [vmem:[%s10228_s30 + $0xe8] sm:$0xff] %v9048_v40  ;;  %6284 = vmatpush1.bf16.msra.mxu1 %v5310_v20  ;;  %v3971_v20 = vunpack.c.l.s8.bf16 %v3179_v12  ;;  %v3997_v40 = vunpack.c.h.s8.bf16 %v3181_v14  ;;  %v4141_v12 = vunpack.c.h.s8.bf16 %v3253_v3 }
 0x6d2   : > { %7937 = vst [vmem:[%s10228_s30 + $0xf8] sm:$0xff] %v9050_v42  ;;  %6456 = vmatpush1.bf16.msra.mxu0 %v5312_v23  ;;  %6285 = vmatprep.subr.bf16.mxu1 %v5335_v29  ;;  %v3973_v23 = vunpack.c.l.s8.bf16 %v3181_v14  ;;  %v3180_v29 = vld [vmem:[%s9820_s10 + $0x130] sm:$0xff]  ;;  %v3205_v42 = vld [vmem:[%s9820_s10 + $0x1f8] sm:$0xff] }
 0x6d3   : > { %6457 = vmatprep.subr.bf16.mxu0 %v5337_v36  ;;  %v3972_v36 = vunpack.c.l.s8.bf16 %v3180_v29  ;;  %v3277_v14 = vld [vmem:[%s9820_s10 + $0x438] sm:$0xff] }
 0x6d5   : > { %6286 = vmatpush1.bf16.msra.mxu1 %v5334_v43  ;;  %v3994_v43 = vunpack.c.h.s8.bf16 %v3178_v22  ;;  %v3274_v22 = vld [vmem:[%s9820_s10 + $0x420] sm:$0xff] }
 0x6d6   : > { %6458 = vmatpush1.bf16.msra.mxu0 %v5336_v44  ;;  %6287 = vmatprep.subr.bf16.mxu1 %v5359_v45  ;;  %v3996_v44 = vunpack.c.h.s8.bf16 %v3180_v29  ;;  %v4019_v45 = vunpack.c.l.s8.bf16 %v3203_v41  ;;  %v3276_v29 = vld [vmem:[%s9820_s10 + $0x430] sm:$0xff] }
 0x6d7   : > { %6459 = vmatprep.subr.bf16.mxu0 %v5361_v27  ;;  %v4021_v27 = vunpack.c.l.s8.bf16 %v3205_v42 }
 0x6d9   : > { %6288 = vmatpush1.bf16.msra.mxu1 %v5358_v49  ;;  %v4018_v49 = vunpack.c.l.s8.bf16 %v3202_v46 }
 0x6da   : > { %6460 = vmatpush1.bf16.msra.mxu0 %v5360_v50  ;;  %6289 = vmatprep.subr.bf16.mxu1 %v5383_v51  ;;  %v4020_v50 = vunpack.c.l.s8.bf16 %v3204_v48  ;;  %v4043_v51 = vunpack.c.h.s8.bf16 %v3203_v41  ;;  %v3299_v41 = vld [vmem:[%s9820_s10 + $0x4e8] sm:$0xff] }
 0x6db   : > { %6461 = vmatprep.subr.bf16.mxu0 %v5385_v52  ;;  %v4045_v52 = vunpack.c.h.s8.bf16 %v3205_v42  ;;  %v3301_v42 = vld [vmem:[%s9820_s10 + $0x4f8] sm:$0xff] }
 0x6dd   : > { %6290 = vmatpush1.bf16.msra.mxu1 %v5382_v57  ;;  %v4042_v57 = vunpack.c.h.s8.bf16 %v3202_v46  ;;  %v3298_v46 = vld [vmem:[%s9820_s10 + $0x4e0] sm:$0xff] }
 0x6de   : > { %6462 = vmatpush1.bf16.msra.mxu0 %v5384_v58  ;;  %6291 = vmatprep.subr.bf16.mxu1 %v5407_v59  ;;  %v4044_v58 = vunpack.c.h.s8.bf16 %v3204_v48  ;;  %v4067_v59 = vunpack.c.l.s8.bf16 %v3227_v54  ;;  %v3300_v48 = vld [vmem:[%s9820_s10 + $0x4f0] sm:$0xff] }
 0x6df   : > { %6463 = vmatprep.subr.bf16.mxu0 %v5409_v61  ;;  %v4069_v61 = vunpack.c.l.s8.bf16 %v3229_v56 }
 0x6e1   : > { %6292 = vmatpush1.bf16.msra.mxu1 %v5406_v63  ;;  %v4066_v63 = vunpack.c.l.s8.bf16 %v3226_v60 }
 0x6e2   : > { %6464 = vmatpush1.bf16.msra.mxu0 %v5408_v0  ;;  %6293 = vmatprep.subr.bf16.mxu1 %v5431_v47  ;;  %v4068_v0 = vunpack.c.l.s8.bf16 %v3228_v62  ;;  %v4091_v47 = vunpack.c.h.s8.bf16 %v3227_v54  ;;  %v3323_v54 = vld [vmem:[%s9820_s10 + $0x5a8] sm:$0xff] }
 0x6e3   : > { %6465 = vmatprep.subr.bf16.mxu0 %v5433_v1  ;;  %v4093_v1 = vunpack.c.h.s8.bf16 %v3229_v56  ;;  %v3325_v56 = vld [vmem:[%s9820_s10 + $0x5b8] sm:$0xff] }
 0x6e5   : > { %6294 = vmatpush1.bf16.msra.mxu1 %v5430_v4  ;;  %v4090_v4 = vunpack.c.h.s8.bf16 %v3226_v60  ;;  %v3322_v60 = vld [vmem:[%s9820_s10 + $0x5a0] sm:$0xff] }
 0x6e6   : > { %6466 = vmatpush1.bf16.msra.mxu0 %v5432_v5  ;;  %6478 = vmatprep.subr.bf16.mxu1 %v3923_v6  ;;  %v4092_v5 = vunpack.c.h.s8.bf16 %v3228_v62  ;;  %v4115_v6 = vunpack.c.l.s8.bf16 %v3251_v2  ;;  %v3324_v62 = vld [vmem:[%s9820_s10 + $0x5b0] sm:$0xff] }
 0x6e7   : > { %6650 = vmatprep.subr.bf16.mxu0 %v3925_v7  ;;  %v4117_v7 = vunpack.c.l.s8.bf16 %v3253_v3  ;;  %v3349_v3 = vld [vmem:[%s9820_s10 + $0x678] sm:$0xff] }
 0x6e8   : > { %6296 = vmatmul.mubr.bf16.vlgmr.msra.gmra.mrb[20].mxu1 %v10029_v25 }
 0x6e9   : > { %6468 = vmatmul.mubr.bf16.vlgmr.msra.gmra.mrb[24].mxu0 %v10029_v25  ;;  %6479 = vmatpush1.bf16.msra.mxu1 %v3922_v9  ;;  %v4114_v9 = vunpack.c.l.s8.bf16 %v3250_v26 }
 0x6ea   : > { %6510 = vmatprep.mubr.bf16.mxu1 %v9929_v21  ;;  %6651 = vmatpush1.bf16.msra.mxu0 %v3924_v10  ;;  %v4116_v10 = vunpack.c.l.s8.bf16 %v3252_v8 }
 0x6eb   : > { %6682 = vmatprep.mubr.bf16.mxu0 %v9929_v21  ;;  %6480 = vmatprep.subr.bf16.mxu1 %v3947_v11  ;;  %v4139_v11 = vunpack.c.h.s8.bf16 %v3251_v2  ;;  %v3347_v2 = vld [vmem:[%s9820_s10 + $0x668] sm:$0xff] }
 0x6ec   : > { %6652 = vmatprep.subr.bf16.mxu0 %v3949_v13  ;;  %v3275_v13 = vld [vmem:[%s9820_s10 + $0x428] sm:$0xff] }
 0x6ed   : > { %6481 = vmatpush1.bf16.msra.mxu1 %v3946_v18  ;;  %v4138_v18 = vunpack.c.h.s8.bf16 %v3250_v26  ;;  %v3346_v26 = vld [vmem:[%s9820_s10 + $0x660] sm:$0xff] }
 0x6ee   : > { %6653 = vmatpush1.bf16.msra.mxu0 %v3948_v19  ;;  %6482 = vmatprep.subr.bf16.mxu1 %v3971_v20  ;;  %v4140_v19 = vunpack.c.h.s8.bf16 %v3252_v8  ;;  %v4163_v20 = vunpack.c.l.s8.bf16 %v3275_v13  ;;  %v3348_v8 = vld [vmem:[%s9820_s10 + $0x670] sm:$0xff] }
 0x6ef   : > { %6654 = vmatprep.subr.bf16.mxu0 %v3973_v23  ;;  %v4165_v23 = vunpack.c.l.s8.bf16 %v3277_v14 }
 0x6f1   : > { %6483 = vmatpush1.bf16.msra.mxu1 %v3970_v32  ;;  %v4162_v32 = vunpack.c.l.s8.bf16 %v3274_v22 }
 0x6f2   : > { %6655 = vmatpush1.bf16.msra.mxu0 %v3972_v36  ;;  %6484 = vmatprep.subr.bf16.mxu1 %v3995_v39  ;;  %v4164_v36 = vunpack.c.l.s8.bf16 %v3276_v29  ;;  %v4187_v39 = vunpack.c.h.s8.bf16 %v3275_v13  ;;  %v4333_v13 = vunpack.c.h.s8.bf16 %v3349_v3 }
 0x6f3   : > { %6656 = vmatprep.subr.bf16.mxu0 %v3997_v40  ;;  %v4189_v40 = vunpack.c.h.s8.bf16 %v3277_v14  ;;  %v3373_v14 = vld [vmem:[%s9820_s10 + $0x738] sm:$0xff] }
 0x6f5   : > { %6485 = vmatpush1.bf16.msra.mxu1 %v3994_v43  ;;  %v4186_v43 = vunpack.c.h.s8.bf16 %v3274_v22  ;;  %v3370_v22 = vld [vmem:[%s9820_s10 + $0x720] sm:$0xff] }
 0x6f6   : > { %6657 = vmatpush1.bf16.msra.mxu0 %v3996_v44  ;;  %6486 = vmatprep.subr.bf16.mxu1 %v4019_v45  ;;  %v4188_v44 = vunpack.c.h.s8.bf16 %v3276_v29  ;;  %v4211_v45 = vunpack.c.l.s8.bf16 %v3299_v41  ;;  %v3372_v29 = vld [vmem:[%s9820_s10 + $0x730] sm:$0xff] }
 0x6f7   : > { %6658 = vmatprep.subr.bf16.mxu0 %v4021_v27  ;;  %v4213_v27 = vunpack.c.l.s8.bf16 %v3301_v42 }
 0x6f9   : > { %6487 = vmatpush1.bf16.msra.mxu1 %v4018_v49  ;;  %v4210_v49 = vunpack.c.l.s8.bf16 %v3298_v46 }
 0x6fa   : > { %6659 = vmatpush1.bf16.msra.mxu0 %v4020_v50  ;;  %6488 = vmatprep.subr.bf16.mxu1 %v4043_v51  ;;  %v4212_v50 = vunpack.c.l.s8.bf16 %v3300_v48  ;;  %v4235_v51 = vunpack.c.h.s8.bf16 %v3299_v41  ;;  %v3395_v41 = vld [vmem:[%s9820_s10 + $0x7e8] sm:$0xff] }
 0x6fb   : > { %6660 = vmatprep.subr.bf16.mxu0 %v4045_v52  ;;  %v4237_v52 = vunpack.c.h.s8.bf16 %v3301_v42  ;;  %v3397_v42 = vld [vmem:[%s9820_s10 + $0x7f8] sm:$0xff] }
 0x6fd   : > { %6489 = vmatpush1.bf16.msra.mxu1 %v4042_v57  ;;  %v4234_v57 = vunpack.c.h.s8.bf16 %v3298_v46  ;;  %v3394_v46 = vld [vmem:[%s9820_s10 + $0x7e0] sm:$0xff] }
 0x6fe   : > { %6661 = vmatpush1.bf16.msra.mxu0 %v4044_v58  ;;  %6490 = vmatprep.subr.bf16.mxu1 %v4067_v59  ;;  %v4236_v58 = vunpack.c.h.s8.bf16 %v3300_v48  ;;  %v4259_v59 = vunpack.c.l.s8.bf16 %v3323_v54  ;;  %v3396_v48 = vld [vmem:[%s9820_s10 + $0x7f0] sm:$0xff] }
 0x6ff   : > { %6662 = vmatprep.subr.bf16.mxu0 %v4069_v61  ;;  %v4261_v61 = vunpack.c.l.s8.bf16 %v3325_v56 }
 0x701   : > { %6491 = vmatpush1.bf16.msra.mxu1 %v4066_v63  ;;  %v4258_v63 = vunpack.c.l.s8.bf16 %v3322_v60 }
 0x702   : > { %6663 = vmatpush1.bf16.msra.mxu0 %v4068_v0  ;;  %6492 = vmatprep.subr.bf16.mxu1 %v4091_v47  ;;  %v4260_v0 = vunpack.c.l.s8.bf16 %v3324_v62  ;;  %v4283_v47 = vunpack.c.h.s8.bf16 %v3323_v54  ;;  %v3419_v54 = vld [vmem:[%s9820_s10 + $0x8a8] sm:$0xff] }
 0x703   : > { %6664 = vmatprep.subr.bf16.mxu0 %v4093_v1  ;;  %v4285_v1 = vunpack.c.h.s8.bf16 %v3325_v56  ;;  %v3421_v56 = vld [vmem:[%s9820_s10 + $0x8b8] sm:$0xff] }
 0x705   : > { %6493 = vmatpush1.bf16.msra.mxu1 %v4090_v4  ;;  %v4282_v4 = vunpack.c.h.s8.bf16 %v3322_v60  ;;  %v3418_v60 = vld [vmem:[%s9820_s10 + $0x8a0] sm:$0xff] }
 0x706   : > { %6665 = vmatpush1.bf16.msra.mxu0 %v4092_v5  ;;  %6494 = vmatprep.subr.bf16.mxu1 %v4115_v6  ;;  %v4284_v5 = vunpack.c.h.s8.bf16 %v3324_v62  ;;  %v4307_v6 = vunpack.c.l.s8.bf16 %v3347_v2  ;;  %v3420_v62 = vld [vmem:[%s9820_s10 + $0x8b0] sm:$0xff] }
 0x707   : > { %6666 = vmatprep.subr.bf16.mxu0 %v4117_v7  ;;  %v4309_v7 = vunpack.c.l.s8.bf16 %v3349_v3  ;;  %v3445_v3 = vld [vmem:[%s9820_s10 + $0x978] sm:$0xff] }
 0x709   : > { %6495 = vmatpush1.bf16.msra.mxu1 %v4114_v9  ;;  %v4306_v9 = vunpack.c.l.s8.bf16 %v3346_v26 }
 0x70a   : > { %6667 = vmatpush1.bf16.msra.mxu0 %v4116_v10  ;;  %6496 = vmatprep.subr.bf16.mxu1 %v4139_v11  ;;  %v4308_v10 = vunpack.c.l.s8.bf16 %v3348_v8  ;;  %v4331_v11 = vunpack.c.h.s8.bf16 %v3347_v2  ;;  %v3443_v2 = vld [vmem:[%s9820_s10 + $0x968] sm:$0xff] }
 0x70b   : > { %6668 = vmatprep.subr.bf16.mxu0 %v4141_v12  ;;  %v3371_v12 = vld [vmem:[%s9820_s10 + $0x728] sm:$0xff] }
 0x70d   : > { %6497 = vmatpush1.bf16.msra.mxu1 %v4138_v18  ;;  %v4330_v18 = vunpack.c.h.s8.bf16 %v3346_v26  ;;  %v3442_v26 = vld [vmem:[%s9820_s10 + $0x960] sm:$0xff] }
 0x70e   : > { %6669 = vmatpush1.bf16.msra.mxu0 %v4140_v19  ;;  %6498 = vmatprep.subr.bf16.mxu1 %v4163_v20  ;;  %v4332_v19 = vunpack.c.h.s8.bf16 %v3348_v8  ;;  %v4355_v20 = vunpack.c.l.s8.bf16 %v3371_v12  ;;  %v3444_v8 = vld [vmem:[%s9820_s10 + $0x970] sm:$0xff] }
 0x70f   : > { %6670 = vmatprep.subr.bf16.mxu0 %v4165_v23  ;;  %v4357_v23 = vunpack.c.l.s8.bf16 %v3373_v14 }
 0x711   : > { %6499 = vmatpush1.bf16.msra.mxu1 %v4162_v32  ;;  %v4354_v32 = vunpack.c.l.s8.bf16 %v3370_v22 }
 0x712   : > { %6671 = vmatpush1.bf16.msra.mxu0 %v4164_v36  ;;  %6500 = vmatprep.subr.bf16.mxu1 %v4187_v39  ;;  %v4356_v36 = vunpack.c.l.s8.bf16 %v3372_v29  ;;  %v4379_v39 = vunpack.c.h.s8.bf16 %v3371_v12  ;;  %v4525_v12 = vunpack.c.h.s8.bf16 %v3445_v3 }
 0x713   : > { %6672 = vmatprep.subr.bf16.mxu0 %v4189_v40  ;;  %v4381_v40 = vunpack.c.h.s8.bf16 %v3373_v14  ;;  %v3469_v14 = vld [vmem:[%s9820_s10 + $0xa38] sm:$0xff] }
 0x715   : > { %6501 = vmatpush1.bf16.msra.mxu1 %v4186_v43  ;;  %v4378_v43 = vunpack.c.h.s8.bf16 %v3370_v22  ;;  %v3466_v22 = vld [vmem:[%s9820_s10 + $0xa20] sm:$0xff] }
 0x716   : > { %6673 = vmatpush1.bf16.msra.mxu0 %v4188_v44  ;;  %6502 = vmatprep.subr.bf16.mxu1 %v4211_v45  ;;  %v4380_v44 = vunpack.c.h.s8.bf16 %v3372_v29  ;;  %v4403_v45 = vunpack.c.l.s8.bf16 %v3395_v41  ;;  %v3468_v29 = vld [vmem:[%s9820_s10 + $0xa30] sm:$0xff] }
 0x717   : > { %6674 = vmatprep.subr.bf16.mxu0 %v4213_v27  ;;  %v4405_v27 = vunpack.c.l.s8.bf16 %v3397_v42 }
 0x719   : > { %6503 = vmatpush1.bf16.msra.mxu1 %v4210_v49  ;;  %v4402_v49 = vunpack.c.l.s8.bf16 %v3394_v46 }
 0x71a   : > { %6675 = vmatpush1.bf16.msra.mxu0 %v4212_v50  ;;  %6504 = vmatprep.subr.bf16.mxu1 %v4235_v51  ;;  %v4404_v50 = vunpack.c.l.s8.bf16 %v3396_v48  ;;  %v4427_v51 = vunpack.c.h.s8.bf16 %v3395_v41  ;;  %v3491_v41 = vld [vmem:[%s9820_s10 + $0xae8] sm:$0xff] }
 0x71b   : > { %6676 = vmatprep.subr.bf16.mxu0 %v4237_v52  ;;  %v4429_v52 = vunpack.c.h.s8.bf16 %v3397_v42  ;;  %v3493_v42 = vld [vmem:[%s9820_s10 + $0xaf8] sm:$0xff] }
 0x71d   : > { %6505 = vmatpush1.bf16.msra.mxu1 %v4234_v57  ;;  %v4426_v57 = vunpack.c.h.s8.bf16 %v3394_v46  ;;  %v3490_v46 = vld [vmem:[%s9820_s10 + $0xae0] sm:$0xff] }
 0x71e   : > { %6677 = vmatpush1.bf16.msra.mxu0 %v4236_v58  ;;  %6506 = vmatprep.subr.bf16.mxu1 %v4259_v59  ;;  %v4428_v58 = vunpack.c.h.s8.bf16 %v3396_v48  ;;  %v4451_v59 = vunpack.c.l.s8.bf16 %v3419_v54  ;;  %v3492_v48 = vld [vmem:[%s9820_s10 + $0xaf0] sm:$0xff] }
 0x71f   : > { %6678 = vmatprep.subr.bf16.mxu0 %v4261_v61  ;;  %v4453_v61 = vunpack.c.l.s8.bf16 %v3421_v56 }
 0x721   : > { %6507 = vmatpush1.bf16.msra.mxu1 %v4258_v63  ;;  %v4450_v63 = vunpack.c.l.s8.bf16 %v3418_v60 }
 0x722   : > { %6679 = vmatpush1.bf16.msra.mxu0 %v4260_v0  ;;  %6508 = vmatprep.subr.bf16.mxu1 %v4283_v47  ;;  %v4452_v0 = vunpack.c.l.s8.bf16 %v3420_v62  ;;  %v4475_v47 = vunpack.c.h.s8.bf16 %v3419_v54  ;;  %v3515_v54 = vld [vmem:[%s9820_s10 + $0xba8] sm:$0xff] }
 0x723   : > { %6680 = vmatprep.subr.bf16.mxu0 %v4285_v1  ;;  %v4477_v1 = vunpack.c.h.s8.bf16 %v3421_v56  ;;  %v3517_v56 = vld [vmem:[%s9820_s10 + $0xbb8] sm:$0xff] }
 0x725   : > { %6509 = vmatpush1.bf16.msra.mxu1 %v4282_v4  ;;  %v4474_v4 = vunpack.c.h.s8.bf16 %v3418_v60  ;;  %v3514_v60 = vld [vmem:[%s9820_s10 + $0xba0] sm:$0xff] }
 0x726   : > { %6681 = vmatpush1.bf16.msra.mxu0 %v4284_v5  ;;  %6521 = vmatprep.subr.bf16.mxu1 %v4307_v6  ;;  %v4476_v5 = vunpack.c.h.s8.bf16 %v3420_v62  ;;  %v4499_v6 = vunpack.c.l.s8.bf16 %v3443_v2  ;;  %v3516_v62 = vld [vmem:[%s9820_s10 + $0xbb0] sm:$0xff] }
 0x727   : > { %6693 = vmatprep.subr.bf16.mxu0 %v4309_v7  ;;  %v4501_v7 = vunpack.c.l.s8.bf16 %v3445_v3  ;;  %v3541_v3 = vld [vmem:[%s9820_s10 + $0xc78] sm:$0xff] }
 0x728   : > { %6511 = vmatmul.mubr.bf16.vlgmr.msra.gmra.mrb[24].mxu1 %v9925_v15 }
 0x729   : > { %6683 = vmatmul.mubr.bf16.vlgmr.msra.gmra.mrb[28].mxu0 %v9925_v15  ;;  %6522 = vmatpush1.bf16.msra.mxu1 %v4306_v9  ;;  %v4498_v9 = vunpack.c.l.s8.bf16 %v3442_v26 }
 0x72a   : > { %6553 = vmatprep.mubr.bf16.mxu1 %v9931_v17  ;;  %6694 = vmatpush1.bf16.msra.mxu0 %v4308_v10  ;;  %v4500_v10 = vunpack.c.l.s8.bf16 %v3444_v8 }
 0x72b   : > { %6725 = vmatprep.mubr.bf16.mxu0 %v9931_v17  ;;  %6523 = vmatprep.subr.bf16.mxu1 %v4331_v11  ;;  %v4523_v11 = vunpack.c.h.s8.bf16 %v3443_v2  ;;  %v3539_v2 = vld [vmem:[%s9820_s10 + $0xc68] sm:$0xff] }
 0x72c   : > { %6695 = vmatprep.subr.bf16.mxu0 %v4333_v13  ;;  %v3467_v13 = vld [vmem:[%s9820_s10 + $0xa28] sm:$0xff] }
 0x72d   : > { %6524 = vmatpush1.bf16.msra.mxu1 %v4330_v18  ;;  %v4522_v18 = vunpack.c.h.s8.bf16 %v3442_v26  ;;  %v3538_v26 = vld [vmem:[%s9820_s10 + $0xc60] sm:$0xff] }
 0x72e   : > { %6696 = vmatpush1.bf16.msra.mxu0 %v4332_v19  ;;  %6525 = vmatprep.subr.bf16.mxu1 %v4355_v20  ;;  %v4524_v19 = vunpack.c.h.s8.bf16 %v3444_v8  ;;  %v4547_v20 = vunpack.c.l.s8.bf16 %v3467_v13  ;;  %v3540_v8 = vld [vmem:[%s9820_s10 + $0xc70] sm:$0xff] }
 0x72f   : > { %6697 = vmatprep.subr.bf16.mxu0 %v4357_v23  ;;  %v4549_v23 = vunpack.c.l.s8.bf16 %v3469_v14 }
 0x731   : > { %6526 = vmatpush1.bf16.msra.mxu1 %v4354_v32  ;;  %v4546_v32 = vunpack.c.l.s8.bf16 %v3466_v22 }
 0x732   : > { %6698 = vmatpush1.bf16.msra.mxu0 %v4356_v36  ;;  %6527 = vmatprep.subr.bf16.mxu1 %v4379_v39  ;;  %v4548_v36 = vunpack.c.l.s8.bf16 %v3468_v29  ;;  %v4571_v39 = vunpack.c.h.s8.bf16 %v3467_v13  ;;  %v4717_v13 = vunpack.c.h.s8.bf16 %v3541_v3 }
 0x733   : > { %6699 = vmatprep.subr.bf16.mxu0 %v4381_v40  ;;  %v4573_v40 = vunpack.c.h.s8.bf16 %v3469_v14  ;;  %v3565_v14 = vld [vmem:[%s9820_s10 + $0xd38] sm:$0xff] }
 0x735   : > { %6528 = vmatpush1.bf16.msra.mxu1 %v4378_v43  ;;  %v4570_v43 = vunpack.c.h.s8.bf16 %v3466_v22  ;;  %v3562_v22 = vld [vmem:[%s9820_s10 + $0xd20] sm:$0xff] }
 0x736   : > { %6700 = vmatpush1.bf16.msra.mxu0 %v4380_v44  ;;  %6529 = vmatprep.subr.bf16.mxu1 %v4403_v45  ;;  %v4572_v44 = vunpack.c.h.s8.bf16 %v3468_v29  ;;  %v4595_v45 = vunpack.c.l.s8.bf16 %v3491_v41  ;;  %v3564_v29 = vld [vmem:[%s9820_s10 + $0xd30] sm:$0xff] }
 0x737   : > { %6701 = vmatprep.subr.bf16.mxu0 %v4405_v27  ;;  %v4597_v27 = vunpack.c.l.s8.bf16 %v3493_v42 }
 0x739   : > { %6530 = vmatpush1.bf16.msra.mxu1 %v4402_v49  ;;  %v4594_v49 = vunpack.c.l.s8.bf16 %v3490_v46 }
 0x73a   : > { %6702 = vmatpush1.bf16.msra.mxu0 %v4404_v50  ;;  %6531 = vmatprep.subr.bf16.mxu1 %v4427_v51  ;;  %v4596_v50 = vunpack.c.l.s8.bf16 %v3492_v48  ;;  %v4619_v51 = vunpack.c.h.s8.bf16 %v3491_v41  ;;  %v3587_v41 = vld [vmem:[%s9820_s10 + $0xde8] sm:$0xff] }
 0x73b   : > { %6703 = vmatprep.subr.bf16.mxu0 %v4429_v52  ;;  %v4621_v52 = vunpack.c.h.s8.bf16 %v3493_v42  ;;  %v3589_v42 = vld [vmem:[%s9820_s10 + $0xdf8] sm:$0xff] }
 0x73d   : > { %6532 = vmatpush1.bf16.msra.mxu1 %v4426_v57  ;;  %v4618_v57 = vunpack.c.h.s8.bf16 %v3490_v46  ;;  %v3586_v46 = vld [vmem:[%s9820_s10 + $0xde0] sm:$0xff] }
 0x73e   : > { %6704 = vmatpush1.bf16.msra.mxu0 %v4428_v58  ;;  %6533 = vmatprep.subr.bf16.mxu1 %v4451_v59  ;;  %v4620_v58 = vunpack.c.h.s8.bf16 %v3492_v48  ;;  %v4643_v59 = vunpack.c.l.s8.bf16 %v3515_v54  ;;  %v3588_v48 = vld [vmem:[%s9820_s10 + $0xdf0] sm:$0xff] }
 0x73f   : > { %6705 = vmatprep.subr.bf16.mxu0 %v4453_v61  ;;  %v4645_v61 = vunpack.c.l.s8.bf16 %v3517_v56 }
 0x741   : > { %6534 = vmatpush1.bf16.msra.mxu1 %v4450_v63  ;;  %v4642_v63 = vunpack.c.l.s8.bf16 %v3514_v60 }
 0x742   : > { %6706 = vmatpush1.bf16.msra.mxu0 %v4452_v0  ;;  %6535 = vmatprep.subr.bf16.mxu1 %v4475_v47  ;;  %v4644_v0 = vunpack.c.l.s8.bf16 %v3516_v62  ;;  %v4667_v47 = vunpack.c.h.s8.bf16 %v3515_v54  ;;  %v3611_v54 = vld [vmem:[%s9820_s10 + $0xea8] sm:$0xff] }
 0x743   : > { %6707 = vmatprep.subr.bf16.mxu0 %v4477_v1  ;;  %v4669_v1 = vunpack.c.h.s8.bf16 %v3517_v56  ;;  %v3613_v56 = vld [vmem:[%s9820_s10 + $0xeb8] sm:$0xff] }
 0x745   : > { %6536 = vmatpush1.bf16.msra.mxu1 %v4474_v4  ;;  %v4666_v4 = vunpack.c.h.s8.bf16 %v3514_v60  ;;  %v3610_v60 = vld [vmem:[%s9820_s10 + $0xea0] sm:$0xff] }
 0x746   : > { %6708 = vmatpush1.bf16.msra.mxu0 %v4476_v5  ;;  %6537 = vmatprep.subr.bf16.mxu1 %v4499_v6  ;;  %v4668_v5 = vunpack.c.h.s8.bf16 %v3516_v62  ;;  %v4691_v6 = vunpack.c.l.s8.bf16 %v3539_v2  ;;  %v3612_v62 = vld [vmem:[%s9820_s10 + $0xeb0] sm:$0xff] }
 0x747   : > { %6709 = vmatprep.subr.bf16.mxu0 %v4501_v7  ;;  %v4693_v7 = vunpack.c.l.s8.bf16 %v3541_v3  ;;  %v3637_v3 = vld [vmem:[%s9820_s10 + $0xf78] sm:$0xff] }
 0x749   : > { %6538 = vmatpush1.bf16.msra.mxu1 %v4498_v9  ;;  %v4690_v9 = vunpack.c.l.s8.bf16 %v3538_v26 }
 0x74a   : > { %6710 = vmatpush1.bf16.msra.mxu0 %v4500_v10  ;;  %6539 = vmatprep.subr.bf16.mxu1 %v4523_v11  ;;  %v4692_v10 = vunpack.c.l.s8.bf16 %v3540_v8  ;;  %v4715_v11 = vunpack.c.h.s8.bf16 %v3539_v2  ;;  %v3635_v2 = vld [vmem:[%s9820_s10 + $0xf68] sm:$0xff] }
 0x74b   : > { %6711 = vmatprep.subr.bf16.mxu0 %v4525_v12  ;;  %v3563_v12 = vld [vmem:[%s9820_s10 + $0xd28] sm:$0xff] }
 0x74d   : > { %6540 = vmatpush1.bf16.msra.mxu1 %v4522_v18  ;;  %v4714_v18 = vunpack.c.h.s8.bf16 %v3538_v26  ;;  %v3634_v26 = vld [vmem:[%s9820_s10 + $0xf60] sm:$0xff] }
 0x74e   : > { %6712 = vmatpush1.bf16.msra.mxu0 %v4524_v19  ;;  %6541 = vmatprep.subr.bf16.mxu1 %v4547_v20  ;;  %v4716_v19 = vunpack.c.h.s8.bf16 %v3540_v8  ;;  %v4739_v20 = vunpack.c.l.s8.bf16 %v3563_v12  ;;  %v3636_v8 = vld [vmem:[%s9820_s10 + $0xf70] sm:$0xff] }
 0x74f   : > { %6713 = vmatprep.subr.bf16.mxu0 %v4549_v23  ;;  %v4741_v23 = vunpack.c.l.s8.bf16 %v3565_v14 }
 0x751   : > { %6542 = vmatpush1.bf16.msra.mxu1 %v4546_v32  ;;  %v4738_v32 = vunpack.c.l.s8.bf16 %v3562_v22 }
 0x752   : > { %6714 = vmatpush1.bf16.msra.mxu0 %v4548_v36  ;;  %6543 = vmatprep.subr.bf16.mxu1 %v4571_v39  ;;  %v4740_v36 = vunpack.c.l.s8.bf16 %v3564_v29  ;;  %v4763_v39 = vunpack.c.h.s8.bf16 %v3563_v12  ;;  %v4909_v12 = vunpack.c.h.s8.bf16 %v3637_v3 }
 0x753   : > { %6715 = vmatprep.subr.bf16.mxu0 %v4573_v40  ;;  %v4765_v40 = vunpack.c.h.s8.bf16 %v3565_v14  ;;  %v3661_v14 = vld [vmem:[%s9820_s10 + $0x1038] sm:$0xff] }
 0x755   : > { %6544 = vmatpush1.bf16.msra.mxu1 %v4570_v43  ;;  %v4762_v43 = vunpack.c.h.s8.bf16 %v3562_v22  ;;  %v3658_v22 = vld [vmem:[%s9820_s10 + $0x1020] sm:$0xff] }
 0x756   : > { %6716 = vmatpush1.bf16.msra.mxu0 %v4572_v44  ;;  %6545 = vmatprep.subr.bf16.mxu1 %v4595_v45  ;;  %v4764_v44 = vunpack.c.h.s8.bf16 %v3564_v29  ;;  %v4787_v45 = vunpack.c.l.s8.bf16 %v3587_v41  ;;  %v3660_v29 = vld [vmem:[%s9820_s10 + $0x1030] sm:$0xff] }
 0x757   : > { %6717 = vmatprep.subr.bf16.mxu0 %v4597_v27  ;;  %v4789_v27 = vunpack.c.l.s8.bf16 %v3589_v42 }
 0x759   : > { %6546 = vmatpush1.bf16.msra.mxu1 %v4594_v49  ;;  %v4786_v49 = vunpack.c.l.s8.bf16 %v3586_v46 }
 0x75a   : > { %6718 = vmatpush1.bf16.msra.mxu0 %v4596_v50  ;;  %6547 = vmatprep.subr.bf16.mxu1 %v4619_v51  ;;  %v4788_v50 = vunpack.c.l.s8.bf16 %v3588_v48  ;;  %v4811_v51 = vunpack.c.h.s8.bf16 %v3587_v41  ;;  %v3683_v41 = vld [vmem:[%s9820_s10 + $0x10e8] sm:$0xff] }
 0x75b   : > { %6719 = vmatprep.subr.bf16.mxu0 %v4621_v52  ;;  %v4813_v52 = vunpack.c.h.s8.bf16 %v3589_v42  ;;  %v3685_v42 = vld [vmem:[%s9820_s10 + $0x10f8] sm:$0xff] }
 0x75d   : > { %6548 = vmatpush1.bf16.msra.mxu1 %v4618_v57  ;;  %v4810_v57 = vunpack.c.h.s8.bf16 %v3586_v46  ;;  %v3682_v46 = vld [vmem:[%s9820_s10 + $0x10e0] sm:$0xff] }
 0x75e   : > { %6720 = vmatpush1.bf16.msra.mxu0 %v4620_v58  ;;  %6549 = vmatprep.subr.bf16.mxu1 %v4643_v59  ;;  %v4812_v58 = vunpack.c.h.s8.bf16 %v3588_v48  ;;  %v4835_v59 = vunpack.c.l.s8.bf16 %v3611_v54  ;;  %v3684_v48 = vld [vmem:[%s9820_s10 + $0x10f0] sm:$0xff] }
 0x75f   : > { %6721 = vmatprep.subr.bf16.mxu0 %v4645_v61  ;;  %v4837_v61 = vunpack.c.l.s8.bf16 %v3613_v56 }
 0x761   : > { %6550 = vmatpush1.bf16.msra.mxu1 %v4642_v63  ;;  %v4834_v63 = vunpack.c.l.s8.bf16 %v3610_v60 }
 0x762   : > { %6722 = vmatpush1.bf16.msra.mxu0 %v4644_v0  ;;  %6551 = vmatprep.subr.bf16.mxu1 %v4667_v47  ;;  %v4836_v0 = vunpack.c.l.s8.bf16 %v3612_v62  ;;  %v4859_v47 = vunpack.c.h.s8.bf16 %v3611_v54  ;;  %v3707_v54 = vld [vmem:[%s9820_s10 + $0x11a8] sm:$0xff] }
 0x763   : > { %6723 = vmatprep.subr.bf16.mxu0 %v4669_v1  ;;  %v4861_v1 = vunpack.c.h.s8.bf16 %v3613_v56  ;;  %v3709_v56 = vld [vmem:[%s9820_s10 + $0x11b8] sm:$0xff] }
 0x765   : > { %6552 = vmatpush1.bf16.msra.mxu1 %v4666_v4  ;;  %v4858_v4 = vunpack.c.h.s8.bf16 %v3610_v60  ;;  %v3706_v60 = vld [vmem:[%s9820_s10 + $0x11a0] sm:$0xff] }
 0x766   : > { %6724 = vmatpush1.bf16.msra.mxu0 %v4668_v5  ;;  %6564 = vmatprep.subr.bf16.mxu1 %v4691_v6  ;;  %v4860_v5 = vunpack.c.h.s8.bf16 %v3612_v62  ;;  %v4883_v6 = vunpack.c.l.s8.bf16 %v3635_v2  ;;  %v3708_v62 = vld [vmem:[%s9820_s10 + $0x11b0] sm:$0xff] }
 0x767   : > { %6736 = vmatprep.subr.bf16.mxu0 %v4693_v7  ;;  %v4885_v7 = vunpack.c.l.s8.bf16 %v3637_v3  ;;  %v3733_v3 = vld [vmem:[%s9820_s10 + $0x1278] sm:$0xff] }
 0x768   : > { %6554 = vmatmul.mubr.bf16.vlgmr.msra.gmra.mrb[24].mxu1 %v9927_v16 }
 0x769   : > { %6726 = vmatmul.mubr.bf16.vlgmr.msra.gmra.mrb[28].mxu0 %v9927_v16  ;;  %6565 = vmatpush1.bf16.msra.mxu1 %v4690_v9  ;;  %v4882_v9 = vunpack.c.l.s8.bf16 %v3634_v26 }
 0x76a   : > { %6596 = vmatprep.mubr.bf16.mxu1 %v10031_v31  ;;  %6737 = vmatpush1.bf16.msra.mxu0 %v4692_v10  ;;  %v4884_v10 = vunpack.c.l.s8.bf16 %v3636_v8 }
 0x76b   : > { %6768 = vmatprep.mubr.bf16.mxu0 %v10031_v31  ;;  %6566 = vmatprep.subr.bf16.mxu1 %v4715_v11  ;;  %v4907_v11 = vunpack.c.h.s8.bf16 %v3635_v2  ;;  %v3731_v2 = vld [vmem:[%s9820_s10 + $0x1268] sm:$0xff] }
 0x76c   : > { %6738 = vmatprep.subr.bf16.mxu0 %v4717_v13  ;;  %v3659_v13 = vld [vmem:[%s9820_s10 + $0x1028] sm:$0xff] }
 0x76d   : > { %6567 = vmatpush1.bf16.msra.mxu1 %v4714_v18  ;;  %v4906_v18 = vunpack.c.h.s8.bf16 %v3634_v26  ;;  %v3730_v26 = vld [vmem:[%s9820_s10 + $0x1260] sm:$0xff] }
 0x76e   : > { %6739 = vmatpush1.bf16.msra.mxu0 %v4716_v19  ;;  %6568 = vmatprep.subr.bf16.mxu1 %v4739_v20  ;;  %v4908_v19 = vunpack.c.h.s8.bf16 %v3636_v8  ;;  %v4931_v20 = vunpack.c.l.s8.bf16 %v3659_v13  ;;  %v3732_v8 = vld [vmem:[%s9820_s10 + $0x1270] sm:$0xff] }
 0x76f   : > { %6740 = vmatprep.subr.bf16.mxu0 %v4741_v23  ;;  %v4933_v23 = vunpack.c.l.s8.bf16 %v3661_v14 }
 0x771   : > { %6569 = vmatpush1.bf16.msra.mxu1 %v4738_v32  ;;  %v4930_v32 = vunpack.c.l.s8.bf16 %v3658_v22 }
 0x772   : > { %6741 = vmatpush1.bf16.msra.mxu0 %v4740_v36  ;;  %6570 = vmatprep.subr.bf16.mxu1 %v4763_v39  ;;  %v4932_v36 = vunpack.c.l.s8.bf16 %v3660_v29  ;;  %v4955_v39 = vunpack.c.h.s8.bf16 %v3659_v13  ;;  %v5101_v13 = vunpack.c.h.s8.bf16 %v3733_v3 }
 0x773   : > { %6742 = vmatprep.subr.bf16.mxu0 %v4765_v40  ;;  %v4957_v40 = vunpack.c.h.s8.bf16 %v3661_v14  ;;  %v3757_v14 = vld [vmem:[%s9820_s10 + $0x1338] sm:$0xff] }
 0x775   : > { %6571 = vmatpush1.bf16.msra.mxu1 %v4762_v43  ;;  %v4954_v43 = vunpack.c.h.s8.bf16 %v3658_v22  ;;  %v3754_v22 = vld [vmem:[%s9820_s10 + $0x1320] sm:$0xff] }
 0x776   : > { %6743 = vmatpush1.bf16.msra.mxu0 %v4764_v44  ;;  %6572 = vmatprep.subr.bf16.mxu1 %v4787_v45  ;;  %v4956_v44 = vunpack.c.h.s8.bf16 %v3660_v29  ;;  %v4979_v45 = vunpack.c.l.s8.bf16 %v3683_v41  ;;  %v3756_v29 = vld [vmem:[%s9820_s10 + $0x1330] sm:$0xff] }
 0x777   : > { %6744 = vmatprep.subr.bf16.mxu0 %v4789_v27  ;;  %v4981_v27 = vunpack.c.l.s8.bf16 %v3685_v42 }
 0x779   : > { %6573 = vmatpush1.bf16.msra.mxu1 %v4786_v49  ;;  %v4978_v49 = vunpack.c.l.s8.bf16 %v3682_v46 }
 0x77a   : > { %6745 = vmatpush1.bf16.msra.mxu0 %v4788_v50  ;;  %6574 = vmatprep.subr.bf16.mxu1 %v4811_v51  ;;  %v4980_v50 = vunpack.c.l.s8.bf16 %v3684_v48  ;;  %v5003_v51 = vunpack.c.h.s8.bf16 %v3683_v41  ;;  %v3779_v41 = vld [vmem:[%s9820_s10 + $0x13e8] sm:$0xff] }
 0x77b   : > { %6746 = vmatprep.subr.bf16.mxu0 %v4813_v52  ;;  %v5005_v52 = vunpack.c.h.s8.bf16 %v3685_v42  ;;  %v3781_v42 = vld [vmem:[%s9820_s10 + $0x13f8] sm:$0xff] }
 0x77d   : > { %6575 = vmatpush1.bf16.msra.mxu1 %v4810_v57  ;;  %v5002_v57 = vunpack.c.h.s8.bf16 %v3682_v46  ;;  %v3778_v46 = vld [vmem:[%s9820_s10 + $0x13e0] sm:$0xff] }
 0x77e   : > { %6747 = vmatpush1.bf16.msra.mxu0 %v4812_v58  ;;  %6576 = vmatprep.subr.bf16.mxu1 %v4835_v59  ;;  %v5004_v58 = vunpack.c.h.s8.bf16 %v3684_v48  ;;  %v5027_v59 = vunpack.c.l.s8.bf16 %v3707_v54  ;;  %v3780_v48 = vld [vmem:[%s9820_s10 + $0x13f0] sm:$0xff] }
 0x77f   : > { %6748 = vmatprep.subr.bf16.mxu0 %v4837_v61  ;;  %v5029_v61 = vunpack.c.l.s8.bf16 %v3709_v56 }
 0x781   : > { %6577 = vmatpush1.bf16.msra.mxu1 %v4834_v63  ;;  %v5026_v63 = vunpack.c.l.s8.bf16 %v3706_v60 }
 0x782   : > { %6749 = vmatpush1.bf16.msra.mxu0 %v4836_v0  ;;  %6578 = vmatprep.subr.bf16.mxu1 %v4859_v47  ;;  %v5028_v0 = vunpack.c.l.s8.bf16 %v3708_v62  ;;  %v5051_v47 = vunpack.c.h.s8.bf16 %v3707_v54  ;;  %v7685_v54 = vld [vmem:[%s10197_s16 + $0x8] sm:$0xff] }
 0x783   : > { %6750 = vmatprep.subr.bf16.mxu0 %v4861_v1  ;;  %v5053_v1 = vunpack.c.h.s8.bf16 %v3709_v56  ;;  %v5197_v56 = vunpack.c.h.s8.bf16 %v3781_v42 }
 0x785   : > { %6579 = vmatpush1.bf16.msra.mxu1 %v4858_v4  ;;  %v5050_v4 = vunpack.c.h.s8.bf16 %v3706_v60 }
 0x786   : > { %6751 = vmatpush1.bf16.msra.mxu0 %v4860_v5  ;;  %6580 = vmatprep.subr.bf16.mxu1 %v4883_v6  ;;  %v5052_v5 = vunpack.c.h.s8.bf16 %v3708_v62  ;;  %v5075_v6 = vunpack.c.l.s8.bf16 %v3731_v2  ;;  %v5194_v62 = vunpack.c.h.s8.bf16 %v3778_v46 }
 0x787   : > { %6752 = vmatprep.subr.bf16.mxu0 %v4885_v7  ;;  %v5077_v7 = vunpack.c.l.s8.bf16 %v3733_v3  ;;  %v3804_v3 = vld [vmem:[%s9820_s10 + $0x14b0] sm:$0xff] }
 0x789   : > { %6581 = vmatpush1.bf16.msra.mxu1 %v4882_v9  ;;  %v5074_v9 = vunpack.c.l.s8.bf16 %v3730_v26 }
 0x78a   : > { %6753 = vmatpush1.bf16.msra.mxu0 %v4884_v10  ;;  %6582 = vmatprep.subr.bf16.mxu1 %v4907_v11  ;;  %v5076_v10 = vunpack.c.l.s8.bf16 %v3732_v8  ;;  %v5099_v11 = vunpack.c.h.s8.bf16 %v3731_v2 }
 0x78b   : > { %6754 = vmatprep.subr.bf16.mxu0 %v4909_v12  ;;  %v3755_v12 = vld [vmem:[%s9820_s10 + $0x1328] sm:$0xff] }
 0x78d   : > { %6583 = vmatpush1.bf16.msra.mxu1 %v4906_v18  ;;  %v5098_v18 = vunpack.c.h.s8.bf16 %v3730_v26 }
 0x78e   : > { %6755 = vmatpush1.bf16.msra.mxu0 %v4908_v19  ;;  %6584 = vmatprep.subr.bf16.mxu1 %v4931_v20  ;;  %v5100_v19 = vunpack.c.h.s8.bf16 %v3732_v8  ;;  %v5123_v20 = vunpack.c.l.s8.bf16 %v3755_v12 }
 0x78f   : > { %6756 = vmatprep.subr.bf16.mxu0 %v4933_v23  ;;  %v5125_v23 = vunpack.c.l.s8.bf16 %v3757_v14 }
 0x791   : > { %6585 = vmatpush1.bf16.msra.mxu1 %v4930_v32  ;;  %v5122_v32 = vunpack.c.l.s8.bf16 %v3754_v22 }
 0x792   : > { %6757 = vmatpush1.bf16.msra.mxu0 %v4932_v36  ;;  %6586 = vmatprep.subr.bf16.mxu1 %v4955_v39  ;;  %v5124_v36 = vunpack.c.l.s8.bf16 %v3756_v29  ;;  %v5147_v39 = vunpack.c.h.s8.bf16 %v3755_v12 }
 0x793   : > { %6758 = vmatprep.subr.bf16.mxu0 %v4957_v40  ;;  %v5149_v40 = vunpack.c.h.s8.bf16 %v3757_v14 }
 0x795   : > { %6587 = vmatpush1.bf16.msra.mxu1 %v4954_v43  ;;  %v5146_v43 = vunpack.c.h.s8.bf16 %v3754_v22 }
 0x796   : > { %6759 = vmatpush1.bf16.msra.mxu0 %v4956_v44  ;;  %6588 = vmatprep.subr.bf16.mxu1 %v4979_v45  ;;  %v5148_v44 = vunpack.c.h.s8.bf16 %v3756_v29  ;;  %v5171_v45 = vunpack.c.l.s8.bf16 %v3779_v41 }
 0x797   : > { %6760 = vmatprep.subr.bf16.mxu0 %v4981_v27  ;;  %v5173_v27 = vunpack.c.l.s8.bf16 %v3781_v42 }
 0x799   : > { %6589 = vmatpush1.bf16.msra.mxu1 %v4978_v49  ;;  %v5170_v49 = vunpack.c.l.s8.bf16 %v3778_v46 }
 0x79a   : > { %6761 = vmatpush1.bf16.msra.mxu0 %v4980_v50  ;;  %6590 = vmatprep.subr.bf16.mxu1 %v5003_v51  ;;  %v7511_v50 = vld [vmem:[%s10194_s25 + $0x8] sm:$0xff]  ;;  %v5172_v51 = vunpack.c.l.s8.bf16 %v3780_v48 }
 0x79b   : > { %6762 = vmatprep.subr.bf16.mxu0 %v5005_v52  ;;  %v5195_v52 = vunpack.c.h.s8.bf16 %v3779_v41  ;;  %v7559_v60 = vrot.slane %v7511_v50, %v9840_v53 }
 0x79d   : > { %6591 = vmatpush1.bf16.msra.mxu1 %v5002_v57  ;;  %v3803_v57 = vld [vmem:[%s9820_s10 + $0x14a8] sm:$0xff] }
 0x79e   : > { %6763 = vmatpush1.bf16.msra.mxu0 %v5004_v58  ;;  %6592 = vmatprep.subr.bf16.mxu1 %v5027_v59  ;;  %v7551_v58 = vrot.slane %v7511_v50, %v9832_v28  ;;  %v10546_v59 = vld [vmem:[%s9820_s10 + $0x14b8] sm:$0xff]  ;;  %v5219_v2 = vunpack.c.l.s8.bf16 %v3803_v57 }
 0x79f   : > { %6764 = vmatprep.subr.bf16.mxu0 %v5029_v61  ;;  %v7555_v61 = vrot.slane %v7511_v50, %v9835_v30  ;;  %v5221_v26 = vunpack.c.l.s8.bf16 %v10546_v59 }
 0x7a1   : > { %6593 = vmatpush1.bf16.msra.mxu1 %v5026_v63  ;;  %v10551_v63 = vld [vmem:[%s9820_s10 + $0x14a0] sm:$0xff] }
 0x7a2   : > { %6765 = vmatpush1.bf16.msra.mxu0 %v5028_v0  ;;  %6594 = vmatprep.subr.bf16.mxu1 %v5051_v47  ;;  %v7725_v0 = vrot.slane %v7685_v54, %v9832_v28  ;;  %v7563_v47 = vrot.slane %v7511_v50, %v9843_v55 }
 0x7a3   : > { %6766 = vmatprep.subr.bf16.mxu0 %v5053_v1  ;;  %v5196_v1 = vunpack.c.h.s8.bf16 %v3780_v48 }
 0x7a5   : > { %6595 = vmatpush1.bf16.msra.mxu1 %v5050_v4 }
 0x7a6   : > { %6767 = vmatpush1.bf16.msra.mxu0 %v5052_v5  ;;  %6607 = vmatprep.subr.bf16.mxu1 %v5075_v6  ;;  %v7733_v5 = vrot.slane %v7685_v54, %v9840_v53  ;;  %v7729_v6 = vrot.slane %v7685_v54, %v9835_v30 }
 0x7a7   : > { %6779 = vmatprep.subr.bf16.mxu0 %v5077_v7 }
 0x7a8   : > { %6597 = vmatmul.mubr.bf16.vlgmr.msra.gmra.mrb[24].mxu1 %v10027_v24 }
 0x7a9   : > { %6769 = vmatmul.mubr.bf16.vlgmr.msra.gmra.mrb[28].mxu0 %v10027_v24  ;;  %6608 = vmatpush1.bf16.msra.mxu1 %v5074_v9 }
 0x7aa   : > { %6639 = vmatprep.mubr.bf16.mxu1 %v10033_v37  ;;  %6780 = vmatpush1.bf16.msra.mxu0 %v5076_v10  ;;  %v7737_v10 = vrot.slane %v7685_v54, %v9843_v55  ;;  %v5244_v54 = vunpack.c.h.s8.bf16 %v3804_v3 }
 0x7ab   : > { %6811 = vmatprep.mubr.bf16.mxu0 %v10033_v37  ;;  %6609 = vmatprep.subr.bf16.mxu1 %v5099_v11  ;;  %v5218_v11 = vunpack.c.l.s8.bf16 %v10551_v63 }
 0x7ac   : > { %6781 = vmatprep.subr.bf16.mxu0 %v5101_v13 }
 0x7ad   : > { %6610 = vmatpush1.bf16.msra.mxu1 %v5098_v18 }
 0x7ae   : > { %6782 = vmatpush1.bf16.msra.mxu0 %v5100_v19  ;;  %6611 = vmatprep.subr.bf16.mxu1 %v5123_v20  ;;  %v5220_v19 = vunpack.c.l.s8.bf16 %v3804_v3  ;;  %v5243_v20 = vunpack.c.h.s8.bf16 %v3803_v57  ;;  %v3826_v57 = vld [vmem:[%s9820_s10 + $0x1560] sm:$0xff] }
 0x7af   : > { %6783 = vmatprep.subr.bf16.mxu0 %v5125_v23 }
 0x7b1   : > { %6612 = vmatpush1.bf16.msra.mxu1 %v5122_v32 }
 0x7b2   : > { %6784 = vmatpush1.bf16.msra.mxu0 %v5124_v36  ;;  %6613 = vmatprep.subr.bf16.mxu1 %v5147_v39  ;;  %v5245_v39 = vunpack.c.h.s8.bf16 %v10546_v59 }
 0x7b3   : > { %6785 = vmatprep.subr.bf16.mxu0 %v5149_v40 }
 0x7b5   : > { %6614 = vmatpush1.bf16.msra.mxu1 %v5146_v43 }
 0x7b6   : > { %6786 = vmatpush1.bf16.msra.mxu0 %v5148_v44  ;;  %6615 = vmatprep.subr.bf16.mxu1 %v5171_v45  ;;  %v3827_v45 = vld [vmem:[%s9820_s10 + $0x1568] sm:$0xff] }
 0x7b7   : > { %6787 = vmatprep.subr.bf16.mxu0 %v5173_v27 }
 0x7b9   : > { %6616 = vmatpush1.bf16.msra.mxu1 %v5170_v49  ;;  %v3829_v49 = vld [vmem:[%s9820_s10 + $0x1578] sm:$0xff] }
 0x7ba   : > { %6788 = vmatpush1.bf16.msra.mxu0 %v5172_v51  ;;  %6617 = vmatprep.subr.bf16.mxu1 %v5195_v52  ;;  %v5242_v51 = vunpack.c.h.s8.bf16 %v10551_v63  ;;  %v5269_v59 = vunpack.c.l.s8.bf16 %v3829_v49  ;;  %v5291_v63 = vunpack.c.h.s8.bf16 %v3827_v45 }
 0x7bb   : > { %v6297_v4 = vpop.f32.mrb[20].mxu1  ;;  %6789 = vmatprep.subr.bf16.mxu0 %v5197_v56  ;;  %v5267_v56 = vunpack.c.l.s8.bf16 %v3827_v45 }
 0x7bc   : > { %v7644_v7 = vmul.f32 %v7551_v58, %v6297_v4  ;;  %v6469_v8 = vpop.f32.mrb[24].mxu0  ;;  %v6299_v9 = vpop.f32.mrb[21].mxu1 }
 0x7bd   : > { %v7646_v12 = vmul.f32 %v7559_v60, %v6469_v8  ;;  %v7645_v13 = vmul.f32 %v7555_v61, %v6299_v9  ;;  %v6471_v14 = vpop.f32.mrb[25].mxu0  ;;  %v6301_v18 = vpop.f32.mrb[22].mxu1  ;;  %6618 = vmatpush1.bf16.msra.mxu1 %v5194_v62  ;;  %v3852_v8 = vld [vmem:[%s9820_s10 + $0x1630] sm:$0xff] }
 0x7be   : > { %v7818_v22 = vadd.f32 %v7725_v0, %v7644_v7  ;;  %v7647_v23 = vmul.f32 %v7563_v47, %v6471_v14  ;;  %v7668_v29 = vmul.f32 %v7551_v58, %v6301_v18  ;;  %v6473_v32 = vpop.f32.mrb[26].mxu0  ;;  %6790 = vmatpush1.bf16.msra.mxu0 %v5196_v1  ;;  %v6303_v36 = vpop.f32.mrb[23].mxu1  ;;  %6619 = vmatprep.subr.bf16.mxu1 %v5219_v2  ;;  %v3853_v1 = vld [vmem:[%s9820_s10 + $0x1638] sm:$0xff]  ;;  %v5290_v2 = vunpack.c.h.s8.bf16 %v3826_v57 }
 0x7bf   : > { %v7820_v40 = vadd.f32 %v7733_v5, %v7646_v12  ;;  %v7819_v41 = vadd.f32 %v7729_v6, %v7645_v13  ;;  %v7670_v42 = vmul.f32 %v7559_v60, %v6473_v32  ;;  %v7669_v43 = vmul.f32 %v7555_v61, %v6303_v36  ;;  %v6475_v44 = vpop.f32.mrb[27].mxu0  ;;  %6791 = vmatprep.subr.bf16.mxu0 %v5221_v26  ;;  %v3828_v60 = vld [vmem:[%s9820_s10 + $0x1570] sm:$0xff] }
 0x7c0   : > { %9051 = vtanh.f32 %v7818_v22  ;;  %v7821_v46 = vadd.f32 %v7737_v10, %v7647_v23  ;;  %v7842_v27 = vadd.f32 %v7725_v0, %v7668_v29  ;;  %v7671_v48 = vmul.f32 %v7563_v47, %v6475_v44  ;;  %v3851_v47 = vld [vmem:[%s9820_s10 + $0x1628] sm:$0xff]  ;;  %v3877_v23 = vld [vmem:[%s9820_s10 + $0x16f8] sm:$0xff] }
 0x7c1   : > { %9053 = vtanh.f32 %v7820_v40  ;;  %v7844_v50 = vadd.f32 %v7733_v5, %v7670_v42  ;;  %6620 = vmatpush1.bf16.msra.mxu1 %v5218_v11  ;;  %v7843_v52 = vadd.f32 %v7729_v6, %v7669_v43  ;;  %v5266_v61 = vunpack.c.l.s8.bf16 %v3826_v57  ;;  %v3850_v6 = vld [vmem:[%s9820_s10 + $0x1620] sm:$0xff]  ;;  %v3876_v42 = vld [vmem:[%s9820_s10 + $0x16f0] sm:$0xff] }
 0x7c2   : > { %9055 = vtanh.f32 %v7819_v41  ;;  %6792 = vmatpush1.bf16.msra.mxu0 %v5220_v19  ;;  %6621 = vmatprep.subr.bf16.mxu1 %v5243_v20  ;;  %v7845_v58 = vadd.f32 %v7737_v10, %v7671_v48  ;;  %v5268_v62 = vunpack.c.l.s8.bf16 %v3828_v60  ;;  %v5293_v0 = vunpack.c.h.s8.bf16 %v3829_v49  ;;  %v3875_v20 = vld [vmem:[%s9820_s10 + $0x16e8] sm:$0xff]  ;;  %v3874_v40 = vld [vmem:[%s9820_s10 + $0x16e0] sm:$0xff]  ;;  %v3901_v48 = vld [vmem:[%s9820_s10 + $0x17b8] sm:$0xff] }
 0x7c3   : > { %9057 = vtanh.f32 %v7821_v46  ;;  %6793 = vmatprep.subr.bf16.mxu0 %v5245_v39  ;;  %v5292_v4 = vunpack.c.h.s8.bf16 %v3828_v60  ;;  %v5315_v5 = vunpack.c.l.s8.bf16 %v3851_v47  ;;  %v5317_v7 = vunpack.c.l.s8.bf16 %v3853_v1 }
 0x7c4   : > { %9059 = vtanh.f32 %v7842_v27  ;;  %v5314_v11 = vunpack.c.l.s8.bf16 %v3850_v6  ;;  %v5316_v13 = vunpack.c.l.s8.bf16 %v3852_v8  ;;  %v5339_v14 = vunpack.c.h.s8.bf16 %v3851_v47  ;;  %v3899_v27 = vld [vmem:[%s9820_s10 + $0x17a8] sm:$0xff] }
 0x7c5   : > { %9061 = vtanh.f32 %v7844_v50  ;;  %6622 = vmatpush1.bf16.msra.mxu1 %v5242_v51  ;;  %v5341_v19 = vunpack.c.h.s8.bf16 %v3853_v1  ;;  %v5338_v32 = vunpack.c.h.s8.bf16 %v3850_v6  ;;  %v5340_v36 = vunpack.c.h.s8.bf16 %v3852_v8  ;;  %v3158_v1 = vld [vmem:[%s9820_s10 + $0x80] sm:$0xff]  ;;  %v3185_v8 = vld [vmem:[%s9820_s10 + $0x158] sm:$0xff] }
 0x7c6   : > { %9063 = vtanh.f32 %v7843_v52  ;;  %6794 = vmatpush1.bf16.msra.mxu0 %v5244_v54  ;;  %6623 = vmatprep.subr.bf16.mxu1 %v5267_v56  ;;  %v5363_v39 = vunpack.c.l.s8.bf16 %v3875_v20  ;;  %v5365_v41 = vunpack.c.l.s8.bf16 %v3877_v23  ;;  %v5362_v43 = vunpack.c.l.s8.bf16 %v3874_v40  ;;  %v3898_v52 = vld [vmem:[%s9820_s10 + $0x17a0] sm:$0xff]  ;;  %v3900_v56 = vld [vmem:[%s9820_s10 + $0x17b0] sm:$0xff] }
 0x7c7   : > { %9065 = vtanh.f32 %v7845_v58  ;;  %6795 = vmatprep.subr.bf16.mxu0 %v5269_v59  ;;  %v5364_v44 = vunpack.c.l.s8.bf16 %v3876_v42  ;;  %v5387_v45 = vunpack.c.h.s8.bf16 %v3875_v20  ;;  %v5389_v46 = vunpack.c.h.s8.bf16 %v3877_v23  ;;  %v3207_v23 = vld [vmem:[%s9820_s10 + $0x208] sm:$0xff] }
 0x7c8   : > { %v5386_v49 = vunpack.c.h.s8.bf16 %v3874_v40  ;;  %v5388_v50 = vunpack.c.h.s8.bf16 %v3876_v42  ;;  %v5411_v51 = vunpack.c.l.s8.bf16 %v3899_v27  ;;  %v5413_v54 = vunpack.c.l.s8.bf16 %v3901_v48  ;;  %v3206_v40 = vld [vmem:[%s9820_s10 + $0x200] sm:$0xff]  ;;  %v3208_v42 = vld [vmem:[%s9820_s10 + $0x210] sm:$0xff] }
 0x7c9   : > { %6624 = vmatpush1.bf16.msra.mxu1 %v5266_v61  ;;  %v5410_v57 = vunpack.c.l.s8.bf16 %v3898_v52  ;;  %v5412_v58 = vunpack.c.l.s8.bf16 %v3900_v56  ;;  %v5435_v59 = vunpack.c.h.s8.bf16 %v3899_v27  ;;  %v5437_v60 = vunpack.c.h.s8.bf16 %v3901_v48  ;;  %v3159_v61 = vld [vmem:[%s9820_s10 + $0x88] sm:$0xff]  ;;  %v3233_v48 = vld [vmem:[%s9820_s10 + $0x2d8] sm:$0xff] }
 0x7ca   : > { %v9052_v3 = vpop.eup %9051  ;;  %6796 = vmatpush1.bf16.msra.mxu0 %v5268_v62  ;;  %6625 = vmatprep.subr.bf16.mxu1 %v5291_v63  ;;  %v3161_v62 = vld [vmem:[%s9820_s10 + $0x98] sm:$0xff]  ;;  %v5434_v63 = vunpack.c.h.s8.bf16 %v3898_v52  ;;  %v3927_v47 = vunpack.c.l.s8.bf16 %v3159_v61  ;;  %v3951_v6 = vunpack.c.h.s8.bf16 %v3159_v61  ;;  %v3231_v27 = vld [vmem:[%s9820_s10 + $0x2c8] sm:$0xff]  ;;  %v3230_v52 = vld [vmem:[%s9820_s10 + $0x2c0] sm:$0xff] }
 0x7cb   : > { %v9054_v26 = vpop.eup %9053  ;;  %7914 = vst [vmem:[%s10228_s30 + $0x40] sm:$0xff] %v9052_v3  ;;  %6797 = vmatprep.subr.bf16.mxu0 %v5293_v0  ;;  %v5436_v0 = vunpack.c.h.s8.bf16 %v3900_v56  ;;  %v3160_v3 = vld [vmem:[%s9820_s10 + $0x90] sm:$0xff]  ;;  %v3255_v61 = vld [vmem:[%s9820_s10 + $0x388] sm:$0xff] }
 0x7cc   : > { %v9056_v9 = vpop.eup %9055  ;;  %7916 = vst [vmem:[%s10228_s30 + $0x50] sm:$0xff] %v9054_v26  ;;  %v3183_v26 = vld [vmem:[%s9820_s10 + $0x148] sm:$0xff]  ;;  %v3232_v56 = vld [vmem:[%s9820_s10 + $0x2d0] sm:$0xff] }
 0x7cd   : > { %v9058_v10 = vpop.eup %9057  ;;  %7915 = vst [vmem:[%s10228_s30 + $0x48] sm:$0xff] %v9056_v9  ;;  %6626 = vmatpush1.bf16.msra.mxu1 %v5290_v2  ;;  %v3929_v2 = vunpack.c.l.s8.bf16 %v3161_v62  ;;  %v3950_v9 = vunpack.c.h.s8.bf16 %v3158_v1  ;;  %v3999_v20 = vunpack.c.h.s8.bf16 %v3183_v26 }
 0x7ce   : > { %v9060_v12 = vpop.eup %9059  ;;  %7917 = vst [vmem:[%s10228_s30 + $0x58] sm:$0xff] %v9058_v10  ;;  %6798 = vmatpush1.bf16.msra.mxu0 %v5292_v4  ;;  %6627 = vmatprep.subr.bf16.mxu1 %v5315_v5  ;;  %v3926_v4 = vunpack.c.l.s8.bf16 %v3158_v1  ;;  %v3928_v5 = vunpack.c.l.s8.bf16 %v3160_v3  ;;  %v3952_v10 = vunpack.c.h.s8.bf16 %v3160_v3  ;;  %v3254_v1 = vld [vmem:[%s9820_s10 + $0x380] sm:$0xff]  ;;  %v3256_v3 = vld [vmem:[%s9820_s10 + $0x390] sm:$0xff] }
 0x7cf   : > { %v9062_v18 = vpop.eup %9061  ;;  %7938 = vst [vmem:[%s10228_s30 + $0x100] sm:$0xff] %v9060_v12  ;;  %6799 = vmatprep.subr.bf16.mxu0 %v5317_v7  ;;  %v3953_v7 = vunpack.c.h.s8.bf16 %v3161_v62  ;;  %v3182_v12 = vld [vmem:[%s9820_s10 + $0x140] sm:$0xff]  ;;  %v3257_v62 = vld [vmem:[%s9820_s10 + $0x398] sm:$0xff] }
 0x7d0   : > { %v9064_v22 = vpop.eup %9063  ;;  %7940 = vst [vmem:[%s10228_s30 + $0x110] sm:$0xff] %v9062_v18  ;;  %v3974_v18 = vunpack.c.l.s8.bf16 %v3182_v12 }
 0x7d1   : > { %v9066_v29 = vpop.eup %9065  ;;  %7939 = vst [vmem:[%s10228_s30 + $0x108] sm:$0xff] %v9064_v22  ;;  %6628 = vmatpush1.bf16.msra.mxu1 %v5314_v11  ;;  %v3975_v11 = vunpack.c.l.s8.bf16 %v3183_v26  ;;  %v4001_v22 = vunpack.c.h.s8.bf16 %v3185_v8  ;;  %v4145_v26 = vunpack.c.h.s8.bf16 %v3257_v62 }
 0x7d2   : > { %7941 = vst [vmem:[%s10228_s30 + $0x118] sm:$0xff] %v9066_v29  ;;  %6800 = vmatpush1.bf16.msra.mxu0 %v5316_v13  ;;  %6629 = vmatprep.subr.bf16.mxu1 %v5339_v14  ;;  %v3977_v13 = vunpack.c.l.s8.bf16 %v3185_v8  ;;  %v3184_v14 = vld [vmem:[%s9820_s10 + $0x150] sm:$0xff]  ;;  %v3209_v29 = vld [vmem:[%s9820_s10 + $0x218] sm:$0xff] }
 0x7d3   : > { %6801 = vmatprep.subr.bf16.mxu0 %v5341_v19  ;;  %v3976_v19 = vunpack.c.l.s8.bf16 %v3184_v14  ;;  %v3281_v8 = vld [vmem:[%s9820_s10 + $0x458] sm:$0xff] }
 0x7d5   : > { %6630 = vmatpush1.bf16.msra.mxu1 %v5338_v32  ;;  %v3998_v32 = vunpack.c.h.s8.bf16 %v3182_v12  ;;  %v3278_v12 = vld [vmem:[%s9820_s10 + $0x440] sm:$0xff] }
 0x7d6   : > { %6802 = vmatpush1.bf16.msra.mxu0 %v5340_v36  ;;  %6631 = vmatprep.subr.bf16.mxu1 %v5363_v39  ;;  %v4000_v36 = vunpack.c.h.s8.bf16 %v3184_v14  ;;  %v4023_v39 = vunpack.c.l.s8.bf16 %v3207_v23  ;;  %v3280_v14 = vld [vmem:[%s9820_s10 + $0x450] sm:$0xff] }
 0x7d7   : > { %6803 = vmatprep.subr.bf16.mxu0 %v5365_v41  ;;  %v4025_v41 = vunpack.c.l.s8.bf16 %v3209_v29 }
 0x7d9   : > { %6632 = vmatpush1.bf16.msra.mxu1 %v5362_v43  ;;  %v4022_v43 = vunpack.c.l.s8.bf16 %v3206_v40 }
 0x7da   : > { %6804 = vmatpush1.bf16.msra.mxu0 %v5364_v44  ;;  %6633 = vmatprep.subr.bf16.mxu1 %v5387_v45  ;;  %v4024_v44 = vunpack.c.l.s8.bf16 %v3208_v42  ;;  %v4047_v45 = vunpack.c.h.s8.bf16 %v3207_v23  ;;  %v3303_v23 = vld [vmem:[%s9820_s10 + $0x508] sm:$0xff] }
 0x7db   : > { %6805 = vmatprep.subr.bf16.mxu0 %v5389_v46  ;;  %v4049_v46 = vunpack.c.h.s8.bf16 %v3209_v29  ;;  %v3305_v29 = vld [vmem:[%s9820_s10 + $0x518] sm:$0xff] }
 0x7dd   : > { %6634 = vmatpush1.bf16.msra.mxu1 %v5386_v49  ;;  %v4046_v49 = vunpack.c.h.s8.bf16 %v3206_v40  ;;  %v3302_v40 = vld [vmem:[%s9820_s10 + $0x500] sm:$0xff] }
 0x7de   : > { %6806 = vmatpush1.bf16.msra.mxu0 %v5388_v50  ;;  %6635 = vmatprep.subr.bf16.mxu1 %v5411_v51  ;;  %v4048_v50 = vunpack.c.h.s8.bf16 %v3208_v42  ;;  %v4071_v51 = vunpack.c.l.s8.bf16 %v3231_v27  ;;  %v3304_v42 = vld [vmem:[%s9820_s10 + $0x510] sm:$0xff] }
 0x7df   : > { %6807 = vmatprep.subr.bf16.mxu0 %v5413_v54  ;;  %v4073_v54 = vunpack.c.l.s8.bf16 %v3233_v48 }
 0x7e1   : > { %6636 = vmatpush1.bf16.msra.mxu1 %v5410_v57  ;;  %v4070_v57 = vunpack.c.l.s8.bf16 %v3230_v52 }
 0x7e2   : > { %6808 = vmatpush1.bf16.msra.mxu0 %v5412_v58  ;;  %6637 = vmatprep.subr.bf16.mxu1 %v5435_v59  ;;  %v4072_v58 = vunpack.c.l.s8.bf16 %v3232_v56  ;;  %v4095_v59 = vunpack.c.h.s8.bf16 %v3231_v27  ;;  %v3327_v27 = vld [vmem:[%s9820_s10 + $0x5c8] sm:$0xff] }
 0x7e3   : > { %6809 = vmatprep.subr.bf16.mxu0 %v5437_v60  ;;  %v4097_v60 = vunpack.c.h.s8.bf16 %v3233_v48  ;;  %v3329_v48 = vld [vmem:[%s9820_s10 + $0x5d8] sm:$0xff] }
 0x7e5   : > { %6638 = vmatpush1.bf16.msra.mxu1 %v5434_v63  ;;  %v4094_v63 = vunpack.c.h.s8.bf16 %v3230_v52  ;;  %v3326_v52 = vld [vmem:[%s9820_s10 + $0x5c0] sm:$0xff] }
 0x7e6   : > { %6810 = vmatpush1.bf16.msra.mxu0 %v5436_v0  ;;  %6822 = vmatprep.subr.bf16.mxu1 %v3927_v47  ;;  %v4096_v0 = vunpack.c.h.s8.bf16 %v3232_v56  ;;  %v4119_v47 = vunpack.c.l.s8.bf16 %v3255_v61  ;;  %v3328_v56 = vld [vmem:[%s9820_s10 + $0x5d0] sm:$0xff] }
 0x7e7   : > { %6994 = vmatprep.subr.bf16.mxu0 %v3929_v2  ;;  %v4121_v2 = vunpack.c.l.s8.bf16 %v3257_v62  ;;  %v3353_v62 = vld [vmem:[%s9820_s10 + $0x698] sm:$0xff] }
 0x7e8   : > { %6640 = vmatmul.mubr.bf16.vlgmr.msra.gmra.mrb[24].mxu1 %v10029_v25 }
 0x7e9   : > { %6812 = vmatmul.mubr.bf16.vlgmr.msra.gmra.mrb[28].mxu0 %v10029_v25  ;;  %6823 = vmatpush1.bf16.msra.mxu1 %v3926_v4  ;;  %v4118_v4 = vunpack.c.l.s8.bf16 %v3254_v1 }
 0x7ea   : > { %6854 = vmatprep.mubr.bf16.mxu1 %v9929_v21  ;;  %6995 = vmatpush1.bf16.msra.mxu0 %v3928_v5  ;;  %v4120_v5 = vunpack.c.l.s8.bf16 %v3256_v3 }
 0x7eb   : > { %7026 = vmatprep.mubr.bf16.mxu0 %v9929_v21  ;;  %6824 = vmatprep.subr.bf16.mxu1 %v3951_v6  ;;  %v4143_v6 = vunpack.c.h.s8.bf16 %v3255_v61  ;;  %v3351_v61 = vld [vmem:[%s9820_s10 + $0x688] sm:$0xff] }
 0x7ec   : > { %6996 = vmatprep.subr.bf16.mxu0 %v3953_v7  ;;  %v3279_v7 = vld [vmem:[%s9820_s10 + $0x448] sm:$0xff] }
 0x7ed   : > { %6825 = vmatpush1.bf16.msra.mxu1 %v3950_v9  ;;  %v4142_v9 = vunpack.c.h.s8.bf16 %v3254_v1  ;;  %v3350_v1 = vld [vmem:[%s9820_s10 + $0x680] sm:$0xff] }
 0x7ee   : > { %6997 = vmatpush1.bf16.msra.mxu0 %v3952_v10  ;;  %6826 = vmatprep.subr.bf16.mxu1 %v3975_v11  ;;  %v4144_v10 = vunpack.c.h.s8.bf16 %v3256_v3  ;;  %v4167_v11 = vunpack.c.l.s8.bf16 %v3279_v7  ;;  %v3352_v3 = vld [vmem:[%s9820_s10 + $0x690] sm:$0xff] }
 0x7ef   : > { %6998 = vmatprep.subr.bf16.mxu0 %v3977_v13  ;;  %v4169_v13 = vunpack.c.l.s8.bf16 %v3281_v8 }
 0x7f1   : > { %6827 = vmatpush1.bf16.msra.mxu1 %v3974_v18  ;;  %v4166_v18 = vunpack.c.l.s8.bf16 %v3278_v12 }
 0x7f2   : > { %6999 = vmatpush1.bf16.msra.mxu0 %v3976_v19  ;;  %6828 = vmatprep.subr.bf16.mxu1 %v3999_v20  ;;  %v4168_v19 = vunpack.c.l.s8.bf16 %v3280_v14  ;;  %v4191_v20 = vunpack.c.h.s8.bf16 %v3279_v7  ;;  %v4337_v7 = vunpack.c.h.s8.bf16 %v3353_v62 }
 0x7f3   : > { %7000 = vmatprep.subr.bf16.mxu0 %v4001_v22  ;;  %v4193_v22 = vunpack.c.h.s8.bf16 %v3281_v8  ;;  %v3377_v8 = vld [vmem:[%s9820_s10 + $0x758] sm:$0xff] }
 0x7f5   : > { %6829 = vmatpush1.bf16.msra.mxu1 %v3998_v32  ;;  %v4190_v32 = vunpack.c.h.s8.bf16 %v3278_v12  ;;  %v3374_v12 = vld [vmem:[%s9820_s10 + $0x740] sm:$0xff] }
 0x7f6   : > { %7001 = vmatpush1.bf16.msra.mxu0 %v4000_v36  ;;  %6830 = vmatprep.subr.bf16.mxu1 %v4023_v39  ;;  %v4192_v36 = vunpack.c.h.s8.bf16 %v3280_v14  ;;  %v4215_v39 = vunpack.c.l.s8.bf16 %v3303_v23  ;;  %v3376_v14 = vld [vmem:[%s9820_s10 + $0x750] sm:$0xff] }
 0x7f7   : > { %7002 = vmatprep.subr.bf16.mxu0 %v4025_v41  ;;  %v4217_v41 = vunpack.c.l.s8.bf16 %v3305_v29 }
 0x7f9   : > { %6831 = vmatpush1.bf16.msra.mxu1 %v4022_v43  ;;  %v4214_v43 = vunpack.c.l.s8.bf16 %v3302_v40 }
 0x7fa   : > { %7003 = vmatpush1.bf16.msra.mxu0 %v4024_v44  ;;  %6832 = vmatprep.subr.bf16.mxu1 %v4047_v45  ;;  %v4216_v44 = vunpack.c.l.s8.bf16 %v3304_v42  ;;  %v4239_v45 = vunpack.c.h.s8.bf16 %v3303_v23  ;;  %v3399_v23 = vld [vmem:[%s9820_s10 + $0x808] sm:$0xff] }
 0x7fb   : > { %7004 = vmatprep.subr.bf16.mxu0 %v4049_v46  ;;  %v4241_v46 = vunpack.c.h.s8.bf16 %v3305_v29  ;;  %v3401_v29 = vld [vmem:[%s9820_s10 + $0x818] sm:$0xff] }
 0x7fd   : > { %6833 = vmatpush1.bf16.msra.mxu1 %v4046_v49  ;;  %v4238_v49 = vunpack.c.h.s8.bf16 %v3302_v40  ;;  %v3398_v40 = vld [vmem:[%s9820_s10 + $0x800] sm:$0xff] }
 0x7fe   : > { %7005 = vmatpush1.bf16.msra.mxu0 %v4048_v50  ;;  %6834 = vmatprep.subr.bf16.mxu1 %v4071_v51  ;;  %v4240_v50 = vunpack.c.h.s8.bf16 %v3304_v42  ;;  %v4263_v51 = vunpack.c.l.s8.bf16 %v3327_v27  ;;  %v3400_v42 = vld [vmem:[%s9820_s10 + $0x810] sm:$0xff] }
 0x7ff   : > { %7006 = vmatprep.subr.bf16.mxu0 %v4073_v54  ;;  %v4265_v54 = vunpack.c.l.s8.bf16 %v3329_v48 }
 0x801   : > { %6835 = vmatpush1.bf16.msra.mxu1 %v4070_v57  ;;  %v4262_v57 = vunpack.c.l.s8.bf16 %v3326_v52 }
 0x802   : > { %7007 = vmatpush1.bf16.msra.mxu0 %v4072_v58  ;;  %6836 = vmatprep.subr.bf16.mxu1 %v4095_v59  ;;  %v4264_v58 = vunpack.c.l.s8.bf16 %v3328_v56  ;;  %v4287_v59 = vunpack.c.h.s8.bf16 %v3327_v27  ;;  %v3423_v27 = vld [vmem:[%s9820_s10 + $0x8c8] sm:$0xff] }
 0x803   : > { %7008 = vmatprep.subr.bf16.mxu0 %v4097_v60  ;;  %v4289_v60 = vunpack.c.h.s8.bf16 %v3329_v48  ;;  %v3425_v48 = vld [vmem:[%s9820_s10 + $0x8d8] sm:$0xff] }
 0x805   : > { %6837 = vmatpush1.bf16.msra.mxu1 %v4094_v63  ;;  %v4286_v63 = vunpack.c.h.s8.bf16 %v3326_v52  ;;  %v3422_v52 = vld [vmem:[%s9820_s10 + $0x8c0] sm:$0xff] }
 0x806   : > { %7009 = vmatpush1.bf16.msra.mxu0 %v4096_v0  ;;  %6838 = vmatprep.subr.bf16.mxu1 %v4119_v47  ;;  %v4288_v0 = vunpack.c.h.s8.bf16 %v3328_v56  ;;  %v4311_v47 = vunpack.c.l.s8.bf16 %v3351_v61  ;;  %v3424_v56 = vld [vmem:[%s9820_s10 + $0x8d0] sm:$0xff] }
 0x807   : > { %7010 = vmatprep.subr.bf16.mxu0 %v4121_v2  ;;  %v4313_v2 = vunpack.c.l.s8.bf16 %v3353_v62  ;;  %v3449_v62 = vld [vmem:[%s9820_s10 + $0x998] sm:$0xff] }
 0x809   : > { %6839 = vmatpush1.bf16.msra.mxu1 %v4118_v4  ;;  %v4310_v4 = vunpack.c.l.s8.bf16 %v3350_v1 }
 0x80a   : > { %7011 = vmatpush1.bf16.msra.mxu0 %v4120_v5  ;;  %6840 = vmatprep.subr.bf16.mxu1 %v4143_v6  ;;  %v4312_v5 = vunpack.c.l.s8.bf16 %v3352_v3  ;;  %v4335_v6 = vunpack.c.h.s8.bf16 %v3351_v61  ;;  %v3447_v61 = vld [vmem:[%s9820_s10 + $0x988] sm:$0xff] }
 0x80b   : > { %7012 = vmatprep.subr.bf16.mxu0 %v4145_v26  ;;  %v3375_v26 = vld [vmem:[%s9820_s10 + $0x748] sm:$0xff] }
 0x80d   : > { %6841 = vmatpush1.bf16.msra.mxu1 %v4142_v9  ;;  %v4334_v9 = vunpack.c.h.s8.bf16 %v3350_v1  ;;  %v3446_v1 = vld [vmem:[%s9820_s10 + $0x980] sm:$0xff] }
 0x80e   : > { %7013 = vmatpush1.bf16.msra.mxu0 %v4144_v10  ;;  %6842 = vmatprep.subr.bf16.mxu1 %v4167_v11  ;;  %v4336_v10 = vunpack.c.h.s8.bf16 %v3352_v3  ;;  %v4359_v11 = vunpack.c.l.s8.bf16 %v3375_v26  ;;  %v3448_v3 = vld [vmem:[%s9820_s10 + $0x990] sm:$0xff] }
 0x80f   : > { %7014 = vmatprep.subr.bf16.mxu0 %v4169_v13  ;;  %v4361_v13 = vunpack.c.l.s8.bf16 %v3377_v8 }
 0x811   : > { %6843 = vmatpush1.bf16.msra.mxu1 %v4166_v18  ;;  %v4358_v18 = vunpack.c.l.s8.bf16 %v3374_v12 }
 0x812   : > { %7015 = vmatpush1.bf16.msra.mxu0 %v4168_v19  ;;  %6844 = vmatprep.subr.bf16.mxu1 %v4191_v20  ;;  %v4360_v19 = vunpack.c.l.s8.bf16 %v3376_v14  ;;  %v4383_v20 = vunpack.c.h.s8.bf16 %v3375_v26  ;;  %v4529_v26 = vunpack.c.h.s8.bf16 %v3449_v62 }
 0x813   : > { %7016 = vmatprep.subr.bf16.mxu0 %v4193_v22  ;;  %v4385_v22 = vunpack.c.h.s8.bf16 %v3377_v8  ;;  %v3473_v8 = vld [vmem:[%s9820_s10 + $0xa58] sm:$0xff] }
 0x815   : > { %6845 = vmatpush1.bf16.msra.mxu1 %v4190_v32  ;;  %v4382_v32 = vunpack.c.h.s8.bf16 %v3374_v12  ;;  %v3470_v12 = vld [vmem:[%s9820_s10 + $0xa40] sm:$0xff] }
 0x816   : > { %7017 = vmatpush1.bf16.msra.mxu0 %v4192_v36  ;;  %6846 = vmatprep.subr.bf16.mxu1 %v4215_v39  ;;  %v4384_v36 = vunpack.c.h.s8.bf16 %v3376_v14  ;;  %v4407_v39 = vunpack.c.l.s8.bf16 %v3399_v23  ;;  %v3472_v14 = vld [vmem:[%s9820_s10 + $0xa50] sm:$0xff] }
 0x817   : > { %7018 = vmatprep.subr.bf16.mxu0 %v4217_v41  ;;  %v4409_v41 = vunpack.c.l.s8.bf16 %v3401_v29 }
 0x819   : > { %6847 = vmatpush1.bf16.msra.mxu1 %v4214_v43  ;;  %v4406_v43 = vunpack.c.l.s8.bf16 %v3398_v40 }
 0x81a   : > { %7019 = vmatpush1.bf16.msra.mxu0 %v4216_v44  ;;  %6848 = vmatprep.subr.bf16.mxu1 %v4239_v45  ;;  %v4408_v44 = vunpack.c.l.s8.bf16 %v3400_v42  ;;  %v4431_v45 = vunpack.c.h.s8.bf16 %v3399_v23  ;;  %v3495_v23 = vld [vmem:[%s9820_s10 + $0xb08] sm:$0xff] }
 0x81b   : > { %7020 = vmatprep.subr.bf16.mxu0 %v4241_v46  ;;  %v4433_v46 = vunpack.c.h.s8.bf16 %v3401_v29  ;;  %v3497_v29 = vld [vmem:[%s9820_s10 + $0xb18] sm:$0xff] }
 0x81d   : > { %6849 = vmatpush1.bf16.msra.mxu1 %v4238_v49  ;;  %v4430_v49 = vunpack.c.h.s8.bf16 %v3398_v40  ;;  %v3494_v40 = vld [vmem:[%s9820_s10 + $0xb00] sm:$0xff] }
 0x81e   : > { %7021 = vmatpush1.bf16.msra.mxu0 %v4240_v50  ;;  %6850 = vmatprep.subr.bf16.mxu1 %v4263_v51  ;;  %v4432_v50 = vunpack.c.h.s8.bf16 %v3400_v42  ;;  %v4455_v51 = vunpack.c.l.s8.bf16 %v3423_v27  ;;  %v3496_v42 = vld [vmem:[%s9820_s10 + $0xb10] sm:$0xff] }
 0x81f   : > { %7022 = vmatprep.subr.bf16.mxu0 %v4265_v54  ;;  %v4457_v54 = vunpack.c.l.s8.bf16 %v3425_v48 }
 0x821   : > { %6851 = vmatpush1.bf16.msra.mxu1 %v4262_v57  ;;  %v4454_v57 = vunpack.c.l.s8.bf16 %v3422_v52 }
 0x822   : > { %7023 = vmatpush1.bf16.msra.mxu0 %v4264_v58  ;;  %6852 = vmatprep.subr.bf16.mxu1 %v4287_v59  ;;  %v4456_v58 = vunpack.c.l.s8.bf16 %v3424_v56  ;;  %v4479_v59 = vunpack.c.h.s8.bf16 %v3423_v27  ;;  %v3519_v27 = vld [vmem:[%s9820_s10 + $0xbc8] sm:$0xff] }
 0x823   : > { %7024 = vmatprep.subr.bf16.mxu0 %v4289_v60  ;;  %v4481_v60 = vunpack.c.h.s8.bf16 %v3425_v48  ;;  %v3521_v48 = vld [vmem:[%s9820_s10 + $0xbd8] sm:$0xff] }
 0x825   : > { %6853 = vmatpush1.bf16.msra.mxu1 %v4286_v63  ;;  %v4478_v63 = vunpack.c.h.s8.bf16 %v3422_v52  ;;  %v3518_v52 = vld [vmem:[%s9820_s10 + $0xbc0] sm:$0xff] }
 0x826   : > { %7025 = vmatpush1.bf16.msra.mxu0 %v4288_v0  ;;  %6865 = vmatprep.subr.bf16.mxu1 %v4311_v47  ;;  %v4480_v0 = vunpack.c.h.s8.bf16 %v3424_v56  ;;  %v4503_v47 = vunpack.c.l.s8.bf16 %v3447_v61  ;;  %v3520_v56 = vld [vmem:[%s9820_s10 + $0xbd0] sm:$0xff] }
 0x827   : > { %7037 = vmatprep.subr.bf16.mxu0 %v4313_v2  ;;  %v4505_v2 = vunpack.c.l.s8.bf16 %v3449_v62  ;;  %v3545_v62 = vld [vmem:[%s9820_s10 + $0xc98] sm:$0xff] }
 0x828   : > { %6855 = vmatmul.mubr.bf16.vlgmr.msra.gmra.mrb[28].mxu1 %v9925_v15 }
 0x829   : > { %7027 = vmatmul.mubr.bf16.vlgmr.msra.gmra.mrb[32].mxu0 %v9925_v15  ;;  %6866 = vmatpush1.bf16.msra.mxu1 %v4310_v4  ;;  %v4502_v4 = vunpack.c.l.s8.bf16 %v3446_v1 }
 0x82a   : > { %6897 = vmatprep.mubr.bf16.mxu1 %v9931_v17  ;;  %7038 = vmatpush1.bf16.msra.mxu0 %v4312_v5  ;;  %v4504_v5 = vunpack.c.l.s8.bf16 %v3448_v3 }
 0x82b   : > { %7069 = vmatprep.mubr.bf16.mxu0 %v9931_v17  ;;  %6867 = vmatprep.subr.bf16.mxu1 %v4335_v6  ;;  %v4527_v6 = vunpack.c.h.s8.bf16 %v3447_v61  ;;  %v3543_v61 = vld [vmem:[%s9820_s10 + $0xc88] sm:$0xff] }
 0x82c   : > { %7039 = vmatprep.subr.bf16.mxu0 %v4337_v7  ;;  %v3471_v7 = vld [vmem:[%s9820_s10 + $0xa48] sm:$0xff] }
 0x82d   : > { %6868 = vmatpush1.bf16.msra.mxu1 %v4334_v9  ;;  %v4526_v9 = vunpack.c.h.s8.bf16 %v3446_v1  ;;  %v3542_v1 = vld [vmem:[%s9820_s10 + $0xc80] sm:$0xff] }
 0x82e   : > { %7040 = vmatpush1.bf16.msra.mxu0 %v4336_v10  ;;  %6869 = vmatprep.subr.bf16.mxu1 %v4359_v11  ;;  %v4528_v10 = vunpack.c.h.s8.bf16 %v3448_v3  ;;  %v4551_v11 = vunpack.c.l.s8.bf16 %v3471_v7  ;;  %v3544_v3 = vld [vmem:[%s9820_s10 + $0xc90] sm:$0xff] }
 0x82f   : > { %7041 = vmatprep.subr.bf16.mxu0 %v4361_v13  ;;  %v4553_v13 = vunpack.c.l.s8.bf16 %v3473_v8 }
 0x831   : > { %6870 = vmatpush1.bf16.msra.mxu1 %v4358_v18  ;;  %v4550_v18 = vunpack.c.l.s8.bf16 %v3470_v12 }
 0x832   : > { %7042 = vmatpush1.bf16.msra.mxu0 %v4360_v19  ;;  %6871 = vmatprep.subr.bf16.mxu1 %v4383_v20  ;;  %v4552_v19 = vunpack.c.l.s8.bf16 %v3472_v14  ;;  %v4575_v20 = vunpack.c.h.s8.bf16 %v3471_v7  ;;  %v4721_v7 = vunpack.c.h.s8.bf16 %v3545_v62 }
 0x833   : > { %7043 = vmatprep.subr.bf16.mxu0 %v4385_v22  ;;  %v4577_v22 = vunpack.c.h.s8.bf16 %v3473_v8  ;;  %v3569_v8 = vld [vmem:[%s9820_s10 + $0xd58] sm:$0xff] }
 0x835   : > { %6872 = vmatpush1.bf16.msra.mxu1 %v4382_v32  ;;  %v4574_v32 = vunpack.c.h.s8.bf16 %v3470_v12  ;;  %v3566_v12 = vld [vmem:[%s9820_s10 + $0xd40] sm:$0xff] }
 0x836   : > { %7044 = vmatpush1.bf16.msra.mxu0 %v4384_v36  ;;  %6873 = vmatprep.subr.bf16.mxu1 %v4407_v39  ;;  %v4576_v36 = vunpack.c.h.s8.bf16 %v3472_v14  ;;  %v4599_v39 = vunpack.c.l.s8.bf16 %v3495_v23  ;;  %v3568_v14 = vld [vmem:[%s9820_s10 + $0xd50] sm:$0xff] }
 0x837   : > { %7045 = vmatprep.subr.bf16.mxu0 %v4409_v41  ;;  %v4601_v41 = vunpack.c.l.s8.bf16 %v3497_v29 }
 0x839   : > { %6874 = vmatpush1.bf16.msra.mxu1 %v4406_v43  ;;  %v4598_v43 = vunpack.c.l.s8.bf16 %v3494_v40 }
 0x83a   : > { %7046 = vmatpush1.bf16.msra.mxu0 %v4408_v44  ;;  %6875 = vmatprep.subr.bf16.mxu1 %v4431_v45  ;;  %v4600_v44 = vunpack.c.l.s8.bf16 %v3496_v42  ;;  %v4623_v45 = vunpack.c.h.s8.bf16 %v3495_v23  ;;  %v3591_v23 = vld [vmem:[%s9820_s10 + $0xe08] sm:$0xff] }
 0x83b   : > { %7047 = vmatprep.subr.bf16.mxu0 %v4433_v46  ;;  %v4625_v46 = vunpack.c.h.s8.bf16 %v3497_v29  ;;  %v3593_v29 = vld [vmem:[%s9820_s10 + $0xe18] sm:$0xff] }
 0x83d   : > { %6876 = vmatpush1.bf16.msra.mxu1 %v4430_v49  ;;  %v4622_v49 = vunpack.c.h.s8.bf16 %v3494_v40  ;;  %v3590_v40 = vld [vmem:[%s9820_s10 + $0xe00] sm:$0xff] }
 0x83e   : > { %7048 = vmatpush1.bf16.msra.mxu0 %v4432_v50  ;;  %6877 = vmatprep.subr.bf16.mxu1 %v4455_v51  ;;  %v4624_v50 = vunpack.c.h.s8.bf16 %v3496_v42  ;;  %v4647_v51 = vunpack.c.l.s8.bf16 %v3519_v27  ;;  %v3592_v42 = vld [vmem:[%s9820_s10 + $0xe10] sm:$0xff] }
 0x83f   : > { %7049 = vmatprep.subr.bf16.mxu0 %v4457_v54  ;;  %v4649_v54 = vunpack.c.l.s8.bf16 %v3521_v48 }
 0x841   : > { %6878 = vmatpush1.bf16.msra.mxu1 %v4454_v57  ;;  %v4646_v57 = vunpack.c.l.s8.bf16 %v3518_v52 }
 0x842   : > { %7050 = vmatpush1.bf16.msra.mxu0 %v4456_v58  ;;  %6879 = vmatprep.subr.bf16.mxu1 %v4479_v59  ;;  %v4648_v58 = vunpack.c.l.s8.bf16 %v3520_v56  ;;  %v4671_v59 = vunpack.c.h.s8.bf16 %v3519_v27  ;;  %v3615_v27 = vld [vmem:[%s9820_s10 + $0xec8] sm:$0xff] }
 0x843   : > { %7051 = vmatprep.subr.bf16.mxu0 %v4481_v60  ;;  %v4673_v60 = vunpack.c.h.s8.bf16 %v3521_v48  ;;  %v3617_v48 = vld [vmem:[%s9820_s10 + $0xed8] sm:$0xff] }
 0x845   : > { %6880 = vmatpush1.bf16.msra.mxu1 %v4478_v63  ;;  %v4670_v63 = vunpack.c.h.s8.bf16 %v3518_v52  ;;  %v3614_v52 = vld [vmem:[%s9820_s10 + $0xec0] sm:$0xff] }
 0x846   : > { %7052 = vmatpush1.bf16.msra.mxu0 %v4480_v0  ;;  %6881 = vmatprep.subr.bf16.mxu1 %v4503_v47  ;;  %v4672_v0 = vunpack.c.h.s8.bf16 %v3520_v56  ;;  %v4695_v47 = vunpack.c.l.s8.bf16 %v3543_v61  ;;  %v3616_v56 = vld [vmem:[%s9820_s10 + $0xed0] sm:$0xff] }
 0x847   : > { %7053 = vmatprep.subr.bf16.mxu0 %v4505_v2  ;;  %v4697_v2 = vunpack.c.l.s8.bf16 %v3545_v62  ;;  %v3641_v62 = vld [vmem:[%s9820_s10 + $0xf98] sm:$0xff] }
 0x849   : > { %6882 = vmatpush1.bf16.msra.mxu1 %v4502_v4  ;;  %v4694_v4 = vunpack.c.l.s8.bf16 %v3542_v1 }
 0x84a   : > { %7054 = vmatpush1.bf16.msra.mxu0 %v4504_v5  ;;  %6883 = vmatprep.subr.bf16.mxu1 %v4527_v6  ;;  %v4696_v5 = vunpack.c.l.s8.bf16 %v3544_v3  ;;  %v4719_v6 = vunpack.c.h.s8.bf16 %v3543_v61  ;;  %v3639_v61 = vld [vmem:[%s9820_s10 + $0xf88] sm:$0xff] }
 0x84b   : > { %7055 = vmatprep.subr.bf16.mxu0 %v4529_v26  ;;  %v3567_v26 = vld [vmem:[%s9820_s10 + $0xd48] sm:$0xff] }
 0x84d   : > { %6884 = vmatpush1.bf16.msra.mxu1 %v4526_v9  ;;  %v4718_v9 = vunpack.c.h.s8.bf16 %v3542_v1  ;;  %v3638_v1 = vld [vmem:[%s9820_s10 + $0xf80] sm:$0xff] }
 0x84e   : > { %7056 = vmatpush1.bf16.msra.mxu0 %v4528_v10  ;;  %6885 = vmatprep.subr.bf16.mxu1 %v4551_v11  ;;  %v4720_v10 = vunpack.c.h.s8.bf16 %v3544_v3  ;;  %v4743_v11 = vunpack.c.l.s8.bf16 %v3567_v26  ;;  %v3640_v3 = vld [vmem:[%s9820_s10 + $0xf90] sm:$0xff] }
 0x84f   : > { %7057 = vmatprep.subr.bf16.mxu0 %v4553_v13  ;;  %v4745_v13 = vunpack.c.l.s8.bf16 %v3569_v8 }
 0x851   : > { %6886 = vmatpush1.bf16.msra.mxu1 %v4550_v18  ;;  %v4742_v18 = vunpack.c.l.s8.bf16 %v3566_v12 }
 0x852   : > { %7058 = vmatpush1.bf16.msra.mxu0 %v4552_v19  ;;  %6887 = vmatprep.subr.bf16.mxu1 %v4575_v20  ;;  %v4744_v19 = vunpack.c.l.s8.bf16 %v3568_v14  ;;  %v4767_v20 = vunpack.c.h.s8.bf16 %v3567_v26  ;;  %v4913_v26 = vunpack.c.h.s8.bf16 %v3641_v62 }
 0x853   : > { %7059 = vmatprep.subr.bf16.mxu0 %v4577_v22  ;;  %v4769_v22 = vunpack.c.h.s8.bf16 %v3569_v8  ;;  %v3665_v8 = vld [vmem:[%s9820_s10 + $0x1058] sm:$0xff] }
 0x855   : > { %6888 = vmatpush1.bf16.msra.mxu1 %v4574_v32  ;;  %v4766_v32 = vunpack.c.h.s8.bf16 %v3566_v12  ;;  %v3662_v12 = vld [vmem:[%s9820_s10 + $0x1040] sm:$0xff] }
 0x856   : > { %7060 = vmatpush1.bf16.msra.mxu0 %v4576_v36  ;;  %6889 = vmatprep.subr.bf16.mxu1 %v4599_v39  ;;  %v4768_v36 = vunpack.c.h.s8.bf16 %v3568_v14  ;;  %v4791_v39 = vunpack.c.l.s8.bf16 %v3591_v23  ;;  %v3664_v14 = vld [vmem:[%s9820_s10 + $0x1050] sm:$0xff] }
 0x857   : > { %7061 = vmatprep.subr.bf16.mxu0 %v4601_v41  ;;  %v4793_v41 = vunpack.c.l.s8.bf16 %v3593_v29 }
 0x859   : > { %6890 = vmatpush1.bf16.msra.mxu1 %v4598_v43  ;;  %v4790_v43 = vunpack.c.l.s8.bf16 %v3590_v40 }
 0x85a   : > { %7062 = vmatpush1.bf16.msra.mxu0 %v4600_v44  ;;  %6891 = vmatprep.subr.bf16.mxu1 %v4623_v45  ;;  %v4792_v44 = vunpack.c.l.s8.bf16 %v3592_v42  ;;  %v4815_v45 = vunpack.c.h.s8.bf16 %v3591_v23  ;;  %v3687_v23 = vld [vmem:[%s9820_s10 + $0x1108] sm:$0xff] }
 0x85b   : > { %7063 = vmatprep.subr.bf16.mxu0 %v4625_v46  ;;  %v4817_v46 = vunpack.c.h.s8.bf16 %v3593_v29  ;;  %v3689_v29 = vld [vmem:[%s9820_s10 + $0x1118] sm:$0xff] }
 0x85d   : > { %6892 = vmatpush1.bf16.msra.mxu1 %v4622_v49  ;;  %v4814_v49 = vunpack.c.h.s8.bf16 %v3590_v40  ;;  %v3686_v40 = vld [vmem:[%s9820_s10 + $0x1100] sm:$0xff] }
 0x85e   : > { %7064 = vmatpush1.bf16.msra.mxu0 %v4624_v50  ;;  %6893 = vmatprep.subr.bf16.mxu1 %v4647_v51  ;;  %v4816_v50 = vunpack.c.h.s8.bf16 %v3592_v42  ;;  %v4839_v51 = vunpack.c.l.s8.bf16 %v3615_v27  ;;  %v3688_v42 = vld [vmem:[%s9820_s10 + $0x1110] sm:$0xff] }
 0x85f   : > { %7065 = vmatprep.subr.bf16.mxu0 %v4649_v54  ;;  %v4841_v54 = vunpack.c.l.s8.bf16 %v3617_v48 }
 0x861   : > { %6894 = vmatpush1.bf16.msra.mxu1 %v4646_v57  ;;  %v4838_v57 = vunpack.c.l.s8.bf16 %v3614_v52 }
 0x862   : > { %7066 = vmatpush1.bf16.msra.mxu0 %v4648_v58  ;;  %6895 = vmatprep.subr.bf16.mxu1 %v4671_v59  ;;  %v4840_v58 = vunpack.c.l.s8.bf16 %v3616_v56  ;;  %v4863_v59 = vunpack.c.h.s8.bf16 %v3615_v27  ;;  %v3711_v27 = vld [vmem:[%s9820_s10 + $0x11c8] sm:$0xff] }
 0x863   : > { %7067 = vmatprep.subr.bf16.mxu0 %v4673_v60  ;;  %v4865_v60 = vunpack.c.h.s8.bf16 %v3617_v48  ;;  %v3713_v48 = vld [vmem:[%s9820_s10 + $0x11d8] sm:$0xff] }
 0x865   : > { %6896 = vmatpush1.bf16.msra.mxu1 %v4670_v63  ;;  %v4862_v63 = vunpack.c.h.s8.bf16 %v3614_v52  ;;  %v3710_v52 = vld [vmem:[%s9820_s10 + $0x11c0] sm:$0xff] }
 0x866   : > { %7068 = vmatpush1.bf16.msra.mxu0 %v4672_v0  ;;  %6908 = vmatprep.subr.bf16.mxu1 %v4695_v47  ;;  %v4864_v0 = vunpack.c.h.s8.bf16 %v3616_v56  ;;  %v4887_v47 = vunpack.c.l.s8.bf16 %v3639_v61  ;;  %v3712_v56 = vld [vmem:[%s9820_s10 + $0x11d0] sm:$0xff] }
 0x867   : > { %7080 = vmatprep.subr.bf16.mxu0 %v4697_v2  ;;  %v4889_v2 = vunpack.c.l.s8.bf16 %v3641_v62  ;;  %v3737_v62 = vld [vmem:[%s9820_s10 + $0x1298] sm:$0xff] }
 0x868   : > { %6898 = vmatmul.mubr.bf16.vlgmr.msra.gmra.mrb[28].mxu1 %v9927_v16 }
 0x869   : > { %7070 = vmatmul.mubr.bf16.vlgmr.msra.gmra.mrb[32].mxu0 %v9927_v16  ;;  %6909 = vmatpush1.bf16.msra.mxu1 %v4694_v4  ;;  %v4886_v4 = vunpack.c.l.s8.bf16 %v3638_v1 }
 0x86a   : > { %6940 = vmatprep.mubr.bf16.mxu1 %v10031_v31  ;;  %7081 = vmatpush1.bf16.msra.mxu0 %v4696_v5  ;;  %v4888_v5 = vunpack.c.l.s8.bf16 %v3640_v3 }
 0x86b   : > { %7112 = vmatprep.mubr.bf16.mxu0 %v10031_v31  ;;  %6910 = vmatprep.subr.bf16.mxu1 %v4719_v6  ;;  %v4911_v6 = vunpack.c.h.s8.bf16 %v3639_v61  ;;  %v3735_v61 = vld [vmem:[%s9820_s10 + $0x1288] sm:$0xff] }
 0x86c   : > { %7082 = vmatprep.subr.bf16.mxu0 %v4721_v7  ;;  %v3663_v7 = vld [vmem:[%s9820_s10 + $0x1048] sm:$0xff] }
 0x86d   : > { %6911 = vmatpush1.bf16.msra.mxu1 %v4718_v9  ;;  %v4910_v9 = vunpack.c.h.s8.bf16 %v3638_v1  ;;  %v3734_v1 = vld [vmem:[%s9820_s10 + $0x1280] sm:$0xff] }
 0x86e   : > { %7083 = vmatpush1.bf16.msra.mxu0 %v4720_v10  ;;  %6912 = vmatprep.subr.bf16.mxu1 %v4743_v11  ;;  %v4912_v10 = vunpack.c.h.s8.bf16 %v3640_v3  ;;  %v4935_v11 = vunpack.c.l.s8.bf16 %v3663_v7  ;;  %v3736_v3 = vld [vmem:[%s9820_s10 + $0x1290] sm:$0xff] }
 0x86f   : > { %7084 = vmatprep.subr.bf16.mxu0 %v4745_v13  ;;  %v4937_v13 = vunpack.c.l.s8.bf16 %v3665_v8 }
 0x871   : > { %6913 = vmatpush1.bf16.msra.mxu1 %v4742_v18  ;;  %v4934_v18 = vunpack.c.l.s8.bf16 %v3662_v12 }
 0x872   : > { %7085 = vmatpush1.bf16.msra.mxu0 %v4744_v19  ;;  %6914 = vmatprep.subr.bf16.mxu1 %v4767_v20  ;;  %v4936_v19 = vunpack.c.l.s8.bf16 %v3664_v14  ;;  %v4959_v20 = vunpack.c.h.s8.bf16 %v3663_v7  ;;  %v5105_v7 = vunpack.c.h.s8.bf16 %v3737_v62 }
 0x873   : > { %7086 = vmatprep.subr.bf16.mxu0 %v4769_v22  ;;  %v4961_v22 = vunpack.c.h.s8.bf16 %v3665_v8  ;;  %v3761_v8 = vld [vmem:[%s9820_s10 + $0x1358] sm:$0xff] }
 0x875   : > { %6915 = vmatpush1.bf16.msra.mxu1 %v4766_v32  ;;  %v4958_v32 = vunpack.c.h.s8.bf16 %v3662_v12  ;;  %v3758_v12 = vld [vmem:[%s9820_s10 + $0x1340] sm:$0xff] }
 0x876   : > { %7087 = vmatpush1.bf16.msra.mxu0 %v4768_v36  ;;  %6916 = vmatprep.subr.bf16.mxu1 %v4791_v39  ;;  %v4960_v36 = vunpack.c.h.s8.bf16 %v3664_v14  ;;  %v4983_v39 = vunpack.c.l.s8.bf16 %v3687_v23  ;;  %v3760_v14 = vld [vmem:[%s9820_s10 + $0x1350] sm:$0xff] }
 0x877   : > { %7088 = vmatprep.subr.bf16.mxu0 %v4793_v41  ;;  %v4985_v41 = vunpack.c.l.s8.bf16 %v3689_v29 }
 0x879   : > { %6917 = vmatpush1.bf16.msra.mxu1 %v4790_v43  ;;  %v4982_v43 = vunpack.c.l.s8.bf16 %v3686_v40 }
 0x87a   : > { %7089 = vmatpush1.bf16.msra.mxu0 %v4792_v44  ;;  %6918 = vmatprep.subr.bf16.mxu1 %v4815_v45  ;;  %v4984_v44 = vunpack.c.l.s8.bf16 %v3688_v42  ;;  %v5007_v45 = vunpack.c.h.s8.bf16 %v3687_v23  ;;  %v3783_v23 = vld [vmem:[%s9820_s10 + $0x1408] sm:$0xff] }
 0x87b   : > { %7090 = vmatprep.subr.bf16.mxu0 %v4817_v46  ;;  %v5009_v46 = vunpack.c.h.s8.bf16 %v3689_v29  ;;  %v3785_v29 = vld [vmem:[%s9820_s10 + $0x1418] sm:$0xff] }
 0x87d   : > { %6919 = vmatpush1.bf16.msra.mxu1 %v4814_v49  ;;  %v5006_v49 = vunpack.c.h.s8.bf16 %v3686_v40  ;;  %v3782_v40 = vld [vmem:[%s9820_s10 + $0x1400] sm:$0xff] }
 0x87e   : > { %7091 = vmatpush1.bf16.msra.mxu0 %v4816_v50  ;;  %6920 = vmatprep.subr.bf16.mxu1 %v4839_v51  ;;  %v5008_v50 = vunpack.c.h.s8.bf16 %v3688_v42  ;;  %v5031_v51 = vunpack.c.l.s8.bf16 %v3711_v27  ;;  %v3784_v42 = vld [vmem:[%s9820_s10 + $0x1410] sm:$0xff] }
 0x87f   : > { %7092 = vmatprep.subr.bf16.mxu0 %v4841_v54  ;;  %v5033_v54 = vunpack.c.l.s8.bf16 %v3713_v48 }
 0x881   : > { %6921 = vmatpush1.bf16.msra.mxu1 %v4838_v57  ;;  %v5030_v57 = vunpack.c.l.s8.bf16 %v3710_v52 }
 0x882   : > { %7093 = vmatpush1.bf16.msra.mxu0 %v4840_v58  ;;  %6922 = vmatprep.subr.bf16.mxu1 %v4863_v59  ;;  %v5032_v58 = vunpack.c.l.s8.bf16 %v3712_v56  ;;  %v5055_v59 = vunpack.c.h.s8.bf16 %v3711_v27  ;;  %v3807_v27 = vld [vmem:[%s9820_s10 + $0x14c8] sm:$0xff] }
 0x883   : > { %7094 = vmatprep.subr.bf16.mxu0 %v4865_v60  ;;  %v5057_v60 = vunpack.c.h.s8.bf16 %v3713_v48  ;;  %v9117_v48 = vld [vmem:[%s10194_s25 + $0x8] sm:$0xff] }
 0x885   : > { %6923 = vmatpush1.bf16.msra.mxu1 %v4862_v63  ;;  %v5054_v63 = vunpack.c.h.s8.bf16 %v3710_v52  ;;  %v7571_v52 = vrot.slane %v9117_v48, %v10006_v35 }
 0x886   : > { %7095 = vmatpush1.bf16.msra.mxu0 %v4864_v0  ;;  %6924 = vmatprep.subr.bf16.mxu1 %v4887_v47  ;;  %v5056_v0 = vunpack.c.h.s8.bf16 %v3712_v56  ;;  %v5079_v47 = vunpack.c.l.s8.bf16 %v3735_v61  ;;  %v10720_v56 = vld [vmem:[%s9820_s10 + $0x14c0] sm:$0xff] }
 0x887   : > { %7096 = vmatprep.subr.bf16.mxu0 %v4889_v2  ;;  %v5081_v2 = vunpack.c.l.s8.bf16 %v3737_v62  ;;  %v3808_v62 = vld [vmem:[%s9820_s10 + $0x14d0] sm:$0xff] }
 0x889   : > { %6925 = vmatpush1.bf16.msra.mxu1 %v4886_v4  ;;  %v5078_v4 = vunpack.c.l.s8.bf16 %v3734_v1 }
 0x88a   : > { %7097 = vmatpush1.bf16.msra.mxu0 %v4888_v5  ;;  %6926 = vmatprep.subr.bf16.mxu1 %v4911_v6  ;;  %v5080_v5 = vunpack.c.l.s8.bf16 %v3736_v3  ;;  %v5103_v6 = vunpack.c.h.s8.bf16 %v3735_v61  ;;  %v5223_v61 = vunpack.c.l.s8.bf16 %v3807_v27 }
 0x88b   : > { %7098 = vmatprep.subr.bf16.mxu0 %v4913_v26  ;;  %v3759_v26 = vld [vmem:[%s9820_s10 + $0x1348] sm:$0xff] }
 0x88d   : > { %6927 = vmatpush1.bf16.msra.mxu1 %v4910_v9  ;;  %v5102_v9 = vunpack.c.h.s8.bf16 %v3734_v1 }
 0x88e   : > { %7099 = vmatpush1.bf16.msra.mxu0 %v4912_v10  ;;  %6928 = vmatprep.subr.bf16.mxu1 %v4935_v11  ;;  %v5104_v10 = vunpack.c.h.s8.bf16 %v3736_v3  ;;  %v5127_v11 = vunpack.c.l.s8.bf16 %v3759_v26 }
 0x88f   : > { %7100 = vmatprep.subr.bf16.mxu0 %v4937_v13  ;;  %v5129_v13 = vunpack.c.l.s8.bf16 %v3761_v8 }
 0x891   : > { %6929 = vmatpush1.bf16.msra.mxu1 %v4934_v18  ;;  %v5126_v18 = vunpack.c.l.s8.bf16 %v3758_v12 }
 0x892   : > { %7101 = vmatpush1.bf16.msra.mxu0 %v4936_v19  ;;  %6930 = vmatprep.subr.bf16.mxu1 %v4959_v20  ;;  %v5128_v19 = vunpack.c.l.s8.bf16 %v3760_v14  ;;  %v5151_v20 = vunpack.c.h.s8.bf16 %v3759_v26 }
 0x893   : > { %7102 = vmatprep.subr.bf16.mxu0 %v4961_v22  ;;  %v5153_v22 = vunpack.c.h.s8.bf16 %v3761_v8 }
 0x895   : > { %6931 = vmatpush1.bf16.msra.mxu1 %v4958_v32  ;;  %v5150_v32 = vunpack.c.h.s8.bf16 %v3758_v12 }
 0x896   : > { %7103 = vmatpush1.bf16.msra.mxu0 %v4960_v36  ;;  %6932 = vmatprep.subr.bf16.mxu1 %v4983_v39  ;;  %v5152_v36 = vunpack.c.h.s8.bf16 %v3760_v14  ;;  %v5175_v39 = vunpack.c.l.s8.bf16 %v3783_v23 }
 0x897   : > { %7104 = vmatprep.subr.bf16.mxu0 %v4985_v41  ;;  %v5177_v41 = vunpack.c.l.s8.bf16 %v3785_v29 }
 0x899   : > { %6933 = vmatpush1.bf16.msra.mxu1 %v4982_v43  ;;  %v5174_v43 = vunpack.c.l.s8.bf16 %v3782_v40 }
 0x89a   : > { %7105 = vmatpush1.bf16.msra.mxu0 %v4984_v44  ;;  %6934 = vmatprep.subr.bf16.mxu1 %v5007_v45  ;;  %v5176_v44 = vunpack.c.l.s8.bf16 %v3784_v42  ;;  %v5199_v45 = vunpack.c.h.s8.bf16 %v3783_v23 }
 0x89b   : > { %7106 = vmatprep.subr.bf16.mxu0 %v5009_v46  ;;  %v5201_v46 = vunpack.c.h.s8.bf16 %v3785_v29 }
 0x89d   : > { %6935 = vmatpush1.bf16.msra.mxu1 %v5006_v49  ;;  %v7567_v49 = vrot.slane %v9117_v48, %v10000_v33 }
 0x89e   : > { %7107 = vmatpush1.bf16.msra.mxu0 %v5008_v50  ;;  %6936 = vmatprep.subr.bf16.mxu1 %v5031_v51  ;;  %v10715_v50 = vld [vmem:[%s9820_s10 + $0x14d8] sm:$0xff]  ;;  %v7575_v51 = vrot.slane %v9117_v48, %v10003_v34 }
 0x89f   : > { %7108 = vmatprep.subr.bf16.mxu0 %v5033_v54  ;;  %v5198_v54 = vunpack.c.h.s8.bf16 %v3782_v40  ;;  %v5225_v1 = vunpack.c.l.s8.bf16 %v10715_v50 }
 0x8a1   : > { %6937 = vmatpush1.bf16.msra.mxu1 %v5030_v57  ;;  %v9118_v57 = vld [vmem:[%s10197_s16 + $0x8] sm:$0xff] }
 0x8a2   : > { %7109 = vmatpush1.bf16.msra.mxu0 %v5032_v58  ;;  %6938 = vmatprep.subr.bf16.mxu1 %v5055_v59  ;;  %v7741_v58 = vrot.slane %v9118_v57, %v10000_v33  ;;  %v7579_v59 = vrot.slane %v9117_v48, %v10011_v38 }
 0x8a3   : > { %7110 = vmatprep.subr.bf16.mxu0 %v5057_v60  ;;  %v5200_v60 = vunpack.c.h.s8.bf16 %v3784_v42 }
 0x8a5   : > { %6939 = vmatpush1.bf16.msra.mxu1 %v5054_v63 }
 0x8a6   : > { %7111 = vmatpush1.bf16.msra.mxu0 %v5056_v0  ;;  %6951 = vmatprep.subr.bf16.mxu1 %v5079_v47  ;;  %v7749_v0 = vrot.slane %v9118_v57, %v10003_v34  ;;  %v7745_v47 = vrot.slane %v9118_v57, %v10006_v35 }
 0x8a7   : > { %7123 = vmatprep.subr.bf16.mxu0 %v5081_v2 }
 0x8a8   : > { %6941 = vmatmul.mubr.bf16.vlgmr.msra.gmra.mrb[28].mxu1 %v10027_v24 }
 0x8a9   : > { %7113 = vmatmul.mubr.bf16.vlgmr.msra.gmra.mrb[32].mxu0 %v10027_v24  ;;  %6952 = vmatpush1.bf16.msra.mxu1 %v5078_v4 }
 0x8aa   : > { %6983 = vmatprep.mubr.bf16.mxu1 %v10033_v37  ;;  %7124 = vmatpush1.bf16.msra.mxu0 %v5080_v5  ;;  %v7753_v5 = vrot.slane %v9118_v57, %v10011_v38 }
 0x8ab   : > { %7155 = vmatprep.mubr.bf16.mxu0 %v10033_v37  ;;  %6953 = vmatprep.subr.bf16.mxu1 %v5103_v6  ;;  %v5222_v6 = vunpack.c.l.s8.bf16 %v10720_v56 }
 0x8ac   : > { %7125 = vmatprep.subr.bf16.mxu0 %v5105_v7 }
 0x8ad   : > { %6954 = vmatpush1.bf16.msra.mxu1 %v5102_v9 }
 0x8ae   : > { %7126 = vmatpush1.bf16.msra.mxu0 %v5104_v10  ;;  %6955 = vmatprep.subr.bf16.mxu1 %v5127_v11  ;;  %v5224_v10 = vunpack.c.l.s8.bf16 %v3808_v62  ;;  %v5247_v11 = vunpack.c.h.s8.bf16 %v3807_v27  ;;  %v5248_v27 = vunpack.c.h.s8.bf16 %v3808_v62 }
 0x8af   : > { %7127 = vmatprep.subr.bf16.mxu0 %v5129_v13 }
 0x8b1   : > { %6956 = vmatpush1.bf16.msra.mxu1 %v5126_v18 }
 0x8b2   : > { %7128 = vmatpush1.bf16.msra.mxu0 %v5128_v19  ;;  %6957 = vmatprep.subr.bf16.mxu1 %v5151_v20  ;;  %v5249_v20 = vunpack.c.h.s8.bf16 %v10715_v50 }
 0x8b3   : > { %7129 = vmatprep.subr.bf16.mxu0 %v5153_v22 }
 0x8b5   : > { %6958 = vmatpush1.bf16.msra.mxu1 %v5150_v32 }
 0x8b6   : > { %7130 = vmatpush1.bf16.msra.mxu0 %v5152_v36  ;;  %6959 = vmatprep.subr.bf16.mxu1 %v5175_v39  ;;  %v3831_v39 = vld [vmem:[%s9820_s10 + $0x1588] sm:$0xff] }
 0x8b7   : > { %7131 = vmatprep.subr.bf16.mxu0 %v5177_v41  ;;  %v5271_v48 = vunpack.c.l.s8.bf16 %v3831_v39  ;;  %v5295_v57 = vunpack.c.h.s8.bf16 %v3831_v39 }
 0x8b9   : > { %6960 = vmatpush1.bf16.msra.mxu1 %v5174_v43  ;;  %v3833_v43 = vld [vmem:[%s9820_s10 + $0x1598] sm:$0xff] }
 0x8ba   : > { %7132 = vmatpush1.bf16.msra.mxu0 %v5176_v44  ;;  %6961 = vmatprep.subr.bf16.mxu1 %v5199_v45  ;;  %v5246_v45 = vunpack.c.h.s8.bf16 %v10720_v56 }
 0x8bb   : > { %v6641_v63 = vpop.f32.mrb[24].mxu1  ;;  %7133 = vmatprep.subr.bf16.mxu0 %v5201_v46 }
 0x8bc   : > { %v7648_v2 = vmul.f32 %v7567_v49, %v6641_v63  ;;  %v6813_v3 = vpop.f32.mrb[28].mxu0  ;;  %v6643_v4 = vpop.f32.mrb[25].mxu1 }
 0x8bd   : > { %v7650_v26 = vmul.f32 %v7575_v51, %v6813_v3  ;;  %v7649_v7 = vmul.f32 %v7571_v52, %v6643_v4  ;;  %v6815_v8 = vpop.f32.mrb[29].mxu0  ;;  %v6645_v9 = vpop.f32.mrb[26].mxu1  ;;  %6962 = vmatpush1.bf16.msra.mxu1 %v5198_v54  ;;  %v3856_v3 = vld [vmem:[%s9820_s10 + $0x1650] sm:$0xff] }
 0x8be   : > { %v7822_v12 = vadd.f32 %v7741_v58, %v7648_v2  ;;  %v7651_v13 = vmul.f32 %v7579_v59, %v6815_v8  ;;  %v7672_v14 = vmul.f32 %v7567_v49, %v6645_v9  ;;  %v6817_v18 = vpop.f32.mrb[30].mxu0  ;;  %7134 = vmatpush1.bf16.msra.mxu0 %v5200_v60  ;;  %v6647_v19 = vpop.f32.mrb[27].mxu1  ;;  %6963 = vmatprep.subr.bf16.mxu1 %v5223_v61  ;;  %v3830_v49 = vld [vmem:[%s9820_s10 + $0x1580] sm:$0xff]  ;;  %v3857_v60 = vld [vmem:[%s9820_s10 + $0x1658] sm:$0xff] }
 0x8bf   : > { %v7824_v22 = vadd.f32 %v7749_v0, %v7650_v26  ;;  %v7823_v23 = vadd.f32 %v7745_v47, %v7649_v7  ;;  %v7674_v29 = vmul.f32 %v7575_v51, %v6817_v18  ;;  %v7673_v32 = vmul.f32 %v7571_v52, %v6647_v19  ;;  %v6819_v36 = vpop.f32.mrb[31].mxu0  ;;  %7135 = vmatprep.subr.bf16.mxu0 %v5225_v1  ;;  %v3832_v52 = vld [vmem:[%s9820_s10 + $0x1590] sm:$0xff] }
 0x8c0   : > { %9067 = vtanh.f32 %v7822_v12  ;;  %v7825_v40 = vadd.f32 %v7753_v5, %v7651_v13  ;;  %v7846_v41 = vadd.f32 %v7741_v58, %v7672_v14  ;;  %v7675_v42 = vmul.f32 %v7579_v59, %v6819_v36  ;;  %v3855_v59 = vld [vmem:[%s9820_s10 + $0x1648] sm:$0xff]  ;;  %v3881_v13 = vld [vmem:[%s9820_s10 + $0x1718] sm:$0xff] }
 0x8c1   : > { %9069 = vtanh.f32 %v7824_v22  ;;  %v7848_v44 = vadd.f32 %v7749_v0, %v7674_v29  ;;  %6964 = vmatpush1.bf16.msra.mxu1 %v5222_v6  ;;  %v7847_v46 = vadd.f32 %v7745_v47, %v7673_v32  ;;  %v5273_v51 = vunpack.c.l.s8.bf16 %v3833_v43  ;;  %v3854_v47 = vld [vmem:[%s9820_s10 + $0x1640] sm:$0xff]  ;;  %v3880_v29 = vld [vmem:[%s9820_s10 + $0x1710] sm:$0xff] }
 0x8c2   : > { %9071 = vtanh.f32 %v7823_v23  ;;  %7136 = vmatpush1.bf16.msra.mxu0 %v5224_v10  ;;  %6965 = vmatprep.subr.bf16.mxu1 %v5247_v11  ;;  %v7849_v50 = vadd.f32 %v7753_v5, %v7675_v42  ;;  %v5270_v54 = vunpack.c.l.s8.bf16 %v3830_v49  ;;  %v5272_v56 = vunpack.c.l.s8.bf16 %v3832_v52  ;;  %v3879_v11 = vld [vmem:[%s9820_s10 + $0x1708] sm:$0xff]  ;;  %v3878_v22 = vld [vmem:[%s9820_s10 + $0x1700] sm:$0xff]  ;;  %v3905_v42 = vld [vmem:[%s9820_s10 + $0x17d8] sm:$0xff] }
 0x8c3   : > { %9073 = vtanh.f32 %v7825_v40  ;;  %7137 = vmatprep.subr.bf16.mxu0 %v5249_v20  ;;  %v5297_v58 = vunpack.c.h.s8.bf16 %v3833_v43  ;;  %v5294_v61 = vunpack.c.h.s8.bf16 %v3830_v49  ;;  %v5296_v63 = vunpack.c.h.s8.bf16 %v3832_v52 }
 0x8c4   : > { %9075 = vtanh.f32 %v7846_v41  ;;  %v5319_v0 = vunpack.c.l.s8.bf16 %v3855_v59  ;;  %v5321_v2 = vunpack.c.l.s8.bf16 %v3857_v60  ;;  %v5318_v6 = vunpack.c.l.s8.bf16 %v3854_v47  ;;  %v3903_v41 = vld [vmem:[%s9820_s10 + $0x17c8] sm:$0xff] }
 0x8c5   : > { %9077 = vtanh.f32 %v7848_v44  ;;  %6966 = vmatpush1.bf16.msra.mxu1 %v5246_v45  ;;  %v5320_v7 = vunpack.c.l.s8.bf16 %v3856_v3  ;;  %v5343_v8 = vunpack.c.h.s8.bf16 %v3855_v59  ;;  %v5345_v10 = vunpack.c.h.s8.bf16 %v3857_v60  ;;  %v3162_v60 = vld [vmem:[%s9820_s10 + $0xa0] sm:$0xff] }
 0x8c6   : > { %9079 = vtanh.f32 %v7847_v46  ;;  %7138 = vmatpush1.bf16.msra.mxu0 %v5248_v27  ;;  %6967 = vmatprep.subr.bf16.mxu1 %v5271_v48  ;;  %v5342_v18 = vunpack.c.h.s8.bf16 %v3854_v47  ;;  %v5344_v19 = vunpack.c.h.s8.bf16 %v3856_v3  ;;  %v5367_v20 = vunpack.c.l.s8.bf16 %v3879_v11  ;;  %v3902_v46 = vld [vmem:[%s9820_s10 + $0x17c0] sm:$0xff]  ;;  %v3904_v48 = vld [vmem:[%s9820_s10 + $0x17d0] sm:$0xff]  ;;  %v3189_v3 = vld [vmem:[%s9820_s10 + $0x178] sm:$0xff] }
 0x8c7   : > { %9081 = vtanh.f32 %v7849_v50  ;;  %7139 = vmatprep.subr.bf16.mxu0 %v5273_v51  ;;  %v5369_v23 = vunpack.c.l.s8.bf16 %v3881_v13  ;;  %v5366_v32 = vunpack.c.l.s8.bf16 %v3878_v22  ;;  %v5368_v36 = vunpack.c.l.s8.bf16 %v3880_v29 }
 0x8c8   : > { %v5391_v39 = vunpack.c.h.s8.bf16 %v3879_v11  ;;  %v5393_v40 = vunpack.c.h.s8.bf16 %v3881_v13  ;;  %v5390_v43 = vunpack.c.h.s8.bf16 %v3878_v22  ;;  %v5392_v44 = vunpack.c.h.s8.bf16 %v3880_v29  ;;  %v3211_v13 = vld [vmem:[%s9820_s10 + $0x228] sm:$0xff] }
 0x8c9   : > { %6968 = vmatpush1.bf16.msra.mxu1 %v5270_v54  ;;  %v5415_v45 = vunpack.c.l.s8.bf16 %v3903_v41  ;;  %v5417_v27 = vunpack.c.l.s8.bf16 %v3905_v42  ;;  %v5414_v49 = vunpack.c.l.s8.bf16 %v3902_v46  ;;  %v5416_v50 = vunpack.c.l.s8.bf16 %v3904_v48  ;;  %v3163_v54 = vld [vmem:[%s9820_s10 + $0xa8] sm:$0xff] }
 0x8ca   : > { %v9068_v62 = vpop.eup %9067  ;;  %7140 = vmatpush1.bf16.msra.mxu0 %v5272_v56  ;;  %6969 = vmatprep.subr.bf16.mxu1 %v5295_v57  ;;  %v5439_v51 = vunpack.c.h.s8.bf16 %v3903_v41  ;;  %v5441_v52 = vunpack.c.h.s8.bf16 %v3905_v42  ;;  %v3165_v56 = vld [vmem:[%s9820_s10 + $0xb8] sm:$0xff]  ;;  %v5438_v57 = vunpack.c.h.s8.bf16 %v3902_v46  ;;  %v3931_v59 = vunpack.c.l.s8.bf16 %v3163_v54 }
 0x8cb   : > { %v9070_v1 = vpop.eup %9069  ;;  %7918 = vst [vmem:[%s10228_s30 + $0x60] sm:$0xff] %v9068_v62  ;;  %7141 = vmatprep.subr.bf16.mxu0 %v5297_v58  ;;  %v5440_v58 = vunpack.c.h.s8.bf16 %v3904_v48  ;;  %v3164_v62 = vld [vmem:[%s9820_s10 + $0xb0] sm:$0xff]  ;;  %v3955_v47 = vunpack.c.h.s8.bf16 %v3163_v54  ;;  %v3237_v41 = vld [vmem:[%s9820_s10 + $0x2f8] sm:$0xff] }
 0x8cc   : > { %v9072_v4 = vpop.eup %9071  ;;  %7920 = vst [vmem:[%s10228_s30 + $0x70] sm:$0xff] %v9070_v1  ;;  %v3187_v1 = vld [vmem:[%s9820_s10 + $0x168] sm:$0xff]  ;;  %v4077_v46 = vunpack.c.l.s8.bf16 %v3237_v41  ;;  %v3261_v54 = vld [vmem:[%s9820_s10 + $0x3b8] sm:$0xff] }
 0x8cd   : > { %v9074_v5 = vpop.eup %9073  ;;  %7919 = vst [vmem:[%s10228_s30 + $0x68] sm:$0xff] %v9072_v4  ;;  %6970 = vmatpush1.bf16.msra.mxu1 %v5294_v61  ;;  %v3933_v61 = vunpack.c.l.s8.bf16 %v3165_v56  ;;  %v3954_v4 = vunpack.c.h.s8.bf16 %v3162_v60  ;;  %v4003_v11 = vunpack.c.h.s8.bf16 %v3187_v1 }
 0x8ce   : > { %v9076_v26 = vpop.eup %9075  ;;  %7921 = vst [vmem:[%s10228_s30 + $0x78] sm:$0xff] %v9074_v5  ;;  %7142 = vmatpush1.bf16.msra.mxu0 %v5296_v63  ;;  %6971 = vmatprep.subr.bf16.mxu1 %v5319_v0  ;;  %v3930_v63 = vunpack.c.l.s8.bf16 %v3162_v60  ;;  %v3932_v0 = vunpack.c.l.s8.bf16 %v3164_v62  ;;  %v3956_v5 = vunpack.c.h.s8.bf16 %v3164_v62  ;;  %v4125_v60 = vunpack.c.l.s8.bf16 %v3261_v54 }
 0x8cf   : > { %v9078_v9 = vpop.eup %9077  ;;  %7942 = vst [vmem:[%s10228_s30 + $0x120] sm:$0xff] %v9076_v26  ;;  %7143 = vmatprep.subr.bf16.mxu0 %v5321_v2  ;;  %v3957_v2 = vunpack.c.h.s8.bf16 %v3165_v56  ;;  %v3186_v26 = vld [vmem:[%s9820_s10 + $0x160] sm:$0xff] }
 0x8d0   : > { %v9080_v12 = vpop.eup %9079  ;;  %7944 = vst [vmem:[%s10228_s30 + $0x130] sm:$0xff] %v9078_v9  ;;  %v3978_v9 = vunpack.c.l.s8.bf16 %v3186_v26 }
 0x8d1   : > { %v9082_v14 = vpop.eup %9081  ;;  %7943 = vst [vmem:[%s10228_s30 + $0x128] sm:$0xff] %v9080_v12  ;;  %6972 = vmatpush1.bf16.msra.mxu1 %v5318_v6  ;;  %v3979_v6 = vunpack.c.l.s8.bf16 %v3187_v1  ;;  %v4005_v12 = vunpack.c.h.s8.bf16 %v3189_v3  ;;  %v3283_v1 = vld [vmem:[%s9820_s10 + $0x468] sm:$0xff] }
 0x8d2   : > { %7945 = vst [vmem:[%s10228_s30 + $0x138] sm:$0xff] %v9082_v14  ;;  %7144 = vmatpush1.bf16.msra.mxu0 %v5320_v7  ;;  %6973 = vmatprep.subr.bf16.mxu1 %v5343_v8  ;;  %v3981_v7 = vunpack.c.l.s8.bf16 %v3189_v3  ;;  %v3188_v8 = vld [vmem:[%s9820_s10 + $0x170] sm:$0xff]  ;;  %v3213_v14 = vld [vmem:[%s9820_s10 + $0x238] sm:$0xff] }
 0x8d3   : > { %7145 = vmatprep.subr.bf16.mxu0 %v5345_v10  ;;  %v3980_v10 = vunpack.c.l.s8.bf16 %v3188_v8  ;;  %v4029_v22 = vunpack.c.l.s8.bf16 %v3213_v14 }
 0x8d5   : > { %6974 = vmatpush1.bf16.msra.mxu1 %v5342_v18  ;;  %v4002_v18 = vunpack.c.h.s8.bf16 %v3186_v26 }
 0x8d6   : > { %7146 = vmatpush1.bf16.msra.mxu0 %v5344_v19  ;;  %6975 = vmatprep.subr.bf16.mxu1 %v5367_v20  ;;  %v4027_v19 = vunpack.c.l.s8.bf16 %v3211_v13  ;;  %v3210_v20 = vld [vmem:[%s9820_s10 + $0x220] sm:$0xff] }
 0x8d7   : > { %7147 = vmatprep.subr.bf16.mxu0 %v5369_v23  ;;  %v3212_v23 = vld [vmem:[%s9820_s10 + $0x230] sm:$0xff]  ;;  %v4026_v29 = vunpack.c.l.s8.bf16 %v3210_v20  ;;  %v4050_v42 = vunpack.c.h.s8.bf16 %v3210_v20 }
 0x8d9   : > { %6976 = vmatpush1.bf16.msra.mxu1 %v5366_v32  ;;  %v4028_v32 = vunpack.c.l.s8.bf16 %v3212_v23 }
 0x8da   : > { %7148 = vmatpush1.bf16.msra.mxu0 %v5368_v36  ;;  %6977 = vmatprep.subr.bf16.mxu1 %v5391_v39  ;;  %v4051_v36 = vunpack.c.h.s8.bf16 %v3211_v13  ;;  %v4053_v39 = vunpack.c.h.s8.bf16 %v3213_v14  ;;  %v3309_v13 = vld [vmem:[%s9820_s10 + $0x538] sm:$0xff] }
 0x8db   : > { %7149 = vmatprep.subr.bf16.mxu0 %v5393_v40  ;;  %v3235_v40 = vld [vmem:[%s9820_s10 + $0x2e8] sm:$0xff]  ;;  %v4221_v20 = vunpack.c.l.s8.bf16 %v3309_v13 }
 0x8dd   : > { %6978 = vmatpush1.bf16.msra.mxu1 %v5390_v43  ;;  %v4052_v43 = vunpack.c.h.s8.bf16 %v3212_v23 }
 0x8de   : > { %7150 = vmatpush1.bf16.msra.mxu0 %v5392_v44  ;;  %6979 = vmatprep.subr.bf16.mxu1 %v5415_v45  ;;  %v4075_v44 = vunpack.c.l.s8.bf16 %v3235_v40  ;;  %v3234_v45 = vld [vmem:[%s9820_s10 + $0x2e0] sm:$0xff] }
 0x8df   : > { %7151 = vmatprep.subr.bf16.mxu0 %v5417_v27  ;;  %v3236_v27 = vld [vmem:[%s9820_s10 + $0x2f0] sm:$0xff]  ;;  %v4074_v48 = vunpack.c.l.s8.bf16 %v3234_v45  ;;  %v4098_v56 = vunpack.c.h.s8.bf16 %v3234_v45 }
 0x8e1   : > { %6980 = vmatpush1.bf16.msra.mxu1 %v5414_v49  ;;  %v4076_v49 = vunpack.c.l.s8.bf16 %v3236_v27 }
 0x8e2   : > { %7152 = vmatpush1.bf16.msra.mxu0 %v5416_v50  ;;  %6981 = vmatprep.subr.bf16.mxu1 %v5439_v51  ;;  %v4099_v50 = vunpack.c.h.s8.bf16 %v3235_v40  ;;  %v4101_v51 = vunpack.c.h.s8.bf16 %v3237_v41  ;;  %v3333_v40 = vld [vmem:[%s9820_s10 + $0x5f8] sm:$0xff] }
 0x8e3   : > { %7153 = vmatprep.subr.bf16.mxu0 %v5441_v52  ;;  %v3259_v52 = vld [vmem:[%s9820_s10 + $0x3a8] sm:$0xff]  ;;  %v4269_v45 = vunpack.c.l.s8.bf16 %v3333_v40 }
 0x8e5   : > { %6982 = vmatpush1.bf16.msra.mxu1 %v5438_v57  ;;  %v4100_v57 = vunpack.c.h.s8.bf16 %v3236_v27 }
 0x8e6   : > { %7154 = vmatpush1.bf16.msra.mxu0 %v5440_v58  ;;  %7166 = vmatprep.subr.bf16.mxu1 %v3931_v59  ;;  %v4123_v58 = vunpack.c.l.s8.bf16 %v3259_v52  ;;  %v3258_v59 = vld [vmem:[%s9820_s10 + $0x3a0] sm:$0xff] }
 0x8e7   : > { %7338 = vmatprep.subr.bf16.mxu0 %v3933_v61  ;;  %v3260_v61 = vld [vmem:[%s9820_s10 + $0x3b0] sm:$0xff]  ;;  %v4122_v62 = vunpack.c.l.s8.bf16 %v3258_v59  ;;  %v4146_v3 = vunpack.c.h.s8.bf16 %v3258_v59 }
 0x8e8   : > { %6984 = vmatmul.mubr.bf16.vlgmr.msra.gmra.mrb[28].mxu1 %v10029_v25 }
 0x8e9   : > { %7156 = vmatmul.mubr.bf16.vlgmr.msra.gmra.mrb[32].mxu0 %v10029_v25  ;;  %7167 = vmatpush1.bf16.msra.mxu1 %v3930_v63  ;;  %v4124_v63 = vunpack.c.l.s8.bf16 %v3260_v61 }
 0x8ea   : > { %7198 = vmatprep.mubr.bf16.mxu1 %v9929_v21  ;;  %7339 = vmatpush1.bf16.msra.mxu0 %v3932_v0  ;;  %v4147_v0 = vunpack.c.h.s8.bf16 %v3259_v52  ;;  %v3357_v52 = vld [vmem:[%s9820_s10 + $0x6b8] sm:$0xff] }
 0x8eb   : > { %7370 = vmatprep.mubr.bf16.mxu0 %v9929_v21  ;;  %7168 = vmatprep.subr.bf16.mxu1 %v3955_v47  ;;  %v4004_v21 = vunpack.c.h.s8.bf16 %v3188_v8  ;;  %v4149_v47 = vunpack.c.h.s8.bf16 %v3261_v54  ;;  %v4317_v59 = vunpack.c.l.s8.bf16 %v3357_v52 }
 0x8ec   : > { %7340 = vmatprep.subr.bf16.mxu0 %v3957_v2  ;;  %v3285_v2 = vld [vmem:[%s9820_s10 + $0x478] sm:$0xff] }
 0x8ed   : > { %7169 = vmatpush1.bf16.msra.mxu1 %v3954_v4  ;;  %v4148_v4 = vunpack.c.h.s8.bf16 %v3260_v61  ;;  %v4173_v26 = vunpack.c.l.s8.bf16 %v3285_v2 }
 0x8ee   : > { %7341 = vmatpush1.bf16.msra.mxu0 %v3956_v5  ;;  %7170 = vmatprep.subr.bf16.mxu1 %v3979_v6  ;;  %v4171_v5 = vunpack.c.l.s8.bf16 %v3283_v1  ;;  %v3282_v6 = vld [vmem:[%s9820_s10 + $0x460] sm:$0xff] }
 0x8ef   : > { %7342 = vmatprep.subr.bf16.mxu0 %v3981_v7  ;;  %v3284_v7 = vld [vmem:[%s9820_s10 + $0x470] sm:$0xff]  ;;  %v4170_v8 = vunpack.c.l.s8.bf16 %v3282_v6  ;;  %v4194_v14 = vunpack.c.h.s8.bf16 %v3282_v6 }
 0x8f1   : > { %7171 = vmatpush1.bf16.msra.mxu1 %v3978_v9  ;;  %v4172_v9 = vunpack.c.l.s8.bf16 %v3284_v7 }
 0x8f2   : > { %7343 = vmatpush1.bf16.msra.mxu0 %v3980_v10  ;;  %7172 = vmatprep.subr.bf16.mxu1 %v4003_v11  ;;  %v4195_v10 = vunpack.c.h.s8.bf16 %v3283_v1  ;;  %v4197_v11 = vunpack.c.h.s8.bf16 %v3285_v2  ;;  %v3381_v1 = vld [vmem:[%s9820_s10 + $0x778] sm:$0xff] }
 0x8f3   : > { %7344 = vmatprep.subr.bf16.mxu0 %v4005_v12  ;;  %v3307_v12 = vld [vmem:[%s9820_s10 + $0x528] sm:$0xff]  ;;  %v4365_v6 = vunpack.c.l.s8.bf16 %v3381_v1 }
 0x8f5   : > { %7173 = vmatpush1.bf16.msra.mxu1 %v4002_v18  ;;  %v4196_v18 = vunpack.c.h.s8.bf16 %v3284_v7 }
 0x8f6   : > { %7345 = vmatpush1.bf16.msra.mxu0 %v4004_v21  ;;  %7174 = vmatprep.subr.bf16.mxu1 %v4027_v19  ;;  %v4219_v21 = vunpack.c.l.s8.bf16 %v3307_v12  ;;  %v3306_v19 = vld [vmem:[%s9820_s10 + $0x520] sm:$0xff] }
 0x8f7   : > { %7346 = vmatprep.subr.bf16.mxu0 %v4029_v22  ;;  %v3308_v22 = vld [vmem:[%s9820_s10 + $0x530] sm:$0xff]  ;;  %v4218_v23 = vunpack.c.l.s8.bf16 %v3306_v19  ;;  %v4242_v41 = vunpack.c.h.s8.bf16 %v3306_v19 }
 0x8f9   : > { %7175 = vmatpush1.bf16.msra.mxu1 %v4026_v29  ;;  %v4220_v29 = vunpack.c.l.s8.bf16 %v3308_v22 }
 0x8fa   : > { %7347 = vmatpush1.bf16.msra.mxu0 %v4028_v32  ;;  %7176 = vmatprep.subr.bf16.mxu1 %v4051_v36  ;;  %v4243_v32 = vunpack.c.h.s8.bf16 %v3307_v12  ;;  %v4245_v36 = vunpack.c.h.s8.bf16 %v3309_v13 }
 0x8fb   : > { %7348 = vmatprep.subr.bf16.mxu0 %v4053_v39  ;;  %v3331_v39 = vld [vmem:[%s9820_s10 + $0x5e8] sm:$0xff] }
 0x8fd   : > { %7177 = vmatpush1.bf16.msra.mxu1 %v4050_v42  ;;  %v4244_v42 = vunpack.c.h.s8.bf16 %v3308_v22 }
 0x8fe   : > { %7349 = vmatpush1.bf16.msra.mxu0 %v4052_v43  ;;  %7178 = vmatprep.subr.bf16.mxu1 %v4075_v44  ;;  %v4267_v43 = vunpack.c.l.s8.bf16 %v3331_v39  ;;  %v3330_v44 = vld [vmem:[%s9820_s10 + $0x5e0] sm:$0xff] }
 0x8ff   : > { %7350 = vmatprep.subr.bf16.mxu0 %v4077_v46  ;;  %v3332_v46 = vld [vmem:[%s9820_s10 + $0x5f0] sm:$0xff]  ;;  %v4266_v27 = vunpack.c.l.s8.bf16 %v3330_v44  ;;  %v4290_v54 = vunpack.c.h.s8.bf16 %v3330_v44 }
 0x901   : > { %7179 = vmatpush1.bf16.msra.mxu1 %v4074_v48  ;;  %v4268_v48 = vunpack.c.l.s8.bf16 %v3332_v46 }
 0x902   : > { %7351 = vmatpush1.bf16.msra.mxu0 %v4076_v49  ;;  %7180 = vmatprep.subr.bf16.mxu1 %v4099_v50  ;;  %v4291_v49 = vunpack.c.h.s8.bf16 %v3331_v39  ;;  %v4293_v50 = vunpack.c.h.s8.bf16 %v3333_v40 }
 0x903   : > { %7352 = vmatprep.subr.bf16.mxu0 %v4101_v51  ;;  %v3355_v51 = vld [vmem:[%s9820_s10 + $0x6a8] sm:$0xff] }
 0x905   : > { %7181 = vmatpush1.bf16.msra.mxu1 %v4098_v56  ;;  %v4292_v56 = vunpack.c.h.s8.bf16 %v3332_v46 }
 0x906   : > { %7353 = vmatpush1.bf16.msra.mxu0 %v4100_v57  ;;  %7182 = vmatprep.subr.bf16.mxu1 %v4123_v58  ;;  %v4315_v57 = vunpack.c.l.s8.bf16 %v3355_v51  ;;  %v3354_v58 = vld [vmem:[%s9820_s10 + $0x6a0] sm:$0xff] }
 0x907   : > { %7354 = vmatprep.subr.bf16.mxu0 %v4125_v60  ;;  %v3356_v60 = vld [vmem:[%s9820_s10 + $0x6b0] sm:$0xff]  ;;  %v4314_v61 = vunpack.c.l.s8.bf16 %v3354_v58  ;;  %v4338_v2 = vunpack.c.h.s8.bf16 %v3354_v58 }
 0x909   : > { %7183 = vmatpush1.bf16.msra.mxu1 %v4122_v62  ;;  %v4316_v62 = vunpack.c.l.s8.bf16 %v3356_v60 }
 0x90a   : > { %7355 = vmatpush1.bf16.msra.mxu0 %v4124_v63  ;;  %7184 = vmatprep.subr.bf16.mxu1 %v4147_v0  ;;  %v4339_v63 = vunpack.c.h.s8.bf16 %v3355_v51  ;;  %v3379_v0 = vld [vmem:[%s9820_s10 + $0x768] sm:$0xff] }
 0x90b   : > { %7356 = vmatprep.subr.bf16.mxu0 %v4149_v47  ;;  %v4341_v47 = vunpack.c.h.s8.bf16 %v3357_v52 }
 0x90d   : > { %7185 = vmatpush1.bf16.msra.mxu1 %v4146_v3  ;;  %v4340_v3 = vunpack.c.h.s8.bf16 %v3356_v60 }
 0x90e   : > { %7357 = vmatpush1.bf16.msra.mxu0 %v4148_v4  ;;  %7186 = vmatprep.subr.bf16.mxu1 %v4171_v5  ;;  %v4363_v4 = vunpack.c.l.s8.bf16 %v3379_v0  ;;  %v3378_v5 = vld [vmem:[%s9820_s10 + $0x760] sm:$0xff] }
 0x90f   : > { %7358 = vmatprep.subr.bf16.mxu0 %v4173_v26  ;;  %v3380_v26 = vld [vmem:[%s9820_s10 + $0x770] sm:$0xff]  ;;  %v4362_v7 = vunpack.c.l.s8.bf16 %v3378_v5  ;;  %v4386_v12 = vunpack.c.h.s8.bf16 %v3378_v5 }
 0x911   : > { %7187 = vmatpush1.bf16.msra.mxu1 %v4170_v8  ;;  %v4387_v8 = vunpack.c.h.s8.bf16 %v3379_v0 }
 0x912   : > { %7359 = vmatpush1.bf16.msra.mxu0 %v4172_v9  ;;  %7188 = vmatprep.subr.bf16.mxu1 %v4195_v10  ;;  %v4389_v9 = vunpack.c.h.s8.bf16 %v3381_v1  ;;  %v3403_v10 = vld [vmem:[%s9820_s10 + $0x828] sm:$0xff] }
 0x913   : > { %7360 = vmatprep.subr.bf16.mxu0 %v4197_v11  ;;  %v3405_v11 = vld [vmem:[%s9820_s10 + $0x838] sm:$0xff]  ;;  %v4411_v13 = vunpack.c.l.s8.bf16 %v3403_v10  ;;  %v4435_v22 = vunpack.c.h.s8.bf16 %v3403_v10 }
 0x915   : > { %7189 = vmatpush1.bf16.msra.mxu1 %v4194_v14  ;;  %v3402_v14 = vld [vmem:[%s9820_s10 + $0x820] sm:$0xff] }
 0x916   : > { %7361 = vmatpush1.bf16.msra.mxu0 %v4196_v18  ;;  %7190 = vmatprep.subr.bf16.mxu1 %v4219_v21  ;;  %v4413_v18 = vunpack.c.l.s8.bf16 %v3405_v11  ;;  %v3404_v21 = vld [vmem:[%s9820_s10 + $0x830] sm:$0xff]  ;;  %v4410_v19 = vunpack.c.l.s8.bf16 %v3402_v14 }
 0x917   : > { %7362 = vmatprep.subr.bf16.mxu0 %v4221_v20  ;;  %v4412_v20 = vunpack.c.l.s8.bf16 %v3404_v21  ;;  %v4436_v39 = vunpack.c.h.s8.bf16 %v3404_v21 }
 0x919   : > { %7191 = vmatpush1.bf16.msra.mxu1 %v4218_v23  ;;  %v4437_v23 = vunpack.c.h.s8.bf16 %v3405_v11 }
 0x91a   : > { %7363 = vmatpush1.bf16.msra.mxu0 %v4220_v29  ;;  %7192 = vmatprep.subr.bf16.mxu1 %v4243_v32  ;;  %v3427_v29 = vld [vmem:[%s9820_s10 + $0x8e8] sm:$0xff]  ;;  %v3429_v32 = vld [vmem:[%s9820_s10 + $0x8f8] sm:$0xff] }
 0x91b   : > { %7364 = vmatprep.subr.bf16.mxu0 %v4245_v36  ;;  %v4434_v36 = vunpack.c.h.s8.bf16 %v3402_v14  ;;  %v4459_v40 = vunpack.c.l.s8.bf16 %v3427_v29  ;;  %v4483_v46 = vunpack.c.h.s8.bf16 %v3427_v29 }
 0x91d   : > { %7193 = vmatpush1.bf16.msra.mxu1 %v4242_v41  ;;  %v3426_v41 = vld [vmem:[%s9820_s10 + $0x8e0] sm:$0xff] }
 0x91e   : > { %7365 = vmatpush1.bf16.msra.mxu0 %v4244_v42  ;;  %7194 = vmatprep.subr.bf16.mxu1 %v4267_v43  ;;  %v4461_v42 = vunpack.c.l.s8.bf16 %v3429_v32  ;;  %v3428_v43 = vld [vmem:[%s9820_s10 + $0x8f0] sm:$0xff]  ;;  %v4458_v44 = vunpack.c.l.s8.bf16 %v3426_v41 }
 0x91f   : > { %7366 = vmatprep.subr.bf16.mxu0 %v4269_v45  ;;  %v4460_v45 = vunpack.c.l.s8.bf16 %v3428_v43  ;;  %v4484_v51 = vunpack.c.h.s8.bf16 %v3428_v43 }
 0x921   : > { %7195 = vmatpush1.bf16.msra.mxu1 %v4266_v27  ;;  %v4485_v27 = vunpack.c.h.s8.bf16 %v3429_v32 }
 0x922   : > { %7367 = vmatpush1.bf16.msra.mxu0 %v4268_v48  ;;  %7196 = vmatprep.subr.bf16.mxu1 %v4291_v49  ;;  %v3451_v48 = vld [vmem:[%s9820_s10 + $0x9a8] sm:$0xff]  ;;  %v3453_v49 = vld [vmem:[%s9820_s10 + $0x9b8] sm:$0xff] }
 0x923   : > { %7368 = vmatprep.subr.bf16.mxu0 %v4293_v50  ;;  %v4482_v50 = vunpack.c.h.s8.bf16 %v3426_v41  ;;  %v4507_v52 = vunpack.c.l.s8.bf16 %v3451_v48  ;;  %v4531_v60 = vunpack.c.h.s8.bf16 %v3451_v48 }
 0x925   : > { %7197 = vmatpush1.bf16.msra.mxu1 %v4290_v54  ;;  %v3450_v54 = vld [vmem:[%s9820_s10 + $0x9a0] sm:$0xff] }
 0x926   : > { %7369 = vmatpush1.bf16.msra.mxu0 %v4292_v56  ;;  %7209 = vmatprep.subr.bf16.mxu1 %v4315_v57  ;;  %v4509_v56 = vunpack.c.l.s8.bf16 %v3453_v49  ;;  %v3452_v57 = vld [vmem:[%s9820_s10 + $0x9b0] sm:$0xff]  ;;  %v4506_v58 = vunpack.c.l.s8.bf16 %v3450_v54  ;;  %v4530_v0 = vunpack.c.h.s8.bf16 %v3450_v54 }
 0x927   : > { %7381 = vmatprep.subr.bf16.mxu0 %v4317_v59  ;;  %v4508_v59 = vunpack.c.l.s8.bf16 %v3452_v57 }
 0x928   : > { %7199 = vmatmul.mubr.bf16.vlgmr.msra.gmra.mrb[32].mxu1 %v9925_v15 }
 0x929   : > { %7371 = vmatmul.mubr.bf16.vlgmr.msra.gmra.mrb[36].mxu0 %v9925_v15  ;;  %7210 = vmatpush1.bf16.msra.mxu1 %v4314_v61  ;;  %v4364_v15 = vunpack.c.l.s8.bf16 %v3380_v26  ;;  %v4533_v61 = vunpack.c.h.s8.bf16 %v3453_v49 }
 0x92a   : > { %7241 = vmatprep.mubr.bf16.mxu1 %v9931_v17  ;;  %7382 = vmatpush1.bf16.msra.mxu0 %v4316_v62  ;;  %v3475_v62 = vld [vmem:[%s9820_s10 + $0xa68] sm:$0xff] }
 0x92b   : > { %7413 = vmatprep.mubr.bf16.mxu0 %v9931_v17  ;;  %7211 = vmatprep.subr.bf16.mxu1 %v4339_v63  ;;  %v4388_v17 = vunpack.c.h.s8.bf16 %v3380_v26  ;;  %v3477_v63 = vld [vmem:[%s9820_s10 + $0xa78] sm:$0xff]  ;;  %v4555_v1 = vunpack.c.l.s8.bf16 %v3475_v62  ;;  %v4579_v26 = vunpack.c.h.s8.bf16 %v3475_v62 }
 0x92c   : > { %7383 = vmatprep.subr.bf16.mxu0 %v4341_v47  ;;  %v4532_v47 = vunpack.c.h.s8.bf16 %v3452_v57 }
 0x92d   : > { %7212 = vmatpush1.bf16.msra.mxu1 %v4338_v2  ;;  %v3474_v2 = vld [vmem:[%s9820_s10 + $0xa60] sm:$0xff] }
 0x92e   : > { %7384 = vmatpush1.bf16.msra.mxu0 %v4340_v3  ;;  %7213 = vmatprep.subr.bf16.mxu1 %v4363_v4  ;;  %v4557_v3 = vunpack.c.l.s8.bf16 %v3477_v63  ;;  %v3476_v4 = vld [vmem:[%s9820_s10 + $0xa70] sm:$0xff]  ;;  %v4554_v5 = vunpack.c.l.s8.bf16 %v3474_v2 }
 0x92f   : > { %7385 = vmatprep.subr.bf16.mxu0 %v4365_v6  ;;  %v4556_v6 = vunpack.c.l.s8.bf16 %v3476_v4  ;;  %v4580_v10 = vunpack.c.h.s8.bf16 %v3476_v4 }
 0x931   : > { %7214 = vmatpush1.bf16.msra.mxu1 %v4362_v7  ;;  %v4581_v7 = vunpack.c.h.s8.bf16 %v3477_v63 }
 0x932   : > { %7386 = vmatpush1.bf16.msra.mxu0 %v4364_v15  ;;  %7215 = vmatprep.subr.bf16.mxu1 %v4387_v8  ;;  %v3499_v15 = vld [vmem:[%s9820_s10 + $0xb28] sm:$0xff]  ;;  %v3501_v8 = vld [vmem:[%s9820_s10 + $0xb38] sm:$0xff] }
 0x933   : > { %7387 = vmatprep.subr.bf16.mxu0 %v4389_v9  ;;  %v4578_v9 = vunpack.c.h.s8.bf16 %v3474_v2  ;;  %v4603_v11 = vunpack.c.l.s8.bf16 %v3499_v15  ;;  %v4627_v21 = vunpack.c.h.s8.bf16 %v3499_v15  ;;  %v3594_v15 = vld [vmem:[%s9820_s10 + $0xe20] sm:$0xff] }
 0x935   : > { %7216 = vmatpush1.bf16.msra.mxu1 %v4386_v12  ;;  %v3498_v12 = vld [vmem:[%s9820_s10 + $0xb20] sm:$0xff] }
 0x936   : > { %7388 = vmatpush1.bf16.msra.mxu0 %v4388_v17  ;;  %7217 = vmatprep.subr.bf16.mxu1 %v4411_v13  ;;  %v4605_v17 = vunpack.c.l.s8.bf16 %v3501_v8  ;;  %v3500_v13 = vld [vmem:[%s9820_s10 + $0xb30] sm:$0xff]  ;;  %v4602_v14 = vunpack.c.l.s8.bf16 %v3498_v12 }
 0x937   : > { %7389 = vmatprep.subr.bf16.mxu0 %v4413_v18  ;;  %v4604_v18 = vunpack.c.l.s8.bf16 %v3500_v13  ;;  %v4628_v29 = vunpack.c.h.s8.bf16 %v3500_v13  ;;  %v3619_v13 = vld [vmem:[%s9820_s10 + $0xee8] sm:$0xff] }
 0x939   : > { %7218 = vmatpush1.bf16.msra.mxu1 %v4410_v19  ;;  %v4629_v19 = vunpack.c.h.s8.bf16 %v3501_v8 }
 0x93a   : > { %7390 = vmatpush1.bf16.msra.mxu0 %v4412_v20  ;;  %7219 = vmatprep.subr.bf16.mxu1 %v4435_v22  ;;  %v3523_v20 = vld [vmem:[%s9820_s10 + $0xbe8] sm:$0xff]  ;;  %v3525_v22 = vld [vmem:[%s9820_s10 + $0xbf8] sm:$0xff] }
 0x93b   : > { %7391 = vmatprep.subr.bf16.mxu0 %v4437_v23  ;;  %v4626_v23 = vunpack.c.h.s8.bf16 %v3498_v12  ;;  %v4651_v32 = vunpack.c.l.s8.bf16 %v3523_v20  ;;  %v4675_v43 = vunpack.c.h.s8.bf16 %v3523_v20  ;;  %v3618_v20 = vld [vmem:[%s9820_s10 + $0xee0] sm:$0xff] }
 0x93d   : > { %7220 = vmatpush1.bf16.msra.mxu1 %v4434_v36  ;;  %v3522_v36 = vld [vmem:[%s9820_s10 + $0xbe0] sm:$0xff] }
 0x93e   : > { %7392 = vmatpush1.bf16.msra.mxu0 %v4436_v39  ;;  %7221 = vmatprep.subr.bf16.mxu1 %v4459_v40  ;;  %v4653_v39 = vunpack.c.l.s8.bf16 %v3525_v22  ;;  %v3524_v40 = vld [vmem:[%s9820_s10 + $0xbf0] sm:$0xff]  ;;  %v4650_v41 = vunpack.c.l.s8.bf16 %v3522_v36 }
 0x93f   : > { %7393 = vmatprep.subr.bf16.mxu0 %v4461_v42  ;;  %v4652_v42 = vunpack.c.l.s8.bf16 %v3524_v40  ;;  %v4676_v48 = vunpack.c.h.s8.bf16 %v3524_v40  ;;  %v3643_v40 = vld [vmem:[%s9820_s10 + $0xfa8] sm:$0xff] }
 0x941   : > { %7222 = vmatpush1.bf16.msra.mxu1 %v4458_v44  ;;  %v4677_v44 = vunpack.c.h.s8.bf16 %v3525_v22 }
 0x942   : > { %7394 = vmatpush1.bf16.msra.mxu0 %v4460_v45  ;;  %7223 = vmatprep.subr.bf16.mxu1 %v4483_v46  ;;  %v3547_v45 = vld [vmem:[%s9820_s10 + $0xca8] sm:$0xff]  ;;  %v3549_v46 = vld [vmem:[%s9820_s10 + $0xcb8] sm:$0xff] }
 0x943   : > { %7395 = vmatprep.subr.bf16.mxu0 %v4485_v27  ;;  %v4674_v27 = vunpack.c.h.s8.bf16 %v3522_v36  ;;  %v4699_v49 = vunpack.c.l.s8.bf16 %v3547_v45  ;;  %v4723_v57 = vunpack.c.h.s8.bf16 %v3547_v45  ;;  %v4867_v36 = vunpack.c.h.s8.bf16 %v3619_v13  ;;  %v3642_v45 = vld [vmem:[%s9820_s10 + $0xfa0] sm:$0xff] }
 0x945   : > { %7224 = vmatpush1.bf16.msra.mxu1 %v4482_v50  ;;  %v3546_v50 = vld [vmem:[%s9820_s10 + $0xca0] sm:$0xff] }
 0x946   : > { %7396 = vmatpush1.bf16.msra.mxu0 %v4484_v51  ;;  %7225 = vmatprep.subr.bf16.mxu1 %v4507_v52  ;;  %v4701_v51 = vunpack.c.l.s8.bf16 %v3549_v46  ;;  %v3548_v52 = vld [vmem:[%s9820_s10 + $0xcb0] sm:$0xff]  ;;  %v4698_v54 = vunpack.c.l.s8.bf16 %v3546_v50 }
 0x947   : > { %7397 = vmatprep.subr.bf16.mxu0 %v4509_v56  ;;  %v4700_v56 = vunpack.c.l.s8.bf16 %v3548_v52  ;;  %v4724_v62 = vunpack.c.h.s8.bf16 %v3548_v52  ;;  %v3667_v52 = vld [vmem:[%s9820_s10 + $0x1068] sm:$0xff] }
 0x949   : > { %7226 = vmatpush1.bf16.msra.mxu1 %v4506_v58  ;;  %v3571_v58 = vld [vmem:[%s9820_s10 + $0xd68] sm:$0xff] }
 0x94a   : > { %7398 = vmatpush1.bf16.msra.mxu0 %v4508_v59  ;;  %7227 = vmatprep.subr.bf16.mxu1 %v4531_v60  ;;  %v4725_v59 = vunpack.c.h.s8.bf16 %v3549_v46  ;;  %v3573_v60 = vld [vmem:[%s9820_s10 + $0xd78] sm:$0xff]  ;;  %v4747_v63 = vunpack.c.l.s8.bf16 %v3571_v58 }
 0x94b   : > { %7399 = vmatprep.subr.bf16.mxu0 %v4533_v61  ;;  %v4722_v61 = vunpack.c.h.s8.bf16 %v3546_v50  ;;  %v4773_v4 = vunpack.c.h.s8.bf16 %v3573_v60  ;;  %v4915_v50 = vunpack.c.h.s8.bf16 %v3643_v40 }
 0x94d   : > { %7228 = vmatpush1.bf16.msra.mxu1 %v4530_v0  ;;  %v3570_v0 = vld [vmem:[%s9820_s10 + $0xd60] sm:$0xff] }
 0x94e   : > { %7400 = vmatpush1.bf16.msra.mxu0 %v4532_v47  ;;  %7229 = vmatprep.subr.bf16.mxu1 %v4555_v1  ;;  %v4749_v47 = vunpack.c.l.s8.bf16 %v3573_v60  ;;  %v3572_v1 = vld [vmem:[%s9820_s10 + $0xd70] sm:$0xff]  ;;  %v4746_v2 = vunpack.c.l.s8.bf16 %v3570_v0 }
 0x94f   : > { %7401 = vmatprep.subr.bf16.mxu0 %v4557_v3  ;;  %v4771_v3 = vunpack.c.h.s8.bf16 %v3571_v58  ;;  %v4939_v58 = vunpack.c.l.s8.bf16 %v3667_v52 }
 0x951   : > { %7230 = vmatpush1.bf16.msra.mxu1 %v4554_v5  ;;  %v3595_v5 = vld [vmem:[%s9820_s10 + $0xe28] sm:$0xff] }
 0x952   : > { %7402 = vmatpush1.bf16.msra.mxu0 %v4556_v6  ;;  %7231 = vmatprep.subr.bf16.mxu1 %v4579_v26  ;;  %v3597_v6 = vld [vmem:[%s9820_s10 + $0xe38] sm:$0xff]  ;;  %v4770_v26 = vunpack.c.h.s8.bf16 %v3570_v0  ;;  %v4819_v12 = vunpack.c.h.s8.bf16 %v3595_v5  ;;  %v4963_v0 = vunpack.c.h.s8.bf16 %v3667_v52  ;;  %v3762_v52 = vld [vmem:[%s9820_s10 + $0x1360] sm:$0xff] }
 0x953   : > { %7403 = vmatprep.subr.bf16.mxu0 %v4581_v7  ;;  %v4795_v7 = vunpack.c.l.s8.bf16 %v3595_v5  ;;  %v4797_v8 = vunpack.c.l.s8.bf16 %v3597_v6  ;;  %v3690_v5 = vld [vmem:[%s9820_s10 + $0x1120] sm:$0xff] }
 0x955   : > { %7232 = vmatpush1.bf16.msra.mxu1 %v4578_v9  ;;  %v3596_v9 = vld [vmem:[%s9820_s10 + $0xe30] sm:$0xff] }
 0x956   : > { %7404 = vmatpush1.bf16.msra.mxu0 %v4580_v10  ;;  %7233 = vmatprep.subr.bf16.mxu1 %v4603_v11  ;;  %v4794_v10 = vunpack.c.l.s8.bf16 %v3594_v15  ;;  %v4796_v11 = vunpack.c.l.s8.bf16 %v3596_v9 }
 0x957   : > { %7405 = vmatprep.subr.bf16.mxu0 %v4605_v17  ;;  %v4821_v17 = vunpack.c.h.s8.bf16 %v3597_v6 }
 0x959   : > { %7234 = vmatpush1.bf16.msra.mxu1 %v4602_v14  ;;  %v3621_v14 = vld [vmem:[%s9820_s10 + $0xef8] sm:$0xff] }
 0x95a   : > { %7406 = vmatpush1.bf16.msra.mxu0 %v4604_v18  ;;  %7235 = vmatprep.subr.bf16.mxu1 %v4627_v21  ;;  %v4818_v18 = vunpack.c.h.s8.bf16 %v3594_v15  ;;  %v4820_v21 = vunpack.c.h.s8.bf16 %v3596_v9  ;;  %v4845_v22 = vunpack.c.l.s8.bf16 %v3621_v14  ;;  %v3715_v9 = vld [vmem:[%s9820_s10 + $0x11e8] sm:$0xff] }
 0x95b   : > { %7407 = vmatprep.subr.bf16.mxu0 %v4629_v19  ;;  %v4843_v19 = vunpack.c.l.s8.bf16 %v3619_v13  ;;  %v3714_v13 = vld [vmem:[%s9820_s10 + $0x11e0] sm:$0xff] }
 0x95d   : > { %7236 = vmatpush1.bf16.msra.mxu1 %v4626_v23  ;;  %v3620_v23 = vld [vmem:[%s9820_s10 + $0xef0] sm:$0xff] }
 0x95e   : > { %7408 = vmatpush1.bf16.msra.mxu0 %v4628_v29  ;;  %7237 = vmatprep.subr.bf16.mxu1 %v4651_v32  ;;  %v4842_v29 = vunpack.c.l.s8.bf16 %v3618_v20  ;;  %v4844_v32 = vunpack.c.l.s8.bf16 %v3620_v23 }
 0x95f   : > { %7409 = vmatprep.subr.bf16.mxu0 %v4653_v39  ;;  %v4869_v39 = vunpack.c.h.s8.bf16 %v3621_v14 }
 0x961   : > { %7238 = vmatpush1.bf16.msra.mxu1 %v4650_v41  ;;  %v3645_v41 = vld [vmem:[%s9820_s10 + $0xfb8] sm:$0xff] }
 0x962   : > { %7410 = vmatpush1.bf16.msra.mxu0 %v4652_v42  ;;  %7239 = vmatprep.subr.bf16.mxu1 %v4675_v43  ;;  %v4866_v42 = vunpack.c.h.s8.bf16 %v3618_v20  ;;  %v4868_v43 = vunpack.c.h.s8.bf16 %v3620_v23  ;;  %v4893_v46 = vunpack.c.l.s8.bf16 %v3645_v41  ;;  %v5059_v20 = vunpack.c.h.s8.bf16 %v3715_v9  ;;  %v3739_v23 = vld [vmem:[%s9820_s10 + $0x12a8] sm:$0xff] }
 0x963   : > { %7411 = vmatprep.subr.bf16.mxu0 %v4677_v44  ;;  %v4891_v44 = vunpack.c.l.s8.bf16 %v3643_v40  ;;  %v3738_v40 = vld [vmem:[%s9820_s10 + $0x12a0] sm:$0xff] }
 0x965   : > { %7240 = vmatpush1.bf16.msra.mxu1 %v4674_v27  ;;  %v3644_v27 = vld [vmem:[%s9820_s10 + $0xfb0] sm:$0xff] }
 0x966   : > { %7412 = vmatpush1.bf16.msra.mxu0 %v4676_v48  ;;  %7252 = vmatprep.subr.bf16.mxu1 %v4699_v49  ;;  %v4890_v48 = vunpack.c.l.s8.bf16 %v3642_v45  ;;  %v4892_v49 = vunpack.c.l.s8.bf16 %v3644_v27 }
 0x967   : > { %7424 = vmatprep.subr.bf16.mxu0 %v4701_v51  ;;  %v4917_v51 = vunpack.c.h.s8.bf16 %v3645_v41 }
 0x968   : > { %7242 = vmatmul.mubr.bf16.vlgmr.msra.gmra.mrb[32].mxu1 %v9927_v16 }
 0x969   : > { %7414 = vmatmul.mubr.bf16.vlgmr.msra.gmra.mrb[36].mxu0 %v9927_v16  ;;  %7253 = vmatpush1.bf16.msra.mxu1 %v4698_v54  ;;  %v4748_v16 = vunpack.c.l.s8.bf16 %v3572_v1  ;;  %v3669_v54 = vld [vmem:[%s9820_s10 + $0x1078] sm:$0xff] }
 0x96a   : > { %7284 = vmatprep.mubr.bf16.mxu1 %v10031_v31  ;;  %7425 = vmatpush1.bf16.msra.mxu0 %v4700_v56  ;;  %v4914_v56 = vunpack.c.h.s8.bf16 %v3642_v45  ;;  %v4941_v60 = vunpack.c.l.s8.bf16 %v3669_v54  ;;  %v5107_v45 = vunpack.c.h.s8.bf16 %v3739_v23 }
 0x96b   : > { %7456 = vmatprep.mubr.bf16.mxu0 %v10031_v31  ;;  %7254 = vmatprep.subr.bf16.mxu1 %v4723_v57  ;;  %v4772_v31 = vunpack.c.h.s8.bf16 %v3572_v1  ;;  %v4916_v57 = vunpack.c.h.s8.bf16 %v3644_v27  ;;  %v3691_v1 = vld [vmem:[%s9820_s10 + $0x1128] sm:$0xff] }
 0x96c   : > { %7426 = vmatprep.subr.bf16.mxu0 %v4725_v59  ;;  %v3666_v59 = vld [vmem:[%s9820_s10 + $0x1060] sm:$0xff]  ;;  %v5011_v15 = vunpack.c.h.s8.bf16 %v3691_v1 }
 0x96d   : > { %7255 = vmatpush1.bf16.msra.mxu1 %v4722_v61  ;;  %v3668_v61 = vld [vmem:[%s9820_s10 + $0x1070] sm:$0xff] }
 0x96e   : > { %7427 = vmatpush1.bf16.msra.mxu0 %v4724_v62  ;;  %7256 = vmatprep.subr.bf16.mxu1 %v4747_v63  ;;  %v4938_v62 = vunpack.c.l.s8.bf16 %v3666_v59  ;;  %v4940_v63 = vunpack.c.l.s8.bf16 %v3668_v61 }
 0x96f   : > { %7428 = vmatprep.subr.bf16.mxu0 %v4749_v47  ;;  %v4965_v47 = vunpack.c.h.s8.bf16 %v3669_v54 }
 0x971   : > { %7257 = vmatpush1.bf16.msra.mxu1 %v4746_v2  ;;  %v3693_v2 = vld [vmem:[%s9820_s10 + $0x1138] sm:$0xff] }
 0x972   : > { %7429 = vmatpush1.bf16.msra.mxu0 %v4748_v16  ;;  %7258 = vmatprep.subr.bf16.mxu1 %v4771_v3  ;;  %v4962_v16 = vunpack.c.h.s8.bf16 %v3666_v59  ;;  %v4964_v3 = vunpack.c.h.s8.bf16 %v3668_v61  ;;  %v4989_v6 = vunpack.c.l.s8.bf16 %v3693_v2  ;;  %v3789_v61 = vld [vmem:[%s9820_s10 + $0x1438] sm:$0xff] }
 0x973   : > { %7430 = vmatprep.subr.bf16.mxu0 %v4773_v4  ;;  %v4987_v4 = vunpack.c.l.s8.bf16 %v3691_v1  ;;  %v3788_v1 = vld [vmem:[%s9820_s10 + $0x1430] sm:$0xff] }
 0x975   : > { %7259 = vmatpush1.bf16.msra.mxu1 %v4770_v26  ;;  %v3692_v26 = vld [vmem:[%s9820_s10 + $0x1130] sm:$0xff] }
 0x976   : > { %7431 = vmatpush1.bf16.msra.mxu0 %v4772_v31  ;;  %7260 = vmatprep.subr.bf16.mxu1 %v4795_v7  ;;  %v4986_v31 = vunpack.c.l.s8.bf16 %v3690_v5  ;;  %v4988_v7 = vunpack.c.l.s8.bf16 %v3692_v26 }
 0x977   : > { %7432 = vmatprep.subr.bf16.mxu0 %v4797_v8  ;;  %v5013_v8 = vunpack.c.h.s8.bf16 %v3693_v2 }
 0x979   : > { %7261 = vmatpush1.bf16.msra.mxu1 %v4794_v10  ;;  %v3717_v10 = vld [vmem:[%s9820_s10 + $0x11f8] sm:$0xff] }
 0x97a   : > { %7433 = vmatpush1.bf16.msra.mxu0 %v4796_v11  ;;  %7262 = vmatprep.subr.bf16.mxu1 %v4819_v12  ;;  %v5010_v11 = vunpack.c.h.s8.bf16 %v3690_v5  ;;  %v5012_v12 = vunpack.c.h.s8.bf16 %v3692_v26  ;;  %v5037_v14 = vunpack.c.l.s8.bf16 %v3717_v10  ;;  %v10885_v5 = vld [vmem:[%s10197_s16 + $0x10] sm:$0xff]  ;;  %v3811_v26 = vld [vmem:[%s9820_s10 + $0x14e8] sm:$0xff] }
 0x97b   : > { %7434 = vmatprep.subr.bf16.mxu0 %v4821_v17  ;;  %v5035_v17 = vunpack.c.l.s8.bf16 %v3715_v9 }
 0x97d   : > { %7263 = vmatpush1.bf16.msra.mxu1 %v4818_v18  ;;  %v3716_v18 = vld [vmem:[%s9820_s10 + $0x11f0] sm:$0xff] }
 0x97e   : > { %7435 = vmatpush1.bf16.msra.mxu0 %v4820_v21  ;;  %7264 = vmatprep.subr.bf16.mxu1 %v4843_v19  ;;  %v5034_v21 = vunpack.c.l.s8.bf16 %v3714_v13  ;;  %v5036_v19 = vunpack.c.l.s8.bf16 %v3716_v18 }
 0x97f   : > { %7436 = vmatprep.subr.bf16.mxu0 %v4845_v22  ;;  %v5061_v22 = vunpack.c.h.s8.bf16 %v3717_v10  ;;  %v10898_v10 = vld [vmem:[%s9820_s10 + $0x14e0] sm:$0xff] }
 0x981   : > { %7265 = vmatpush1.bf16.msra.mxu1 %v4842_v29  ;;  %v3741_v29 = vld [vmem:[%s9820_s10 + $0x12b8] sm:$0xff] }
 0x982   : > { %7437 = vmatpush1.bf16.msra.mxu0 %v4844_v32  ;;  %7266 = vmatprep.subr.bf16.mxu1 %v4867_v36  ;;  %v5058_v32 = vunpack.c.h.s8.bf16 %v3714_v13  ;;  %v5060_v36 = vunpack.c.h.s8.bf16 %v3716_v18  ;;  %v5085_v41 = vunpack.c.l.s8.bf16 %v3741_v29  ;;  %v5109_v27 = vunpack.c.h.s8.bf16 %v3741_v29 }
 0x983   : > { %7438 = vmatprep.subr.bf16.mxu0 %v4869_v39  ;;  %v5083_v39 = vunpack.c.l.s8.bf16 %v3739_v23  ;;  %v5227_v13 = vunpack.c.l.s8.bf16 %v3811_v26  ;;  %v7769_v29 = vrot.slane %v10885_v5, %v9843_v55 }
 0x985   : > { %7267 = vmatpush1.bf16.msra.mxu1 %v4866_v42  ;;  %v3740_v42 = vld [vmem:[%s9820_s10 + $0x12b0] sm:$0xff] }
 0x986   : > { %7439 = vmatpush1.bf16.msra.mxu0 %v4868_v43  ;;  %7268 = vmatprep.subr.bf16.mxu1 %v4891_v44  ;;  %v5082_v43 = vunpack.c.l.s8.bf16 %v3738_v40  ;;  %v5084_v44 = vunpack.c.l.s8.bf16 %v3740_v42 }
 0x987   : > { %7440 = vmatprep.subr.bf16.mxu0 %v4893_v46  ;;  %v3763_v46 = vld [vmem:[%s9820_s10 + $0x1368] sm:$0xff] }
 0x989   : > { %7269 = vmatpush1.bf16.msra.mxu1 %v4890_v48  ;;  %v3765_v48 = vld [vmem:[%s9820_s10 + $0x1378] sm:$0xff] }
 0x98a   : > { %7441 = vmatpush1.bf16.msra.mxu0 %v4892_v49  ;;  %7270 = vmatprep.subr.bf16.mxu1 %v4915_v50  ;;  %v5106_v49 = vunpack.c.h.s8.bf16 %v3738_v40  ;;  %v5108_v50 = vunpack.c.h.s8.bf16 %v3740_v42  ;;  %v5133_v54 = vunpack.c.l.s8.bf16 %v3765_v48  ;;  %v5157_v59 = vunpack.c.h.s8.bf16 %v3765_v48 }
 0x98b   : > { %7442 = vmatprep.subr.bf16.mxu0 %v4917_v51  ;;  %v5131_v51 = vunpack.c.l.s8.bf16 %v3763_v46  ;;  %v5251_v42 = vunpack.c.h.s8.bf16 %v3811_v26  ;;  %v3861_v26 = vld [vmem:[%s9820_s10 + $0x1678] sm:$0xff] }
 0x98d   : > { %7271 = vmatpush1.bf16.msra.mxu1 %v4914_v56  ;;  %v3764_v56 = vld [vmem:[%s9820_s10 + $0x1370] sm:$0xff] }
 0x98e   : > { %7443 = vmatpush1.bf16.msra.mxu0 %v4916_v57  ;;  %7272 = vmatprep.subr.bf16.mxu1 %v4939_v58  ;;  %v5130_v57 = vunpack.c.l.s8.bf16 %v3762_v52  ;;  %v5155_v58 = vunpack.c.h.s8.bf16 %v3763_v46 }
 0x98f   : > { %7444 = vmatprep.subr.bf16.mxu0 %v4941_v60  ;;  %v3787_v60 = vld [vmem:[%s9820_s10 + $0x1428] sm:$0xff] }
 0x991   : > { %7273 = vmatpush1.bf16.msra.mxu1 %v4938_v62  ;;  %v5154_v62 = vunpack.c.h.s8.bf16 %v3762_v52  ;;  %v3835_v52 = vld [vmem:[%s9820_s10 + $0x15a8] sm:$0xff] }
 0x992   : > { %7445 = vmatpush1.bf16.msra.mxu0 %v4940_v63  ;;  %7274 = vmatprep.subr.bf16.mxu1 %v4963_v0  ;;  %v5179_v63 = vunpack.c.l.s8.bf16 %v3787_v60  ;;  %v3786_v0 = vld [vmem:[%s9820_s10 + $0x1420] sm:$0xff] }
 0x993   : > { %7446 = vmatprep.subr.bf16.mxu0 %v4965_v47  ;;  %v5181_v47 = vunpack.c.l.s8.bf16 %v3789_v61  ;;  %v5178_v2 = vunpack.c.l.s8.bf16 %v3786_v0  ;;  %v5202_v9 = vunpack.c.h.s8.bf16 %v3786_v0 }
 0x995   : > { %7275 = vmatpush1.bf16.msra.mxu1 %v4962_v16  ;;  %v10882_v16 = vld [vmem:[%s10194_s25 + $0x10] sm:$0xff] }
 0x996   : > { %7447 = vmatpush1.bf16.msra.mxu0 %v4964_v3  ;;  %7276 = vmatprep.subr.bf16.mxu1 %v4987_v4  ;;  %v5180_v3 = vunpack.c.l.s8.bf16 %v3788_v1  ;;  %v5203_v4 = vunpack.c.h.s8.bf16 %v3787_v60 }
 0x997   : > { %7448 = vmatprep.subr.bf16.mxu0 %v4989_v6  ;;  %v5205_v6 = vunpack.c.h.s8.bf16 %v3789_v61 }
 0x999   : > { %7277 = vmatpush1.bf16.msra.mxu1 %v4986_v31  ;;  %v7583_v31 = vrot.slane %v10882_v16, %v9832_v28 }
 0x99a   : > { %7449 = vmatpush1.bf16.msra.mxu0 %v4988_v7  ;;  %7278 = vmatprep.subr.bf16.mxu1 %v5011_v15  ;;  %v10891_v7 = vld [vmem:[%s9820_s10 + $0x14f8] sm:$0xff]  ;;  %v7591_v15 = vrot.slane %v10882_v16, %v9840_v53 }
 0x99b   : > { %7450 = vmatprep.subr.bf16.mxu0 %v5013_v8  ;;  %v7587_v8 = vrot.slane %v10882_v16, %v9835_v30 }
 0x99d   : > { %7279 = vmatpush1.bf16.msra.mxu1 %v5010_v11  ;;  %v7757_v11 = vrot.slane %v10885_v5, %v9832_v28 }
 0x99e   : > { %7451 = vmatpush1.bf16.msra.mxu0 %v5012_v12  ;;  %7280 = vmatprep.subr.bf16.mxu1 %v5035_v17  ;;  %v7595_v12 = vrot.slane %v10882_v16, %v9843_v55  ;;  %v5204_v17 = vunpack.c.h.s8.bf16 %v3788_v1  ;;  %v5253_v55 = vunpack.c.h.s8.bf16 %v10891_v7 }
 0x99f   : > { %7452 = vmatprep.subr.bf16.mxu0 %v5037_v14  ;;  %v3812_v14 = vld [vmem:[%s9820_s10 + $0x14f0] sm:$0xff] }
 0x9a0   : > { %v5252_v61 = vunpack.c.h.s8.bf16 %v3812_v14 }
 0x9a1   : > { %7281 = vmatpush1.bf16.msra.mxu1 %v5034_v21  ;;  %v7765_v21 = vrot.slane %v10885_v5, %v9840_v53  ;;  %v5228_v53 = vunpack.c.l.s8.bf16 %v3812_v14 }
 0x9a2   : > { %7453 = vmatpush1.bf16.msra.mxu0 %v5036_v19  ;;  %7282 = vmatprep.subr.bf16.mxu1 %v5059_v20  ;;  %v7761_v19 = vrot.slane %v10885_v5, %v9835_v30  ;;  %v5229_v20 = vunpack.c.l.s8.bf16 %v10891_v7 }
 0x9a3   : > { %7454 = vmatprep.subr.bf16.mxu0 %v5061_v22 }
 0x9a5   : > { %7283 = vmatpush1.bf16.msra.mxu1 %v5058_v32  ;;  %v5226_v32 = vunpack.c.l.s8.bf16 %v10898_v10 }
 0x9a6   : > { %7455 = vmatpush1.bf16.msra.mxu0 %v5060_v36  ;;  %7295 = vmatprep.subr.bf16.mxu1 %v5083_v39 }
 0x9a7   : > { %7467 = vmatprep.subr.bf16.mxu0 %v5085_v41 }
 0x9a8   : > { %7285 = vmatmul.mubr.bf16.vlgmr.msra.gmra.mrb[32].mxu1 %v10027_v24 }
 0x9a9   : > { %7457 = vmatmul.mubr.bf16.vlgmr.msra.gmra.mrb[36].mxu0 %v10027_v24  ;;  %7296 = vmatpush1.bf16.msra.mxu1 %v5082_v43  ;;  %v5132_v24 = vunpack.c.l.s8.bf16 %v3764_v56 }
 0x9aa   : > { %7327 = vmatprep.mubr.bf16.mxu1 %v10033_v37  ;;  %7468 = vmatpush1.bf16.msra.mxu0 %v5084_v44 }
 0x9ab   : > { %7499 = vmatprep.mubr.bf16.mxu0 %v10033_v37  ;;  %7297 = vmatprep.subr.bf16.mxu1 %v5107_v45  ;;  %v5156_v37 = vunpack.c.h.s8.bf16 %v3764_v56 }
 0x9ac   : > { %7469 = vmatprep.subr.bf16.mxu0 %v5109_v27 }
 0x9ad   : > { %7298 = vmatpush1.bf16.msra.mxu1 %v5106_v49 }
 0x9ae   : > { %7470 = vmatpush1.bf16.msra.mxu0 %v5108_v50  ;;  %7299 = vmatprep.subr.bf16.mxu1 %v5131_v51 }
 0x9af   : > { %7471 = vmatprep.subr.bf16.mxu0 %v5133_v54 }
 0x9b1   : > { %7300 = vmatpush1.bf16.msra.mxu1 %v5130_v57 }
 0x9b2   : > { %7472 = vmatpush1.bf16.msra.mxu0 %v5132_v24  ;;  %7301 = vmatprep.subr.bf16.mxu1 %v5155_v58  ;;  %v3837_v24 = vld [vmem:[%s9820_s10 + $0x15b8] sm:$0xff] }
 0x9b3   : > { %7473 = vmatprep.subr.bf16.mxu0 %v5157_v59  ;;  %v5250_v59 = vunpack.c.h.s8.bf16 %v10898_v10  ;;  %v5277_v0 = vunpack.c.l.s8.bf16 %v3837_v24 }
 0x9b5   : > { %7302 = vmatpush1.bf16.msra.mxu1 %v5154_v62  ;;  %v5275_v62 = vunpack.c.l.s8.bf16 %v3835_v52 }
 0x9b6   : > { %7474 = vmatpush1.bf16.msra.mxu0 %v5156_v37  ;;  %7303 = vmatprep.subr.bf16.mxu1 %v5179_v63  ;;  %v3834_v37 = vld [vmem:[%s9820_s10 + $0x15a0] sm:$0xff] }
 0x9b7   : > { %7475 = vmatprep.subr.bf16.mxu0 %v5181_v47  ;;  %v3836_v47 = vld [vmem:[%s9820_s10 + $0x15b0] sm:$0xff]  ;;  %v5274_v1 = vunpack.c.l.s8.bf16 %v3834_v37 }
 0x9b9   : > { %7304 = vmatpush1.bf16.msra.mxu1 %v5178_v2  ;;  %v5276_v2 = vunpack.c.l.s8.bf16 %v3836_v47 }
 0x9ba   : > { %7476 = vmatpush1.bf16.msra.mxu0 %v5180_v3  ;;  %7305 = vmatprep.subr.bf16.mxu1 %v5203_v4  ;;  %v5299_v3 = vunpack.c.h.s8.bf16 %v3835_v52  ;;  %v5301_v4 = vunpack.c.h.s8.bf16 %v3837_v24  ;;  %v3908_v52 = vld [vmem:[%s9820_s10 + $0x17f0] sm:$0xff] }
 0x9bb   : > { %v6985_v18 = vpop.f32.mrb[28].mxu1  ;;  %7477 = vmatprep.subr.bf16.mxu0 %v5205_v6  ;;  %v3859_v6 = vld [vmem:[%s9820_s10 + $0x1668] sm:$0xff] }
 0x9bc   : > { %v7652_v22 = vmul.f32 %v7583_v31, %v6985_v18  ;;  %v7157_v23 = vpop.f32.mrb[32].mxu0  ;;  %v6987_v28 = vpop.f32.mrb[29].mxu1 }
 0x9bd   : > { %v7654_v36 = vmul.f32 %v7591_v15, %v7157_v23  ;;  %v7653_v39 = vmul.f32 %v7587_v8, %v6987_v28  ;;  %v7159_v40 = vpop.f32.mrb[33].mxu0  ;;  %v6989_v41 = vpop.f32.mrb[30].mxu1  ;;  %7306 = vmatpush1.bf16.msra.mxu1 %v5202_v9  ;;  %v3858_v9 = vld [vmem:[%s9820_s10 + $0x1660] sm:$0xff]  ;;  %v3883_v23 = vld [vmem:[%s9820_s10 + $0x1728] sm:$0xff] }
 0x9be   : > { %v7826_v30 = vadd.f32 %v7757_v11, %v7652_v22  ;;  %v7655_v43 = vmul.f32 %v7595_v12, %v7159_v40  ;;  %v7676_v44 = vmul.f32 %v7583_v31, %v6989_v41  ;;  %v7161_v45 = vpop.f32.mrb[34].mxu0  ;;  %7478 = vmatpush1.bf16.msra.mxu0 %v5204_v17  ;;  %v6991_v46 = vpop.f32.mrb[31].mxu1  ;;  %7307 = vmatprep.subr.bf16.mxu1 %v5227_v13  ;;  %v5298_v31 = vunpack.c.h.s8.bf16 %v3834_v37  ;;  %v3882_v41 = vld [vmem:[%s9820_s10 + $0x1720] sm:$0xff] }
 0x9bf   : > { %v7828_v27 = vadd.f32 %v7765_v21, %v7654_v36  ;;  %v7827_v48 = vadd.f32 %v7761_v19, %v7653_v39  ;;  %v7678_v49 = vmul.f32 %v7591_v15, %v7161_v45  ;;  %v7677_v50 = vmul.f32 %v7587_v8, %v6991_v46  ;;  %v7163_v51 = vpop.f32.mrb[35].mxu0  ;;  %7479 = vmatprep.subr.bf16.mxu0 %v5229_v20  ;;  %v3907_v46 = vld [vmem:[%s9820_s10 + $0x17e8] sm:$0xff] }
 0x9c0   : > { %9083 = vtanh.f32 %v7826_v30  ;;  %v7829_v54 = vadd.f32 %v7769_v29, %v7655_v43  ;;  %v7850_v56 = vadd.f32 %v7757_v11, %v7676_v44  ;;  %v7679_v57 = vmul.f32 %v7595_v12, %v7163_v51  ;;  %v3860_v12 = vld [vmem:[%s9820_s10 + $0x1670] sm:$0xff] }
 0x9c1   : > { %9085 = vtanh.f32 %v7828_v27  ;;  %v7852_v58 = vadd.f32 %v7765_v21, %v7678_v49  ;;  %7308 = vmatpush1.bf16.msra.mxu1 %v5226_v32  ;;  %v7851_v60 = vadd.f32 %v7761_v19, %v7677_v50  ;;  %v5300_v15 = vunpack.c.h.s8.bf16 %v3836_v47  ;;  %v3906_v50 = vld [vmem:[%s9820_s10 + $0x17e0] sm:$0xff] }
 0x9c2   : > { %9087 = vtanh.f32 %v7827_v48  ;;  %7480 = vmatpush1.bf16.msra.mxu0 %v5228_v53  ;;  %7309 = vmatprep.subr.bf16.mxu1 %v5251_v42  ;;  %v7853_v63 = vadd.f32 %v7769_v29, %v7679_v57  ;;  %v5323_v8 = vunpack.c.l.s8.bf16 %v3859_v6  ;;  %v5325_v11 = vunpack.c.l.s8.bf16 %v3861_v26  ;;  %v3885_v29 = vld [vmem:[%s9820_s10 + $0x1738] sm:$0xff]  ;;  %v3884_v42 = vld [vmem:[%s9820_s10 + $0x1730] sm:$0xff] }
 0x9c3   : > { %9089 = vtanh.f32 %v7829_v54  ;;  %7481 = vmatprep.subr.bf16.mxu0 %v5253_v55  ;;  %v5322_v14 = vunpack.c.l.s8.bf16 %v3858_v9  ;;  %v5324_v21 = vunpack.c.l.s8.bf16 %v3860_v12  ;;  %v5347_v19 = vunpack.c.h.s8.bf16 %v3859_v6  ;;  %v3909_v55 = vld [vmem:[%s9820_s10 + $0x17f8] sm:$0xff] }
 0x9c4   : > { %9091 = vtanh.f32 %v7850_v56  ;;  %v5349_v22 = vunpack.c.h.s8.bf16 %v3861_v26  ;;  %v5346_v36 = vunpack.c.h.s8.bf16 %v3858_v9  ;;  %v5348_v39 = vunpack.c.h.s8.bf16 %v3860_v12 }
 0x9c5   : > { %9093 = vtanh.f32 %v7852_v58  ;;  %7310 = vmatpush1.bf16.msra.mxu1 %v5250_v59  ;;  %v5371_v40 = vunpack.c.l.s8.bf16 %v3883_v23  ;;  %v5373_v53 = vunpack.c.l.s8.bf16 %v3885_v29  ;;  %v5370_v30 = vunpack.c.l.s8.bf16 %v3882_v41 }
 0x9c6   : > { %9095 = vtanh.f32 %v7851_v60  ;;  %7482 = vmatpush1.bf16.msra.mxu0 %v5252_v61  ;;  %7311 = vmatprep.subr.bf16.mxu1 %v5275_v62  ;;  %v5372_v43 = vunpack.c.l.s8.bf16 %v3884_v42  ;;  %v5395_v44 = vunpack.c.h.s8.bf16 %v3883_v23  ;;  %v5397_v45 = vunpack.c.h.s8.bf16 %v3885_v29 }
 0x9c7   : > { %9097 = vtanh.f32 %v7853_v63  ;;  %7483 = vmatprep.subr.bf16.mxu0 %v5277_v0  ;;  %v5394_v27 = vunpack.c.h.s8.bf16 %v3882_v41  ;;  %v5396_v48 = vunpack.c.h.s8.bf16 %v3884_v42  ;;  %v5419_v49 = vunpack.c.l.s8.bf16 %v3907_v46  ;;  %v7982_v41 = vld [vmem:[%s10228_s30 + $0x18] sm:$0xff] (%p11163_p13)  ;;  %v7986_v42 = vld [vmem:[%s10228_s30 + $0x28] sm:$0xff] (%p11163_p13) }
 0x9c8   : > { %v5421_v51 = vunpack.c.l.s8.bf16 %v3909_v55  ;;  %v5418_v54 = vunpack.c.l.s8.bf16 %v3906_v50  ;;  %v5420_v56 = vunpack.c.l.s8.bf16 %v3908_v52  ;;  %v5443_v57 = vunpack.c.h.s8.bf16 %v3907_v46  ;;  %7983 = vst [vmem:[%s10977_s0 + $0x18] sm:$0xff] (%p11163_p13), %v7982_v41  ;;  %7987 = vst [vmem:[%s10977_s0 + $0x28] sm:$0xff] (%p11163_p13), %v7986_v42  ;;  %v7996_v46 = vld [vmem:[%s10228_s30 + $0x50] sm:$0xff] (%p11163_p13) }
 0x9c9   : > { %7312 = vmatpush1.bf16.msra.mxu1 %v5274_v1  ;;  %v5445_v24 = vunpack.c.h.s8.bf16 %v3909_v55  ;;  %v5442_v58 = vunpack.c.h.s8.bf16 %v3906_v50  ;;  %v5444_v59 = vunpack.c.h.s8.bf16 %v3908_v52  ;;  %v7599_v60 = vrot.slane %v10882_v16, %v10000_v33  ;;  %v7998_v55 = vld [vmem:[%s10228_s30 + $0x58] sm:$0xff] (%p11163_p13)  ;;  %7997 = vst [vmem:[%s10977_s0 + $0x50] sm:$0xff] (%p11163_p13), %v7996_v46 }
 0x9ca   : > { %v9084_v7 = vpop.eup %9083  ;;  %7484 = vmatpush1.bf16.msra.mxu0 %v5276_v2  ;;  %7313 = vmatprep.subr.bf16.mxu1 %v5299_v3  ;;  %v7607_v61 = vrot.slane %v10882_v16, %v10003_v34  ;;  %v7603_v62 = vrot.slane %v10882_v16, %v10006_v35  ;;  %v7773_v37 = vrot.slane %v10885_v5, %v10000_v33  ;;  %v8006_v50 = vld [vmem:[%s10228_s30 + $0x78] sm:$0xff] (%p11163_p13) }
 0x9cb   : > { %v9086_v10 = vpop.eup %9085  ;;  %7922 = vst [vmem:[%s10228_s30 + $0x80] sm:$0xff] %v9084_v7  ;;  %7485 = vmatprep.subr.bf16.mxu0 %v5301_v4  ;;  %v7611_v63 = vrot.slane %v10882_v16, %v10011_v38  ;;  %v7781_v47 = vrot.slane %v10885_v5, %v10003_v34  ;;  %v7785_v4 = vrot.slane %v10885_v5, %v10011_v38  ;;  %7999 = vst [vmem:[%s10977_s0 + $0x58] sm:$0xff] (%p11163_p13), %v7998_v55 }
 0x9cc   : > { %v9088_v17 = vpop.eup %9087  ;;  %7924 = vst [vmem:[%s10228_s30 + $0x90] sm:$0xff] %v9086_v10  ;;  %8007 = vst [vmem:[%s10977_s0 + $0x78] sm:$0xff] (%p11163_p13), %v8006_v50 }
 0x9cd   : > { %v9090_v13 = vpop.eup %9089  ;;  %7923 = vst [vmem:[%s10228_s30 + $0x88] sm:$0xff] %v9088_v17  ;;  %7314 = vmatpush1.bf16.msra.mxu1 %v5298_v31 }
 0x9ce   : > { %v9092_v18 = vpop.eup %9091  ;;  %7925 = vst [vmem:[%s10228_s30 + $0x98] sm:$0xff] %v9090_v13  ;;  %7486 = vmatpush1.bf16.msra.mxu0 %v5300_v15  ;;  %7315 = vmatprep.subr.bf16.mxu1 %v5323_v8 }
 0x9cf   : > { %v9094_v20 = vpop.eup %9093  ;;  %7946 = vst [vmem:[%s10228_s30 + $0x140] sm:$0xff] %v9092_v18  ;;  %7487 = vmatprep.subr.bf16.mxu0 %v5325_v11 }
 0x9d0   : > { %v9096_v28 = vpop.eup %9095  ;;  %7948 = vst [vmem:[%s10228_s30 + $0x150] sm:$0xff] %v9094_v20 }
 0x9d1   : > { %v9098_v32 = vpop.eup %9097  ;;  %7947 = vst [vmem:[%s10228_s30 + $0x148] sm:$0xff] %v9096_v28  ;;  %7316 = vmatpush1.bf16.msra.mxu1 %v5322_v14 }
 0x9d2   : > { %7949 = vst [vmem:[%s10228_s30 + $0x158] sm:$0xff] %v9098_v32  ;;  %7488 = vmatpush1.bf16.msra.mxu0 %v5324_v21  ;;  %7317 = vmatprep.subr.bf16.mxu1 %v5347_v19 }
 0x9d3   : > { %7489 = vmatprep.subr.bf16.mxu0 %v5349_v22 }
 0x9d4   : > { %v8010_v52 = vld [vmem:[%s10228_s30 + $0x88] sm:$0xff] (%p11163_p13) }
 0x9d5   : > { %7318 = vmatpush1.bf16.msra.mxu1 %v5346_v36  ;;  %v7976_v36 = vld [vmem:[%s10228_s30] sm:$0xff] (%p11163_p13)  ;;  %8011 = vst [vmem:[%s10977_s0 + $0x88] sm:$0xff] (%p11163_p13), %v8010_v52 }
 0x9d6   : > { %7490 = vmatpush1.bf16.msra.mxu0 %v5348_v39  ;;  %7319 = vmatprep.subr.bf16.mxu1 %v5371_v40  ;;  %v7978_v39 = vld [vmem:[%s10228_s30 + $0x8] sm:$0xff] (%p11163_p13)  ;;  %v7980_v40 = vld [vmem:[%s10228_s30 + $0x10] sm:$0xff] (%p11163_p13)  ;;  %7977 = vst [vmem:[%s10977_s0] sm:$0xff] (%p11163_p13), %v7976_v36 }
 0x9d7   : > { %7491 = vmatprep.subr.bf16.mxu0 %v5373_v53  ;;  %v7984_v53 = vld [vmem:[%s10228_s30 + $0x20] sm:$0xff] (%p11163_p13)  ;;  %7979 = vst [vmem:[%s10977_s0 + $0x8] sm:$0xff] (%p11163_p13), %v7978_v39  ;;  %7981 = vst [vmem:[%s10977_s0 + $0x10] sm:$0xff] (%p11163_p13), %v7980_v40 }
 0x9d8   : > { %7985 = vst [vmem:[%s10977_s0 + $0x20] sm:$0xff] (%p11163_p13), %v7984_v53 }
 0x9d9   : > { %7320 = vmatpush1.bf16.msra.mxu1 %v5370_v30  ;;  %v7988_v30 = vld [vmem:[%s10228_s30 + $0x30] sm:$0xff] (%p11163_p13) }
 0x9da   : > { %7492 = vmatpush1.bf16.msra.mxu0 %v5372_v43  ;;  %7321 = vmatprep.subr.bf16.mxu1 %v5395_v44  ;;  %v7990_v43 = vld [vmem:[%s10228_s30 + $0x38] sm:$0xff] (%p11163_p13)  ;;  %v7992_v44 = vld [vmem:[%s10228_s30 + $0x40] sm:$0xff] (%p11163_p13)  ;;  %7989 = vst [vmem:[%s10977_s0 + $0x30] sm:$0xff] (%p11163_p13), %v7988_v30 }
 0x9db   : > { %7493 = vmatprep.subr.bf16.mxu0 %v5397_v45  ;;  %7991 = vst [vmem:[%s10977_s0 + $0x38] sm:$0xff] (%p11163_p13), %v7990_v43  ;;  %7993 = vst [vmem:[%s10977_s0 + $0x40] sm:$0xff] (%p11163_p13), %v7992_v44  ;;  %v7994_v45 = vld [vmem:[%s10228_s30 + $0x48] sm:$0xff] (%p11163_p13) }
 0x9dc   : > { %7995 = vst [vmem:[%s10977_s0 + $0x48] sm:$0xff] (%p11163_p13), %v7994_v45 }
 0x9dd   : > { %7322 = vmatpush1.bf16.msra.mxu1 %v5394_v27  ;;  %v8000_v27 = vld [vmem:[%s10228_s30 + $0x60] sm:$0xff] (%p11163_p13) }
 0x9de   : > { %7494 = vmatpush1.bf16.msra.mxu0 %v5396_v48  ;;  %7323 = vmatprep.subr.bf16.mxu1 %v5419_v49  ;;  %v8002_v48 = vld [vmem:[%s10228_s30 + $0x68] sm:$0xff] (%p11163_p13)  ;;  %v8004_v49 = vld [vmem:[%s10228_s30 + $0x70] sm:$0xff] (%p11163_p13)  ;;  %8001 = vst [vmem:[%s10977_s0 + $0x60] sm:$0xff] (%p11163_p13), %v8000_v27 }
 0x9df   : > { %7495 = vmatprep.subr.bf16.mxu0 %v5421_v51  ;;  %8003 = vst [vmem:[%s10977_s0 + $0x68] sm:$0xff] (%p11163_p13), %v8002_v48  ;;  %8005 = vst [vmem:[%s10977_s0 + $0x70] sm:$0xff] (%p11163_p13), %v8004_v49  ;;  %v8008_v51 = vld [vmem:[%s10228_s30 + $0x80] sm:$0xff] (%p11163_p13) }
 0x9e0   : > { %8009 = vst [vmem:[%s10977_s0 + $0x80] sm:$0xff] (%p11163_p13), %v8008_v51 }
 0x9e1   : > { %7324 = vmatpush1.bf16.msra.mxu1 %v5418_v54  ;;  %v8012_v54 = vld [vmem:[%s10228_s30 + $0x90] sm:$0xff] (%p11163_p13) }
 0x9e2   : > { %7496 = vmatpush1.bf16.msra.mxu0 %v5420_v56  ;;  %7325 = vmatprep.subr.bf16.mxu1 %v5443_v57  ;;  %v8014_v56 = vld [vmem:[%s10228_s30 + $0x98] sm:$0xff] (%p11163_p13)  ;;  %8013 = vst [vmem:[%s10977_s0 + $0x90] sm:$0xff] (%p11163_p13), %v8012_v54 }
 0x9e3   : > { %7497 = vmatprep.subr.bf16.mxu0 %v5445_v24  ;;  %8015 = vst [vmem:[%s10977_s0 + $0x98] sm:$0xff] (%p11163_p13), %v8014_v56 }
 0x9e5   : > { %7326 = vmatpush1.bf16.msra.mxu1 %v5442_v58 }
 0x9e6   : > { %7498 = vmatpush1.bf16.msra.mxu0 %v5444_v59 }
 0x9e8   : > { %7328 = vmatmul.mubr.bf16.vlgmr.msra.gmra.mrb[32].mxu1 %v10029_v25 }
 0x9e9   : > { %7500 = vmatmul.mubr.bf16.vlgmr.msra.gmra.mrb[36].mxu0 %v10029_v25  ;;  %v7777_v25 = vrot.slane %v10885_v5, %v10006_v35 }
 0xabb   : > { %v7329_v0 = vpop.f32.mrb[32].mxu1 }
 0xabc   : > { %v7656_v1 = vmul.f32 %v7599_v60, %v7329_v0  ;;  %v7501_v2 = vpop.f32.mrb[36].mxu0  ;;  %v7331_v3 = vpop.f32.mrb[33].mxu1  ;;  %v8034_v0 = vld [vmem:[%s10228_s30 + $0xe8] sm:$0xff] (%p11163_p13) }
 0xabd   : > { %v7658_v6 = vmul.f32 %v7607_v61, %v7501_v2  ;;  %v7657_v26 = vmul.f32 %v7603_v62, %v7331_v3  ;;  %v7503_v31 = vpop.f32.mrb[37].mxu0  ;;  %v7333_v33 = vpop.f32.mrb[34].mxu1  ;;  %8035 = vst [vmem:[%s10977_s0 + $0x328] sm:$0xff] (%p11163_p13), %v8034_v0  ;;  %v8042_v2 = vld [vmem:[%s10228_s30 + $0x108] sm:$0xff] (%p11163_p13)  ;;  %v8044_v3 = vld [vmem:[%s10228_s30 + $0x110] sm:$0xff] (%p11163_p13) }
 0xabe   : > { %v7830_v7 = vadd.f32 %v7773_v37, %v7656_v1  ;;  %v7659_v15 = vmul.f32 %v7611_v63, %v7503_v31  ;;  %v7680_v16 = vmul.f32 %v7599_v60, %v7333_v33  ;;  %v7505_v8 = vpop.f32.mrb[38].mxu0  ;;  %v7335_v9 = vpop.f32.mrb[35].mxu1  ;;  %v8024_v60 = vld [vmem:[%s10228_s30 + $0xc0] sm:$0xff] (%p11163_p13)  ;;  %8043 = vst [vmem:[%s10977_s0 + $0x348] sm:$0xff] (%p11163_p13), %v8042_v2  ;;  %8045 = vst [vmem:[%s10977_s0 + $0x350] sm:$0xff] (%p11163_p13), %v8044_v3  ;;  %v8052_v31 = vld [vmem:[%s10228_s30 + $0x130] sm:$0xff] (%p11163_p13) }
 0xabf   : > { %v7832_v10 = vadd.f32 %v7781_v47, %v7658_v6  ;;  %v7831_v34 = vadd.f32 %v7777_v25, %v7657_v26  ;;  %v7682_v11 = vmul.f32 %v7607_v61, %v7505_v8  ;;  %v7681_v12 = vmul.f32 %v7603_v62, %v7335_v9  ;;  %v7507_v35 = vpop.f32.mrb[39].mxu0  ;;  %v8026_v61 = vld [vmem:[%s10228_s30 + $0xc8] sm:$0xff] (%p11163_p13)  ;;  %v8028_v62 = vld [vmem:[%s10228_s30 + $0xd0] sm:$0xff] (%p11163_p13)  ;;  %8025 = vst [vmem:[%s10977_s0 + $0x300] sm:$0xff] (%p11163_p13), %v8024_v60  ;;  %v8040_v1 = vld [vmem:[%s10228_s30 + $0x100] sm:$0xff] (%p11163_p13) }
 0xac0   : > { %9099 = vtanh.f32 %v7830_v7  ;;  %v7833_v17 = vadd.f32 %v7785_v4, %v7659_v15  ;;  %v7854_v13 = vadd.f32 %v7773_v37, %v7680_v16  ;;  %v7683_v38 = vmul.f32 %v7611_v63, %v7507_v35  ;;  %8027 = vst [vmem:[%s10977_s0 + $0x308] sm:$0xff] (%p11163_p13), %v8026_v61  ;;  %8029 = vst [vmem:[%s10977_s0 + $0x310] sm:$0xff] (%p11163_p13), %v8028_v62  ;;  %v8030_v37 = vld [vmem:[%s10228_s30 + $0xd8] sm:$0xff] (%p11163_p13)  ;;  %v8032_v63 = vld [vmem:[%s10228_s30 + $0xe0] sm:$0xff] (%p11163_p13) }
 0xac1   : > { %9101 = vtanh.f32 %v7832_v10  ;;  %v7856_v5 = vadd.f32 %v7781_v47, %v7682_v11  ;;  %v7855_v14 = vadd.f32 %v7777_v25, %v7681_v12  ;;  %8031 = vst [vmem:[%s10977_s0 + $0x318] sm:$0xff] (%p11163_p13), %v8030_v37  ;;  %8033 = vst [vmem:[%s10977_s0 + $0x320] sm:$0xff] (%p11163_p13), %v8032_v63  ;;  %v8036_v47 = vld [vmem:[%s10228_s30 + $0xf0] sm:$0xff] (%p11163_p13)  ;;  %v8038_v25 = vld [vmem:[%s10228_s30 + $0xf8] sm:$0xff] (%p11163_p13) }
 0xac2   : > { %9103 = vtanh.f32 %v7831_v34  ;;  %v7857_v18 = vadd.f32 %v7785_v4, %v7683_v38  ;;  %8037 = vst [vmem:[%s10977_s0 + $0x330] sm:$0xff] (%p11163_p13), %v8036_v47  ;;  %8039 = vst [vmem:[%s10977_s0 + $0x338] sm:$0xff] (%p11163_p13), %v8038_v25  ;;  %v8046_v4 = vld [vmem:[%s10228_s30 + $0x118] sm:$0xff] (%p11163_p13)  ;;  %v8048_v6 = vld [vmem:[%s10228_s30 + $0x120] sm:$0xff] (%p11163_p13) }
 0xac3   : > { %9105 = vtanh.f32 %v7833_v17  ;;  %8041 = vst [vmem:[%s10977_s0 + $0x340] sm:$0xff] (%p11163_p13), %v8040_v1  ;;  %8047 = vst [vmem:[%s10977_s0 + $0x358] sm:$0xff] (%p11163_p13), %v8046_v4  ;;  %v8050_v26 = vld [vmem:[%s10228_s30 + $0x128] sm:$0xff] (%p11163_p13)  ;;  %v8054_v33 = vld [vmem:[%s10228_s30 + $0x138] sm:$0xff] (%p11163_p13) }
 0xac4   : > { %9107 = vtanh.f32 %v7854_v13  ;;  %8049 = vst [vmem:[%s10977_s0 + $0x360] sm:$0xff] (%p11163_p13), %v8048_v6  ;;  %8051 = vst [vmem:[%s10977_s0 + $0x368] sm:$0xff] (%p11163_p13), %v8050_v26  ;;  %v8056_v7 = vld [vmem:[%s10228_s30 + $0x140] sm:$0xff] (%p11163_p13)  ;;  %v8058_v15 = vld [vmem:[%s10228_s30 + $0x148] sm:$0xff] (%p11163_p13) }
 0xac5   : > { %9109 = vtanh.f32 %v7856_v5  ;;  %8053 = vst [vmem:[%s10977_s0 + $0x370] sm:$0xff] (%p11163_p13), %v8052_v31  ;;  %8055 = vst [vmem:[%s10977_s0 + $0x378] sm:$0xff] (%p11163_p13), %v8054_v33  ;;  %v8060_v16 = vld [vmem:[%s10228_s30 + $0x150] sm:$0xff] (%p11163_p13)  ;;  %v8062_v8 = vld [vmem:[%s10228_s30 + $0x158] sm:$0xff] (%p11163_p13) }
 0xac6   : > { %9111 = vtanh.f32 %v7855_v14  ;;  %8057 = vst [vmem:[%s10977_s0 + $0x380] sm:$0xff] (%p11163_p13), %v8056_v7  ;;  %8059 = vst [vmem:[%s10977_s0 + $0x388] sm:$0xff] (%p11163_p13), %v8058_v15 }
 0xac7   : > { %9113 = vtanh.f32 %v7857_v18  ;;  %8061 = vst [vmem:[%s10977_s0 + $0x390] sm:$0xff] (%p11163_p13), %v8060_v16  ;;  %8063 = vst [vmem:[%s10977_s0 + $0x398] sm:$0xff] (%p11163_p13), %v8062_v8 }
 0xaca   : > { %v9100_v21 = vpop.eup %9099 }
 0xacb   : > { %v9102_v19 = vpop.eup %9101  ;;  %7926 = vst [vmem:[%s10228_s30 + $0xa0] sm:$0xff] %v9100_v21 }
 0xacc   : > { %v9104_v20 = vpop.eup %9103  ;;  %7928 = vst [vmem:[%s10228_s30 + $0xb0] sm:$0xff] %v9102_v19  ;;  %7960 = sbr.rel (!%p11163_p13) target bundleno = 2779 (0xadb), region = 100 }
 0xacd   : > { %v9106_v22 = vpop.eup %9105  ;;  %7927 = vst [vmem:[%s10228_s30 + $0xa8] sm:$0xff] %v9104_v20 }
 0xace   : > { %v9108_v23 = vpop.eup %9107  ;;  %7929 = vst [vmem:[%s10228_s30 + $0xb8] sm:$0xff] %v9106_v22 }
 0xacf   : > { %v9110_v28 = vpop.eup %9109  ;;  %7950 = vst [vmem:[%s10228_s30 + $0x160] sm:$0xff] %v9108_v23 }
 0xad0   : > { %v9112_v29 = vpop.eup %9111  ;;  %7952 = vst [vmem:[%s10228_s30 + $0x170] sm:$0xff] %v9110_v28 }
 0xad1   : > { %v9114_v32 = vpop.eup %9113  ;;  %7951 = vst [vmem:[%s10228_s30 + $0x168] sm:$0xff] %v9112_v29 }
 0xad2   : > { %7953 = vst [vmem:[%s10228_s30 + $0x178] sm:$0xff] %v9114_v32  ;;  %v8016_v57 = vld [vmem:[%s10228_s30 + $0xa0] sm:$0xff] (%p11163_p13) }
 0xad3   : > { %8017 = vst [vmem:[%s10977_s0 + $0xa0] sm:$0xff] %v8016_v57  ;;  %v8020_v58 = vld [vmem:[%s10228_s30 + $0xb0] sm:$0xff] }
 0xad4   : > { %v8018_v24 = vld [vmem:[%s10228_s30 + $0xa8] sm:$0xff]  ;;  %8021 = vst [vmem:[%s10977_s0 + $0xb0] sm:$0xff] %v8020_v58 }
 0xad5   : > { %v8022_v59 = vld [vmem:[%s10228_s30 + $0xb8] sm:$0xff]  ;;  %8019 = vst [vmem:[%s10977_s0 + $0xa8] sm:$0xff] %v8018_v24 }
 0xad6   : > { %8023 = vst [vmem:[%s10977_s0 + $0xb8] sm:$0xff] %v8022_v59  ;;  %v8064_v9 = vld [vmem:[%s10228_s30 + $0x160] sm:$0xff] }
 0xad7   : > { %8065 = vst [vmem:[%s10977_s0 + $0x3a0] sm:$0xff] %v8064_v9  ;;  %v8068_v34 = vld [vmem:[%s10228_s30 + $0x170] sm:$0xff] }
 0xad8   : > { %v8066_v10 = vld [vmem:[%s10228_s30 + $0x168] sm:$0xff]  ;;  %8069 = vst [vmem:[%s10977_s0 + $0x3b0] sm:$0xff] %v8068_v34 }
 0xad9   : > { %v8070_v11 = vld [vmem:[%s10228_s30 + $0x178] sm:$0xff]  ;;  %8067 = vst [vmem:[%s10977_s0 + $0x3a8] sm:$0xff] %v8066_v10 }
 0xada   : > { %8071 = vst [vmem:[%s10977_s0 + $0x3b8] sm:$0xff] %v8070_v11 }
 0xadb PF: > { %s11165_s16 = sld [smem:[#allocation22_spill]]  ;;  %s11166_s19 = sld [smem:[#allocation21_spill]] }
 0xadc   : > { %s11167_s15 = sld [smem:[#allocation23_spill]]  ;;  %s11168_s13 = smov %s9419_s14 }
 0xae1   : > { %p21_p12 = scmp.ge.s32.totalorder %s11165_s16, 6   ;;  %s11169_s14 = smov %s11166_s19 }
 0xae3   :  { %23 = sbr.rel (!%p21_p12) target bundleno = 14 (0xe), region = 168 }
 0xaea   :  { %8087 = vsyncpa [#allocation3], 1 }
 0xaeb   :  { %8089 = vsyncpa [#allocation3 + $0x1], 1 }
 0xaec   :  { %8090 = vsyncpa [#allocation5], 1 }
 0xaed   :  { %8091 = vsyncpa [#allocation8], 1 }
 0xaee   :  { %8092 = vsyncpa [#allocation11], 1 }

</bundles_post_ra>
